<compile_context>
chip_gen: v7x
topology: tpu7x:2x2x1
jax: 0.10.0
libtpu: 0.0.40
codegen_flags: <defaults>
</compile_context>

<pallas_src>
import numpy as np
import jax
import jax.numpy as jnp
from jax.experimental import pallas as pl
from jax.experimental.pallas import tpu as pltpu

LANE = 128
STRIDES = (1, 1, 2, 1, 2, 1)      # conv1..conv6 strides from the module


def _round_up(x, m):
    return (x + m - 1) // m * m


def _make_conv_kernel(tap_list, m_rows):
    """tap_list: 9 static (parity_plane, flat_row_start) pairs; m_rows: GEMM M."""
    def kernel(x_ref, w_ref, b_ref, a_ref, o_ref):
        # x_ref: (1, planes, Hq*Wq, Cin) bf16    w_ref: (9, Cin, Cout_pad) bf16
        # b_ref: (1, Cout_pad) f32               a_ref: (1, 1) f32 (SMEM)
        # o_ref: (1, m_rows, Cout_pad) bf16
        acc = None
        for k, (p, start) in enumerate(tap_list):
            xs = x_ref[0, p, pl.ds(start, m_rows), :]            # (M, Cin) bf16
            d = jnp.dot(xs, w_ref[k], preferred_element_type=jnp.float32)
            acc = d if acc is None else acc + d
        y = acc + b_ref[...]                                     # (M, Cout_pad) f32
        alpha = a_ref[0, 0]                                      # SMEM scalar read
        y = jnp.where(y >= 0.0, y, alpha * y)                    # PReLU
        o_ref[0] = y.astype(o_ref.dtype)
    return kernel


def conv3x3_prelu(x, w, b, alpha, stride):
    """x: (N,H,W,Cin); w: (3,3,Cin,Cout) HWIO; b: (Cout,); alpha: scalar."""
    N, H, W, Cin = x.shape
    Cout = w.shape[-1]
    Cout_pad = _round_up(Cout, LANE)
    Ho = (H - 1) // stride + 1
    Wo = (W - 1) // stride + 1

    xb = x.astype(jnp.bfloat16)
    xp = jnp.pad(xb, ((0, 0), (1, 1), (1, 1), (0, 0)))           # spatial pad = 1
    if stride == 1:
        Hq, Wq, planes = H + 2, W + 2, 1
        xq = xp.reshape(N, 1, Hq * Wq, Cin)
        def tap(dy, dx):
            return (0, dy * Wq + dx)
    elif stride == 2:
        Hp, Wp = H + 2, W + 2
        He, We = _round_up(Hp, 2), _round_up(Wp, 2)
        xp = jnp.pad(xp, ((0, 0), (0, He - Hp), (0, We - Wp), (0, 0)))
        Hq, Wq, planes = He // 2, We // 2, 4
        # space-to-depth parity split: plane = (y % 2) * 2 + (x % 2)
        xq = (xp.reshape(N, Hq, 2, Wq, 2, Cin)
                .transpose(0, 2, 4, 1, 3, 5)
                .reshape(N, 4, Hq * Wq, Cin))
        def tap(dy, dx):
            return ((dy % 2) * 2 + (dx % 2), (dy // 2) * Wq + (dx // 2))
    else:
        raise ValueError("only stride 1 or 2 supported")

    # GEMM M dimension: output rows laid out with the *input* row pitch Wq so
    # every tap is one contiguous slice of the flattened plane; the (Wq - Wo)
    # wrap-around junk columns per row are dropped after the call.
    Mv = (Ho - 1) * Wq + Wo
    tap_list = tuple(tap(dy, dx) for dy in range(3) for dx in range(3))

    wq = jnp.pad(w.astype(jnp.bfloat16).reshape(9, Cin, Cout),
                 ((0, 0), (0, 0), (0, Cout_pad - Cout)))
    bq = jnp.pad(b.astype(jnp.float32), (0, Cout_pad - Cout)).reshape(1, Cout_pad)
    aq = jnp.asarray(alpha, jnp.float32).reshape(1, 1)

    out = pl.pallas_call(
        _make_conv_kernel(tap_list, Mv),
        out_shape=jax.ShapeDtypeStruct((N, Mv, Cout_pad), jnp.bfloat16),
        grid_spec=pltpu.PrefetchScalarGridSpec(
            num_scalar_prefetch=0,
            grid=(N,),
            in_specs=[
                pl.BlockSpec((1, planes, Hq * Wq, Cin), lambda n: (n, 0, 0, 0)),
                pl.BlockSpec((9, Cin, Cout_pad), lambda n: (0, 0, 0)),
                pl.BlockSpec((1, Cout_pad), lambda n: (0, 0)),
                pl.BlockSpec(memory_space=pltpu.MemorySpace.SMEM),   # PReLU alpha
            ],
            out_specs=pl.BlockSpec((1, Mv, Cout_pad), lambda n: (n, 0, 0)),
        ),
        compiler_params=pltpu.CompilerParams(
            dimension_semantics=("parallel",)),
    )(xq, wq, bq, aq)

    # Drop wrap-around junk columns and padded channels. Under jit, XLA fuses
    # this with the next layer's pad / parity split (one pass over activations).
    out = jnp.pad(out, ((0, 0), (0, Ho * Wq - Mv), (0, 0)))
    out = out.reshape(N, Ho, Wq, Cout_pad)[:, :, :Wo, :Cout]
    # TODO(synk): for large images, tile output rows (halo fetch via
    # memory_space=pl.ANY + make_async_copy) so the padded image block stays
    # within the VMEM budget instead of one whole image per grid step.
    return out


def feature_extractor_forward(x_nhwc, params):
    """Mirrors FeatureExtractor.forward; returns (x1, x2, x3) in NHWC, f32."""
    h = conv3x3_prelu(x_nhwc, *params[0], STRIDES[0])
    x1 = conv3x3_prelu(h, *params[1], STRIDES[1])
    h = conv3x3_prelu(x1, *params[2], STRIDES[2])
    x2 = conv3x3_prelu(h, *params[3], STRIDES[3])
    h = conv3x3_prelu(x2, *params[4], STRIDES[4])
    x3 = conv3x3_prelu(h, *params[5], STRIDES[5])
    return (x1.astype(jnp.float32), x2.astype(jnp.float32),
            x3.astype(jnp.float32))


def _reference_forward(x_nhwc, params):
    """Pure-JAX reference with matching bf16-input / f32-accumulate numerics."""
    def layer(x, p, s):
        w, b, a = p
        y = jax.lax.conv_general_dilated(
            x.astype(jnp.bfloat16), w.astype(jnp.bfloat16), (s, s),
            ((1, 1), (1, 1)),
            dimension_numbers=('NHWC', 'HWIO', 'NHWC'),
            preferred_element_type=jnp.float32)
        y = y + b.astype(jnp.float32)
        y = jnp.where(y >= 0.0, y, a * y)
        return y.astype(jnp.bfloat16)
    h = layer(x_nhwc, params[0], STRIDES[0]); r1 = layer(h, params[1], STRIDES[1])
    h = layer(r1, params[2], STRIDES[2]);     r2 = layer(h, params[3], STRIDES[3])
    h = layer(r2, params[4], STRIDES[4]);     r3 = layer(h, params[5], STRIDES[5])
    return tuple(t.astype(jnp.float32) for t in (r1, r2, r3))


if __name__ == "__main__":
    key = jax.random.PRNGKey(0)
    N, C, H, W = 2, 3, 16, 16
    key, kx = jax.random.split(key)
    x_nchw = jax.random.normal(kx, (N, C, H, W), jnp.float32)   # PyTorch NCHW input

    # Deterministic synthetic parameters (shapes from the module __init__).
    # Conv weights built directly in HWIO; PReLU alpha = 0.25 (nn.PReLU default).
    layer_defs = [(3, 32), (32, 32), (32, 64), (64, 64), (64, 96), (96, 96)]
    params = []
    for (cin, cout) in layer_defs:
        key, kw, kb = jax.random.split(key, 3)
        wgt = jax.random.normal(kw, (3, 3, cin, cout), jnp.float32) / np.sqrt(9 * cin)
        bias = jax.random.normal(kb, (cout,), jnp.float32) * 0.1
        params.append((wgt, bias, jnp.float32(0.25)))

    x_nhwc = jnp.transpose(x_nchw, (0, 2, 3, 1))

    fwd = jax.jit(feature_extractor_forward)
    x1, x2, x3 = fwd(x_nhwc, params)
    jax.block_until_ready((x1, x2, x3))

    # Back to PyTorch's NCHW output convention.
    out_nchw = tuple(jnp.transpose(t, (0, 3, 1, 2)) for t in (x1, x2, x3))
    assert out_nchw[0].shape == (N, 32, 16, 16)
    assert out_nchw[1].shape == (N, 64, 8, 8)
    assert out_nchw[2].shape == (N, 96, 4, 4)

    # Correctness check against a pure-JAX conv reference (same bf16/f32 math).
    r1, r2, r3 = _reference_forward(x_nhwc, params)
    for got, ref in zip((x1, x2, x3), (r1, r2, r3)):
        np.testing.assert_allclose(np.asarray(got), np.asarray(ref),
                                   rtol=1e-2, atol=1e-2)

    print("KERNEL_OK")
</pallas_src>

<mosaic_0001>
module attributes {stable_mosaic.version = 11 : i64} {
  func.func @kernel(%arg0: i32, %arg1: memref<1x1x324x3xbf16, #tpu.memory_space<vmem>>, %arg2: memref<9x3x128xbf16, #tpu.memory_space<vmem>>, %arg3: memref<1x128xf32, #tpu.memory_space<vmem>>, %arg4: memref<1x1xf32, #tpu.memory_space<smem>>, %arg5: memref<1x286x128xbf16, #tpu.memory_space<vmem>>) attributes {dimension_semantics = [#tpu.dimension_semantics<parallel>], iteration_bounds = array<i64: 2>, scalar_prefetch = 0 : i64, scratch_operands = 0 : i64, tpu.core_type = #tpu.core_type<tc>, window_params = [{transform_indices = @transform_0, window_bounds = array<i64: 1, 1, 324, 3>}, {pipeline_mode = #tpu.pipeline_mode<synchronous>, transform_indices = @transform_1, window_bounds = array<i64: 9, 3, 128>}, {pipeline_mode = #tpu.pipeline_mode<synchronous>, transform_indices = @transform_2, window_bounds = array<i64: 1, 128>}, {transform_indices = @transform_3, window_bounds = array<i64: 1, 1>}, {transform_indices = @transform_4, window_bounds = array<i64: 1, 286, 128>}]} {
    %c0 = arith.constant 0 : index
    %c0_0 = arith.constant 0 : index
    %c0_1 = arith.constant 0 : index
    %c0_2 = arith.constant 0 : index
    %0 = vector.load %arg1[%c0, %c0_0, %c0_1, %c0_2] : memref<1x1x324x3xbf16, #tpu.memory_space<vmem>>, vector<1x1x286x3xbf16>
    %1 = vector.shape_cast %0 : vector<1x1x286x3xbf16> to vector<286x3xbf16>
    %c0_3 = arith.constant 0 : index
    %c0_4 = arith.constant 0 : index
    %c0_5 = arith.constant 0 : index
    %2 = vector.load %arg2[%c0_3, %c0_4, %c0_5] : memref<9x3x128xbf16, #tpu.memory_space<vmem>>, vector<1x3x128xbf16>
    %3 = vector.shape_cast %2 : vector<1x3x128xbf16> to vector<3x128xbf16>
    %cst = arith.constant dense<0.000000e+00> : vector<286x128xf32>
    %4 = tpu.matmul %1, %3, %cst {dimension_numbers = #tpu.dot_dimension_numbers<[1], [0], [0], [1], [0, 0, 1, 1], [], []>} : vector<286x3xbf16>, vector<3x128xbf16>, vector<286x128xf32> -> vector<286x128xf32>
    %c0_6 = arith.constant 0 : index
    %c0_7 = arith.constant 0 : index
    %c1 = arith.constant 1 : index
    %c0_8 = arith.constant 0 : index
    %5 = vector.load %arg1[%c0_6, %c0_7, %c1, %c0_8] : memref<1x1x324x3xbf16, #tpu.memory_space<vmem>>, vector<1x1x286x3xbf16>
    %6 = vector.shape_cast %5 : vector<1x1x286x3xbf16> to vector<286x3xbf16>
    %c1_9 = arith.constant 1 : index
    %c0_10 = arith.constant 0 : index
    %c0_11 = arith.constant 0 : index
    %7 = vector.load %arg2[%c1_9, %c0_10, %c0_11] : memref<9x3x128xbf16, #tpu.memory_space<vmem>>, vector<1x3x128xbf16>
    %8 = vector.shape_cast %7 : vector<1x3x128xbf16> to vector<3x128xbf16>
    %cst_12 = arith.constant dense<0.000000e+00> : vector<286x128xf32>
    %9 = tpu.matmul %6, %8, %cst_12 {dimension_numbers = #tpu.dot_dimension_numbers<[1], [0], [0], [1], [0, 0, 1, 1], [], []>} : vector<286x3xbf16>, vector<3x128xbf16>, vector<286x128xf32> -> vector<286x128xf32>
    %10 = arith.addf %4, %9 : vector<286x128xf32>
    %c0_13 = arith.constant 0 : index
    %c0_14 = arith.constant 0 : index
    %c2 = arith.constant 2 : index
    %c0_15 = arith.constant 0 : index
    %11 = vector.load %arg1[%c0_13, %c0_14, %c2, %c0_15] : memref<1x1x324x3xbf16, #tpu.memory_space<vmem>>, vector<1x1x286x3xbf16>
    %12 = vector.shape_cast %11 : vector<1x1x286x3xbf16> to vector<286x3xbf16>
    %c2_16 = arith.constant 2 : index
    %c0_17 = arith.constant 0 : index
    %c0_18 = arith.constant 0 : index
    %13 = vector.load %arg2[%c2_16, %c0_17, %c0_18] : memref<9x3x128xbf16, #tpu.memory_space<vmem>>, vector<1x3x128xbf16>
    %14 = vector.shape_cast %13 : vector<1x3x128xbf16> to vector<3x128xbf16>
    %cst_19 = arith.constant dense<0.000000e+00> : vector<286x128xf32>
    %15 = tpu.matmul %12, %14, %cst_19 {dimension_numbers = #tpu.dot_dimension_numbers<[1], [0], [0], [1], [0, 0, 1, 1], [], []>} : vector<286x3xbf16>, vector<3x128xbf16>, vector<286x128xf32> -> vector<286x128xf32>
    %16 = arith.addf %10, %15 : vector<286x128xf32>
    %c0_20 = arith.constant 0 : index
    %c0_21 = arith.constant 0 : index
    %c18 = arith.constant 18 : index
    %c0_22 = arith.constant 0 : index
    %17 = vector.load %arg1[%c0_20, %c0_21, %c18, %c0_22] : memref<1x1x324x3xbf16, #tpu.memory_space<vmem>>, vector<1x1x286x3xbf16>
    %18 = vector.shape_cast %17 : vector<1x1x286x3xbf16> to vector<286x3xbf16>
    %c3 = arith.constant 3 : index
    %c0_23 = arith.constant 0 : index
    %c0_24 = arith.constant 0 : index
    %19 = vector.load %arg2[%c3, %c0_23, %c0_24] : memref<9x3x128xbf16, #tpu.memory_space<vmem>>, vector<1x3x128xbf16>
    %20 = vector.shape_cast %19 : vector<1x3x128xbf16> to vector<3x128xbf16>
    %cst_25 = arith.constant dense<0.000000e+00> : vector<286x128xf32>
    %21 = tpu.matmul %18, %20, %cst_25 {dimension_numbers = #tpu.dot_dimension_numbers<[1], [0], [0], [1], [0, 0, 1, 1], [], []>} : vector<286x3xbf16>, vector<3x128xbf16>, vector<286x128xf32> -> vector<286x128xf32>
    %22 = arith.addf %16, %21 : vector<286x128xf32>
    %c0_26 = arith.constant 0 : index
    %c0_27 = arith.constant 0 : index
    %c19 = arith.constant 19 : index
    %c0_28 = arith.constant 0 : index
    %23 = vector.load %arg1[%c0_26, %c0_27, %c19, %c0_28] : memref<1x1x324x3xbf16, #tpu.memory_space<vmem>>, vector<1x1x286x3xbf16>
    %24 = vector.shape_cast %23 : vector<1x1x286x3xbf16> to vector<286x3xbf16>
    %c4 = arith.constant 4 : index
    %c0_29 = arith.constant 0 : index
    %c0_30 = arith.constant 0 : index
    %25 = vector.load %arg2[%c4, %c0_29, %c0_30] : memref<9x3x128xbf16, #tpu.memory_space<vmem>>, vector<1x3x128xbf16>
    %26 = vector.shape_cast %25 : vector<1x3x128xbf16> to vector<3x128xbf16>
    %cst_31 = arith.constant dense<0.000000e+00> : vector<286x128xf32>
    %27 = tpu.matmul %24, %26, %cst_31 {dimension_numbers = #tpu.dot_dimension_numbers<[1], [0], [0], [1], [0, 0, 1, 1], [], []>} : vector<286x3xbf16>, vector<3x128xbf16>, vector<286x128xf32> -> vector<286x128xf32>
    %28 = arith.addf %22, %27 : vector<286x128xf32>
    %c0_32 = arith.constant 0 : index
    %c0_33 = arith.constant 0 : index
    %c20 = arith.constant 20 : index
    %c0_34 = arith.constant 0 : index
    %29 = vector.load %arg1[%c0_32, %c0_33, %c20, %c0_34] : memref<1x1x324x3xbf16, #tpu.memory_space<vmem>>, vector<1x1x286x3xbf16>
    %30 = vector.shape_cast %29 : vector<1x1x286x3xbf16> to vector<286x3xbf16>
    %c5 = arith.constant 5 : index
    %c0_35 = arith.constant 0 : index
    %c0_36 = arith.constant 0 : index
    %31 = vector.load %arg2[%c5, %c0_35, %c0_36] : memref<9x3x128xbf16, #tpu.memory_space<vmem>>, vector<1x3x128xbf16>
    %32 = vector.shape_cast %31 : vector<1x3x128xbf16> to vector<3x128xbf16>
    %cst_37 = arith.constant dense<0.000000e+00> : vector<286x128xf32>
    %33 = tpu.matmul %30, %32, %cst_37 {dimension_numbers = #tpu.dot_dimension_numbers<[1], [0], [0], [1], [0, 0, 1, 1], [], []>} : vector<286x3xbf16>, vector<3x128xbf16>, vector<286x128xf32> -> vector<286x128xf32>
    %34 = arith.addf %28, %33 : vector<286x128xf32>
    %c0_38 = arith.constant 0 : index
    %c0_39 = arith.constant 0 : index
    %c36 = arith.constant 36 : index
    %c0_40 = arith.constant 0 : index
    %35 = vector.load %arg1[%c0_38, %c0_39, %c36, %c0_40] : memref<1x1x324x3xbf16, #tpu.memory_space<vmem>>, vector<1x1x286x3xbf16>
    %36 = vector.shape_cast %35 : vector<1x1x286x3xbf16> to vector<286x3xbf16>
    %c6 = arith.constant 6 : index
    %c0_41 = arith.constant 0 : index
    %c0_42 = arith.constant 0 : index
    %37 = vector.load %arg2[%c6, %c0_41, %c0_42] : memref<9x3x128xbf16, #tpu.memory_space<vmem>>, vector<1x3x128xbf16>
    %38 = vector.shape_cast %37 : vector<1x3x128xbf16> to vector<3x128xbf16>
    %cst_43 = arith.constant dense<0.000000e+00> : vector<286x128xf32>
    %39 = tpu.matmul %36, %38, %cst_43 {dimension_numbers = #tpu.dot_dimension_numbers<[1], [0], [0], [1], [0, 0, 1, 1], [], []>} : vector<286x3xbf16>, vector<3x128xbf16>, vector<286x128xf32> -> vector<286x128xf32>
    %40 = arith.addf %34, %39 : vector<286x128xf32>
    %c0_44 = arith.constant 0 : index
    %c0_45 = arith.constant 0 : index
    %c37 = arith.constant 37 : index
    %c0_46 = arith.constant 0 : index
    %41 = vector.load %arg1[%c0_44, %c0_45, %c37, %c0_46] : memref<1x1x324x3xbf16, #tpu.memory_space<vmem>>, vector<1x1x286x3xbf16>
    %42 = vector.shape_cast %41 : vector<1x1x286x3xbf16> to vector<286x3xbf16>
    %c7 = arith.constant 7 : index
    %c0_47 = arith.constant 0 : index
    %c0_48 = arith.constant 0 : index
    %43 = vector.load %arg2[%c7, %c0_47, %c0_48] : memref<9x3x128xbf16, #tpu.memory_space<vmem>>, vector<1x3x128xbf16>
    %44 = vector.shape_cast %43 : vector<1x3x128xbf16> to vector<3x128xbf16>
    %cst_49 = arith.constant dense<0.000000e+00> : vector<286x128xf32>
    %45 = tpu.matmul %42, %44, %cst_49 {dimension_numbers = #tpu.dot_dimension_numbers<[1], [0], [0], [1], [0, 0, 1, 1], [], []>} : vector<286x3xbf16>, vector<3x128xbf16>, vector<286x128xf32> -> vector<286x128xf32>
    %46 = arith.addf %40, %45 : vector<286x128xf32>
    %c0_50 = arith.constant 0 : index
    %c0_51 = arith.constant 0 : index
    %c38 = arith.constant 38 : index
    %c0_52 = arith.constant 0 : index
    %47 = vector.load %arg1[%c0_50, %c0_51, %c38, %c0_52] : memref<1x1x324x3xbf16, #tpu.memory_space<vmem>>, vector<1x1x286x3xbf16>
    %48 = vector.shape_cast %47 : vector<1x1x286x3xbf16> to vector<286x3xbf16>
    %c8 = arith.constant 8 : index
    %c0_53 = arith.constant 0 : index
    %c0_54 = arith.constant 0 : index
    %49 = vector.load %arg2[%c8, %c0_53, %c0_54] : memref<9x3x128xbf16, #tpu.memory_space<vmem>>, vector<1x3x128xbf16>
    %50 = vector.shape_cast %49 : vector<1x3x128xbf16> to vector<3x128xbf16>
    %cst_55 = arith.constant dense<0.000000e+00> : vector<286x128xf32>
    %51 = tpu.matmul %48, %50, %cst_55 {dimension_numbers = #tpu.dot_dimension_numbers<[1], [0], [0], [1], [0, 0, 1, 1], [], []>} : vector<286x3xbf16>, vector<3x128xbf16>, vector<286x128xf32> -> vector<286x128xf32>
    %52 = arith.addf %46, %51 : vector<286x128xf32>
    %c0_56 = arith.constant 0 : index
    %c0_57 = arith.constant 0 : index
    %53 = vector.load %arg3[%c0_56, %c0_57] : memref<1x128xf32, #tpu.memory_space<vmem>>, vector<1x128xf32>
    %54 = vector.broadcast %53 : vector<1x128xf32> to vector<286x128xf32>
    %55 = arith.addf %52, %54 : vector<286x128xf32>
    %c0_58 = arith.constant 0 : index
    %c0_59 = arith.constant 0 : index
    %56 = memref.load %arg4[%c0_58, %c0_59] : memref<1x1xf32, #tpu.memory_space<smem>>
    %cst_60 = arith.constant 0.000000e+00 : f32
    %57 = vector.broadcast %cst_60 : f32 to vector<286x128xf32>
    %58 = arith.cmpf oge, %55, %57 : vector<286x128xf32>
    %59 = vector.broadcast %56 : f32 to vector<286x128xf32>
    %60 = arith.mulf %59, %55 : vector<286x128xf32>
    %61 = arith.select %58, %55, %60 : vector<286x128xi1>, vector<286x128xf32>
    %62 = arith.truncf %61 : vector<286x128xf32> to vector<286x128xbf16>
    %c0_61 = arith.constant 0 : index
    %c0_62 = arith.constant 0 : index
    %c0_63 = arith.constant 0 : index
    %63 = vector.load %arg5[%c0_61, %c0_62, %c0_63] : memref<1x286x128xbf16, #tpu.memory_space<vmem>>, vector<1x286x128xbf16>
    %64 = vector.shape_cast %63 : vector<1x286x128xbf16> to vector<286x128xbf16>
    %65 = vector.shape_cast %62 : vector<286x128xbf16> to vector<1x286x128xbf16>
    tpu.vector_store %arg5[%c0_61, %c0_62, %c0_63], %65 {strides = array<i32>} : memref<1x286x128xbf16, #tpu.memory_space<vmem>>, vector<1x286x128xbf16>,
    return
  }
  func.func @transform_0(%arg0: i32) -> (i32, i32, i32, i32) {
    %c0_i32 = arith.constant 0 : i32
    %c0_i32_0 = arith.constant 0 : i32
    %c0_i32_1 = arith.constant 0 : i32
    %c0_i32_2 = arith.constant 0 : i32
    return %arg0, %c0_i32, %c0_i32_0, %c0_i32_1 : i32, i32, i32, i32
  }
  func.func @transform_1(%arg0: i32) -> (i32, i32, i32) {
    %c0_i32 = arith.constant 0 : i32
    %c0_i32_0 = arith.constant 0 : i32
    %c0_i32_1 = arith.constant 0 : i32
    %c0_i32_2 = arith.constant 0 : i32
    return %c0_i32, %c0_i32_0, %c0_i32_1 : i32, i32, i32
  }
  func.func @transform_2(%arg0: i32) -> (i32, i32) {
    %c0_i32 = arith.constant 0 : i32
    %c0_i32_0 = arith.constant 0 : i32
    %c0_i32_1 = arith.constant 0 : i32
    return %c0_i32, %c0_i32_0 : i32, i32
  }
  func.func @transform_3(%arg0: i32) -> (i32, i32) {
    %c0_i32 = arith.constant 0 : i32
    %c0_i32_0 = arith.constant 0 : i32
    %c0_i32_1 = arith.constant 0 : i32
    return %c0_i32, %c0_i32_0 : i32, i32
  }
  func.func @transform_4(%arg0: i32) -> (i32, i32, i32) {
    %c0_i32 = arith.constant 0 : i32
    %c0_i32_0 = arith.constant 0 : i32
    %c0_i32_1 = arith.constant 0 : i32
    return %arg0, %c0_i32, %c0_i32_0 : i32, i32, i32
  }
}

module attributes {stable_mosaic.version = 11 : i64} {
  func.func @kernel(%arg0: i32, %arg1: memref<1x1x324x32xbf16, #tpu.memory_space<vmem>>, %arg2: memref<9x32x128xbf16, #tpu.memory_space<vmem>>, %arg3: memref<1x128xf32, #tpu.memory_space<vmem>>, %arg4: memref<1x1xf32, #tpu.memory_space<smem>>, %arg5: memref<1x286x128xbf16, #tpu.memory_space<vmem>>) attributes {dimension_semantics = [#tpu.dimension_semantics<parallel>], iteration_bounds = array<i64: 2>, scalar_prefetch = 0 : i64, scratch_operands = 0 : i64, tpu.core_type = #tpu.core_type<tc>, window_params = [{transform_indices = @transform_0, window_bounds = array<i64: 1, 1, 324, 32>}, {pipeline_mode = #tpu.pipeline_mode<synchronous>, transform_indices = @transform_1, window_bounds = array<i64: 9, 32, 128>}, {pipeline_mode = #tpu.pipeline_mode<synchronous>, transform_indices = @transform_2, window_bounds = array<i64: 1, 128>}, {transform_indices = @transform_3, window_bounds = array<i64: 1, 1>}, {transform_indices = @transform_4, window_bounds = array<i64: 1, 286, 128>}]} {
    %c0 = arith.constant 0 : index
    %c0_0 = arith.constant 0 : index
    %c0_1 = arith.constant 0 : index
    %c0_2 = arith.constant 0 : index
    %0 = vector.load %arg1[%c0, %c0_0, %c0_1, %c0_2] : memref<1x1x324x32xbf16, #tpu.memory_space<vmem>>, vector<1x1x286x32xbf16>
    %1 = vector.shape_cast %0 : vector<1x1x286x32xbf16> to vector<286x32xbf16>
    %c0_3 = arith.constant 0 : index
    %c0_4 = arith.constant 0 : index
    %c0_5 = arith.constant 0 : index
    %2 = vector.load %arg2[%c0_3, %c0_4, %c0_5] : memref<9x32x128xbf16, #tpu.memory_space<vmem>>, vector<1x32x128xbf16>
    %3 = vector.shape_cast %2 : vector<1x32x128xbf16> to vector<32x128xbf16>
    %cst = arith.constant dense<0.000000e+00> : vector<286x128xf32>
    %4 = tpu.matmul %1, %3, %cst {dimension_numbers = #tpu.dot_dimension_numbers<[1], [0], [0], [1], [0, 0, 1, 1], [], []>} : vector<286x32xbf16>, vector<32x128xbf16>, vector<286x128xf32> -> vector<286x128xf32>
    %c0_6 = arith.constant 0 : index
    %c0_7 = arith.constant 0 : index
    %c1 = arith.constant 1 : index
    %c0_8 = arith.constant 0 : index
    %5 = vector.load %arg1[%c0_6, %c0_7, %c1, %c0_8] : memref<1x1x324x32xbf16, #tpu.memory_space<vmem>>, vector<1x1x286x32xbf16>
    %6 = vector.shape_cast %5 : vector<1x1x286x32xbf16> to vector<286x32xbf16>
    %c1_9 = arith.constant 1 : index
    %c0_10 = arith.constant 0 : index
    %c0_11 = arith.constant 0 : index
    %7 = vector.load %arg2[%c1_9, %c0_10, %c0_11] : memref<9x32x128xbf16, #tpu.memory_space<vmem>>, vector<1x32x128xbf16>
    %8 = vector.shape_cast %7 : vector<1x32x128xbf16> to vector<32x128xbf16>
    %cst_12 = arith.constant dense<0.000000e+00> : vector<286x128xf32>
    %9 = tpu.matmul %6, %8, %cst_12 {dimension_numbers = #tpu.dot_dimension_numbers<[1], [0], [0], [1], [0, 0, 1, 1], [], []>} : vector<286x32xbf16>, vector<32x128xbf16>, vector<286x128xf32> -> vector<286x128xf32>
    %10 = arith.addf %4, %9 : vector<286x128xf32>
    %c0_13 = arith.constant 0 : index
    %c0_14 = arith.constant 0 : index
    %c2 = arith.constant 2 : index
    %c0_15 = arith.constant 0 : index
    %11 = vector.load %arg1[%c0_13, %c0_14, %c2, %c0_15] : memref<1x1x324x32xbf16, #tpu.memory_space<vmem>>, vector<1x1x286x32xbf16>
    %12 = vector.shape_cast %11 : vector<1x1x286x32xbf16> to vector<286x32xbf16>
    %c2_16 = arith.constant 2 : index
    %c0_17 = arith.constant 0 : index
    %c0_18 = arith.constant 0 : index
    %13 = vector.load %arg2[%c2_16, %c0_17, %c0_18] : memref<9x32x128xbf16, #tpu.memory_space<vmem>>, vector<1x32x128xbf16>
    %14 = vector.shape_cast %13 : vector<1x32x128xbf16> to vector<32x128xbf16>
    %cst_19 = arith.constant dense<0.000000e+00> : vector<286x128xf32>
    %15 = tpu.matmul %12, %14, %cst_19 {dimension_numbers = #tpu.dot_dimension_numbers<[1], [0], [0], [1], [0, 0, 1, 1], [], []>} : vector<286x32xbf16>, vector<32x128xbf16>, vector<286x128xf32> -> vector<286x128xf32>
    %16 = arith.addf %10, %15 : vector<286x128xf32>
    %c0_20 = arith.constant 0 : index
    %c0_21 = arith.constant 0 : index
    %c18 = arith.constant 18 : index
    %c0_22 = arith.constant 0 : index
    %17 = vector.load %arg1[%c0_20, %c0_21, %c18, %c0_22] : memref<1x1x324x32xbf16, #tpu.memory_space<vmem>>, vector<1x1x286x32xbf16>
    %18 = vector.shape_cast %17 : vector<1x1x286x32xbf16> to vector<286x32xbf16>
    %c3 = arith.constant 3 : index
    %c0_23 = arith.constant 0 : index
    %c0_24 = arith.constant 0 : index
    %19 = vector.load %arg2[%c3, %c0_23, %c0_24] : memref<9x32x128xbf16, #tpu.memory_space<vmem>>, vector<1x32x128xbf16>
    %20 = vector.shape_cast %19 : vector<1x32x128xbf16> to vector<32x128xbf16>
    %cst_25 = arith.constant dense<0.000000e+00> : vector<286x128xf32>
    %21 = tpu.matmul %18, %20, %cst_25 {dimension_numbers = #tpu.dot_dimension_numbers<[1], [0], [0], [1], [0, 0, 1, 1], [], []>} : vector<286x32xbf16>, vector<32x128xbf16>, vector<286x128xf32> -> vector<286x128xf32>
    %22 = arith.addf %16, %21 : vector<286x128xf32>
    %c0_26 = arith.constant 0 : index
    %c0_27 = arith.constant 0 : index
    %c19 = arith.constant 19 : index
    %c0_28 = arith.constant 0 : index
    %23 = vector.load %arg1[%c0_26, %c0_27, %c19, %c0_28] : memref<1x1x324x32xbf16, #tpu.memory_space<vmem>>, vector<1x1x286x32xbf16>
    %24 = vector.shape_cast %23 : vector<1x1x286x32xbf16> to vector<286x32xbf16>
    %c4 = arith.constant 4 : index
    %c0_29 = arith.constant 0 : index
    %c0_30 = arith.constant 0 : index
    %25 = vector.load %arg2[%c4, %c0_29, %c0_30] : memref<9x32x128xbf16, #tpu.memory_space<vmem>>, vector<1x32x128xbf16>
    %26 = vector.shape_cast %25 : vector<1x32x128xbf16> to vector<32x128xbf16>
    %cst_31 = arith.constant dense<0.000000e+00> : vector<286x128xf32>
    %27 = tpu.matmul %24, %26, %cst_31 {dimension_numbers = #tpu.dot_dimension_numbers<[1], [0], [0], [1], [0, 0, 1, 1], [], []>} : vector<286x32xbf16>, vector<32x128xbf16>, vector<286x128xf32> -> vector<286x128xf32>
    %28 = arith.addf %22, %27 : vector<286x128xf32>
    %c0_32 = arith.constant 0 : index
    %c0_33 = arith.constant 0 : index
    %c20 = arith.constant 20 : index
    %c0_34 = arith.constant 0 : index
    %29 = vector.load %arg1[%c0_32, %c0_33, %c20, %c0_34] : memref<1x1x324x32xbf16, #tpu.memory_space<vmem>>, vector<1x1x286x32xbf16>
    %30 = vector.shape_cast %29 : vector<1x1x286x32xbf16> to vector<286x32xbf16>
    %c5 = arith.constant 5 : index
    %c0_35 = arith.constant 0 : index
    %c0_36 = arith.constant 0 : index
    %31 = vector.load %arg2[%c5, %c0_35, %c0_36] : memref<9x32x128xbf16, #tpu.memory_space<vmem>>, vector<1x32x128xbf16>
    %32 = vector.shape_cast %31 : vector<1x32x128xbf16> to vector<32x128xbf16>
    %cst_37 = arith.constant dense<0.000000e+00> : vector<286x128xf32>
    %33 = tpu.matmul %30, %32, %cst_37 {dimension_numbers = #tpu.dot_dimension_numbers<[1], [0], [0], [1], [0, 0, 1, 1], [], []>} : vector<286x32xbf16>, vector<32x128xbf16>, vector<286x128xf32> -> vector<286x128xf32>
    %34 = arith.addf %28, %33 : vector<286x128xf32>
    %c0_38 = arith.constant 0 : index
    %c0_39 = arith.constant 0 : index
    %c36 = arith.constant 36 : index
    %c0_40 = arith.constant 0 : index
    %35 = vector.load %arg1[%c0_38, %c0_39, %c36, %c0_40] : memref<1x1x324x32xbf16, #tpu.memory_space<vmem>>, vector<1x1x286x32xbf16>
    %36 = vector.shape_cast %35 : vector<1x1x286x32xbf16> to vector<286x32xbf16>
    %c6 = arith.constant 6 : index
    %c0_41 = arith.constant 0 : index
    %c0_42 = arith.constant 0 : index
    %37 = vector.load %arg2[%c6, %c0_41, %c0_42] : memref<9x32x128xbf16, #tpu.memory_space<vmem>>, vector<1x32x128xbf16>
    %38 = vector.shape_cast %37 : vector<1x32x128xbf16> to vector<32x128xbf16>
    %cst_43 = arith.constant dense<0.000000e+00> : vector<286x128xf32>
    %39 = tpu.matmul %36, %38, %cst_43 {dimension_numbers = #tpu.dot_dimension_numbers<[1], [0], [0], [1], [0, 0, 1, 1], [], []>} : vector<286x32xbf16>, vector<32x128xbf16>, vector<286x128xf32> -> vector<286x128xf32>
    %40 = arith.addf %34, %39 : vector<286x128xf32>
    %c0_44 = arith.constant 0 : index
    %c0_45 = arith.constant 0 : index
    %c37 = arith.constant 37 : index
    %c0_46 = arith.constant 0 : index
    %41 = vector.load %arg1[%c0_44, %c0_45, %c37, %c0_46] : memref<1x1x324x32xbf16, #tpu.memory_space<vmem>>, vector<1x1x286x32xbf16>
    %42 = vector.shape_cast %41 : vector<1x1x286x32xbf16> to vector<286x32xbf16>
    %c7 = arith.constant 7 : index
    %c0_47 = arith.constant 0 : index
    %c0_48 = arith.constant 0 : index
    %43 = vector.load %arg2[%c7, %c0_47, %c0_48] : memref<9x32x128xbf16, #tpu.memory_space<vmem>>, vector<1x32x128xbf16>
    %44 = vector.shape_cast %43 : vector<1x32x128xbf16> to vector<32x128xbf16>
    %cst_49 = arith.constant dense<0.000000e+00> : vector<286x128xf32>
    %45 = tpu.matmul %42, %44, %cst_49 {dimension_numbers = #tpu.dot_dimension_numbers<[1], [0], [0], [1], [0, 0, 1, 1], [], []>} : vector<286x32xbf16>, vector<32x128xbf16>, vector<286x128xf32> -> vector<286x128xf32>
    %46 = arith.addf %40, %45 : vector<286x128xf32>
    %c0_50 = arith.constant 0 : index
    %c0_51 = arith.constant 0 : index
    %c38 = arith.constant 38 : index
    %c0_52 = arith.constant 0 : index
    %47 = vector.load %arg1[%c0_50, %c0_51, %c38, %c0_52] : memref<1x1x324x32xbf16, #tpu.memory_space<vmem>>, vector<1x1x286x32xbf16>
    %48 = vector.shape_cast %47 : vector<1x1x286x32xbf16> to vector<286x32xbf16>
    %c8 = arith.constant 8 : index
    %c0_53 = arith.constant 0 : index
    %c0_54 = arith.constant 0 : index
    %49 = vector.load %arg2[%c8, %c0_53, %c0_54] : memref<9x32x128xbf16, #tpu.memory_space<vmem>>, vector<1x32x128xbf16>
    %50 = vector.shape_cast %49 : vector<1x32x128xbf16> to vector<32x128xbf16>
    %cst_55 = arith.constant dense<0.000000e+00> : vector<286x128xf32>
    %51 = tpu.matmul %48, %50, %cst_55 {dimension_numbers = #tpu.dot_dimension_numbers<[1], [0], [0], [1], [0, 0, 1, 1], [], []>} : vector<286x32xbf16>, vector<32x128xbf16>, vector<286x128xf32> -> vector<286x128xf32>
    %52 = arith.addf %46, %51 : vector<286x128xf32>
    %c0_56 = arith.constant 0 : index
    %c0_57 = arith.constant 0 : index
    %53 = vector.load %arg3[%c0_56, %c0_57] : memref<1x128xf32, #tpu.memory_space<vmem>>, vector<1x128xf32>
    %54 = vector.broadcast %53 : vector<1x128xf32> to vector<286x128xf32>
    %55 = arith.addf %52, %54 : vector<286x128xf32>
    %c0_58 = arith.constant 0 : index
    %c0_59 = arith.constant 0 : index
    %56 = memref.load %arg4[%c0_58, %c0_59] : memref<1x1xf32, #tpu.memory_space<smem>>
    %cst_60 = arith.constant 0.000000e+00 : f32
    %57 = vector.broadcast %cst_60 : f32 to vector<286x128xf32>
    %58 = arith.cmpf oge, %55, %57 : vector<286x128xf32>
    %59 = vector.broadcast %56 : f32 to vector<286x128xf32>
    %60 = arith.mulf %59, %55 : vector<286x128xf32>
    %61 = arith.select %58, %55, %60 : vector<286x128xi1>, vector<286x128xf32>
    %62 = arith.truncf %61 : vector<286x128xf32> to vector<286x128xbf16>
    %c0_61 = arith.constant 0 : index
    %c0_62 = arith.constant 0 : index
    %c0_63 = arith.constant 0 : index
    %63 = vector.load %arg5[%c0_61, %c0_62, %c0_63] : memref<1x286x128xbf16, #tpu.memory_space<vmem>>, vector<1x286x128xbf16>
    %64 = vector.shape_cast %63 : vector<1x286x128xbf16> to vector<286x128xbf16>
    %65 = vector.shape_cast %62 : vector<286x128xbf16> to vector<1x286x128xbf16>
    tpu.vector_store %arg5[%c0_61, %c0_62, %c0_63], %65 {strides = array<i32>} : memref<1x286x128xbf16, #tpu.memory_space<vmem>>, vector<1x286x128xbf16>,
    return
  }
  func.func @transform_0(%arg0: i32) -> (i32, i32, i32, i32) {
    %c0_i32 = arith.constant 0 : i32
    %c0_i32_0 = arith.constant 0 : i32
    %c0_i32_1 = arith.constant 0 : i32
    %c0_i32_2 = arith.constant 0 : i32
    return %arg0, %c0_i32, %c0_i32_0, %c0_i32_1 : i32, i32, i32, i32
  }
  func.func @transform_1(%arg0: i32) -> (i32, i32, i32) {
    %c0_i32 = arith.constant 0 : i32
    %c0_i32_0 = arith.constant 0 : i32
    %c0_i32_1 = arith.constant 0 : i32
    %c0_i32_2 = arith.constant 0 : i32
    return %c0_i32, %c0_i32_0, %c0_i32_1 : i32, i32, i32
  }
  func.func @transform_2(%arg0: i32) -> (i32, i32) {
    %c0_i32 = arith.constant 0 : i32
    %c0_i32_0 = arith.constant 0 : i32
    %c0_i32_1 = arith.constant 0 : i32
    return %c0_i32, %c0_i32_0 : i32, i32
  }
  func.func @transform_3(%arg0: i32) -> (i32, i32) {
    %c0_i32 = arith.constant 0 : i32
    %c0_i32_0 = arith.constant 0 : i32
    %c0_i32_1 = arith.constant 0 : i32
    return %c0_i32, %c0_i32_0 : i32, i32
  }
  func.func @transform_4(%arg0: i32) -> (i32, i32, i32) {
    %c0_i32 = arith.constant 0 : i32
    %c0_i32_0 = arith.constant 0 : i32
    %c0_i32_1 = arith.constant 0 : i32
    return %arg0, %c0_i32, %c0_i32_0 : i32, i32, i32
  }
}

module attributes {stable_mosaic.version = 11 : i64} {
  func.func @kernel(%arg0: i32, %arg1: memref<1x4x81x32xbf16, #tpu.memory_space<vmem>>, %arg2: memref<9x32x128xbf16, #tpu.memory_space<vmem>>, %arg3: memref<1x128xf32, #tpu.memory_space<vmem>>, %arg4: memref<1x1xf32, #tpu.memory_space<smem>>, %arg5: memref<1x71x128xbf16, #tpu.memory_space<vmem>>) attributes {dimension_semantics = [#tpu.dimension_semantics<parallel>], iteration_bounds = array<i64: 2>, scalar_prefetch = 0 : i64, scratch_operands = 0 : i64, tpu.core_type = #tpu.core_type<tc>, window_params = [{transform_indices = @transform_0, window_bounds = array<i64: 1, 4, 81, 32>}, {pipeline_mode = #tpu.pipeline_mode<synchronous>, transform_indices = @transform_1, window_bounds = array<i64: 9, 32, 128>}, {pipeline_mode = #tpu.pipeline_mode<synchronous>, transform_indices = @transform_2, window_bounds = array<i64: 1, 128>}, {transform_indices = @transform_3, window_bounds = array<i64: 1, 1>}, {transform_indices = @transform_4, window_bounds = array<i64: 1, 71, 128>}]} {
    %c0 = arith.constant 0 : index
    %c0_0 = arith.constant 0 : index
    %c0_1 = arith.constant 0 : index
    %c0_2 = arith.constant 0 : index
    %0 = vector.load %arg1[%c0, %c0_0, %c0_1, %c0_2] : memref<1x4x81x32xbf16, #tpu.memory_space<vmem>>, vector<1x1x71x32xbf16>
    %1 = vector.shape_cast %0 : vector<1x1x71x32xbf16> to vector<71x32xbf16>
    %c0_3 = arith.constant 0 : index
    %c0_4 = arith.constant 0 : index
    %c0_5 = arith.constant 0 : index
    %2 = vector.load %arg2[%c0_3, %c0_4, %c0_5] : memref<9x32x128xbf16, #tpu.memory_space<vmem>>, vector<1x32x128xbf16>
    %3 = vector.shape_cast %2 : vector<1x32x128xbf16> to vector<32x128xbf16>
    %cst = arith.constant dense<0.000000e+00> : vector<71x128xf32>
    %4 = tpu.matmul %1, %3, %cst {dimension_numbers = #tpu.dot_dimension_numbers<[1], [0], [0], [1], [0, 0, 1, 1], [], []>} : vector<71x32xbf16>, vector<32x128xbf16>, vector<71x128xf32> -> vector<71x128xf32>
    %c0_6 = arith.constant 0 : index
    %c1 = arith.constant 1 : index
    %c0_7 = arith.constant 0 : index
    %c0_8 = arith.constant 0 : index
    %5 = vector.load %arg1[%c0_6, %c1, %c0_7, %c0_8] : memref<1x4x81x32xbf16, #tpu.memory_space<vmem>>, vector<1x1x71x32xbf16>
    %6 = vector.shape_cast %5 : vector<1x1x71x32xbf16> to vector<71x32xbf16>
    %c1_9 = arith.constant 1 : index
    %c0_10 = arith.constant 0 : index
    %c0_11 = arith.constant 0 : index
    %7 = vector.load %arg2[%c1_9, %c0_10, %c0_11] : memref<9x32x128xbf16, #tpu.memory_space<vmem>>, vector<1x32x128xbf16>
    %8 = vector.shape_cast %7 : vector<1x32x128xbf16> to vector<32x128xbf16>
    %cst_12 = arith.constant dense<0.000000e+00> : vector<71x128xf32>
    %9 = tpu.matmul %6, %8, %cst_12 {dimension_numbers = #tpu.dot_dimension_numbers<[1], [0], [0], [1], [0, 0, 1, 1], [], []>} : vector<71x32xbf16>, vector<32x128xbf16>, vector<71x128xf32> -> vector<71x128xf32>
    %10 = arith.addf %4, %9 : vector<71x128xf32>
    %c0_13 = arith.constant 0 : index
    %c0_14 = arith.constant 0 : index
    %c1_15 = arith.constant 1 : index
    %c0_16 = arith.constant 0 : index
    %11 = vector.load %arg1[%c0_13, %c0_14, %c1_15, %c0_16] : memref<1x4x81x32xbf16, #tpu.memory_space<vmem>>, vector<1x1x71x32xbf16>
    %12 = vector.shape_cast %11 : vector<1x1x71x32xbf16> to vector<71x32xbf16>
    %c2 = arith.constant 2 : index
    %c0_17 = arith.constant 0 : index
    %c0_18 = arith.constant 0 : index
    %13 = vector.load %arg2[%c2, %c0_17, %c0_18] : memref<9x32x128xbf16, #tpu.memory_space<vmem>>, vector<1x32x128xbf16>
    %14 = vector.shape_cast %13 : vector<1x32x128xbf16> to vector<32x128xbf16>
    %cst_19 = arith.constant dense<0.000000e+00> : vector<71x128xf32>
    %15 = tpu.matmul %12, %14, %cst_19 {dimension_numbers = #tpu.dot_dimension_numbers<[1], [0], [0], [1], [0, 0, 1, 1], [], []>} : vector<71x32xbf16>, vector<32x128xbf16>, vector<71x128xf32> -> vector<71x128xf32>
    %16 = arith.addf %10, %15 : vector<71x128xf32>
    %c0_20 = arith.constant 0 : index
    %c2_21 = arith.constant 2 : index
    %c0_22 = arith.constant 0 : index
    %c0_23 = arith.constant 0 : index
    %17 = vector.load %arg1[%c0_20, %c2_21, %c0_22, %c0_23] : memref<1x4x81x32xbf16, #tpu.memory_space<vmem>>, vector<1x1x71x32xbf16>
    %18 = vector.shape_cast %17 : vector<1x1x71x32xbf16> to vector<71x32xbf16>
    %c3 = arith.constant 3 : index
    %c0_24 = arith.constant 0 : index
    %c0_25 = arith.constant 0 : index
    %19 = vector.load %arg2[%c3, %c0_24, %c0_25] : memref<9x32x128xbf16, #tpu.memory_space<vmem>>, vector<1x32x128xbf16>
    %20 = vector.shape_cast %19 : vector<1x32x128xbf16> to vector<32x128xbf16>
    %cst_26 = arith.constant dense<0.000000e+00> : vector<71x128xf32>
    %21 = tpu.matmul %18, %20, %cst_26 {dimension_numbers = #tpu.dot_dimension_numbers<[1], [0], [0], [1], [0, 0, 1, 1], [], []>} : vector<71x32xbf16>, vector<32x128xbf16>, vector<71x128xf32> -> vector<71x128xf32>
    %22 = arith.addf %16, %21 : vector<71x128xf32>
    %c0_27 = arith.constant 0 : index
    %c3_28 = arith.constant 3 : index
    %c0_29 = arith.constant 0 : index
    %c0_30 = arith.constant 0 : index
    %23 = vector.load %arg1[%c0_27, %c3_28, %c0_29, %c0_30] : memref<1x4x81x32xbf16, #tpu.memory_space<vmem>>, vector<1x1x71x32xbf16>
    %24 = vector.shape_cast %23 : vector<1x1x71x32xbf16> to vector<71x32xbf16>
    %c4 = arith.constant 4 : index
    %c0_31 = arith.constant 0 : index
    %c0_32 = arith.constant 0 : index
    %25 = vector.load %arg2[%c4, %c0_31, %c0_32] : memref<9x32x128xbf16, #tpu.memory_space<vmem>>, vector<1x32x128xbf16>
    %26 = vector.shape_cast %25 : vector<1x32x128xbf16> to vector<32x128xbf16>
    %cst_33 = arith.constant dense<0.000000e+00> : vector<71x128xf32>
    %27 = tpu.matmul %24, %26, %cst_33 {dimension_numbers = #tpu.dot_dimension_numbers<[1], [0], [0], [1], [0, 0, 1, 1], [], []>} : vector<71x32xbf16>, vector<32x128xbf16>, vector<71x128xf32> -> vector<71x128xf32>
    %28 = arith.addf %22, %27 : vector<71x128xf32>
    %c0_34 = arith.constant 0 : index
    %c2_35 = arith.constant 2 : index
    %c1_36 = arith.constant 1 : index
    %c0_37 = arith.constant 0 : index
    %29 = vector.load %arg1[%c0_34, %c2_35, %c1_36, %c0_37] : memref<1x4x81x32xbf16, #tpu.memory_space<vmem>>, vector<1x1x71x32xbf16>
    %30 = vector.shape_cast %29 : vector<1x1x71x32xbf16> to vector<71x32xbf16>
    %c5 = arith.constant 5 : index
    %c0_38 = arith.constant 0 : index
    %c0_39 = arith.constant 0 : index
    %31 = vector.load %arg2[%c5, %c0_38, %c0_39] : memref<9x32x128xbf16, #tpu.memory_space<vmem>>, vector<1x32x128xbf16>
    %32 = vector.shape_cast %31 : vector<1x32x128xbf16> to vector<32x128xbf16>
    %cst_40 = arith.constant dense<0.000000e+00> : vector<71x128xf32>
    %33 = tpu.matmul %30, %32, %cst_40 {dimension_numbers = #tpu.dot_dimension_numbers<[1], [0], [0], [1], [0, 0, 1, 1], [], []>} : vector<71x32xbf16>, vector<32x128xbf16>, vector<71x128xf32> -> vector<71x128xf32>
    %34 = arith.addf %28, %33 : vector<71x128xf32>
    %c0_41 = arith.constant 0 : index
    %c0_42 = arith.constant 0 : index
    %c9 = arith.constant 9 : index
    %c0_43 = arith.constant 0 : index
    %35 = vector.load %arg1[%c0_41, %c0_42, %c9, %c0_43] : memref<1x4x81x32xbf16, #tpu.memory_space<vmem>>, vector<1x1x71x32xbf16>
    %36 = vector.shape_cast %35 : vector<1x1x71x32xbf16> to vector<71x32xbf16>
    %c6 = arith.constant 6 : index
    %c0_44 = arith.constant 0 : index
    %c0_45 = arith.constant 0 : index
    %37 = vector.load %arg2[%c6, %c0_44, %c0_45] : memref<9x32x128xbf16, #tpu.memory_space<vmem>>, vector<1x32x128xbf16>
    %38 = vector.shape_cast %37 : vector<1x32x128xbf16> to vector<32x128xbf16>
    %cst_46 = arith.constant dense<0.000000e+00> : vector<71x128xf32>
    %39 = tpu.matmul %36, %38, %cst_46 {dimension_numbers = #tpu.dot_dimension_numbers<[1], [0], [0], [1], [0, 0, 1, 1], [], []>} : vector<71x32xbf16>, vector<32x128xbf16>, vector<71x128xf32> -> vector<71x128xf32>
    %40 = arith.addf %34, %39 : vector<71x128xf32>
    %c0_47 = arith.constant 0 : index
    %c1_48 = arith.constant 1 : index
    %c9_49 = arith.constant 9 : index
    %c0_50 = arith.constant 0 : index
    %41 = vector.load %arg1[%c0_47, %c1_48, %c9_49, %c0_50] : memref<1x4x81x32xbf16, #tpu.memory_space<vmem>>, vector<1x1x71x32xbf16>
    %42 = vector.shape_cast %41 : vector<1x1x71x32xbf16> to vector<71x32xbf16>
    %c7 = arith.constant 7 : index
    %c0_51 = arith.constant 0 : index
    %c0_52 = arith.constant 0 : index
    %43 = vector.load %arg2[%c7, %c0_51, %c0_52] : memref<9x32x128xbf16, #tpu.memory_space<vmem>>, vector<1x32x128xbf16>
    %44 = vector.shape_cast %43 : vector<1x32x128xbf16> to vector<32x128xbf16>
    %cst_53 = arith.constant dense<0.000000e+00> : vector<71x128xf32>
    %45 = tpu.matmul %42, %44, %cst_53 {dimension_numbers = #tpu.dot_dimension_numbers<[1], [0], [0], [1], [0, 0, 1, 1], [], []>} : vector<71x32xbf16>, vector<32x128xbf16>, vector<71x128xf32> -> vector<71x128xf32>
    %46 = arith.addf %40, %45 : vector<71x128xf32>
    %c0_54 = arith.constant 0 : index
    %c0_55 = arith.constant 0 : index
    %c10 = arith.constant 10 : index
    %c0_56 = arith.constant 0 : index
    %47 = vector.load %arg1[%c0_54, %c0_55, %c10, %c0_56] : memref<1x4x81x32xbf16, #tpu.memory_space<vmem>>, vector<1x1x71x32xbf16>
    %48 = vector.shape_cast %47 : vector<1x1x71x32xbf16> to vector<71x32xbf16>
    %c8 = arith.constant 8 : index
    %c0_57 = arith.constant 0 : index
    %c0_58 = arith.constant 0 : index
    %49 = vector.load %arg2[%c8, %c0_57, %c0_58] : memref<9x32x128xbf16, #tpu.memory_space<vmem>>, vector<1x32x128xbf16>
    %50 = vector.shape_cast %49 : vector<1x32x128xbf16> to vector<32x128xbf16>
    %cst_59 = arith.constant dense<0.000000e+00> : vector<71x128xf32>
    %51 = tpu.matmul %48, %50, %cst_59 {dimension_numbers = #tpu.dot_dimension_numbers<[1], [0], [0], [1], [0, 0, 1, 1], [], []>} : vector<71x32xbf16>, vector<32x128xbf16>, vector<71x128xf32> -> vector<71x128xf32>
    %52 = arith.addf %46, %51 : vector<71x128xf32>
    %c0_60 = arith.constant 0 : index
    %c0_61 = arith.constant 0 : index
    %53 = vector.load %arg3[%c0_60, %c0_61] : memref<1x128xf32, #tpu.memory_space<vmem>>, vector<1x128xf32>
    %54 = vector.broadcast %53 : vector<1x128xf32> to vector<71x128xf32>
    %55 = arith.addf %52, %54 : vector<71x128xf32>
    %c0_62 = arith.constant 0 : index
    %c0_63 = arith.constant 0 : index
    %56 = memref.load %arg4[%c0_62, %c0_63] : memref<1x1xf32, #tpu.memory_space<smem>>
    %cst_64 = arith.constant 0.000000e+00 : f32
    %57 = vector.broadcast %cst_64 : f32 to vector<71x128xf32>
    %58 = arith.cmpf oge, %55, %57 : vector<71x128xf32>
    %59 = vector.broadcast %56 : f32 to vector<71x128xf32>
    %60 = arith.mulf %59, %55 : vector<71x128xf32>
    %61 = arith.select %58, %55, %60 : vector<71x128xi1>, vector<71x128xf32>
    %62 = arith.truncf %61 : vector<71x128xf32> to vector<71x128xbf16>
    %c0_65 = arith.constant 0 : index
    %c0_66 = arith.constant 0 : index
    %c0_67 = arith.constant 0 : index
    %63 = vector.load %arg5[%c0_65, %c0_66, %c0_67] : memref<1x71x128xbf16, #tpu.memory_space<vmem>>, vector<1x71x128xbf16>
    %64 = vector.shape_cast %63 : vector<1x71x128xbf16> to vector<71x128xbf16>
    %65 = vector.shape_cast %62 : vector<71x128xbf16> to vector<1x71x128xbf16>
    tpu.vector_store %arg5[%c0_65, %c0_66, %c0_67], %65 {strides = array<i32>} : memref<1x71x128xbf16, #tpu.memory_space<vmem>>, vector<1x71x128xbf16>,
    return
  }
  func.func @transform_0(%arg0: i32) -> (i32, i32, i32, i32) {
    %c0_i32 = arith.constant 0 : i32
    %c0_i32_0 = arith.constant 0 : i32
    %c0_i32_1 = arith.constant 0 : i32
    %c0_i32_2 = arith.constant 0 : i32
    return %arg0, %c0_i32, %c0_i32_0, %c0_i32_1 : i32, i32, i32, i32
  }
  func.func @transform_1(%arg0: i32) -> (i32, i32, i32) {
    %c0_i32 = arith.constant 0 : i32
    %c0_i32_0 = arith.constant 0 : i32
    %c0_i32_1 = arith.constant 0 : i32
    %c0_i32_2 = arith.constant 0 : i32
    return %c0_i32, %c0_i32_0, %c0_i32_1 : i32, i32, i32
  }
  func.func @transform_2(%arg0: i32) -> (i32, i32) {
    %c0_i32 = arith.constant 0 : i32
    %c0_i32_0 = arith.constant 0 : i32
    %c0_i32_1 = arith.constant 0 : i32
    return %c0_i32, %c0_i32_0 : i32, i32
  }
  func.func @transform_3(%arg0: i32) -> (i32, i32) {
    %c0_i32 = arith.constant 0 : i32
    %c0_i32_0 = arith.constant 0 : i32
    %c0_i32_1 = arith.constant 0 : i32
    return %c0_i32, %c0_i32_0 : i32, i32
  }
  func.func @transform_4(%arg0: i32) -> (i32, i32, i32) {
    %c0_i32 = arith.constant 0 : i32
    %c0_i32_0 = arith.constant 0 : i32
    %c0_i32_1 = arith.constant 0 : i32
    return %arg0, %c0_i32, %c0_i32_0 : i32, i32, i32
  }
}

module attributes {stable_mosaic.version = 11 : i64} {
  func.func @kernel(%arg0: i32, %arg1: memref<1x1x100x64xbf16, #tpu.memory_space<vmem>>, %arg2: memref<9x64x128xbf16, #tpu.memory_space<vmem>>, %arg3: memref<1x128xf32, #tpu.memory_space<vmem>>, %arg4: memref<1x1xf32, #tpu.memory_space<smem>>, %arg5: memref<1x78x128xbf16, #tpu.memory_space<vmem>>) attributes {dimension_semantics = [#tpu.dimension_semantics<parallel>], iteration_bounds = array<i64: 2>, scalar_prefetch = 0 : i64, scratch_operands = 0 : i64, tpu.core_type = #tpu.core_type<tc>, window_params = [{transform_indices = @transform_0, window_bounds = array<i64: 1, 1, 100, 64>}, {pipeline_mode = #tpu.pipeline_mode<synchronous>, transform_indices = @transform_1, window_bounds = array<i64: 9, 64, 128>}, {pipeline_mode = #tpu.pipeline_mode<synchronous>, transform_indices = @transform_2, window_bounds = array<i64: 1, 128>}, {transform_indices = @transform_3, window_bounds = array<i64: 1, 1>}, {transform_indices = @transform_4, window_bounds = array<i64: 1, 78, 128>}]} {
    %c0 = arith.constant 0 : index
    %c0_0 = arith.constant 0 : index
    %c0_1 = arith.constant 0 : index
    %c0_2 = arith.constant 0 : index
    %0 = vector.load %arg1[%c0, %c0_0, %c0_1, %c0_2] : memref<1x1x100x64xbf16, #tpu.memory_space<vmem>>, vector<1x1x78x64xbf16>
    %1 = vector.shape_cast %0 : vector<1x1x78x64xbf16> to vector<78x64xbf16>
    %c0_3 = arith.constant 0 : index
    %c0_4 = arith.constant 0 : index
    %c0_5 = arith.constant 0 : index
    %2 = vector.load %arg2[%c0_3, %c0_4, %c0_5] : memref<9x64x128xbf16, #tpu.memory_space<vmem>>, vector<1x64x128xbf16>
    %3 = vector.shape_cast %2 : vector<1x64x128xbf16> to vector<64x128xbf16>
    %cst = arith.constant dense<0.000000e+00> : vector<78x128xf32>
    %4 = tpu.matmul %1, %3, %cst {dimension_numbers = #tpu.dot_dimension_numbers<[1], [0], [0], [1], [0, 0, 1, 1], [], []>} : vector<78x64xbf16>, vector<64x128xbf16>, vector<78x128xf32> -> vector<78x128xf32>
    %c0_6 = arith.constant 0 : index
    %c0_7 = arith.constant 0 : index
    %c1 = arith.constant 1 : index
    %c0_8 = arith.constant 0 : index
    %5 = vector.load %arg1[%c0_6, %c0_7, %c1, %c0_8] : memref<1x1x100x64xbf16, #tpu.memory_space<vmem>>, vector<1x1x78x64xbf16>
    %6 = vector.shape_cast %5 : vector<1x1x78x64xbf16> to vector<78x64xbf16>
    %c1_9 = arith.constant 1 : index
    %c0_10 = arith.constant 0 : index
    %c0_11 = arith.constant 0 : index
    %7 = vector.load %arg2[%c1_9, %c0_10, %c0_11] : memref<9x64x128xbf16, #tpu.memory_space<vmem>>, vector<1x64x128xbf16>
    %8 = vector.shape_cast %7 : vector<1x64x128xbf16> to vector<64x128xbf16>
    %cst_12 = arith.constant dense<0.000000e+00> : vector<78x128xf32>
    %9 = tpu.matmul %6, %8, %cst_12 {dimension_numbers = #tpu.dot_dimension_numbers<[1], [0], [0], [1], [0, 0, 1, 1], [], []>} : vector<78x64xbf16>, vector<64x128xbf16>, vector<78x128xf32> -> vector<78x128xf32>
    %10 = arith.addf %4, %9 : vector<78x128xf32>
    %c0_13 = arith.constant 0 : index
    %c0_14 = arith.constant 0 : index
    %c2 = arith.constant 2 : index
    %c0_15 = arith.constant 0 : index
    %11 = vector.load %arg1[%c0_13, %c0_14, %c2, %c0_15] : memref<1x1x100x64xbf16, #tpu.memory_space<vmem>>, vector<1x1x78x64xbf16>
    %12 = vector.shape_cast %11 : vector<1x1x78x64xbf16> to vector<78x64xbf16>
    %c2_16 = arith.constant 2 : index
    %c0_17 = arith.constant 0 : index
    %c0_18 = arith.constant 0 : index
    %13 = vector.load %arg2[%c2_16, %c0_17, %c0_18] : memref<9x64x128xbf16, #tpu.memory_space<vmem>>, vector<1x64x128xbf16>
    %14 = vector.shape_cast %13 : vector<1x64x128xbf16> to vector<64x128xbf16>
    %cst_19 = arith.constant dense<0.000000e+00> : vector<78x128xf32>
    %15 = tpu.matmul %12, %14, %cst_19 {dimension_numbers = #tpu.dot_dimension_numbers<[1], [0], [0], [1], [0, 0, 1, 1], [], []>} : vector<78x64xbf16>, vector<64x128xbf16>, vector<78x128xf32> -> vector<78x128xf32>
    %16 = arith.addf %10, %15 : vector<78x128xf32>
    %c0_20 = arith.constant 0 : index
    %c0_21 = arith.constant 0 : index
    %c10 = arith.constant 10 : index
    %c0_22 = arith.constant 0 : index
    %17 = vector.load %arg1[%c0_20, %c0_21, %c10, %c0_22] : memref<1x1x100x64xbf16, #tpu.memory_space<vmem>>, vector<1x1x78x64xbf16>
    %18 = vector.shape_cast %17 : vector<1x1x78x64xbf16> to vector<78x64xbf16>
    %c3 = arith.constant 3 : index
    %c0_23 = arith.constant 0 : index
    %c0_24 = arith.constant 0 : index
    %19 = vector.load %arg2[%c3, %c0_23, %c0_24] : memref<9x64x128xbf16, #tpu.memory_space<vmem>>, vector<1x64x128xbf16>
    %20 = vector.shape_cast %19 : vector<1x64x128xbf16> to vector<64x128xbf16>
    %cst_25 = arith.constant dense<0.000000e+00> : vector<78x128xf32>
    %21 = tpu.matmul %18, %20, %cst_25 {dimension_numbers = #tpu.dot_dimension_numbers<[1], [0], [0], [1], [0, 0, 1, 1], [], []>} : vector<78x64xbf16>, vector<64x128xbf16>, vector<78x128xf32> -> vector<78x128xf32>
    %22 = arith.addf %16, %21 : vector<78x128xf32>
    %c0_26 = arith.constant 0 : index
    %c0_27 = arith.constant 0 : index
    %c11 = arith.constant 11 : index
    %c0_28 = arith.constant 0 : index
    %23 = vector.load %arg1[%c0_26, %c0_27, %c11, %c0_28] : memref<1x1x100x64xbf16, #tpu.memory_space<vmem>>, vector<1x1x78x64xbf16>
    %24 = vector.shape_cast %23 : vector<1x1x78x64xbf16> to vector<78x64xbf16>
    %c4 = arith.constant 4 : index
    %c0_29 = arith.constant 0 : index
    %c0_30 = arith.constant 0 : index
    %25 = vector.load %arg2[%c4, %c0_29, %c0_30] : memref<9x64x128xbf16, #tpu.memory_space<vmem>>, vector<1x64x128xbf16>
    %26 = vector.shape_cast %25 : vector<1x64x128xbf16> to vector<64x128xbf16>
    %cst_31 = arith.constant dense<0.000000e+00> : vector<78x128xf32>
    %27 = tpu.matmul %24, %26, %cst_31 {dimension_numbers = #tpu.dot_dimension_numbers<[1], [0], [0], [1], [0, 0, 1, 1], [], []>} : vector<78x64xbf16>, vector<64x128xbf16>, vector<78x128xf32> -> vector<78x128xf32>
    %28 = arith.addf %22, %27 : vector<78x128xf32>
    %c0_32 = arith.constant 0 : index
    %c0_33 = arith.constant 0 : index
    %c12 = arith.constant 12 : index
    %c0_34 = arith.constant 0 : index
    %29 = vector.load %arg1[%c0_32, %c0_33, %c12, %c0_34] : memref<1x1x100x64xbf16, #tpu.memory_space<vmem>>, vector<1x1x78x64xbf16>
    %30 = vector.shape_cast %29 : vector<1x1x78x64xbf16> to vector<78x64xbf16>
    %c5 = arith.constant 5 : index
    %c0_35 = arith.constant 0 : index
    %c0_36 = arith.constant 0 : index
    %31 = vector.load %arg2[%c5, %c0_35, %c0_36] : memref<9x64x128xbf16, #tpu.memory_space<vmem>>, vector<1x64x128xbf16>
    %32 = vector.shape_cast %31 : vector<1x64x128xbf16> to vector<64x128xbf16>
    %cst_37 = arith.constant dense<0.000000e+00> : vector<78x128xf32>
    %33 = tpu.matmul %30, %32, %cst_37 {dimension_numbers = #tpu.dot_dimension_numbers<[1], [0], [0], [1], [0, 0, 1, 1], [], []>} : vector<78x64xbf16>, vector<64x128xbf16>, vector<78x128xf32> -> vector<78x128xf32>
    %34 = arith.addf %28, %33 : vector<78x128xf32>
    %c0_38 = arith.constant 0 : index
    %c0_39 = arith.constant 0 : index
    %c20 = arith.constant 20 : index
    %c0_40 = arith.constant 0 : index
    %35 = vector.load %arg1[%c0_38, %c0_39, %c20, %c0_40] : memref<1x1x100x64xbf16, #tpu.memory_space<vmem>>, vector<1x1x78x64xbf16>
    %36 = vector.shape_cast %35 : vector<1x1x78x64xbf16> to vector<78x64xbf16>
    %c6 = arith.constant 6 : index
    %c0_41 = arith.constant 0 : index
    %c0_42 = arith.constant 0 : index
    %37 = vector.load %arg2[%c6, %c0_41, %c0_42] : memref<9x64x128xbf16, #tpu.memory_space<vmem>>, vector<1x64x128xbf16>
    %38 = vector.shape_cast %37 : vector<1x64x128xbf16> to vector<64x128xbf16>
    %cst_43 = arith.constant dense<0.000000e+00> : vector<78x128xf32>
    %39 = tpu.matmul %36, %38, %cst_43 {dimension_numbers = #tpu.dot_dimension_numbers<[1], [0], [0], [1], [0, 0, 1, 1], [], []>} : vector<78x64xbf16>, vector<64x128xbf16>, vector<78x128xf32> -> vector<78x128xf32>
    %40 = arith.addf %34, %39 : vector<78x128xf32>
    %c0_44 = arith.constant 0 : index
    %c0_45 = arith.constant 0 : index
    %c21 = arith.constant 21 : index
    %c0_46 = arith.constant 0 : index
    %41 = vector.load %arg1[%c0_44, %c0_45, %c21, %c0_46] : memref<1x1x100x64xbf16, #tpu.memory_space<vmem>>, vector<1x1x78x64xbf16>
    %42 = vector.shape_cast %41 : vector<1x1x78x64xbf16> to vector<78x64xbf16>
    %c7 = arith.constant 7 : index
    %c0_47 = arith.constant 0 : index
    %c0_48 = arith.constant 0 : index
    %43 = vector.load %arg2[%c7, %c0_47, %c0_48] : memref<9x64x128xbf16, #tpu.memory_space<vmem>>, vector<1x64x128xbf16>
    %44 = vector.shape_cast %43 : vector<1x64x128xbf16> to vector<64x128xbf16>
    %cst_49 = arith.constant dense<0.000000e+00> : vector<78x128xf32>
    %45 = tpu.matmul %42, %44, %cst_49 {dimension_numbers = #tpu.dot_dimension_numbers<[1], [0], [0], [1], [0, 0, 1, 1], [], []>} : vector<78x64xbf16>, vector<64x128xbf16>, vector<78x128xf32> -> vector<78x128xf32>
    %46 = arith.addf %40, %45 : vector<78x128xf32>
    %c0_50 = arith.constant 0 : index
    %c0_51 = arith.constant 0 : index
    %c22 = arith.constant 22 : index
    %c0_52 = arith.constant 0 : index
    %47 = vector.load %arg1[%c0_50, %c0_51, %c22, %c0_52] : memref<1x1x100x64xbf16, #tpu.memory_space<vmem>>, vector<1x1x78x64xbf16>
    %48 = vector.shape_cast %47 : vector<1x1x78x64xbf16> to vector<78x64xbf16>
    %c8 = arith.constant 8 : index
    %c0_53 = arith.constant 0 : index
    %c0_54 = arith.constant 0 : index
    %49 = vector.load %arg2[%c8, %c0_53, %c0_54] : memref<9x64x128xbf16, #tpu.memory_space<vmem>>, vector<1x64x128xbf16>
    %50 = vector.shape_cast %49 : vector<1x64x128xbf16> to vector<64x128xbf16>
    %cst_55 = arith.constant dense<0.000000e+00> : vector<78x128xf32>
    %51 = tpu.matmul %48, %50, %cst_55 {dimension_numbers = #tpu.dot_dimension_numbers<[1], [0], [0], [1], [0, 0, 1, 1], [], []>} : vector<78x64xbf16>, vector<64x128xbf16>, vector<78x128xf32> -> vector<78x128xf32>
    %52 = arith.addf %46, %51 : vector<78x128xf32>
    %c0_56 = arith.constant 0 : index
    %c0_57 = arith.constant 0 : index
    %53 = vector.load %arg3[%c0_56, %c0_57] : memref<1x128xf32, #tpu.memory_space<vmem>>, vector<1x128xf32>
    %54 = vector.broadcast %53 : vector<1x128xf32> to vector<78x128xf32>
    %55 = arith.addf %52, %54 : vector<78x128xf32>
    %c0_58 = arith.constant 0 : index
    %c0_59 = arith.constant 0 : index
    %56 = memref.load %arg4[%c0_58, %c0_59] : memref<1x1xf32, #tpu.memory_space<smem>>
    %cst_60 = arith.constant 0.000000e+00 : f32
    %57 = vector.broadcast %cst_60 : f32 to vector<78x128xf32>
    %58 = arith.cmpf oge, %55, %57 : vector<78x128xf32>
    %59 = vector.broadcast %56 : f32 to vector<78x128xf32>
    %60 = arith.mulf %59, %55 : vector<78x128xf32>
    %61 = arith.select %58, %55, %60 : vector<78x128xi1>, vector<78x128xf32>
    %62 = arith.truncf %61 : vector<78x128xf32> to vector<78x128xbf16>
    %c0_61 = arith.constant 0 : index
    %c0_62 = arith.constant 0 : index
    %c0_63 = arith.constant 0 : index
    %63 = vector.load %arg5[%c0_61, %c0_62, %c0_63] : memref<1x78x128xbf16, #tpu.memory_space<vmem>>, vector<1x78x128xbf16>
    %64 = vector.shape_cast %63 : vector<1x78x128xbf16> to vector<78x128xbf16>
    %65 = vector.shape_cast %62 : vector<78x128xbf16> to vector<1x78x128xbf16>
    tpu.vector_store %arg5[%c0_61, %c0_62, %c0_63], %65 {strides = array<i32>} : memref<1x78x128xbf16, #tpu.memory_space<vmem>>, vector<1x78x128xbf16>,
    return
  }
  func.func @transform_0(%arg0: i32) -> (i32, i32, i32, i32) {
    %c0_i32 = arith.constant 0 : i32
    %c0_i32_0 = arith.constant 0 : i32
    %c0_i32_1 = arith.constant 0 : i32
    %c0_i32_2 = arith.constant 0 : i32
    return %arg0, %c0_i32, %c0_i32_0, %c0_i32_1 : i32, i32, i32, i32
  }
  func.func @transform_1(%arg0: i32) -> (i32, i32, i32) {
    %c0_i32 = arith.constant 0 : i32
    %c0_i32_0 = arith.constant 0 : i32
    %c0_i32_1 = arith.constant 0 : i32
    %c0_i32_2 = arith.constant 0 : i32
    return %c0_i32, %c0_i32_0, %c0_i32_1 : i32, i32, i32
  }
  func.func @transform_2(%arg0: i32) -> (i32, i32) {
    %c0_i32 = arith.constant 0 : i32
    %c0_i32_0 = arith.constant 0 : i32
    %c0_i32_1 = arith.constant 0 : i32
    return %c0_i32, %c0_i32_0 : i32, i32
  }
  func.func @transform_3(%arg0: i32) -> (i32, i32) {
    %c0_i32 = arith.constant 0 : i32
    %c0_i32_0 = arith.constant 0 : i32
    %c0_i32_1 = arith.constant 0 : i32
    return %c0_i32, %c0_i32_0 : i32, i32
  }
  func.func @transform_4(%arg0: i32) -> (i32, i32, i32) {
    %c0_i32 = arith.constant 0 : i32
    %c0_i32_0 = arith.constant 0 : i32
    %c0_i32_1 = arith.constant 0 : i32
    return %arg0, %c0_i32, %c0_i32_0 : i32, i32, i32
  }
}

module attributes {stable_mosaic.version = 11 : i64} {
  func.func @kernel(%arg0: i32, %arg1: memref<1x4x25x64xbf16, #tpu.memory_space<vmem>>, %arg2: memref<9x64x128xbf16, #tpu.memory_space<vmem>>, %arg3: memref<1x128xf32, #tpu.memory_space<vmem>>, %arg4: memref<1x1xf32, #tpu.memory_space<smem>>, %arg5: memref<1x19x128xbf16, #tpu.memory_space<vmem>>) attributes {dimension_semantics = [#tpu.dimension_semantics<parallel>], iteration_bounds = array<i64: 2>, scalar_prefetch = 0 : i64, scratch_operands = 0 : i64, tpu.core_type = #tpu.core_type<tc>, window_params = [{transform_indices = @transform_0, window_bounds = array<i64: 1, 4, 25, 64>}, {pipeline_mode = #tpu.pipeline_mode<synchronous>, transform_indices = @transform_1, window_bounds = array<i64: 9, 64, 128>}, {pipeline_mode = #tpu.pipeline_mode<synchronous>, transform_indices = @transform_2, window_bounds = array<i64: 1, 128>}, {transform_indices = @transform_3, window_bounds = array<i64: 1, 1>}, {transform_indices = @transform_4, window_bounds = array<i64: 1, 19, 128>}]} {
    %c0 = arith.constant 0 : index
    %c0_0 = arith.constant 0 : index
    %c0_1 = arith.constant 0 : index
    %c0_2 = arith.constant 0 : index
    %0 = vector.load %arg1[%c0, %c0_0, %c0_1, %c0_2] : memref<1x4x25x64xbf16, #tpu.memory_space<vmem>>, vector<1x1x19x64xbf16>
    %1 = vector.shape_cast %0 : vector<1x1x19x64xbf16> to vector<19x64xbf16>
    %c0_3 = arith.constant 0 : index
    %c0_4 = arith.constant 0 : index
    %c0_5 = arith.constant 0 : index
    %2 = vector.load %arg2[%c0_3, %c0_4, %c0_5] : memref<9x64x128xbf16, #tpu.memory_space<vmem>>, vector<1x64x128xbf16>
    %3 = vector.shape_cast %2 : vector<1x64x128xbf16> to vector<64x128xbf16>
    %cst = arith.constant dense<0.000000e+00> : vector<19x128xf32>
    %4 = tpu.matmul %1, %3, %cst {dimension_numbers = #tpu.dot_dimension_numbers<[1], [0], [0], [1], [0, 0, 1, 1], [], []>} : vector<19x64xbf16>, vector<64x128xbf16>, vector<19x128xf32> -> vector<19x128xf32>
    %c0_6 = arith.constant 0 : index
    %c1 = arith.constant 1 : index
    %c0_7 = arith.constant 0 : index
    %c0_8 = arith.constant 0 : index
    %5 = vector.load %arg1[%c0_6, %c1, %c0_7, %c0_8] : memref<1x4x25x64xbf16, #tpu.memory_space<vmem>>, vector<1x1x19x64xbf16>
    %6 = vector.shape_cast %5 : vector<1x1x19x64xbf16> to vector<19x64xbf16>
    %c1_9 = arith.constant 1 : index
    %c0_10 = arith.constant 0 : index
    %c0_11 = arith.constant 0 : index
    %7 = vector.load %arg2[%c1_9, %c0_10, %c0_11] : memref<9x64x128xbf16, #tpu.memory_space<vmem>>, vector<1x64x128xbf16>
    %8 = vector.shape_cast %7 : vector<1x64x128xbf16> to vector<64x128xbf16>
    %cst_12 = arith.constant dense<0.000000e+00> : vector<19x128xf32>
    %9 = tpu.matmul %6, %8, %cst_12 {dimension_numbers = #tpu.dot_dimension_numbers<[1], [0], [0], [1], [0, 0, 1, 1], [], []>} : vector<19x64xbf16>, vector<64x128xbf16>, vector<19x128xf32> -> vector<19x128xf32>
    %10 = arith.addf %4, %9 : vector<19x128xf32>
    %c0_13 = arith.constant 0 : index
    %c0_14 = arith.constant 0 : index
    %c1_15 = arith.constant 1 : index
    %c0_16 = arith.constant 0 : index
    %11 = vector.load %arg1[%c0_13, %c0_14, %c1_15, %c0_16] : memref<1x4x25x64xbf16, #tpu.memory_space<vmem>>, vector<1x1x19x64xbf16>
    %12 = vector.shape_cast %11 : vector<1x1x19x64xbf16> to vector<19x64xbf16>
    %c2 = arith.constant 2 : index
    %c0_17 = arith.constant 0 : index
    %c0_18 = arith.constant 0 : index
    %13 = vector.load %arg2[%c2, %c0_17, %c0_18] : memref<9x64x128xbf16, #tpu.memory_space<vmem>>, vector<1x64x128xbf16>
    %14 = vector.shape_cast %13 : vector<1x64x128xbf16> to vector<64x128xbf16>
    %cst_19 = arith.constant dense<0.000000e+00> : vector<19x128xf32>
    %15 = tpu.matmul %12, %14, %cst_19 {dimension_numbers = #tpu.dot_dimension_numbers<[1], [0], [0], [1], [0, 0, 1, 1], [], []>} : vector<19x64xbf16>, vector<64x128xbf16>, vector<19x128xf32> -> vector<19x128xf32>
    %16 = arith.addf %10, %15 : vector<19x128xf32>
    %c0_20 = arith.constant 0 : index
    %c2_21 = arith.constant 2 : index
    %c0_22 = arith.constant 0 : index
    %c0_23 = arith.constant 0 : index
    %17 = vector.load %arg1[%c0_20, %c2_21, %c0_22, %c0_23] : memref<1x4x25x64xbf16, #tpu.memory_space<vmem>>, vector<1x1x19x64xbf16>
    %18 = vector.shape_cast %17 : vector<1x1x19x64xbf16> to vector<19x64xbf16>
    %c3 = arith.constant 3 : index
    %c0_24 = arith.constant 0 : index
    %c0_25 = arith.constant 0 : index
    %19 = vector.load %arg2[%c3, %c0_24, %c0_25] : memref<9x64x128xbf16, #tpu.memory_space<vmem>>, vector<1x64x128xbf16>
    %20 = vector.shape_cast %19 : vector<1x64x128xbf16> to vector<64x128xbf16>
    %cst_26 = arith.constant dense<0.000000e+00> : vector<19x128xf32>
    %21 = tpu.matmul %18, %20, %cst_26 {dimension_numbers = #tpu.dot_dimension_numbers<[1], [0], [0], [1], [0, 0, 1, 1], [], []>} : vector<19x64xbf16>, vector<64x128xbf16>, vector<19x128xf32> -> vector<19x128xf32>
    %22 = arith.addf %16, %21 : vector<19x128xf32>
    %c0_27 = arith.constant 0 : index
    %c3_28 = arith.constant 3 : index
    %c0_29 = arith.constant 0 : index
    %c0_30 = arith.constant 0 : index
    %23 = vector.load %arg1[%c0_27, %c3_28, %c0_29, %c0_30] : memref<1x4x25x64xbf16, #tpu.memory_space<vmem>>, vector<1x1x19x64xbf16>
    %24 = vector.shape_cast %23 : vector<1x1x19x64xbf16> to vector<19x64xbf16>
    %c4 = arith.constant 4 : index
    %c0_31 = arith.constant 0 : index
    %c0_32 = arith.constant 0 : index
    %25 = vector.load %arg2[%c4, %c0_31, %c0_32] : memref<9x64x128xbf16, #tpu.memory_space<vmem>>, vector<1x64x128xbf16>
    %26 = vector.shape_cast %25 : vector<1x64x128xbf16> to vector<64x128xbf16>
    %cst_33 = arith.constant dense<0.000000e+00> : vector<19x128xf32>
    %27 = tpu.matmul %24, %26, %cst_33 {dimension_numbers = #tpu.dot_dimension_numbers<[1], [0], [0], [1], [0, 0, 1, 1], [], []>} : vector<19x64xbf16>, vector<64x128xbf16>, vector<19x128xf32> -> vector<19x128xf32>
    %28 = arith.addf %22, %27 : vector<19x128xf32>
    %c0_34 = arith.constant 0 : index
    %c2_35 = arith.constant 2 : index
    %c1_36 = arith.constant 1 : index
    %c0_37 = arith.constant 0 : index
    %29 = vector.load %arg1[%c0_34, %c2_35, %c1_36, %c0_37] : memref<1x4x25x64xbf16, #tpu.memory_space<vmem>>, vector<1x1x19x64xbf16>
    %30 = vector.shape_cast %29 : vector<1x1x19x64xbf16> to vector<19x64xbf16>
    %c5 = arith.constant 5 : index
    %c0_38 = arith.constant 0 : index
    %c0_39 = arith.constant 0 : index
    %31 = vector.load %arg2[%c5, %c0_38, %c0_39] : memref<9x64x128xbf16, #tpu.memory_space<vmem>>, vector<1x64x128xbf16>
    %32 = vector.shape_cast %31 : vector<1x64x128xbf16> to vector<64x128xbf16>
    %cst_40 = arith.constant dense<0.000000e+00> : vector<19x128xf32>
    %33 = tpu.matmul %30, %32, %cst_40 {dimension_numbers = #tpu.dot_dimension_numbers<[1], [0], [0], [1], [0, 0, 1, 1], [], []>} : vector<19x64xbf16>, vector<64x128xbf16>, vector<19x128xf32> -> vector<19x128xf32>
    %34 = arith.addf %28, %33 : vector<19x128xf32>
    %c0_41 = arith.constant 0 : index
    %c0_42 = arith.constant 0 : index
    %c5_43 = arith.constant 5 : index
    %c0_44 = arith.constant 0 : index
    %35 = vector.load %arg1[%c0_41, %c0_42, %c5_43, %c0_44] : memref<1x4x25x64xbf16, #tpu.memory_space<vmem>>, vector<1x1x19x64xbf16>
    %36 = vector.shape_cast %35 : vector<1x1x19x64xbf16> to vector<19x64xbf16>
    %c6 = arith.constant 6 : index
    %c0_45 = arith.constant 0 : index
    %c0_46 = arith.constant 0 : index
    %37 = vector.load %arg2[%c6, %c0_45, %c0_46] : memref<9x64x128xbf16, #tpu.memory_space<vmem>>, vector<1x64x128xbf16>
    %38 = vector.shape_cast %37 : vector<1x64x128xbf16> to vector<64x128xbf16>
    %cst_47 = arith.constant dense<0.000000e+00> : vector<19x128xf32>
    %39 = tpu.matmul %36, %38, %cst_47 {dimension_numbers = #tpu.dot_dimension_numbers<[1], [0], [0], [1], [0, 0, 1, 1], [], []>} : vector<19x64xbf16>, vector<64x128xbf16>, vector<19x128xf32> -> vector<19x128xf32>
    %40 = arith.addf %34, %39 : vector<19x128xf32>
    %c0_48 = arith.constant 0 : index
    %c1_49 = arith.constant 1 : index
    %c5_50 = arith.constant 5 : index
    %c0_51 = arith.constant 0 : index
    %41 = vector.load %arg1[%c0_48, %c1_49, %c5_50, %c0_51] : memref<1x4x25x64xbf16, #tpu.memory_space<vmem>>, vector<1x1x19x64xbf16>
    %42 = vector.shape_cast %41 : vector<1x1x19x64xbf16> to vector<19x64xbf16>
    %c7 = arith.constant 7 : index
    %c0_52 = arith.constant 0 : index
    %c0_53 = arith.constant 0 : index
    %43 = vector.load %arg2[%c7, %c0_52, %c0_53] : memref<9x64x128xbf16, #tpu.memory_space<vmem>>, vector<1x64x128xbf16>
    %44 = vector.shape_cast %43 : vector<1x64x128xbf16> to vector<64x128xbf16>
    %cst_54 = arith.constant dense<0.000000e+00> : vector<19x128xf32>
    %45 = tpu.matmul %42, %44, %cst_54 {dimension_numbers = #tpu.dot_dimension_numbers<[1], [0], [0], [1], [0, 0, 1, 1], [], []>} : vector<19x64xbf16>, vector<64x128xbf16>, vector<19x128xf32> -> vector<19x128xf32>
    %46 = arith.addf %40, %45 : vector<19x128xf32>
    %c0_55 = arith.constant 0 : index
    %c0_56 = arith.constant 0 : index
    %c6_57 = arith.constant 6 : index
    %c0_58 = arith.constant 0 : index
    %47 = vector.load %arg1[%c0_55, %c0_56, %c6_57, %c0_58] : memref<1x4x25x64xbf16, #tpu.memory_space<vmem>>, vector<1x1x19x64xbf16>
    %48 = vector.shape_cast %47 : vector<1x1x19x64xbf16> to vector<19x64xbf16>
    %c8 = arith.constant 8 : index
    %c0_59 = arith.constant 0 : index
    %c0_60 = arith.constant 0 : index
    %49 = vector.load %arg2[%c8, %c0_59, %c0_60] : memref<9x64x128xbf16, #tpu.memory_space<vmem>>, vector<1x64x128xbf16>
    %50 = vector.shape_cast %49 : vector<1x64x128xbf16> to vector<64x128xbf16>
    %cst_61 = arith.constant dense<0.000000e+00> : vector<19x128xf32>
    %51 = tpu.matmul %48, %50, %cst_61 {dimension_numbers = #tpu.dot_dimension_numbers<[1], [0], [0], [1], [0, 0, 1, 1], [], []>} : vector<19x64xbf16>, vector<64x128xbf16>, vector<19x128xf32> -> vector<19x128xf32>
    %52 = arith.addf %46, %51 : vector<19x128xf32>
    %c0_62 = arith.constant 0 : index
    %c0_63 = arith.constant 0 : index
    %53 = vector.load %arg3[%c0_62, %c0_63] : memref<1x128xf32, #tpu.memory_space<vmem>>, vector<1x128xf32>
    %54 = vector.broadcast %53 : vector<1x128xf32> to vector<19x128xf32>
    %55 = arith.addf %52, %54 : vector<19x128xf32>
    %c0_64 = arith.constant 0 : index
    %c0_65 = arith.constant 0 : index
    %56 = memref.load %arg4[%c0_64, %c0_65] : memref<1x1xf32, #tpu.memory_space<smem>>
    %cst_66 = arith.constant 0.000000e+00 : f32
    %57 = vector.broadcast %cst_66 : f32 to vector<19x128xf32>
    %58 = arith.cmpf oge, %55, %57 : vector<19x128xf32>
    %59 = vector.broadcast %56 : f32 to vector<19x128xf32>
    %60 = arith.mulf %59, %55 : vector<19x128xf32>
    %61 = arith.select %58, %55, %60 : vector<19x128xi1>, vector<19x128xf32>
    %62 = arith.truncf %61 : vector<19x128xf32> to vector<19x128xbf16>
    %c0_67 = arith.constant 0 : index
    %c0_68 = arith.constant 0 : index
    %c0_69 = arith.constant 0 : index
    %63 = vector.load %arg5[%c0_67, %c0_68, %c0_69] : memref<1x19x128xbf16, #tpu.memory_space<vmem>>, vector<1x19x128xbf16>
    %64 = vector.shape_cast %63 : vector<1x19x128xbf16> to vector<19x128xbf16>
    %65 = vector.shape_cast %62 : vector<19x128xbf16> to vector<1x19x128xbf16>
    tpu.vector_store %arg5[%c0_67, %c0_68, %c0_69], %65 {strides = array<i32>} : memref<1x19x128xbf16, #tpu.memory_space<vmem>>, vector<1x19x128xbf16>,
    return
  }
  func.func @transform_0(%arg0: i32) -> (i32, i32, i32, i32) {
    %c0_i32 = arith.constant 0 : i32
    %c0_i32_0 = arith.constant 0 : i32
    %c0_i32_1 = arith.constant 0 : i32
    %c0_i32_2 = arith.constant 0 : i32
    return %arg0, %c0_i32, %c0_i32_0, %c0_i32_1 : i32, i32, i32, i32
  }
  func.func @transform_1(%arg0: i32) -> (i32, i32, i32) {
    %c0_i32 = arith.constant 0 : i32
    %c0_i32_0 = arith.constant 0 : i32
    %c0_i32_1 = arith.constant 0 : i32
    %c0_i32_2 = arith.constant 0 : i32
    return %c0_i32, %c0_i32_0, %c0_i32_1 : i32, i32, i32
  }
  func.func @transform_2(%arg0: i32) -> (i32, i32) {
    %c0_i32 = arith.constant 0 : i32
    %c0_i32_0 = arith.constant 0 : i32
    %c0_i32_1 = arith.constant 0 : i32
    return %c0_i32, %c0_i32_0 : i32, i32
  }
  func.func @transform_3(%arg0: i32) -> (i32, i32) {
    %c0_i32 = arith.constant 0 : i32
    %c0_i32_0 = arith.constant 0 : i32
    %c0_i32_1 = arith.constant 0 : i32
    return %c0_i32, %c0_i32_0 : i32, i32
  }
  func.func @transform_4(%arg0: i32) -> (i32, i32, i32) {
    %c0_i32 = arith.constant 0 : i32
    %c0_i32_0 = arith.constant 0 : i32
    %c0_i32_1 = arith.constant 0 : i32
    return %arg0, %c0_i32, %c0_i32_0 : i32, i32, i32
  }
}

module attributes {stable_mosaic.version = 11 : i64} {
  func.func @kernel(%arg0: i32, %arg1: memref<1x1x36x96xbf16, #tpu.memory_space<vmem>>, %arg2: memref<9x96x128xbf16, #tpu.memory_space<vmem>>, %arg3: memref<1x128xf32, #tpu.memory_space<vmem>>, %arg4: memref<1x1xf32, #tpu.memory_space<smem>>, %arg5: memref<1x22x128xbf16, #tpu.memory_space<vmem>>) attributes {dimension_semantics = [#tpu.dimension_semantics<parallel>], iteration_bounds = array<i64: 2>, scalar_prefetch = 0 : i64, scratch_operands = 0 : i64, tpu.core_type = #tpu.core_type<tc>, window_params = [{transform_indices = @transform_0, window_bounds = array<i64: 1, 1, 36, 96>}, {pipeline_mode = #tpu.pipeline_mode<synchronous>, transform_indices = @transform_1, window_bounds = array<i64: 9, 96, 128>}, {pipeline_mode = #tpu.pipeline_mode<synchronous>, transform_indices = @transform_2, window_bounds = array<i64: 1, 128>}, {transform_indices = @transform_3, window_bounds = array<i64: 1, 1>}, {transform_indices = @transform_4, window_bounds = array<i64: 1, 22, 128>}]} {
    %c0 = arith.constant 0 : index
    %c0_0 = arith.constant 0 : index
    %c0_1 = arith.constant 0 : index
    %c0_2 = arith.constant 0 : index
    %0 = vector.load %arg1[%c0, %c0_0, %c0_1, %c0_2] : memref<1x1x36x96xbf16, #tpu.memory_space<vmem>>, vector<1x1x22x96xbf16>
    %1 = vector.shape_cast %0 : vector<1x1x22x96xbf16> to vector<22x96xbf16>
    %c0_3 = arith.constant 0 : index
    %c0_4 = arith.constant 0 : index
    %c0_5 = arith.constant 0 : index
    %2 = vector.load %arg2[%c0_3, %c0_4, %c0_5] : memref<9x96x128xbf16, #tpu.memory_space<vmem>>, vector<1x96x128xbf16>
    %3 = vector.shape_cast %2 : vector<1x96x128xbf16> to vector<96x128xbf16>
    %cst = arith.constant dense<0.000000e+00> : vector<22x128xf32>
    %4 = tpu.matmul %1, %3, %cst {dimension_numbers = #tpu.dot_dimension_numbers<[1], [0], [0], [1], [0, 0, 1, 1], [], []>} : vector<22x96xbf16>, vector<96x128xbf16>, vector<22x128xf32> -> vector<22x128xf32>
    %c0_6 = arith.constant 0 : index
    %c0_7 = arith.constant 0 : index
    %c1 = arith.constant 1 : index
    %c0_8 = arith.constant 0 : index
    %5 = vector.load %arg1[%c0_6, %c0_7, %c1, %c0_8] : memref<1x1x36x96xbf16, #tpu.memory_space<vmem>>, vector<1x1x22x96xbf16>
    %6 = vector.shape_cast %5 : vector<1x1x22x96xbf16> to vector<22x96xbf16>
    %c1_9 = arith.constant 1 : index
    %c0_10 = arith.constant 0 : index
    %c0_11 = arith.constant 0 : index
    %7 = vector.load %arg2[%c1_9, %c0_10, %c0_11] : memref<9x96x128xbf16, #tpu.memory_space<vmem>>, vector<1x96x128xbf16>
    %8 = vector.shape_cast %7 : vector<1x96x128xbf16> to vector<96x128xbf16>
    %cst_12 = arith.constant dense<0.000000e+00> : vector<22x128xf32>
    %9 = tpu.matmul %6, %8, %cst_12 {dimension_numbers = #tpu.dot_dimension_numbers<[1], [0], [0], [1], [0, 0, 1, 1], [], []>} : vector<22x96xbf16>, vector<96x128xbf16>, vector<22x128xf32> -> vector<22x128xf32>
    %10 = arith.addf %4, %9 : vector<22x128xf32>
    %c0_13 = arith.constant 0 : index
    %c0_14 = arith.constant 0 : index
    %c2 = arith.constant 2 : index
    %c0_15 = arith.constant 0 : index
    %11 = vector.load %arg1[%c0_13, %c0_14, %c2, %c0_15] : memref<1x1x36x96xbf16, #tpu.memory_space<vmem>>, vector<1x1x22x96xbf16>
    %12 = vector.shape_cast %11 : vector<1x1x22x96xbf16> to vector<22x96xbf16>
    %c2_16 = arith.constant 2 : index
    %c0_17 = arith.constant 0 : index
    %c0_18 = arith.constant 0 : index
    %13 = vector.load %arg2[%c2_16, %c0_17, %c0_18] : memref<9x96x128xbf16, #tpu.memory_space<vmem>>, vector<1x96x128xbf16>
    %14 = vector.shape_cast %13 : vector<1x96x128xbf16> to vector<96x128xbf16>
    %cst_19 = arith.constant dense<0.000000e+00> : vector<22x128xf32>
    %15 = tpu.matmul %12, %14, %cst_19 {dimension_numbers = #tpu.dot_dimension_numbers<[1], [0], [0], [1], [0, 0, 1, 1], [], []>} : vector<22x96xbf16>, vector<96x128xbf16>, vector<22x128xf32> -> vector<22x128xf32>
    %16 = arith.addf %10, %15 : vector<22x128xf32>
    %c0_20 = arith.constant 0 : index
    %c0_21 = arith.constant 0 : index
    %c6 = arith.constant 6 : index
    %c0_22 = arith.constant 0 : index
    %17 = vector.load %arg1[%c0_20, %c0_21, %c6, %c0_22] : memref<1x1x36x96xbf16, #tpu.memory_space<vmem>>, vector<1x1x22x96xbf16>
    %18 = vector.shape_cast %17 : vector<1x1x22x96xbf16> to vector<22x96xbf16>
    %c3 = arith.constant 3 : index
    %c0_23 = arith.constant 0 : index
    %c0_24 = arith.constant 0 : index
    %19 = vector.load %arg2[%c3, %c0_23, %c0_24] : memref<9x96x128xbf16, #tpu.memory_space<vmem>>, vector<1x96x128xbf16>
    %20 = vector.shape_cast %19 : vector<1x96x128xbf16> to vector<96x128xbf16>
    %cst_25 = arith.constant dense<0.000000e+00> : vector<22x128xf32>
    %21 = tpu.matmul %18, %20, %cst_25 {dimension_numbers = #tpu.dot_dimension_numbers<[1], [0], [0], [1], [0, 0, 1, 1], [], []>} : vector<22x96xbf16>, vector<96x128xbf16>, vector<22x128xf32> -> vector<22x128xf32>
    %22 = arith.addf %16, %21 : vector<22x128xf32>
    %c0_26 = arith.constant 0 : index
    %c0_27 = arith.constant 0 : index
    %c7 = arith.constant 7 : index
    %c0_28 = arith.constant 0 : index
    %23 = vector.load %arg1[%c0_26, %c0_27, %c7, %c0_28] : memref<1x1x36x96xbf16, #tpu.memory_space<vmem>>, vector<1x1x22x96xbf16>
    %24 = vector.shape_cast %23 : vector<1x1x22x96xbf16> to vector<22x96xbf16>
    %c4 = arith.constant 4 : index
    %c0_29 = arith.constant 0 : index
    %c0_30 = arith.constant 0 : index
    %25 = vector.load %arg2[%c4, %c0_29, %c0_30] : memref<9x96x128xbf16, #tpu.memory_space<vmem>>, vector<1x96x128xbf16>
    %26 = vector.shape_cast %25 : vector<1x96x128xbf16> to vector<96x128xbf16>
    %cst_31 = arith.constant dense<0.000000e+00> : vector<22x128xf32>
    %27 = tpu.matmul %24, %26, %cst_31 {dimension_numbers = #tpu.dot_dimension_numbers<[1], [0], [0], [1], [0, 0, 1, 1], [], []>} : vector<22x96xbf16>, vector<96x128xbf16>, vector<22x128xf32> -> vector<22x128xf32>
    %28 = arith.addf %22, %27 : vector<22x128xf32>
    %c0_32 = arith.constant 0 : index
    %c0_33 = arith.constant 0 : index
    %c8 = arith.constant 8 : index
    %c0_34 = arith.constant 0 : index
    %29 = vector.load %arg1[%c0_32, %c0_33, %c8, %c0_34] : memref<1x1x36x96xbf16, #tpu.memory_space<vmem>>, vector<1x1x22x96xbf16>
    %30 = vector.shape_cast %29 : vector<1x1x22x96xbf16> to vector<22x96xbf16>
    %c5 = arith.constant 5 : index
    %c0_35 = arith.constant 0 : index
    %c0_36 = arith.constant 0 : index
    %31 = vector.load %arg2[%c5, %c0_35, %c0_36] : memref<9x96x128xbf16, #tpu.memory_space<vmem>>, vector<1x96x128xbf16>
    %32 = vector.shape_cast %31 : vector<1x96x128xbf16> to vector<96x128xbf16>
    %cst_37 = arith.constant dense<0.000000e+00> : vector<22x128xf32>
    %33 = tpu.matmul %30, %32, %cst_37 {dimension_numbers = #tpu.dot_dimension_numbers<[1], [0], [0], [1], [0, 0, 1, 1], [], []>} : vector<22x96xbf16>, vector<96x128xbf16>, vector<22x128xf32> -> vector<22x128xf32>
    %34 = arith.addf %28, %33 : vector<22x128xf32>
    %c0_38 = arith.constant 0 : index
    %c0_39 = arith.constant 0 : index
    %c12 = arith.constant 12 : index
    %c0_40 = arith.constant 0 : index
    %35 = vector.load %arg1[%c0_38, %c0_39, %c12, %c0_40] : memref<1x1x36x96xbf16, #tpu.memory_space<vmem>>, vector<1x1x22x96xbf16>
    %36 = vector.shape_cast %35 : vector<1x1x22x96xbf16> to vector<22x96xbf16>
    %c6_41 = arith.constant 6 : index
    %c0_42 = arith.constant 0 : index
    %c0_43 = arith.constant 0 : index
    %37 = vector.load %arg2[%c6_41, %c0_42, %c0_43] : memref<9x96x128xbf16, #tpu.memory_space<vmem>>, vector<1x96x128xbf16>
    %38 = vector.shape_cast %37 : vector<1x96x128xbf16> to vector<96x128xbf16>
    %cst_44 = arith.constant dense<0.000000e+00> : vector<22x128xf32>
    %39 = tpu.matmul %36, %38, %cst_44 {dimension_numbers = #tpu.dot_dimension_numbers<[1], [0], [0], [1], [0, 0, 1, 1], [], []>} : vector<22x96xbf16>, vector<96x128xbf16>, vector<22x128xf32> -> vector<22x128xf32>
    %40 = arith.addf %34, %39 : vector<22x128xf32>
    %c0_45 = arith.constant 0 : index
    %c0_46 = arith.constant 0 : index
    %c13 = arith.constant 13 : index
    %c0_47 = arith.constant 0 : index
    %41 = vector.load %arg1[%c0_45, %c0_46, %c13, %c0_47] : memref<1x1x36x96xbf16, #tpu.memory_space<vmem>>, vector<1x1x22x96xbf16>
    %42 = vector.shape_cast %41 : vector<1x1x22x96xbf16> to vector<22x96xbf16>
    %c7_48 = arith.constant 7 : index
    %c0_49 = arith.constant 0 : index
    %c0_50 = arith.constant 0 : index
    %43 = vector.load %arg2[%c7_48, %c0_49, %c0_50] : memref<9x96x128xbf16, #tpu.memory_space<vmem>>, vector<1x96x128xbf16>
    %44 = vector.shape_cast %43 : vector<1x96x128xbf16> to vector<96x128xbf16>
    %cst_51 = arith.constant dense<0.000000e+00> : vector<22x128xf32>
    %45 = tpu.matmul %42, %44, %cst_51 {dimension_numbers = #tpu.dot_dimension_numbers<[1], [0], [0], [1], [0, 0, 1, 1], [], []>} : vector<22x96xbf16>, vector<96x128xbf16>, vector<22x128xf32> -> vector<22x128xf32>
    %46 = arith.addf %40, %45 : vector<22x128xf32>
    %c0_52 = arith.constant 0 : index
    %c0_53 = arith.constant 0 : index
    %c14 = arith.constant 14 : index
    %c0_54 = arith.constant 0 : index
    %47 = vector.load %arg1[%c0_52, %c0_53, %c14, %c0_54] : memref<1x1x36x96xbf16, #tpu.memory_space<vmem>>, vector<1x1x22x96xbf16>
    %48 = vector.shape_cast %47 : vector<1x1x22x96xbf16> to vector<22x96xbf16>
    %c8_55 = arith.constant 8 : index
    %c0_56 = arith.constant 0 : index
    %c0_57 = arith.constant 0 : index
    %49 = vector.load %arg2[%c8_55, %c0_56, %c0_57] : memref<9x96x128xbf16, #tpu.memory_space<vmem>>, vector<1x96x128xbf16>
    %50 = vector.shape_cast %49 : vector<1x96x128xbf16> to vector<96x128xbf16>
    %cst_58 = arith.constant dense<0.000000e+00> : vector<22x128xf32>
    %51 = tpu.matmul %48, %50, %cst_58 {dimension_numbers = #tpu.dot_dimension_numbers<[1], [0], [0], [1], [0, 0, 1, 1], [], []>} : vector<22x96xbf16>, vector<96x128xbf16>, vector<22x128xf32> -> vector<22x128xf32>
    %52 = arith.addf %46, %51 : vector<22x128xf32>
    %c0_59 = arith.constant 0 : index
    %c0_60 = arith.constant 0 : index
    %53 = vector.load %arg3[%c0_59, %c0_60] : memref<1x128xf32, #tpu.memory_space<vmem>>, vector<1x128xf32>
    %54 = vector.broadcast %53 : vector<1x128xf32> to vector<22x128xf32>
    %55 = arith.addf %52, %54 : vector<22x128xf32>
    %c0_61 = arith.constant 0 : index
    %c0_62 = arith.constant 0 : index
    %56 = memref.load %arg4[%c0_61, %c0_62] : memref<1x1xf32, #tpu.memory_space<smem>>
    %cst_63 = arith.constant 0.000000e+00 : f32
    %57 = vector.broadcast %cst_63 : f32 to vector<22x128xf32>
    %58 = arith.cmpf oge, %55, %57 : vector<22x128xf32>
    %59 = vector.broadcast %56 : f32 to vector<22x128xf32>
    %60 = arith.mulf %59, %55 : vector<22x128xf32>
    %61 = arith.select %58, %55, %60 : vector<22x128xi1>, vector<22x128xf32>
    %62 = arith.truncf %61 : vector<22x128xf32> to vector<22x128xbf16>
    %c0_64 = arith.constant 0 : index
    %c0_65 = arith.constant 0 : index
    %c0_66 = arith.constant 0 : index
    %63 = vector.load %arg5[%c0_64, %c0_65, %c0_66] : memref<1x22x128xbf16, #tpu.memory_space<vmem>>, vector<1x22x128xbf16>
    %64 = vector.shape_cast %63 : vector<1x22x128xbf16> to vector<22x128xbf16>
    %65 = vector.shape_cast %62 : vector<22x128xbf16> to vector<1x22x128xbf16>
    tpu.vector_store %arg5[%c0_64, %c0_65, %c0_66], %65 {strides = array<i32>} : memref<1x22x128xbf16, #tpu.memory_space<vmem>>, vector<1x22x128xbf16>,
    return
  }
  func.func @transform_0(%arg0: i32) -> (i32, i32, i32, i32) {
    %c0_i32 = arith.constant 0 : i32
    %c0_i32_0 = arith.constant 0 : i32
    %c0_i32_1 = arith.constant 0 : i32
    %c0_i32_2 = arith.constant 0 : i32
    return %arg0, %c0_i32, %c0_i32_0, %c0_i32_1 : i32, i32, i32, i32
  }
  func.func @transform_1(%arg0: i32) -> (i32, i32, i32) {
    %c0_i32 = arith.constant 0 : i32
    %c0_i32_0 = arith.constant 0 : i32
    %c0_i32_1 = arith.constant 0 : i32
    %c0_i32_2 = arith.constant 0 : i32
    return %c0_i32, %c0_i32_0, %c0_i32_1 : i32, i32, i32
  }
  func.func @transform_2(%arg0: i32) -> (i32, i32) {
    %c0_i32 = arith.constant 0 : i32
    %c0_i32_0 = arith.constant 0 : i32
    %c0_i32_1 = arith.constant 0 : i32
    return %c0_i32, %c0_i32_0 : i32, i32
  }
  func.func @transform_3(%arg0: i32) -> (i32, i32) {
    %c0_i32 = arith.constant 0 : i32
    %c0_i32_0 = arith.constant 0 : i32
    %c0_i32_1 = arith.constant 0 : i32
    return %c0_i32, %c0_i32_0 : i32, i32
  }
  func.func @transform_4(%arg0: i32) -> (i32, i32, i32) {
    %c0_i32 = arith.constant 0 : i32
    %c0_i32_0 = arith.constant 0 : i32
    %c0_i32_1 = arith.constant 0 : i32
    return %arg0, %c0_i32, %c0_i32_0 : i32, i32, i32
  }
}

</mosaic_0001>

<bundles_post_ra>
// kernel: feature_extractor_forward.6
= control target key start
LH: loop header
LB: loop body
LE: loop exit
PB: predicated region body
PF: predicated region fallthrough
CT: control target
= control target key end

     0   :  { %s5511_s17 = smov 0   ;;  %s6455_s0 = inlined_call_operand.vmem [shape: bf16[2,1,324,3], index: 0, kind: input, shape index: {}]   ;;  %s6456_s1 = inlined_call_operand.vmem [shape: bf16[9,3,128], index: 1, kind: input, shape index: {}]   ;;  %s6457_s2 = inlined_call_operand.vmem [shape: f32[1,128], index: 2, kind: input, shape index: {}]   ;;  %s6458_s3 = inlined_call_operand.<no memory space> [shape: f32[1,1], index: 3, kind: input, shape index: {}]   ;;  %s6459_s4 = inlined_call_operand.vmem [shape: bf16[2,286,128], index: 4, kind: output, shape index: {}]  }
   0x1   :  { %9 = sst [smem:[#allocation2]] %s6458_s3 }
   0x2 LB: > { %s4149_s18 = sadd.s32 4294967295, %s5480_s17   ;;  %p4153_p0 = scmp.ge.s32.totalorder %s5480_s17, 1  ;;  %s5480_s17 = sphi %s5511_s17, %s15_s17  }
   0x3   : > { %p163_p1 = scmp.lt.s32.totalorder %s5480_s17, 3 }
   0x5   : > { %p164_p2 = pnand %p4153_p0, %p163_p1 }
   0x6   : > { %vm529_vm0 = vcmask (!%p164_p2), 1040384   ;;  %vm530_vm1 = vcmask (!%p164_p2), 1041408   ;;  %v4269_v0 = vld [vmem:[%s6456_s1 + $0x8] sm:$0x3] (!%p164_p2)  ;;  %p189_p3 = scmp.lt.s32.totalorder (!%p164_p2), %s4149_s18, 1  ;;  %v5482_v1 = vmov (!%p164_p2), 65535  }
   0x7   : > { %167 = sbr.rel (%p164_p2) target bundleno = 577 (0x241), region = 36  ;;  %v531_v2 = vsel (!%p164_p2), %vm529_vm0, 4294967295, %v5482_v1  ;;  %v4156_v3 = vld [vmem:[%s6456_s1 + $0x2] sm:$0x3] (!%p164_p2)  ;;  %v4307_v5 = vld [vmem:[%s6456_s1 + $0xa] sm:$0x3] (!%p164_p2) }
   0x8   : > { %v5525_v4 = vsel (!%p164_p2), %vm530_vm1, %v531_v2, 0  ;;  %v236_v9 = vld [vmem:[%s6456_s1] sm:$0x3] (!%p164_p2)  ;;  %vm330_vm2 = vsmask.f32 (!%p164_p2), 7424  ;;  %vm474_vm3 = vcmask (!%p164_p2), 23552  }
   0x9   : > { %v5533_v6 = vand.u32 (!%p164_p2), %v4269_v0, %v5525_v4  ;;  %v534_v7 = vand.u32 (!%p164_p2), %v4156_v3, %v5525_v4  ;;  %v5537_v8 = vand.u32 (!%p164_p2), %v4307_v5, %v5525_v4  ;;  %v5544_v10 = vand.u32 (!%p164_p2), %v5525_v4, %v236_v9  ;;  %v4327_v11 = vld [vmem:[%s6456_s1 + $0xc] sm:$0x3] (!%p164_p2)  ;;  %v4212_v17 = vld [vmem:[%s6456_s1 + $0x4] sm:$0x3] (!%p164_p2)  ;;  %s3804_s14 = sld [smem:[#allocation2]] (!%p164_p2) }
   0xa   : > { %vm1810_vm4 = vsmask.f32 (!%p164_p2), 6400  ;;  %v5587_v26 = vand.u32 (!%p164_p2), %v4327_v11, %v5525_v4  ;;  %v5596_v35 = vand.u32 (!%p164_p2), %v4212_v17, %v5525_v4  ;;  %vm2253_vm5 = vcmask (!%p164_p2), 1045504  }
   0xb   : > { %4904 = vmatprep.subr.bf16.mxu0 (!%p164_p2), %v5533_v6  ;;  %4752 = vmatprep.subr.bf16.mxu1 (!%p164_p2), %v534_v7  ;;  %vm939_vm6 = vcmask (!%p164_p2), 1046528   ;;  %vm3006_vm7 = vsmask.f32 (!%p164_p2), 5376  ;;  %vm3453_vm8 = vcmask (!%p164_p2), 1044480  }
   0xc   : > { %4905 = vmatpush3.bf16.msra.mxu0 (!%p164_p2), %v5533_v6  ;;  %4753 = vmatpush3.bf16.msra.mxu1 (!%p164_p2), %v534_v7 }
   0xd   : > { %4942 = vmatprep.subr.bf16.mxu0 (!%p164_p2), %v5537_v8  ;;  %4790 = vmatprep.subr.bf16.mxu1 (!%p164_p2), %v5544_v10 }
   0xe   : > { %s6461_s18 = smov (!%p189_p3, %s4149_s18), 1 }
   0xf   : > { %s5384_s26 = smul.u32 164, %s6461_s18 }
  0x10   : > { %s5385_s19 = smul.u32 144, %s6461_s18 }
  0x11   : > { %s5551_s29 = scalar_lea.vmem %s6455_s0, %s5384_s26 }
  0x12   : > { %v200_v12 = vld [vmem:[%s5551_s29] sm:$0xf]  ;;  %v5558_v13 = vld [vmem:[%s5551_s29 + $0x4] sm:$0xf]  ;;  %v5566_v15 = vld [vmem:[%s5551_s29 + $0x8] sm:$0xff]   ;;  %s6355_s18 = scalar_lea.vmem %s6459_s4, %s5385_s19 }
  0x13   : > { %v5563_v14 = vcombine.low %v200_v12, %v5558_v13  ;;  %v1678_v16 = vld [vmem:[%s5551_s29 + $0x8] sm:$0xe]  ;;  %v5573_v18 = vld [vmem:[%s5551_s29 + $0xc] sm:$0xf]  ;;  %v339_v21 = vshll.u32 %v5566_v15, 16  ;;  %v343_v22 = vshrl.u32 %v5566_v15, 16 }
  0x14   : > { %v5580_v23 = vld [vmem:[%s5551_s29 + $0x10] sm:$0xff]   ;;  %v4270_v25 = vcombine.low %v1678_v16, %v5573_v18  ;;  %v5593_v34 = vld [vmem:[%s5551_s29 + $0x18] sm:$0xff]   ;;  %v5602_v41 = vld [vmem:[%s5551_s29 + $0x20] sm:$0xff]  }
  0x15   : > { %v332_v19 = vshrl.u32 %v5563_v14, 16  ;;  %v334_v20 = vshll.u32 %v5563_v14, 16  ;;  %v5583_v24 = vld [vmem:[%s5551_s29 + $0x10] sm:$0xff]   ;;  %v341_v28 = vrot.slane %v339_v21, 1  ;;  %v1820_v29 = vshrl.u32 %v5580_v23, 16  ;;  %v5599_v40 = vld [vmem:[%s5551_s29 + $0x18] sm:$0xff]  }
  0x16   : > { %v1823_v30 = vshll.u32 %v5580_v23, 16  ;;  %v1812_v31 = vshrl.u32 %v4270_v25, 16  ;;  %v1815_v32 = vshll.u32 %v4270_v25, 16  ;;  %v347_v33 = vshll.u32 %v5583_v24, 16  ;;  %v5612_v54 = vld [vmem:[%s5551_s29 + $0x20] sm:$0xff]   ;;  %v5615_v55 = vld [vmem:[%s5551_s29 + $0x28] sm:$0xff]  }
  0x17   : > { %v336_v27 = vrot.slane %v334_v20, 1  ;;  %v345_v37 = vor.u32 %v343_v22, %v341_v28  ;;  %v1822_v38 = vrot.slane %v1820_v29, 1  ;;  %v1829_v45 = vshrl.u32 %v5593_v34, 16  ;;  %v5621_v60 = vld [vmem:[%s5551_s29 + $0x28] sm:$0xff]   ;;  %v5628_v1 = vld [vmem:[%s5551_s29 + $0x30] sm:$0xff]   ;;  %v5646_v29 = vld [vmem:[%s5551_s29 + $0x38] sm:$0xff]  }
  0x18   : > { %v1825_v39 = vrot.slane %v1823_v30, 2  ;;  %v1814_v42 = vrot.slane %v1812_v31, 1  ;;  %v1817_v43 = vrot.slane %v1815_v32, 2  ;;  %v349_v44 = vrot.slane %v347_v33, 1  ;;  %v5633_v9 = vld [vmem:[%s5551_s29 + $0x30] sm:$0xff]  }
  0x19   : > { %v337_v36 = vor.u32 %v336_v27, %v332_v19  ;;  %v1832_v48 = vshll.u32 %v5593_v34, 16  ;;  %v351_v49 = vshrl.u32 %v5583_v24, 16  ;;  %v1831_v52 = vrot.slane %v1829_v45, 1 }
  0x1a   : > { %v1826_v47 = vor.u32 %v1825_v39, %v1822_v38  ;;  %v1818_v50 = vor.u32 %v1817_v43, %v1814_v42  ;;  %v350_v51 = vsel %vm330_vm2, %v345_v37, %v349_v44  ;;  %v355_v53 = vshll.u32 %v5599_v40, 16  ;;  %v5655_v42 = vld [vmem:[%s5551_s29 + $0x38] sm:$0xff]  }
  0x1b   : > { %v342_v46 = vsel %vm330_vm2, %v337_v36, %v341_v28  ;;  %v1834_v56 = vrot.slane %v1832_v48, 2  ;;  %v353_v57 = vor.u32 %v351_v49, %v349_v44  ;;  %v1838_v58 = vshrl.u32 %v5602_v41, 16 }
  0x1c   : > { %4754 = vmatprep.mubr.msk.bf16.mxu1 %vm474_vm3, %v342_v46  ;;  %v1841_v59 = vshll.u32 %v5602_v41, 16  ;;  %v1827_v61 = vsel %vm1810_vm4, %v1818_v50, %v1826_v47  ;;  %v357_v62 = vrot.slane %v355_v53, 1  ;;  %v359_v63 = vshrl.u32 %v5599_v40, 16  ;;  %v5665_v50 = vld [vmem:[%s5551_s29 + $0x40] sm:$0xff]  }
  0x1d   : > { %4755 = vmatmul.mubr.msk.bf16.vlgmr.msra.gmra.mrb[0].mxu1 %vm474_vm3, %v350_v51  ;;  %v363_v0 = vshll.u32 %v5612_v54, 16  ;;  %4906 = vmatprep.mubr.msk.bf16.mxu0 %vm474_vm3, %v1827_v61  ;;  %v1835_v2 = vor.u32 %v1834_v56, %v1831_v52  ;;  %v1840_v3 = vrot.slane %v1838_v58, 1  ;;  %v1847_v7 = vshrl.u32 %v5615_v55, 16 }
  0x1e   : > { %4791 = vmatpush3.bf16.msra.mxu1 %v5544_v10  ;;  %v1843_v5 = vrot.slane %v1841_v59, 2  ;;  %v358_v11 = vsel %vm330_vm2, %v353_v57, %v357_v62  ;;  %v361_v12 = vor.u32 %v359_v63, %v357_v62  ;;  %v1850_v10 = vshll.u32 %v5615_v55, 16  ;;  %v5670_v57 = vld [vmem:[%s5551_s29 + $0x40] sm:$0xff]  }
  0x1f   : > { %4828 = vmatprep.subr.bf16.mxu1 %v5596_v35  ;;  %v365_v16 = vrot.slane %v363_v0, 1  ;;  %v1836_v17 = vsel %vm1810_vm4, %v1826_v47, %v1835_v2  ;;  %4758 = vmatprep.mubr.msk.bf16.mxu1 %vm474_vm3, %v358_v11  ;;  %v1849_v20 = vrot.slane %v1847_v7, 1  ;;  %v367_v21 = vshrl.u32 %v5612_v54, 16  ;;  %v5681_v7 = vld [vmem:[%s5551_s29 + $0x48] sm:$0xff]  }
  0x20   : > { %v1844_v19 = vor.u32 %v1843_v5, %v1840_v3  ;;  %4907 = vmatmul.mubr.msk.bf16.vlgmr.msra.gmra.mrb[0].mxu0 %vm474_vm3, %v1836_v17  ;;  %v1852_v25 = vrot.slane %v1850_v10, 2  ;;  %v371_v27 = vshll.u32 %v5621_v60, 16  ;;  %v1856_v28 = vshrl.u32 %v5628_v1, 16  ;;  %v5678_v5 = vld [vmem:[%s5551_s29 + $0x48] sm:$0xff]  }
  0x21   : > { %v366_v22 = vsel %vm330_vm2, %v361_v12, %v365_v16  ;;  %4943 = vmatpush3.bf16.msra.mxu0 %v5537_v8  ;;  %v369_v31 = vor.u32 %v367_v21, %v365_v16  ;;  %v1859_v32 = vshll.u32 %v5628_v1, 16  ;;  %v375_v33 = vshrl.u32 %v5621_v60, 16 }
  0x22   : > { %v1845_v30 = vsel %vm1810_vm4, %v1835_v2, %v1844_v19  ;;  %v1853_v36 = vor.u32 %v1852_v25, %v1849_v20  ;;  %v373_v37 = vrot.slane %v371_v27, 1  ;;  %v1858_v38 = vrot.slane %v1856_v28, 1  ;;  %4980 = vmatprep.subr.bf16.mxu0 %v5587_v26  ;;  %v5690_v20 = vld [vmem:[%s5551_s29 + $0x50] sm:$0xff]  }
  0x23   : > { %4910 = vmatprep.mubr.msk.bf16.mxu0 %vm474_vm3, %v1845_v30  ;;  %v379_v39 = vshll.u32 %v5633_v9, 16  ;;  %v1861_v8 = vrot.slane %v1859_v32, 2  ;;  %v1865_v43 = vshrl.u32 %v5646_v29, 16  ;;  %v1868_v44 = vshll.u32 %v5646_v29, 16 }
  0x24   : > { %v383_v45 = vshrl.u32 %v5633_v9, 16  ;;  %v1854_v46 = vsel %vm1810_vm4, %v1844_v19, %v1853_v36  ;;  %v374_v47 = vsel %vm330_vm2, %v369_v31, %v373_v37  ;;  %v377_v48 = vor.u32 %v375_v33, %v373_v37  ;;  %v5698_v31 = vld [vmem:[%s5551_s29 + $0x50] sm:$0xff]  }
  0x25   : > { %4759 = vmatmul.mubr.msk.bf16.gmra.mrb[4].mxu1 %vm474_vm3, %v366_v22  ;;  %v381_v49 = vrot.slane %v379_v39, 1  ;;  %v1862_v51 = vor.u32 %v1861_v8, %v1858_v38  ;;  %v1867_v52 = vrot.slane %v1865_v43, 1  ;;  %v1870_v53 = vrot.slane %v1868_v44, 2 }
  0x26   : > { %4762 = vmatprep.mubr.msk.bf16.mxu1 %vm474_vm3, %v374_v47  ;;  %v387_v56 = vshll.u32 %v5655_v42, 16  ;;  %v1874_v61 = vshrl.u32 %v5665_v50, 16  ;;  %v1877_v62 = vshll.u32 %v5665_v50, 16  ;;  %v391_v3 = vshrl.u32 %v5655_v42, 16  ;;  %v5708_v47 = vld [vmem:[%s5551_s29 + $0x58] sm:$0xff]  }
  0x27   : > { %v382_v58 = vsel %vm330_vm2, %v377_v48, %v381_v49  ;;  %v385_v59 = vor.u32 %v383_v45, %v381_v49  ;;  %v1863_v63 = vsel %vm1810_vm4, %v1853_v36, %v1862_v51  ;;  %v1871_v0 = vor.u32 %v1870_v53, %v1867_v52  ;;  %v5703_v36 = vld [vmem:[%s5551_s29 + $0x58] sm:$0xff]  }
  0x28   : > { %v389_v2 = vrot.slane %v387_v56, 1  ;;  %4911 = vmatmul.mubr.msk.bf16.gmra.mrb[4].mxu0 %vm474_vm3, %v1854_v46  ;;  %v1876_v11 = vrot.slane %v1874_v61, 1  ;;  %v1879_v12 = vrot.slane %v1877_v62, 2  ;;  %v395_v16 = vshll.u32 %v5670_v57, 16 }
  0x29   : > { %v399_v10 = vshrl.u32 %v5670_v57, 16  ;;  %4914 = vmatprep.mubr.msk.bf16.mxu0 %vm474_vm3, %v1863_v63  ;;  %v1883_v19 = vshrl.u32 %v5678_v5, 16  ;;  %v1886_v22 = vshll.u32 %v5678_v5, 16  ;;  %v403_v25 = vshll.u32 %v5681_v7, 16  ;;  %v2247_v63 = vld [vmem:[%s5551_s29 + $0x8] sm:$0xc] }
  0x2a   : > { %v390_v17 = vsel %vm330_vm2, %v385_v59, %v389_v2  ;;  %v1880_v21 = vor.u32 %v1879_v12, %v1876_v11  ;;  %v397_v27 = vrot.slane %v395_v16, 1  ;;  %v1892_v28 = vshrl.u32 %v5690_v20, 16 }
  0x2b   : > { %v1895_v30 = vshll.u32 %v5690_v20, 16  ;;  %v1872_v32 = vsel %vm1810_vm4, %v1862_v51, %v1871_v0  ;;  %v393_v33 = vor.u32 %v391_v3, %v389_v2  ;;  %v1885_v37 = vrot.slane %v1883_v19, 1 }
  0x2c   : > { %v1888_v38 = vrot.slane %v1886_v22, 2  ;;  %v401_v39 = vor.u32 %v399_v10, %v397_v27  ;;  %v405_v8 = vrot.slane %v403_v25, 1  ;;  %v1881_v43 = vsel %vm1810_vm4, %v1871_v0, %v1880_v21  ;;  %v5722_v0 = vld [vmem:[%s5551_s29 + $0x60] sm:$0xff]  }
  0x2d   : > { %4763 = vmatmul.mubr.msk.bf16.gmra.mrb[8].mxu1 %vm474_vm3, %v382_v58  ;;  %v1894_v44 = vrot.slane %v1892_v28, 1  ;;  %v1897_v45 = vrot.slane %v1895_v30, 2  ;;  %v411_v46 = vshll.u32 %v5698_v31, 16  ;;  %v398_v48 = vsel %vm330_vm2, %v393_v33, %v397_v27 }
  0x2e   : > { %4766 = vmatprep.mubr.msk.bf16.mxu1 %vm474_vm3, %v390_v17  ;;  %v407_v49 = vshrl.u32 %v5681_v7, 16  ;;  %v1901_v51 = vshrl.u32 %v5703_v36, 16  ;;  %v1904_v52 = vshll.u32 %v5703_v36, 16  ;;  %v1889_v53 = vor.u32 %v1888_v38, %v1885_v37  ;;  %v5727_v17 = vld [vmem:[%s5551_s29 + $0x68] sm:$0xff]  }
  0x2f   : > { %v406_v56 = vsel %vm330_vm2, %v401_v39, %v405_v8  ;;  %v415_v58 = vshrl.u32 %v5698_v31, 16  ;;  %v419_v59 = vshll.u32 %v5708_v47, 16  ;;  %v1898_v61 = vor.u32 %v1897_v45, %v1894_v44  ;;  %v5744_v39 = vld [vmem:[%s5551_s29 + $0x70] sm:$0xff]  }
  0x30   : > { %4915 = vmatmul.mubr.msk.bf16.gmra.mrb[8].mxu0 %vm474_vm3, %v1872_v32  ;;  %v413_v62 = vrot.slane %v411_v46, 1  ;;  %v409_v2 = vor.u32 %v407_v49, %v405_v8  ;;  %v1903_v3 = vrot.slane %v1901_v51, 1  ;;  %v1906_v11 = vrot.slane %v1904_v52, 2  ;;  %v5750_v46 = vld [vmem:[%s5551_s29 + $0x78] sm:$0xff]  }
  0x31   : > { %4918 = vmatprep.mubr.msk.bf16.mxu0 %vm474_vm3, %v1881_v43  ;;  %v1890_v12 = vsel %vm1810_vm4, %v1880_v21, %v1889_v53  ;;  %v421_v10 = vrot.slane %v419_v59, 1  ;;  %v1899_v19 = vsel %vm1810_vm4, %v1889_v53, %v1898_v61  ;;  %v4308_v22 = vcombine.low %v2247_v63, %v5573_v18  ;;  %v237_v63 = vld [vmem:[%s5551_s29 + $0x8c] sm:$0xf] }
  0x32   : > { %v417_v16 = vor.u32 %v415_v58, %v413_v62  ;;  %v427_v25 = vshll.u32 %v5722_v0, 16  ;;  %v414_v27 = vsel %vm330_vm2, %v409_v2, %v413_v62  ;;  %v423_v28 = vshrl.u32 %v5708_v47, 16  ;;  %v5767_v62 = vld [vmem:[%s5551_s29 + $0x88] sm:$0xf] }
  0x33   : > { %v5736_v21 = vor.u32 %v1906_v11, %v1903_v3  ;;  %v431_v32 = vshrl.u32 %v5722_v0, 16  ;;  %v435_v33 = vshll.u32 %v5727_v17, 16  ;;  %v2254_v18 = vrot.slane %v4308_v22, 2 }
  0x34   : > { %v422_v30 = vsel %vm330_vm2, %v417_v16, %v421_v10  ;;  %v2255_v37 = vrot.slane %v5580_v23, 2  ;;  %v429_v38 = vrot.slane %v427_v25, 1  ;;  %v425_v8 = vor.u32 %v423_v28, %v421_v10 }
  0x35   : > { %4767 = vmatmul.mubr.msk.bf16.gmra.mrb[12].mxu1 %vm474_vm3, %v398_v48  ;;  %v1908_v43 = vsel %vm1810_vm4, %v1898_v61, %v5736_v21  ;;  %v437_v45 = vrot.slane %v435_v33, 1  ;;  %v443_v48 = vshll.u32 %v5744_v39, 16  ;;  %v439_v51 = vshrl.u32 %v5727_v17, 16  ;;  %v5764_v61 = vld [vmem:[%s5551_s29 + $0x80] sm:$0xff]  }
  0x36   : > { %4770 = vmatprep.mubr.msk.bf16.mxu1 %vm474_vm3, %v406_v56  ;;  %v433_v44 = vor.u32 %v431_v32, %v429_v38  ;;  %v2256_v23 = vsel %vm2253_vm5, %v2254_v18, %v2255_v37  ;;  %v430_v49 = vsel %vm330_vm2, %v425_v8, %v429_v38  ;;  %v2257_v52 = vrot.slane %v5593_v34, 2  ;;  %v4365_v34 = vld [vmem:[%s6456_s1 + $0xe] sm:$0x3] }
  0x37   : > { %v447_v56 = vshrl.u32 %v5744_v39, 16  ;;  %v451_v58 = vshll.u32 %v5750_v46, 16  ;;  %v2259_v59 = vrot.slane %v5602_v41, 2  ;;  %v445_v2 = vrot.slane %v443_v48, 1 }
  0x38   : > { %4919 = vmatmul.mubr.msk.bf16.gmra.mrb[12].mxu0 %vm474_vm3, %v1890_v12  ;;  %v438_v53 = vsel %vm330_vm2, %v433_v44, %v437_v45  ;;  %v441_v3 = vor.u32 %v439_v51, %v437_v45  ;;  %v2258_v11 = vsel %vm2253_vm5, %v2255_v37, %v2257_v52  ;;  %v5777_v41 = vcombine.low %v5767_v62, %v237_v63 }
  0x39   : > { %4922 = vmatprep.mubr.msk.bf16.mxu0 %vm474_vm3, %v1899_v19  ;;  %v449_v12 = vor.u32 %v447_v56, %v445_v2  ;;  %v453_v16 = vrot.slane %v451_v58, 1  ;;  %v2260_v10 = vsel %vm2253_vm5, %v2257_v52, %v2259_v59  ;;  %v459_v19 = vshll.u32 %v5764_v61, 16  ;;  %v5819_v56 = vld [vmem:[%s5551_s29 + $0x60] sm:$0xff]  }
  0x3a   : > { %v5782_v22 = vand.u32 %v4365_v34, %v5525_v4  ;;  %v446_v25 = vsel %vm330_vm2, %v441_v3, %v445_v2  ;;  %v455_v28 = vshrl.u32 %v5750_v46, 16  ;;  %v463_v32 = vshrl.u32 %v5764_v61, 16  ;;  %v5839_v2 = vld [vmem:[%s5551_s29 + $0x68] sm:$0xff]   ;;  %v5844_v34 = vld [vmem:[%s5551_s29 + $0x70] sm:$0xff]  }
  0x3b   : > { %v467_v33 = vshll.u32 %v5777_v41, 16  ;;  %v2263_v18 = vrot.slane %v5628_v1, 2  ;;  %v461_v37 = vrot.slane %v459_v19, 1  ;;  %v2265_v1 = vrot.slane %v5646_v29, 2 }
  0x3c   : > { %v471_v48 = vshrl.u32 %v5777_v41, 16  ;;  %v2269_v29 = vrot.slane %v5678_v5, 2  ;;  %v2273_v5 = vrot.slane %v5703_v36, 2  ;;  %v2277_v3 = vrot.slane %v5839_v2, 2 }
  0x3d   : > { %4771 = vmatmul.mubr.msk.bf16.gmra.mrb[16].mxu1 %vm474_vm3, %v414_v27  ;;  %v2261_v27 = vrot.slane %v5615_v55, 2  ;;  %v457_v55 = vor.u32 %v455_v28, %v453_v16  ;;  %v465_v38 = vor.u32 %v463_v32, %v461_v37  ;;  %v469_v8 = vrot.slane %v467_v33, 1  ;;  %v5872_v28 = vld [vmem:[%s5551_s29 + $0x88] sm:$0xff]   ;;  %v5876_v32 = vld [vmem:[%s5551_s29 + $0x90] sm:$0xff]  }
  0x3e   : > { %4774 = vmatprep.mubr.msk.bf16.mxu1 %vm474_vm3, %v422_v30  ;;  %v454_v30 = vsel %vm330_vm2, %v449_v12, %v453_v16  ;;  %v2285_v33 = vrot.slane %v5872_v28, 2 }
  0x3f   : > { %v462_v44 = vsel %vm330_vm2, %v457_v55, %v461_v37  ;;  %v470_v45 = vsel %vm330_vm2, %v465_v38, %v469_v8  ;;  %v473_v52 = vor.u32 %v471_v48, %v469_v8  ;;  %v2561_v37 = vld [vmem:[%s5551_s29 + $0x10] sm:$0xc]  ;;  %v5886_v55 = vld [vmem:[%s5551_s29 + $0x14] sm:$0xf] }
  0x40   : > { %4923 = vmatmul.mubr.msk.bf16.gmra.mrb[16].mxu0 %vm474_vm3, %v1908_v43  ;;  %v2264_v43 = vsel %vm2253_vm5, %v2261_v27, %v2263_v18  ;;  %v5892_v38 = vld [vmem:[%s5551_s29 + $0x98] ss:$0 sps:$4 sm:$0x11]  }
  0x41   : > { %4944 = vmatprep.mubr.msk.bf16.mxu0 %vm474_vm3, %v2256_v23  ;;  %v2267_v23 = vrot.slane %v5665_v50, 2 }
  0x43   : > { %v2268_v51 = vsel %vm2253_vm5, %v2265_v1, %v2267_v23  ;;  %v2270_v50 = vsel %vm2253_vm5, %v2267_v23, %v2269_v29 }
  0x45   : > { %4775 = vmatmul.mubr.msk.bf16.gmra.mrb[20].mxu1 %vm474_vm3, %v430_v49  ;;  %v2266_v49 = vsel %vm2253_vm5, %v2263_v18, %v2265_v1  ;;  %v2287_v18 = vrot.slane %v5876_v32, 2  ;;  %v2289_v1 = vrot.slane %v5892_v38, 2 }
  0x46   : > { %4778 = vmatprep.mubr.msk.bf16.mxu1 %vm474_vm3, %v438_v53  ;;  %v2271_v53 = vrot.slane %v5690_v20, 2  ;;  %v2275_v20 = vrot.slane %v5819_v56, 2 }
  0x47   : > { %v2288_v8 = vsel %vm2253_vm5, %v2285_v33, %v2287_v18  ;;  %v2290_v48 = vsel %vm2253_vm5, %v2287_v18, %v2289_v1  ;;  %v5971_v18 = vld [vmem:[%s5551_s29 + $0x50] sm:$0xff]  }
  0x48   : > { %4945 = vmatmul.mubr.msk.bf16.vlgmr.msra.gmra.mrb[0].mxu0 %vm474_vm3, %v2258_v11  ;;  %v2272_v58 = vsel %vm2253_vm5, %v2269_v29, %v2271_v53  ;;  %v2274_v63 = vsel %vm2253_vm5, %v2271_v53, %v2273_v5  ;;  %v2276_v36 = vsel %vm2253_vm5, %v2273_v5, %v2275_v20  ;;  %v2279_v11 = vrot.slane %v5844_v34, 2 }
  0x49   : > { %4981 = vmatpush3.bf16.msra.mxu0 %v5587_v26  ;;  %4948 = vmatprep.mubr.msk.bf16.mxu0 %vm474_vm3, %v2260_v10  ;;  %v2262_v26 = vsel %vm2253_vm5, %v2259_v59, %v2261_v27  ;;  %v4232_v59 = vld [vmem:[%s6456_s1 + $0x6] sm:$0x3]  ;;  %v2278_v12 = vsel %vm2253_vm5, %v2275_v20, %v2277_v3  ;;  %v5935_v20 = vld [vmem:[%s5551_s29 + $0x38] sm:$0xff]  }
  0x4a   : > { %5018 = vmatprep.subr.bf16.mxu0 %v5782_v22  ;;  %v2280_v16 = vsel %vm2253_vm5, %v2277_v3, %v2279_v11  ;;  %v5860_v10 = vld [vmem:[%s5551_s29 + $0x80] sm:$0xff]   ;;  %v2702_v3 = vrot.slane %v5935_v20, 2 }
  0x4d   : > { %4779 = vmatmul.mubr.msk.bf16.gmra.mrb[24].mxu1 %vm474_vm3, %v446_v25  ;;  %v2283_v25 = vrot.slane %v5860_v10, 2 }
  0x4e   : > { %4782 = vmatprep.mubr.msk.bf16.mxu1 %vm474_vm3, %v454_v30 }
  0x50   : > { %4949 = vmatmul.mubr.msk.bf16.gmra.mrb[4].mxu0 %vm474_vm3, %v2262_v26  ;;  %v2286_v26 = vsel %vm2253_vm5, %v2283_v25, %v2285_v33 }
  0x51   : > { %4952 = vmatprep.mubr.msk.bf16.mxu0 %vm474_vm3, %v2264_v43  ;;  %v5896_v43 = vcombine.low %v2561_v37, %v5886_v55 }
  0x55   : > { %4783 = vmatmul.mubr.msk.bf16.gmra.mrb[28].mxu1 %vm474_vm3, %v462_v44  ;;  %v5899_v44 = vld [vmem:[%s5551_s29 + $0x18] sm:$0xff]  }
  0x56   : > { %4786 = vmatprep.mubr.msk.bf16.mxu1 %vm474_vm3, %v470_v45  ;;  %v2693_v45 = vrot.slane %v5896_v43, 2  ;;  %v2694_v23 = vrot.slane %v5899_v44, 2 }
  0x58   : > { %4953 = vmatmul.mubr.msk.bf16.gmra.mrb[8].mxu0 %vm474_vm3, %v2266_v49  ;;  %v5912_v49 = vld [vmem:[%s5551_s29 + $0x20] sm:$0xff]  }
  0x59   : > { %4956 = vmatprep.mubr.msk.bf16.mxu0 %vm474_vm3, %v2268_v51  ;;  %v2695_v51 = vsel %vm2253_vm5, %v2693_v45, %v2694_v23  ;;  %v2696_v29 = vrot.slane %v5912_v49, 2  ;;  %v2708_v45 = vrot.slane %v5971_v18, 2 }
  0x5d   : > { %4787 = vmatmul.mubr.msk.bf16.gmra.mrb[32].mxu1 %vm474_vm3, %v473_v52  ;;  %v5916_v52 = vld [vmem:[%s5551_s29 + $0x28] sm:$0xff]  }
  0x5e   : > { %4792 = vmatprep.mubr.msk.bf16.mxu1 %vm474_vm3, %v5563_v14  ;;  %v5829_v14 = vand.u32 %v4232_v59, %v5525_v4  ;;  %v2698_v53 = vrot.slane %v5916_v52, 2  ;;  %v5931_v59 = vld [vmem:[%s5551_s29 + $0x30] sm:$0xff]  }
  0x60   : > { %4957 = vmatmul.mubr.msk.bf16.gmra.mrb[12].mxu0 %vm474_vm3, %v2270_v50  ;;  %v4385_v50 = vld [vmem:[%s6456_s1 + $0x10] sm:$0x3]  ;;  %v2699_v5 = vsel %vm2253_vm5, %v2696_v29, %v2698_v53 }
  0x61   : > { %4960 = vmatprep.mubr.msk.bf16.mxu0 %vm474_vm3, %v2272_v58  ;;  %v2697_v58 = vsel %vm2253_vm5, %v2694_v23, %v2696_v29  ;;  %v945_v29 = vrot.slane %v5599_v40, 1 }
  0x65   : > { %4793 = vmatmul.mubr.msk.bf16.vlgmr.msra.gmra.mrb[0].mxu1 %vm474_vm3, %v5566_v15 }
  0x66   : > { %4796 = vmatprep.mubr.msk.bf16.mxu1 %vm474_vm3, %v5583_v24  ;;  %4829 = vmatpush3.bf16.msra.mxu1 %v5596_v35  ;;  %v5853_v35 = vld [vmem:[%s5551_s29 + $0x78] sm:$0xff]  }
  0x67   : > { %4866 = vmatprep.subr.bf16.mxu1 %v5829_v14  ;;  %v2281_v19 = vrot.slane %v5853_v35, 2 }
  0x68   : > { %4961 = vmatmul.mubr.msk.bf16.gmra.mrb[16].mxu0 %vm474_vm3, %v2274_v63  ;;  %v5938_v63 = vand.u32 %v4385_v50, %v5525_v4  ;;  %v5994_v50 = vld [vmem:[%s5551_s29 + $0x68] sm:$0xff]  }
  0x69   : > { %4964 = vmatprep.mubr.msk.bf16.mxu0 %vm474_vm3, %v2276_v36  ;;  %v2282_v27 = vsel %vm2253_vm5, %v2279_v11, %v2281_v19  ;;  %v2284_v30 = vsel %vm2253_vm5, %v2281_v19, %v2283_v25  ;;  %v2700_v36 = vrot.slane %v5931_v59, 2  ;;  %v5952_v11 = vld [vmem:[%s5551_s29 + $0x40] sm:$0xff]  }
  0x6a   : > { %v2704_v19 = vrot.slane %v5952_v11, 2 }
  0x6b   : > { %v2701_v4 = vsel %vm2253_vm5, %v2698_v53, %v2700_v36 }
  0x6c   : > { %v2705_v33 = vsel %vm2253_vm5, %v2702_v3, %v2704_v19 }
  0x6d   : > { %4797 = vmatmul.mubr.msk.bf16.gmra.mrb[4].mxu1 %vm474_vm3, %v5599_v40  ;;  %v947_v40 = vrot.slane %v5612_v54, 1 }
  0x6e   : > { %4800 = vmatprep.mubr.msk.bf16.mxu1 %vm474_vm3, %v5612_v54 }
  0x6f   : > { %v948_v54 = vsel %vm939_vm6, %v945_v29, %v947_v40 }
  0x70   : > { %4965 = vmatmul.mubr.msk.bf16.gmra.mrb[20].mxu0 %vm474_vm3, %v2278_v12  ;;  %v5956_v12 = vld [vmem:[%s5551_s29 + $0x48] sm:$0xff]  }
  0x71   : > { %4968 = vmatprep.mubr.msk.bf16.mxu0 %vm474_vm3, %v2280_v16  ;;  %v933_v16 = vld [vmem:[%s5551_s29] sm:$0xe] }
  0x72   : > { %v4213_v25 = vcombine.low %v933_v16, %v5558_v13  ;;  %v5976_v13 = vld [vmem:[%s5551_s29 + $0x58] sm:$0xff]  }
  0x74   : > { %v940_v37 = vrot.slane %v4213_v25, 1 }
  0x75   : > { %4801 = vmatmul.mubr.msk.bf16.gmra.mrb[8].mxu1 %vm474_vm3, %v5621_v60 }
  0x76   : > { %4804 = vmatprep.mubr.msk.bf16.mxu1 %vm474_vm3, %v5633_v9 }
  0x78   : > { %4969 = vmatmul.mubr.msk.bf16.gmra.mrb[24].mxu0 %vm474_vm3, %v2282_v27  ;;  %v2706_v27 = vrot.slane %v5956_v12, 2 }
  0x79   : > { %4972 = vmatprep.mubr.msk.bf16.mxu0 %vm474_vm3, %v2284_v30  ;;  %v235_v30 = vld [vmem:[%s5551_s29 + $0x8c] sm:$0x7] }
  0x7a   : > { %v4193_v1 = vcombine.low %v5767_v62, %v235_v30  ;;  %v5989_v62 = vld [vmem:[%s5551_s29 + $0x60] sm:$0xff]  }
  0x7d   : > { %4805 = vmatmul.mubr.msk.bf16.gmra.mrb[12].mxu1 %vm474_vm3, %v5655_v42 }
  0x7e   : > { %4808 = vmatprep.mubr.msk.bf16.mxu1 %vm474_vm3, %v5670_v57 }
  0x80   : > { %4973 = vmatmul.mubr.msk.bf16.gmra.mrb[28].mxu0 %vm474_vm3, %v2286_v26  ;;  %v941_v26 = vrot.slane %v5566_v15, 1  ;;  %v943_v15 = vrot.slane %v5583_v24, 1  ;;  %v2712_v24 = vrot.slane %v5989_v62, 2 }
  0x81   : > { %4976 = vmatprep.mubr.msk.bf16.mxu0 %vm474_vm3, %v2288_v8  ;;  %v2707_v8 = vsel %vm2253_vm5, %v2704_v19, %v2706_v27  ;;  %v6014_v19 = vld [vmem:[%s5551_s29 + $0x78] sm:$0xff]  }
  0x82   : > { %v942_v23 = vsel %vm939_vm6, %v940_v37, %v941_v26  ;;  %v953_v37 = vrot.slane %v5655_v42, 1  ;;  %v955_v42 = vrot.slane %v5670_v57, 1 }
  0x85   : > { %4809 = vmatmul.mubr.msk.bf16.gmra.mrb[16].mxu1 %vm474_vm3, %v5681_v7 }
  0x86   : > { %4812 = vmatprep.mubr.msk.bf16.mxu1 %vm474_vm3, %v5698_v31 }
  0x88   : > { %4977 = vmatmul.mubr.msk.bf16.gmra.mrb[32].mxu0 %vm474_vm3, %v2290_v48  ;;  %v2710_v48 = vrot.slane %v5976_v13, 2 }
  0x89   : > { %4982 = vmatprep.mubr.msk.bf16.mxu0 %vm474_vm3, %v2695_v51  ;;  %v2709_v51 = vsel %vm2253_vm5, %v2706_v27, %v2708_v45  ;;  %v2718_v27 = vrot.slane %v6014_v19, 2 }
  0x8a   : > { %v2711_v53 = vsel %vm2253_vm5, %v2708_v45, %v2710_v48 }
  0x8d   : > { %4813 = vmatmul.mubr.msk.bf16.gmra.mrb[20].mxu1 %vm474_vm3, %v5708_v47 }
  0x8e   : > { %4816 = vmatprep.mubr.msk.bf16.mxu1 %vm474_vm3, %v5722_v0 }
  0x90   : > { %4983 = vmatmul.mubr.msk.bf16.vlgmr.msra.gmra.mrb[0].mxu0 %vm474_vm3, %v2697_v58  ;;  %v944_v58 = vsel %vm939_vm6, %v941_v26, %v943_v15 }
  0x91   : > { %5019 = vmatpush3.bf16.msra.mxu0 %v5782_v22  ;;  %4986 = vmatprep.mubr.msk.bf16.mxu0 %vm474_vm3, %v2699_v5  ;;  %v2703_v22 = vsel %vm2253_vm5, %v2700_v36, %v2702_v3  ;;  %v946_v5 = vsel %vm939_vm6, %v943_v15, %v945_v29  ;;  %v2714_v36 = vrot.slane %v5994_v50, 2  ;;  %v2713_v3 = vsel %vm2253_vm5, %v2710_v48, %v2712_v24  ;;  %v6045_v15 = vld [vmem:[%s5551_s29 + $0x90] sm:$0xff]   ;;  %v6049_v29 = vld [vmem:[%s5551_s29 + $0x98] sm:$0xff]  }
  0x92   : > { %5056 = vmatprep.subr.bf16.mxu0 %v5938_v63 }
  0x93   : > { %v2715_v16 = vsel %vm2253_vm5, %v2712_v24, %v2714_v36  ;;  %v2724_v24 = vrot.slane %v6045_v15, 2 }
  0x95   : > { %4817 = vmatmul.mubr.msk.bf16.gmra.mrb[24].mxu1 %vm474_vm3, %v5727_v17 }
  0x96   : > { %4820 = vmatprep.mubr.msk.bf16.mxu1 %vm474_vm3, %v5744_v39 }
  0x98   : > { %4987 = vmatmul.mubr.msk.bf16.gmra.mrb[4].mxu0 %vm474_vm3, %v2701_v4  ;;  %v6008_v4 = vld [vmem:[%s5551_s29 + $0x70] sm:$0xff]  }
  0x99   : > { %4990 = vmatprep.mubr.msk.bf16.mxu0 %vm474_vm3, %v2703_v22  ;;  %v949_v22 = vrot.slane %v5621_v60, 1  ;;  %v951_v60 = vrot.slane %v5633_v9, 1 }
  0x9b   : > { %v950_v25 = vsel %vm939_vm6, %v947_v40, %v949_v22  ;;  %v954_v45 = vsel %vm939_vm6, %v951_v60, %v953_v37  ;;  %v3016_v40 = vshrl.u32 %v5899_v44, 16 }
  0x9d   : > { %4821 = vmatmul.mubr.msk.bf16.gmra.mrb[28].mxu1 %vm474_vm3, %v5750_v46 }
  0x9e   : > { %4824 = vmatprep.mubr.msk.bf16.mxu1 %vm474_vm3, %v5764_v61 }
  0xa0   : > { %4991 = vmatmul.mubr.msk.bf16.gmra.mrb[8].mxu0 %vm474_vm3, %v2705_v33  ;;  %v6027_v33 = vld [vmem:[%s5551_s29 + $0x80] sm:$0xff]  }
  0xa1   : > { %4994 = vmatprep.mubr.msk.bf16.mxu0 %vm474_vm3, %v2707_v8  ;;  %v6032_v8 = vld [vmem:[%s5551_s29 + $0x88] sm:$0xff]   ;;  %v2720_v9 = vrot.slane %v6027_v33, 2 }
  0xa3   : > { %v2721_v48 = vsel %vm2253_vm5, %v2718_v27, %v2720_v9 }
  0xa5   : > { %4825 = vmatmul.mubr.msk.bf16.gmra.mrb[32].mxu1 %vm474_vm3, %v4193_v1  ;;  %v952_v1 = vsel %vm939_vm6, %v949_v22, %v951_v60  ;;  %v959_v22 = vrot.slane %v5698_v31, 1 }
  0xa6   : > { %4830 = vmatprep.mubr.msk.bf16.mxu1 %vm474_vm3, %v942_v23  ;;  %v2722_v23 = vrot.slane %v6032_v8, 2 }
  0xa8   : > { %4995 = vmatmul.mubr.msk.bf16.gmra.mrb[12].mxu0 %vm474_vm3, %v2709_v51  ;;  %v957_v51 = vrot.slane %v5681_v7, 1  ;;  %v3011_v7 = vshll.u32 %v5896_v43, 16 }
  0xa9   : > { %4998 = vmatprep.mubr.msk.bf16.mxu0 %vm474_vm3, %v2711_v53  ;;  %v2723_v53 = vsel %vm2253_vm5, %v2720_v9, %v2722_v23  ;;  %v3028_v9 = vshll.u32 %v5912_v49, 16 }
  0xaa   : > { %v958_v57 = vsel %vm939_vm6, %v955_v42, %v957_v51  ;;  %v3013_v60 = vrot.slane %v3011_v7, 3 }
  0xad   : > { %4831 = vmatmul.mubr.msk.bf16.vlgmr.msra.gmra.mrb[0].mxu1 %vm474_vm3, %v944_v58  ;;  %v956_v58 = vsel %vm939_vm6, %v953_v37, %v955_v42  ;;  %v960_v37 = vsel %vm939_vm6, %v957_v51, %v959_v22  ;;  %v3037_v42 = vshll.u32 %v5916_v52, 16 }
  0xae   : > { %4834 = vmatprep.mubr.msk.bf16.mxu1 %vm474_vm3, %v946_v5  ;;  %4867 = vmatpush3.bf16.msra.mxu1 %v5829_v14  ;;  %v2716_v14 = vrot.slane %v6008_v4, 2  ;;  %v2726_v5 = vrot.slane %v6049_v29, 2 }
  0xaf   : > { %5094 = vmatprep.subr.bf16.mxu1 %v5533_v6  ;;  %v3039_v7 = vrot.slane %v3037_v42, 3  ;;  %v971_v42 = vrot.slane %v5764_v61, 1 }
  0xb0   : > { %4999 = vmatmul.mubr.msk.bf16.gmra.mrb[16].mxu0 %vm474_vm3, %v2713_v3  ;;  %v2717_v30 = vsel %vm2253_vm5, %v2714_v36, %v2716_v14  ;;  %v2719_v26 = vsel %vm2253_vm5, %v2716_v14, %v2718_v27  ;;  %v3008_v36 = vshrl.u32 %v5896_v43, 16  ;;  %v3019_v3 = vshll.u32 %v5899_v44, 16  ;;  %v5453_v14 = vld [vmem:[%s5551_s29 + $0xa0] ss:$0 sps:$4 sm:$0x11]  }
  0xb1   : > { %5002 = vmatprep.mubr.msk.bf16.mxu0 %vm474_vm3, %v2715_v16  ;;  %v2725_v16 = vsel %vm2253_vm5, %v2722_v23, %v2724_v24  ;;  %v3018_v43 = vrot.slane %v3016_v40, 2 }
  0xb2   : > { %v3010_v27 = vrot.slane %v3008_v36, 2 }
  0xb5   : > { %4835 = vmatmul.mubr.msk.bf16.gmra.mrb[4].mxu1 %vm474_vm3, %v948_v54  ;;  %v2727_v54 = vsel %vm2253_vm5, %v2724_v24, %v2726_v5  ;;  %v965_v24 = vrot.slane %v5727_v17, 1  ;;  %v3052_v17 = vshrl.u32 %v5935_v20, 16 }
  0xb6   : > { %4838 = vmatprep.mubr.msk.bf16.mxu1 %vm474_vm3, %v950_v25  ;;  %v961_v25 = vrot.slane %v5708_v47, 1  ;;  %v3034_v47 = vshrl.u32 %v5916_v52, 16 }
  0xb8   : > { %5003 = vmatmul.mubr.msk.bf16.gmra.mrb[20].mxu0 %vm474_vm3, %v2717_v30  ;;  %v3021_v30 = vrot.slane %v3019_v3, 3  ;;  %v962_v31 = vsel %vm939_vm6, %v959_v22, %v961_v25  ;;  %v3036_v36 = vrot.slane %v3034_v47, 2  ;;  %v3073_v47 = vshll.u32 %v5956_v12, 16 }
  0xb9   : > { %5006 = vmatprep.mubr.msk.bf16.mxu0 %vm474_vm3, %v2719_v26  ;;  %v2728_v26 = vrot.slane %v5453_v14, 2  ;;  %v967_v14 = vrot.slane %v5744_v39, 1 }
  0xba   : > { %v3022_v23 = vor.u32 %v3021_v30, %v3018_v43  ;;  %v969_v43 = vrot.slane %v5750_v46, 1 }
  0xbb   : > { %v2729_v51 = vsel %vm2253_vm5, %v2726_v5, %v2728_v26  ;;  %v3046_v5 = vshll.u32 %v5931_v59, 16 }
  0xbd   : > { %4839 = vmatmul.mubr.msk.bf16.gmra.mrb[8].mxu1 %vm474_vm3, %v952_v1  ;;  %v3025_v1 = vshrl.u32 %v5912_v49, 16 }
  0xbe   : > { %4842 = vmatprep.mubr.msk.bf16.mxu1 %vm474_vm3, %v954_v45  ;;  %v3014_v45 = vor.u32 %v3013_v60, %v3010_v27  ;;  %v3048_v60 = vrot.slane %v3046_v5, 3  ;;  %v3088_v5 = vshrl.u32 %v5976_v13, 16 }
  0xc0   : > { %5007 = vmatmul.mubr.msk.bf16.gmra.mrb[24].mxu0 %vm474_vm3, %v2721_v48  ;;  %v963_v48 = vrot.slane %v5722_v0, 1  ;;  %v3043_v0 = vshrl.u32 %v5931_v59, 16 }
  0xc1   : > { %5010 = vmatprep.mubr.msk.bf16.mxu0 %vm474_vm3, %v2723_v53  ;;  %v3027_v53 = vrot.slane %v3025_v1, 2  ;;  %v3061_v1 = vshrl.u32 %v5952_v11, 16 }
  0xc2   : > { %v964_v40 = vsel %vm939_vm6, %v961_v25, %v963_v48  ;;  %v966_v22 = vsel %vm939_vm6, %v963_v48, %v965_v24  ;;  %v3045_v27 = vrot.slane %v3043_v0, 2 }
  0xc3   : > { %v3063_v48 = vrot.slane %v3061_v1, 2  ;;  %v3097_v1 = vshrl.u32 %v5989_v62, 16 }
  0xc4   : > { %v3049_v39 = vor.u32 %v3048_v60, %v3045_v27 }
  0xc5   : > { %4843 = vmatmul.mubr.msk.bf16.gmra.mrb[12].mxu1 %vm474_vm3, %v956_v58  ;;  %v3030_v58 = vrot.slane %v3028_v9, 3  ;;  %v3064_v9 = vshll.u32 %v5952_v11, 16 }
  0xc6   : > { %4846 = vmatprep.mubr.msk.bf16.mxu1 %vm474_vm3, %v958_v57  ;;  %v3023_v57 = vsel %vm3006_vm7, %v3014_v45, %v3022_v23  ;;  %v970_v45 = vsel %vm939_vm6, %v967_v14, %v969_v43 }
  0xc7   : > { %v3031_v3 = vor.u32 %v3030_v58, %v3027_v53  ;;  %v973_v53 = vrot.slane %v5777_v41, 1  ;;  %v5455_v41 = vld [vmem:[%s5551_s29 + $0x10] sm:$0xff]  }
  0xc8   : > { %5011 = vmatmul.mubr.msk.bf16.gmra.mrb[28].mxu0 %vm474_vm3, %v2725_v16  ;;  %v3040_v16 = vor.u32 %v3039_v7, %v3036_v36  ;;  %v972_v36 = vsel %vm939_vm6, %v969_v43, %v971_v42  ;;  %v1374_v27 = vrot.slane %v5455_v41, 1  ;;  %v3090_v43 = vrot.slane %v3088_v5, 2 }
  0xc9   : > { %5014 = vmatprep.mubr.msk.bf16.mxu0 %vm474_vm3, %v2727_v54  ;;  %v3055_v54 = vshll.u32 %v5935_v20, 16  ;;  %v3032_v25 = vsel %vm3006_vm7, %v3022_v23, %v3031_v3  ;;  %v3070_v23 = vshrl.u32 %v5956_v12, 16  ;;  %v974_v61 = vsel %vm939_vm6, %v971_v42, %v973_v53 }
  0xca   : > { %v3041_v30 = vsel %vm3006_vm7, %v3031_v3, %v3040_v16  ;;  %v3082_v3 = vshll.u32 %v5971_v18, 16  ;;  %v3127_v5 = vshll.u32 %v6014_v19, 16 }
  0xcb   : > { %v3057_v26 = vrot.slane %v3055_v54, 3 }
  0xcd   : > { %4847 = vmatmul.mubr.msk.bf16.gmra.mrb[16].mxu1 %vm474_vm3, %v960_v37  ;;  %v3054_v37 = vrot.slane %v3052_v17, 2 }
  0xce   : > { %4850 = vmatprep.mubr.msk.bf16.mxu1 %vm474_vm3, %v962_v31  ;;  %v968_v31 = vsel %vm939_vm6, %v965_v24, %v967_v14  ;;  %v3072_v24 = vrot.slane %v3070_v23, 2  ;;  %v3084_v14 = vrot.slane %v3082_v3, 3  ;;  %v3109_v23 = vshll.u32 %v5994_v50, 16 }
  0xcf   : > { %v3058_v46 = vor.u32 %v3057_v26, %v3054_v37  ;;  %v5456_v37 = vld [vmem:[%s5551_s29 + $0x18] sm:$0xff]   ;;  %v3118_v3 = vshll.u32 %v6008_v4, 16 }
  0xd0   : > { %5015 = vmatmul.mubr.msk.bf16.gmra.mrb[32].mxu0 %vm474_vm3, %v2729_v51  ;;  %v3050_v51 = vsel %vm3006_vm7, %v3040_v16, %v3049_v39  ;;  %v3091_v16 = vshll.u32 %v5976_v13, 16 }
  0xd1   : > { %5020 = vmatprep.mubr.msk.bf16.mxu0 %vm474_vm3, %v3023_v57  ;;  %v3059_v58 = vsel %vm3006_vm7, %v3049_v39, %v3058_v46  ;;  %v3075_v57 = vrot.slane %v3073_v47, 3  ;;  %v5457_v39 = vld [vmem:[%s5551_s29 + $0x20] sm:$0xff]   ;;  %v1376_v47 = vrot.slane %v5456_v37, 1  ;;  %v5460_v37 = vld [vmem:[%s5551_s29 + $0x38] sm:$0xff]  }
  0xd3   : > { %v3076_v0 = vor.u32 %v3075_v57, %v3072_v24  ;;  %v3111_v57 = vrot.slane %v3109_v23, 3  ;;  %v1384_v23 = vrot.slane %v5460_v37, 1  ;;  %v5464_v37 = vld [vmem:[%s5551_s29 + $0x58] sm:$0xff]  }
  0xd5   : > { %4851 = vmatmul.mubr.msk.bf16.gmra.mrb[20].mxu1 %vm474_vm3, %v964_v40  ;;  %v3079_v40 = vshrl.u32 %v5971_v18, 16 }
  0xd6   : > { %4854 = vmatprep.mubr.msk.bf16.mxu1 %vm474_vm3, %v966_v22  ;;  %v5454_v22 = vld [vmem:[%s5551_s29 + $0x8] sm:$0xfe]  }
  0xd7   : > { %v3081_v54 = vrot.slane %v3079_v40, 2  ;;  %v3115_v40 = vshrl.u32 %v6008_v4, 16 }
  0xd8   : > { %5021 = vmatmul.mubr.msk.bf16.vlgmr.msra.gmra.mrb[0].mxu0 %vm474_vm3, %v3032_v25  ;;  %v1373_v25 = vrot.slane %v5454_v22, 1  ;;  %v5459_v22 = vld [vmem:[%s5551_s29 + $0x30] sm:$0xff]  }
  0xd9   : > { %5057 = vmatpush3.bf16.msra.mxu0 %v5938_v63  ;;  %5024 = vmatprep.mubr.msk.bf16.mxu0 %vm474_vm3, %v3041_v30  ;;  %v3066_v63 = vrot.slane %v3064_v9, 3  ;;  %v3093_v30 = vrot.slane %v3091_v16, 3  ;;  %v3085_v26 = vor.u32 %v3084_v14, %v3081_v54  ;;  %v3100_v9 = vshll.u32 %v5989_v62, 16 }
  0xda   : > { %v3117_v54 = vrot.slane %v3115_v40, 2  ;;  %v3120_v14 = vrot.slane %v3118_v3, 3  ;;  %v3154_v40 = vshll.u32 %v6045_v15, 16  ;;  %v5463_v3 = vld [vmem:[%s5551_s29 + $0x50] sm:$0xff]  }
  0xdb   : > { %v3067_v7 = vor.u32 %v3066_v63, %v3063_v48  ;;  %v3086_v42 = vsel %vm3006_vm7, %v3076_v0, %v3085_v26  ;;  %v3099_v48 = vrot.slane %v3097_v1, 2  ;;  %v3102_v63 = vrot.slane %v3100_v9, 3  ;;  %v5461_v9 = vld [vmem:[%s5551_s29 + $0x40] sm:$0xff]  }
  0xdc   : > { %v3136_v1 = vshll.u32 %v6027_v33, 16 }
  0xdd   : > { %4855 = vmatmul.mubr.msk.bf16.gmra.mrb[24].mxu1 %vm474_vm3, %v968_v31  ;;  %v3068_v17 = vsel %vm3006_vm7, %v3058_v46, %v3067_v7  ;;  %v3077_v60 = vsel %vm3006_vm7, %v3067_v7, %v3076_v0  ;;  %v1375_v31 = vsel %vm939_vm6, %v1373_v25, %v1374_v27  ;;  %v3106_v46 = vshrl.u32 %v5994_v50, 16  ;;  %v5458_v7 = vld [vmem:[%s5551_s29 + $0x28] sm:$0xff]  }
  0xde   : > { %4858 = vmatprep.mubr.msk.bf16.mxu1 %vm474_vm3, %v970_v45  ;;  %v3094_v45 = vor.u32 %v3093_v30, %v3090_v43  ;;  %v3124_v0 = vshrl.u32 %v6014_v19, 16  ;;  %v1380_v16 = vrot.slane %v5458_v7, 1  ;;  %v1382_v25 = vrot.slane %v5459_v22, 1 }
  0xdf   : > { %v3108_v24 = vrot.slane %v3106_v46, 2  ;;  %v3129_v43 = vrot.slane %v3127_v5, 3  ;;  %v3145_v46 = vshll.u32 %v6032_v8, 16 }
  0xe0   : > { %5025 = vmatmul.mubr.msk.bf16.gmra.mrb[4].mxu0 %vm474_vm3, %v3050_v51  ;;  %v1378_v51 = vrot.slane %v5457_v39, 1 }
  0xe1   : > { %5028 = vmatprep.mubr.msk.bf16.mxu0 %vm474_vm3, %v3059_v58  ;;  %v3095_v58 = vsel %vm3006_vm7, %v3085_v26, %v3094_v45  ;;  %v3112_v41 = vor.u32 %v3111_v57, %v3108_v24  ;;  %v3121_v26 = vor.u32 %v3120_v14, %v3117_v54  ;;  %v3147_v24 = vrot.slane %v3145_v46, 3 }
  0xe2   : > { %v1381_v30 = vsel %vm939_vm6, %v1378_v51, %v1380_v16  ;;  %v1385_v57 = vsel %vm939_vm6, %v1382_v25, %v1384_v23  ;;  %v3156_v54 = vrot.slane %v3154_v40, 3  ;;  %v1390_v14 = vrot.slane %v5463_v3, 1 }
  0xe3   : > { %v1392_v46 = vrot.slane %v5464_v37, 1  ;;  %v5473_v37 = vld [vmem:[%s5551_s29 + $0x90] sm:$0xff]  }
  0xe5   : > { %4859 = vmatmul.mubr.msk.bf16.gmra.mrb[28].mxu1 %vm474_vm3, %v972_v36  ;;  %v1377_v36 = vsel %vm939_vm6, %v1374_v27, %v1376_v47 }
  0xe6   : > { %4862 = vmatprep.mubr.msk.bf16.mxu1 %vm474_vm3, %v974_v61  ;;  %v1379_v61 = vsel %vm939_vm6, %v1376_v47, %v1378_v51  ;;  %v3122_v47 = vsel %vm3006_vm7, %v3112_v41, %v3121_v26 }
  0xe8   : > { %5029 = vmatmul.mubr.msk.bf16.gmra.mrb[8].mxu0 %vm474_vm3, %v3068_v17 }
  0xe9   : > { %5032 = vmatprep.mubr.msk.bf16.mxu0 %vm474_vm3, %v3077_v60  ;;  %v3126_v60 = vrot.slane %v3124_v0, 2  ;;  %v3163_v0 = vshll.u32 %v6049_v29, 16 }
  0xeb   : > { %v3130_v39 = vor.u32 %v3129_v43, %v3126_v60  ;;  %v3165_v43 = vrot.slane %v3163_v0, 3  ;;  %v5470_v0 = vld [vmem:[%s5551_s29 + $0x78] sm:$0xff]  }
  0xed   : > { %4863 = vmatmul.mubr.msk.bf16.gmra.mrb[32].mxu1 %vm474_vm3, %v973_v53  ;;  %v3103_v53 = vor.u32 %v3102_v63, %v3099_v48  ;;  %v3138_v48 = vrot.slane %v3136_v1, 3  ;;  %v1386_v63 = vrot.slane %v5461_v9, 1  ;;  %v3131_v51 = vsel %vm3006_vm7, %v3121_v26, %v3130_v39  ;;  %v5466_v9 = vld [vmem:[%s5551_s29 + $0x60] sm:$0xff]  }
  0xee   : > { %4868 = vmatprep.mubr.msk.bf16.mxu1 %vm474_vm3, %v1375_v31  ;;  %v3133_v31 = vshrl.u32 %v6027_v33, 16 }
  0xef   : > { %v3104_v17 = vsel %vm3006_vm7, %v3094_v45, %v3103_v53  ;;  %v3113_v27 = vsel %vm3006_vm7, %v3103_v53, %v3112_v41  ;;  %v3142_v45 = vshrl.u32 %v6032_v8, 16  ;;  %v1387_v53 = vsel %vm939_vm6, %v1384_v23, %v1386_v63 }
  0xf0   : > { %5033 = vmatmul.mubr.msk.bf16.gmra.mrb[12].mxu0 %vm474_vm3, %v3086_v42  ;;  %v3135_v42 = vrot.slane %v3133_v31, 2  ;;  %v3160_v41 = vshrl.u32 %v6049_v29, 16 }
  0xf1   : > { %5036 = vmatprep.mubr.msk.bf16.mxu0 %vm474_vm3, %v3095_v58  ;;  %v3144_v58 = vrot.slane %v3142_v45, 2  ;;  %v3447_v45 = vld [vmem:[%s5551_s29 + $0x10] sm:$0x8] }
  0xf2   : > { %v3139_v7 = vor.u32 %v3138_v48, %v3135_v42  ;;  %v3162_v60 = vrot.slane %v3160_v41, 2  ;;  %v1394_v48 = vrot.slane %v5466_v9, 1  ;;  %v1910_v9 = vshrl.u32 %v5819_v56, 16 }
  0xf3   : > { %v3148_v22 = vor.u32 %v3147_v24, %v3144_v58  ;;  %v1393_v58 = vsel %vm939_vm6, %v1390_v14, %v1392_v46  ;;  %v5468_v24 = vld [vmem:[%s5551_s29 + $0x68] sm:$0xff]  }
  0xf5   : > { %4869 = vmatmul.mubr.msk.bf16.vlgmr.msra.gmra.mrb[0].mxu1 %vm474_vm3, %v1377_v36  ;;  %v5462_v36 = vld [vmem:[%s5551_s29 + $0x48] sm:$0xff]  }
  0xf6   : > { %4872 = vmatprep.mubr.msk.bf16.mxu1 %vm474_vm3, %v1379_v61  ;;  %5095 = vmatpush3.bf16.msra.mxu1 %v5533_v6  ;;  %v1383_v6 = vsel %vm939_vm6, %v1380_v16, %v1382_v25  ;;  %v3151_v61 = vshrl.u32 %v6045_v15, 16  ;;  %v1388_v5 = vrot.slane %v5462_v36, 1  ;;  %v3140_v16 = vsel %vm3006_vm7, %v3130_v39, %v3139_v7  ;;  %v6182_v25 = vld [vmem:[%s5551_s29 + $0xa0] ss:$0 sps:$4 sm:$0x33]  }
  0xf7   : > { %v3169_v31 = vshrl.u32 %v6182_v25, 16  ;;  %v3172_v1 = vshll.u32 %v6182_v25, 16  ;;  %v3166_v39 = vor.u32 %v3165_v43, %v3162_v60  ;;  %v1395_v36 = vsel %vm939_vm6, %v1392_v46, %v1394_v48  ;;  %v5472_v43 = vld [vmem:[%s5551_s29 + $0x88] sm:$0xff]  }
  0xf8   : > { %5037 = vmatmul.mubr.msk.bf16.gmra.mrb[16].mxu0 %vm474_vm3, %v3104_v17  ;;  %v3153_v17 = vrot.slane %v3151_v61, 2  ;;  %v3455_v61 = vrot.slane %v5899_v44, 3  ;;  %v3457_v44 = vrot.slane %v5912_v49, 3 }
  0xf9   : > { %5040 = vmatprep.mubr.msk.bf16.mxu0 %vm474_vm3, %v3113_v27  ;;  %v3149_v27 = vsel %vm3006_vm7, %v3139_v7, %v3148_v22  ;;  %v3174_v42 = vrot.slane %v3172_v1, 3  ;;  %v5469_v7 = vld [vmem:[%s5551_s29 + $0x70] sm:$0xff]   ;;  %v1406_v1 = vrot.slane %v5473_v37, 1 }
  0xfa   : > { %v3157_v26 = vor.u32 %v3156_v54, %v3153_v17  ;;  %v1398_v3 = vrot.slane %v5469_v7, 1  ;;  %v3459_v17 = vrot.slane %v5916_v52, 3  ;;  %v1400_v54 = vrot.slane %v5470_v0, 1 }
  0xfc   : > { %v3158_v23 = vsel %vm3006_vm7, %v3148_v22, %v3157_v26  ;;  %v3460_v60 = vsel %vm3453_vm8, %v3457_v44, %v3459_v17  ;;  %v1401_v49 = vsel %vm939_vm6, %v1398_v3, %v1400_v54 }
  0xfd   : > { %4873 = vmatmul.mubr.msk.bf16.gmra.mrb[4].mxu1 %vm474_vm3, %v1381_v30  ;;  %v1389_v30 = vsel %vm939_vm6, %v1386_v63, %v1388_v5  ;;  %v3167_v63 = vsel %vm3006_vm7, %v3157_v26, %v3166_v39  ;;  %v3463_v26 = vrot.slane %v5935_v20, 3  ;;  %v3465_v20 = vrot.slane %v5952_v11, 3 }
  0xfe   : > { %4876 = vmatprep.mubr.msk.bf16.mxu1 %vm474_vm3, %v1383_v6  ;;  %v1391_v6 = vsel %vm939_vm6, %v1388_v5, %v1390_v14  ;;  %v3458_v14 = vsel %vm3453_vm8, %v3455_v61, %v3457_v44  ;;  %v1931_v11 = vshll.u32 %v5844_v34, 16 }
 0x100   : > { %5041 = vmatmul.mubr.msk.bf16.gmra.mrb[20].mxu0 %vm474_vm3, %v3122_v47  ;;  %v3171_v47 = vrot.slane %v3169_v31, 2 }
 0x101   : > { %5044 = vmatprep.mubr.msk.bf16.mxu0 %vm474_vm3, %v3131_v51  ;;  %v4386_v51 = vcombine.low %v3447_v45, %v5886_v55  ;;  %v1396_v55 = vrot.slane %v5468_v24, 1 }
 0x103   : > { %v1397_v41 = vsel %vm939_vm6, %v1394_v48, %v1396_v55  ;;  %v1399_v5 = vsel %vm939_vm6, %v1396_v55, %v1398_v3  ;;  %v1922_v48 = vshll.u32 %v5839_v2, 16  ;;  %v1937_v55 = vshrl.u32 %v5853_v35, 16 }
 0x105   : > { %4877 = vmatmul.mubr.msk.bf16.gmra.mrb[8].mxu1 %vm474_vm3, %v1385_v57  ;;  %v3175_v57 = vor.u32 %v3174_v42, %v3171_v47  ;;  %v3467_v42 = vrot.slane %v5956_v12, 3  ;;  %v1939_v0 = vrot.slane %v1937_v55, 1 }
 0x106   : > { %4880 = vmatprep.mubr.msk.bf16.mxu1 %vm474_vm3, %v1387_v53  ;;  %v3454_v53 = vrot.slane %v4386_v51, 3 }
 0x107   : > { %v3176_v40 = vsel %vm3006_vm7, %v3166_v39, %v3175_v57  ;;  %v1913_v39 = vshll.u32 %v5819_v56, 16  ;;  %v1919_v56 = vshrl.u32 %v5839_v2, 16  ;;  %v3468_v24 = vsel %vm3453_vm8, %v3465_v20, %v3467_v42 }
 0x108   : > { %5045 = vmatmul.mubr.msk.bf16.gmra.mrb[24].mxu0 %vm474_vm3, %v3140_v16  ;;  %v3456_v22 = vsel %vm3453_vm8, %v3454_v53, %v3455_v61  ;;  %v5471_v16 = vld [vmem:[%s5551_s29 + $0x80] sm:$0xff]   ;;  %v1924_v57 = vrot.slane %v1922_v48, 2  ;;  %v1933_v53 = vrot.slane %v1931_v11, 2  ;;  %v3471_v61 = vrot.slane %v5976_v13, 3 }
 0x109   : > { %5048 = vmatprep.mubr.msk.bf16.mxu0 %vm474_vm3, %v3149_v27  ;;  %v1402_v27 = vrot.slane %v5471_v16, 1  ;;  %v1915_v47 = vrot.slane %v1913_v39, 2  ;;  %v1921_v12 = vrot.slane %v1919_v56, 1  ;;  %v3487_v56 = vrot.slane %v6049_v29, 3 }
 0x10b   : > { %v1403_v52 = vsel %vm939_vm6, %v1400_v54, %v1402_v27  ;;  %v3475_v54 = vrot.slane %v5994_v50, 3 }
 0x10d   : > { %4881 = vmatmul.mubr.msk.bf16.gmra.mrb[12].mxu1 %vm474_vm3, %v1389_v30  ;;  %v3461_v30 = vrot.slane %v5931_v59, 3 }
 0x10e   : > { %4884 = vmatprep.mubr.msk.bf16.mxu1 %vm474_vm3, %v1391_v6  ;;  %v1404_v6 = vrot.slane %v5472_v43, 1  ;;  %v1967_v43 = vshll.u32 %v5876_v32, 16 }
 0x10f   : > { %v3462_v31 = vsel %vm3453_vm8, %v3459_v17, %v3461_v30  ;;  %v3464_v45 = vsel %vm3453_vm8, %v3461_v30, %v3463_v26 }
 0x110   : > { %5049 = vmatmul.mubr.msk.bf16.gmra.mrb[28].mxu0 %vm474_vm3, %v3158_v23  ;;  %v1405_v59 = vsel %vm939_vm6, %v1402_v27, %v1404_v6  ;;  %v1407_v46 = vsel %vm939_vm6, %v1404_v6, %v1406_v1  ;;  %v1912_v23 = vrot.slane %v1910_v9, 1  ;;  %v1958_v27 = vshll.u32 %v5872_v28, 16 }
 0x111   : > { %5052 = vmatprep.mubr.msk.bf16.mxu0 %vm474_vm3, %v3167_v63  ;;  %v3466_v63 = vsel %vm3453_vm8, %v3463_v26, %v3465_v20  ;;  %v3477_v26 = vrot.slane %v6008_v4, 3 }
 0x112   : > { %v1916_v51 = vor.u32 %v1915_v47, %v1912_v23  ;;  %v1960_v37 = vrot.slane %v1958_v27, 2 }
 0x113   : > { %v3478_v9 = vsel %vm3453_vm8, %v3475_v54, %v3477_v26 }
 0x114   : > { %v1917_v2 = vsel %vm1810_vm4, %v5736_v21, %v1916_v51  ;;  %v1949_v21 = vshll.u32 %v5860_v10, 16 }
 0x115   : > { %4885 = vmatmul.mubr.msk.bf16.gmra.mrb[16].mxu1 %vm474_vm3, %v1393_v58  ;;  %v1928_v58 = vshrl.u32 %v5844_v34, 16  ;;  %v1925_v34 = vor.u32 %v1924_v57, %v1921_v12 }
 0x116   : > { %4888 = vmatprep.mubr.msk.bf16.mxu1 %vm474_vm3, %v1395_v36  ;;  %v3469_v36 = vrot.slane %v5971_v18, 3  ;;  %v1946_v18 = vshrl.u32 %v5860_v10, 16  ;;  %v1951_v17 = vrot.slane %v1949_v21, 2 }
 0x117   : > { %v1930_v7 = vrot.slane %v1928_v58, 1  ;;  %v1926_v13 = vsel %vm1810_vm4, %v1916_v51, %v1925_v34 }
 0x118   : > { %5053 = vmatmul.mubr.msk.bf16.gmra.mrb[32].mxu0 %vm474_vm3, %v3176_v40  ;;  %v1940_v40 = vshll.u32 %v5853_v35, 16  ;;  %v3470_v3 = vsel %vm3453_vm8, %v3467_v42, %v3469_v36  ;;  %v1948_v16 = vrot.slane %v1946_v18, 1 }
 0x119   : > { %5058 = vmatprep.mubr.msk.bf16.mxu0 %vm474_vm3, %v3456_v22  ;;  %v1934_v22 = vor.u32 %v1933_v53, %v1930_v7 }
 0x11a   : > { %v1942_v44 = vrot.slane %v1940_v40, 2 }
 0x11b   : > { %v1935_v35 = vsel %vm1810_vm4, %v1925_v34, %v1934_v22 }
 0x11c   : > { %v1943_v10 = vor.u32 %v1942_v44, %v1939_v0 }
 0x11d   : > { %4889 = vmatmul.mubr.msk.bf16.gmra.mrb[20].mxu1 %vm474_vm3, %v1397_v41  ;;  %v3472_v41 = vsel %vm3453_vm8, %v3469_v36, %v3471_v61 }
 0x11e   : > { %4892 = vmatprep.mubr.msk.bf16.mxu1 %vm474_vm3, %v1399_v5  ;;  %v3473_v5 = vrot.slane %v5989_v62, 3  ;;  %v1964_v62 = vshrl.u32 %v5876_v32, 16  ;;  %v1944_v50 = vsel %vm1810_vm4, %v1934_v22, %v1943_v10 }
 0x120   : > { %5059 = vmatmul.mubr.msk.bf16.vlgmr.msra.gmra.mrb[0].mxu0 %vm474_vm3, %v3458_v14  ;;  %v1955_v14 = vshrl.u32 %v5872_v28, 16  ;;  %v3476_v30 = vsel %vm3453_vm8, %v3473_v5, %v3475_v54  ;;  %v1966_v6 = vrot.slane %v1964_v62, 1 }
 0x121   : > { %5062 = vmatprep.mubr.msk.bf16.mxu0 %vm474_vm3, %v3460_v60  ;;  %v3474_v60 = vsel %vm3453_vm8, %v3471_v61, %v3473_v5  ;;  %v6341_v5 = vstv %s3804_s14 }
 0x125   : > { %4893 = vmatmul.mubr.msk.bf16.gmra.mrb[24].mxu1 %vm474_vm3, %v1401_v49  ;;  %v1952_v49 = vor.u32 %v1951_v17, %v1948_v16 }
 0x126   : > { %4896 = vmatprep.mubr.msk.bf16.mxu1 %vm474_vm3, %v1403_v52  ;;  %v1957_v52 = vrot.slane %v1955_v14, 1 }
 0x127   : > { %v1953_v28 = vsel %vm1810_vm4, %v1943_v10, %v1952_v49 }
 0x128   : > { %5063 = vmatmul.mubr.msk.bf16.gmra.mrb[4].mxu0 %vm474_vm3, %v3462_v31  ;;  %v1969_v31 = vrot.slane %v1967_v43, 2  ;;  %v1961_v32 = vor.u32 %v1960_v37, %v1957_v52 }
 0x129   : > { %5066 = vmatprep.mubr.msk.bf16.mxu0 %vm474_vm3, %v3464_v45 }
 0x12a   : > { %v1970_v39 = vor.u32 %v1969_v31, %v1966_v6  ;;  %v1962_v4 = vsel %vm1810_vm4, %v1952_v49, %v1961_v32 }
 0x12c   : > { %v1971_v20 = vsel %vm1810_vm4, %v1961_v32, %v1970_v39 }
 0x12d   : > { %4897 = vmatmul.mubr.msk.bf16.gmra.mrb[28].mxu1 %vm474_vm3, %v1405_v59  ;;  %v1973_v59 = vshll.u32 %v5892_v38, 16 }
 0x12e   : > { %4900 = vmatprep.mubr.msk.bf16.mxu1 %vm474_vm3, %v1407_v46  ;;  %v3483_v46 = vrot.slane %v6032_v8, 3 }
 0x12f   : > { %v1975_v23 = vrot.slane %v1973_v59, 2 }
 0x130   : > { %5067 = vmatmul.mubr.msk.bf16.gmra.mrb[8].mxu0 %vm474_vm3, %v3466_v63  ;;  %v3489_v63 = vrot.slane %v6182_v25, 3 }
 0x131   : > { %5070 = vmatprep.mubr.msk.bf16.mxu0 %vm474_vm3, %v3468_v24  ;;  %v1976_v38 = vsel %vm1810_vm4, %v1970_v39, %v1975_v23 }
 0x132   : > { %v3490_v51 = vsel %vm3453_vm8, %v3487_v56, %v3489_v63 }
 0x135   : > { %4901 = vmatmul.mubr.msk.bf16.gmra.mrb[32].mxu1 %vm474_vm3, %v1406_v1  ;;  %v3479_v1 = vrot.slane %v6014_v19, 3  ;;  %v3481_v19 = vrot.slane %v6027_v33, 3  ;;  %v3485_v33 = vrot.slane %v6045_v15, 3 }
 0x136   : > { %4926 = vmatprep.mubr.msk.bf16.mxu1 %vm474_vm3, %v1917_v2 }
 0x137   : > { %v3480_v45 = vsel %vm3453_vm8, %v3477_v26, %v3479_v1  ;;  %v3482_v47 = vsel %vm3453_vm8, %v3479_v1, %v3481_v19  ;;  %v3484_v42 = vsel %vm3453_vm8, %v3481_v19, %v3483_v46  ;;  %v3486_v8 = vsel %vm3453_vm8, %v3483_v46, %v3485_v33 }
 0x138   : > { %5071 = vmatmul.mubr.msk.bf16.gmra.mrb[12].mxu0 %vm474_vm3, %v3470_v3  ;;  %v3488_v48 = vsel %vm3453_vm8, %v3485_v33, %v3487_v56 }
 0x139   : > { %5074 = vmatprep.mubr.msk.bf16.mxu0 %vm474_vm3, %v3472_v41 }
 0x13d   : > { %4927 = vmatmul.mubr.msk.bf16.vlgmr.msra.gmra.mrb[20].mxu1 %vm474_vm3, %v1926_v13  ;;  %v6339_v13 = vld [vmem:[%s6457_s2] ss:$0 sm:$0xff] }
 0x13e   : > { %4930 = vmatprep.mubr.msk.bf16.mxu1 %vm474_vm3, %v1935_v35 }
 0x140   : > { %5075 = vmatmul.mubr.msk.bf16.gmra.mrb[16].mxu0 %vm474_vm3, %v3474_v60 }
 0x141   : > { %5078 = vmatprep.mubr.msk.bf16.mxu0 %vm474_vm3, %v3476_v30 }
 0x145   : > { %4931 = vmatmul.mubr.msk.bf16.gmra.mrb[24].mxu1 %vm474_vm3, %v1944_v50 }
 0x146   : > { %4934 = vmatprep.mubr.msk.bf16.mxu1 %vm474_vm3, %v1953_v28 }
 0x148   : > { %5079 = vmatmul.mubr.msk.bf16.gmra.mrb[20].mxu0 %vm474_vm3, %v3478_v9 }
 0x149   : > { %5082 = vmatprep.mubr.msk.bf16.mxu0 %vm474_vm3, %v3480_v45 }
 0x14d   : > { %4935 = vmatmul.mubr.msk.bf16.gmra.mrb[28].mxu1 %vm474_vm3, %v1962_v4 }
 0x14e   : > { %4938 = vmatprep.mubr.msk.bf16.mxu1 %vm474_vm3, %v1971_v20 }
 0x150   : > { %5083 = vmatmul.mubr.msk.bf16.gmra.mrb[24].mxu0 %vm474_vm3, %v3482_v47 }
 0x151   : > { %5086 = vmatprep.mubr.msk.bf16.mxu0 %vm474_vm3, %v3484_v42 }
 0x155   : > { %4939 = vmatmul.mubr.msk.bf16.gmra.mrb[32].mxu1 %vm474_vm3, %v1976_v38 }
 0x158   : > { %5087 = vmatmul.mubr.msk.bf16.gmra.mrb[28].mxu0 %vm474_vm3, %v3486_v8 }
 0x159   : > { %5090 = vmatprep.mubr.msk.bf16.mxu0 %vm474_vm3, %v3488_v48 }
 0x160   : > { %5091 = vmatmul.mubr.msk.bf16.gmra.mrb[32].mxu0 %vm474_vm3, %v3490_v51 }
 0x1c8   : > { %v4870_v58 = vpop.f32.mrb[0].mxu1 }
 0x1c9   : > { %v1499_v15 = vpop.f32.mrb[1].mxu1 }
 0x1ca   : > { %v4871_v11 = vpop.f32.mrb[2].mxu1 }
 0x1cb   : > { %v1502_v29 = vpop.f32.mrb[3].mxu1 }
 0x1d0   : > { %v4874_v24 = vpop.f32.mrb[4].mxu1 }
 0x1d1   : > { %v1515_v12 = vpop.f32.mrb[5].mxu1 }
 0x1d2   : > { %v4875_v57 = vpop.f32.mrb[6].mxu1 }
 0x1d3   : > { %v1518_v36 = vpop.f32.mrb[7].mxu1 }
 0x1d8   : > { %v6312_v2 = vpop.f32.mrb[8].mxu1 }
 0x1d9   : > { %v6314_v7 = vpop.f32.mrb[9].mxu1 }
 0x1da   : > { %v6316_v53 = vpop.f32.mrb[10].mxu1 }
 0x1db   : > { %v6318_v61 = vpop.f32.mrb[11].mxu1 }
 0x1e0   : > { %v6320_v25 = vpop.f32.mrb[12].mxu1 }
 0x1e1   : > { %v6322_v34 = vpop.f32.mrb[13].mxu1 }
 0x1e2   : > { %v6324_v55 = vpop.f32.mrb[14].mxu1 }
 0x1e3   : > { %v6326_v40 = vpop.f32.mrb[15].mxu1 }
 0x1e8   : > { %v6328_v3 = vpop.f32.mrb[16].mxu1 }
 0x1e9   : > { %v6330_v22 = vpop.f32.mrb[17].mxu1 }
 0x1ea   : > { %v6332_v18 = vpop.f32.mrb[18].mxu1 }
 0x1eb   : > { %v6334_v21 = vpop.f32.mrb[19].mxu1 }
 0x1f3   : > { %v5060_v41 = vpop.f32.mrb[0].mxu0 }
 0x1f4   : > { %v5096_v0 = vadd.f32 %v5060_v41, %v4870_v58  ;;  %v3582_v44 = vpop.f32.mrb[1].mxu0 }
 0x1f5   : > { %v5097_v35 = vadd.f32 %v3582_v44, %v1499_v15  ;;  %v5061_v16 = vpop.f32.mrb[2].mxu0 }
 0x1f6   : > { %v3770_v17 = vadd.f32 %v5096_v0, %v6339_v13  ;;  %v5098_v54 = vadd.f32 %v5061_v16, %v4871_v11  ;;  %v3585_v10 = vpop.f32.mrb[3].mxu0 }
 0x1f7   : > { %v3768_v14 = vadd.f32 %v5097_v35, %v6339_v13  ;;  %v5099_v27 = vadd.f32 %v3585_v10, %v1502_v29 }
 0x1f8   : > { %v3844_v60 = vmul.f32 %v6341_v5, %v3770_v17  ;;  %v3771_v49 = vadd.f32 %v5098_v54, %v6339_v13  ;;  %vm3807_vm9 = vcmp.ge.f32.partialorder %v3770_v17, 0.0 }
 0x1f9   : > { %v3842_v62 = vmul.f32 %v6341_v5, %v3768_v14  ;;  %v3769_v43 = vadd.f32 %v5099_v27, %v6339_v13  ;;  %vm3805_vm10 = vcmp.ge.f32.partialorder %v3768_v14, 0.0 }
 0x1fa   : > { %vm3808_vm11 = vcmp.ge.f32.partialorder %v3771_v49, 0.0  ;;  %v3845_v30 = vmul.f32 %v6341_v5, %v3771_v49  ;;  %v3880_v37 = vsel %vm3807_vm9, %v3770_v17, %v3844_v60 }
 0x1fb   : > { %vm3806_vm12 = vcmp.ge.f32.partialorder %v3769_v43, 0.0  ;;  %v3843_v50 = vmul.f32 %v6341_v5, %v3769_v43  ;;  %v5064_v52 = vpop.f32.mrb[4].mxu0  ;;  %v3878_v31 = vsel %vm3805_vm10, %v3768_v14, %v3842_v62 }
 0x1fc   : > { %v3881_v26 = vsel %vm3808_vm11, %v3771_v49, %v3845_v30  ;;  %v5100_v28 = vadd.f32 %v5064_v52, %v4874_v24  ;;  %v3598_v6 = vpop.f32.mrb[5].mxu0 }
 0x1fd   : > { %v4488_v1 = vpack.c.bf16 %v3881_v26, %v3880_v37  ;;  %v3879_v32 = vsel %vm3806_vm12, %v3769_v43, %v3843_v50  ;;  %v5101_v9 = vadd.f32 %v3598_v6, %v1515_v12  ;;  %v5065_v39 = vpop.f32.mrb[6].mxu0 }
 0x1fe   : > { %v4483_v45 = vpack.c.bf16 %v3879_v32, %v3878_v31  ;;  %v3774_v4 = vadd.f32 %v5100_v28, %v6339_v13  ;;  %v5102_v59 = vadd.f32 %v5065_v39, %v4875_v57  ;;  %v3601_v19 = vpop.f32.mrb[7].mxu0 }
 0x1ff   : > { %4565 = vst [vmem:[%s6355_s18 + $0x8] sm:$0xff] %v4488_v1   ;;  %v3772_v20 = vadd.f32 %v5101_v9, %v6339_v13  ;;  %v5103_v46 = vadd.f32 %v3601_v19, %v1518_v36 }
 0x200   : > { %4484 = vst [vmem:[%s6355_s18] sm:$0xff] %v4483_v45   ;;  %v3848_v23 = vmul.f32 %v6341_v5, %v3774_v4  ;;  %v3775_v47 = vadd.f32 %v5102_v59, %v6339_v13  ;;  %vm3811_vm13 = vcmp.ge.f32.partialorder %v3774_v4, 0.0 }
 0x201   : > { %v3846_v42 = vmul.f32 %v6341_v5, %v3772_v20  ;;  %v3773_v38 = vadd.f32 %v5103_v46, %v6339_v13  ;;  %vm3809_vm14 = vcmp.ge.f32.partialorder %v3772_v20, 0.0 }
 0x202   : > { %vm3812_vm15 = vcmp.ge.f32.partialorder %v3775_v47, 0.0  ;;  %v3849_v33 = vmul.f32 %v6341_v5, %v3775_v47  ;;  %v3884_v48 = vsel %vm3811_vm13, %v3774_v4, %v3848_v23 }
 0x203   : > { %vm3810_vm0 = vcmp.ge.f32.partialorder %v3773_v38, 0.0  ;;  %v3847_v56 = vmul.f32 %v6341_v5, %v3773_v38  ;;  %v5068_v8 = vpop.f32.mrb[8].mxu0  ;;  %v3882_v15 = vsel %vm3809_vm14, %v3772_v20, %v3846_v42 }
 0x204   : > { %v3885_v63 = vsel %vm3812_vm15, %v3775_v47, %v3849_v33  ;;  %v5104_v51 = vadd.f32 %v5068_v8, %v6312_v2  ;;  %v3614_v58 = vpop.f32.mrb[9].mxu0 }
 0x205   : > { %v4498_v11 = vpack.c.bf16 %v3885_v63, %v3884_v48  ;;  %v3883_v29 = vsel %vm3810_vm0, %v3773_v38, %v3847_v56  ;;  %v5105_v24 = vadd.f32 %v3614_v58, %v6314_v7  ;;  %v5069_v12 = vpop.f32.mrb[10].mxu0 }
 0x206   : > { %v4493_v57 = vpack.c.bf16 %v3883_v29, %v3882_v15  ;;  %v3778_v36 = vadd.f32 %v5104_v51, %v6339_v13  ;;  %v5106_v41 = vadd.f32 %v5069_v12, %v6316_v53  ;;  %v3617_v0 = vpop.f32.mrb[11].mxu0 }
 0x207   : > { %4567 = vst [vmem:[%s6355_s18 + $0x18] sm:$0xff] %v4498_v11   ;;  %v3776_v44 = vadd.f32 %v5105_v24, %v6339_v13  ;;  %v5107_v35 = vadd.f32 %v3617_v0, %v6318_v61 }
 0x208   : > { %4566 = vst [vmem:[%s6355_s18 + $0x10] sm:$0xff] %v4493_v57   ;;  %v3852_v2 = vmul.f32 %v6341_v5, %v3778_v36  ;;  %v3779_v16 = vadd.f32 %v5106_v41, %v6339_v13  ;;  %vm3815_vm1 = vcmp.ge.f32.partialorder %v3778_v36, 0.0 }
 0x209   : > { %v3850_v7 = vmul.f32 %v6341_v5, %v3776_v44  ;;  %v3777_v17 = vadd.f32 %v5107_v35, %v6339_v13  ;;  %vm3813_vm2 = vcmp.ge.f32.partialorder %v3776_v44, 0.0 }
 0x20a   : > { %vm3816_vm3 = vcmp.ge.f32.partialorder %v3779_v16, 0.0  ;;  %v3853_v53 = vmul.f32 %v6341_v5, %v3779_v16  ;;  %v3888_v61 = vsel %vm3815_vm1, %v3778_v36, %v3852_v2 }
 0x20b   : > { %vm3814_vm4 = vcmp.ge.f32.partialorder %v3777_v17, 0.0  ;;  %v3851_v54 = vmul.f32 %v6341_v5, %v3777_v17  ;;  %v5072_v10 = vpop.f32.mrb[12].mxu0  ;;  %v3886_v49 = vsel %vm3813_vm2, %v3776_v44, %v3850_v7 }
 0x20c   : > { %v3889_v14 = vsel %vm3816_vm3, %v3779_v16, %v3853_v53  ;;  %v5108_v27 = vadd.f32 %v5072_v10, %v6320_v25  ;;  %v3630_v60 = vpop.f32.mrb[13].mxu0 }
 0x20d   : > { %v4508_v62 = vpack.c.bf16 %v3889_v14, %v3888_v61  ;;  %v3887_v43 = vsel %vm3814_vm4, %v3777_v17, %v3851_v54  ;;  %v5109_v30 = vadd.f32 %v3630_v60, %v6322_v34  ;;  %v5073_v50 = vpop.f32.mrb[14].mxu0 }
 0x20e   : > { %v4503_v52 = vpack.c.bf16 %v3887_v43, %v3886_v49  ;;  %v3782_v37 = vadd.f32 %v5108_v27, %v6339_v13  ;;  %v5110_v26 = vadd.f32 %v5073_v50, %v6324_v55  ;;  %v3633_v28 = vpop.f32.mrb[15].mxu0 }
 0x20f   : > { %4569 = vst [vmem:[%s6355_s18 + $0x28] sm:$0xff] %v4508_v62   ;;  %v3780_v31 = vadd.f32 %v5109_v30, %v6339_v13  ;;  %v5111_v25 = vadd.f32 %v3633_v28, %v6326_v40 }
 0x210   : > { %v4928_v6 = vpop.f32.mrb[20].mxu1  ;;  %4568 = vst [vmem:[%s6355_s18 + $0x20] sm:$0xff] %v4503_v52   ;;  %v3856_v32 = vmul.f32 %v6341_v5, %v3782_v37  ;;  %v3783_v9 = vadd.f32 %v5110_v26, %v6339_v13  ;;  %vm3819_vm5 = vcmp.ge.f32.partialorder %v3782_v37, 0.0 }
 0x211   : > { %v2148_v1 = vpop.f32.mrb[21].mxu1  ;;  %v3854_v39 = vmul.f32 %v6341_v5, %v3780_v31  ;;  %v3781_v45 = vadd.f32 %v5111_v25, %v6339_v13  ;;  %vm3817_vm6 = vcmp.ge.f32.partialorder %v3780_v31, 0.0 }
 0x212   : > { %v4929_v34 = vpop.f32.mrb[22].mxu1  ;;  %vm3820_vm7 = vcmp.ge.f32.partialorder %v3783_v9, 0.0  ;;  %v3857_v4 = vmul.f32 %v6341_v5, %v3783_v9  ;;  %v3892_v19 = vsel %vm3819_vm5, %v3782_v37, %v3856_v32 }
 0x213   : > { %v2151_v55 = vpop.f32.mrb[23].mxu1  ;;  %vm3818_vm8 = vcmp.ge.f32.partialorder %v3781_v45, 0.0  ;;  %v3855_v40 = vmul.f32 %v6341_v5, %v3781_v45  ;;  %v5076_v59 = vpop.f32.mrb[16].mxu0  ;;  %v3890_v47 = vsel %vm3817_vm6, %v3780_v31, %v3854_v39 }
 0x214   : > { %v3893_v20 = vsel %vm3820_vm7, %v3783_v9, %v3857_v4  ;;  %v5112_v46 = vadd.f32 %v5076_v59, %v6328_v3  ;;  %v3646_v23 = vpop.f32.mrb[17].mxu0 }
 0x215   : > { %v4518_v42 = vpack.c.bf16 %v3893_v20, %v3892_v19  ;;  %v3891_v38 = vsel %vm3818_vm8, %v3781_v45, %v3855_v40  ;;  %v5113_v33 = vadd.f32 %v3646_v23, %v6330_v22  ;;  %v5077_v56 = vpop.f32.mrb[18].mxu0 }
 0x216   : > { %v4513_v8 = vpack.c.bf16 %v3891_v38, %v3890_v47  ;;  %v3786_v48 = vadd.f32 %v5112_v46, %v6339_v13  ;;  %v5114_v63 = vadd.f32 %v5077_v56, %v6332_v18  ;;  %v3649_v51 = vpop.f32.mrb[19].mxu0 }
 0x217   : > { %4571 = vst [vmem:[%s6355_s18 + $0x38] sm:$0xff] %v4518_v42   ;;  %v3784_v15 = vadd.f32 %v5113_v33, %v6339_v13  ;;  %v5115_v3 = vadd.f32 %v3649_v51, %v6334_v21 }
 0x218   : > { %v4932_v58 = vpop.f32.mrb[24].mxu1  ;;  %4570 = vst [vmem:[%s6355_s18 + $0x30] sm:$0xff] %v4513_v8   ;;  %v3860_v29 = vmul.f32 %v6341_v5, %v3786_v48  ;;  %v3787_v24 = vadd.f32 %v5114_v63, %v6339_v13  ;;  %vm3823_vm9 = vcmp.ge.f32.partialorder %v3786_v48, 0.0 }
 0x219   : > { %v2164_v11 = vpop.f32.mrb[25].mxu1  ;;  %v3858_v12 = vmul.f32 %v6341_v5, %v3784_v15  ;;  %v3785_v57 = vadd.f32 %v5115_v3, %v6339_v13  ;;  %vm3821_vm10 = vcmp.ge.f32.partialorder %v3784_v15, 0.0 }
 0x21a   : > { %v4933_v22 = vpop.f32.mrb[26].mxu1  ;;  %vm3824_vm11 = vcmp.ge.f32.partialorder %v3787_v24, 0.0  ;;  %v3861_v36 = vmul.f32 %v6341_v5, %v3787_v24  ;;  %v3896_v0 = vsel %vm3823_vm9, %v3786_v48, %v3860_v29 }
 0x21b   : > { %v2167_v18 = vpop.f32.mrb[27].mxu1  ;;  %vm3822_vm12 = vcmp.ge.f32.partialorder %v3785_v57, 0.0  ;;  %v3859_v21 = vmul.f32 %v6341_v5, %v3785_v57  ;;  %v5080_v41 = vpop.f32.mrb[20].mxu0  ;;  %v3894_v16 = vsel %vm3821_vm10, %v3784_v15, %v3858_v12 }
 0x21c   : > { %v3897_v44 = vsel %vm3824_vm11, %v3787_v24, %v3861_v36  ;;  %v5116_v35 = vadd.f32 %v5080_v41, %v4928_v6  ;;  %v3662_v2 = vpop.f32.mrb[21].mxu0 }
 0x21d   : > { %v4528_v7 = vpack.c.bf16 %v3897_v44, %v3896_v0  ;;  %v3895_v17 = vsel %vm3822_vm12, %v3785_v57, %v3859_v21  ;;  %v5117_v53 = vadd.f32 %v3662_v2, %v2148_v1  ;;  %v5081_v54 = vpop.f32.mrb[22].mxu0 }
 0x21e   : > { %v4523_v10 = vpack.c.bf16 %v3895_v17, %v3894_v16  ;;  %v3790_v61 = vadd.f32 %v5116_v35, %v6339_v13  ;;  %v5118_v14 = vadd.f32 %v5081_v54, %v4929_v34  ;;  %v3665_v27 = vpop.f32.mrb[23].mxu0 }
 0x21f   : > { %4573 = vst [vmem:[%s6355_s18 + $0x48] sm:$0xff] %v4528_v7   ;;  %v3788_v49 = vadd.f32 %v5117_v53, %v6339_v13  ;;  %v5119_v62 = vadd.f32 %v3665_v27, %v2151_v55 }
 0x220   : > { %v4936_v60 = vpop.f32.mrb[28].mxu1  ;;  %4572 = vst [vmem:[%s6355_s18 + $0x40] sm:$0xff] %v4523_v10   ;;  %v3864_v30 = vmul.f32 %v6341_v5, %v3790_v61  ;;  %v3791_v50 = vadd.f32 %v5118_v14, %v6339_v13  ;;  %vm3827_vm13 = vcmp.ge.f32.partialorder %v3790_v61, 0.0 }
 0x221   : > { %v2180_v43 = vpop.f32.mrb[29].mxu1  ;;  %v3862_v37 = vmul.f32 %v6341_v5, %v3788_v49  ;;  %v3789_v26 = vadd.f32 %v5119_v62, %v6339_v13  ;;  %vm3825_vm14 = vcmp.ge.f32.partialorder %v3788_v49, 0.0 }
 0x222   : > { %v4937_v52 = vpop.f32.mrb[30].mxu1  ;;  %vm3828_vm15 = vcmp.ge.f32.partialorder %v3791_v50, 0.0  ;;  %v3865_v6 = vmul.f32 %v6341_v5, %v3791_v50  ;;  %v3900_v1 = vsel %vm3827_vm13, %v3790_v61, %v3864_v30 }
 0x223   : > { %v2183_v28 = vpop.f32.mrb[31].mxu1  ;;  %vm3826_vm0 = vcmp.ge.f32.partialorder %v3789_v26, 0.0  ;;  %v3863_v31 = vmul.f32 %v6341_v5, %v3789_v26  ;;  %v5084_v25 = vpop.f32.mrb[24].mxu0  ;;  %v3898_v39 = vsel %vm3825_vm14, %v3788_v49, %v3862_v37 }
 0x224   : > { %v3901_v32 = vsel %vm3828_vm15, %v3791_v50, %v3865_v6  ;;  %v5120_v9 = vadd.f32 %v5084_v25, %v4932_v58  ;;  %v3678_v34 = vpop.f32.mrb[25].mxu0 }
 0x225   : > { %v4538_v45 = vpack.c.bf16 %v3901_v32, %v3900_v1  ;;  %v3899_v55 = vsel %vm3826_vm0, %v3789_v26, %v3863_v31  ;;  %v5121_v4 = vadd.f32 %v3678_v34, %v2164_v11  ;;  %v5085_v40 = vpop.f32.mrb[26].mxu0 }
 0x226   : > { %v4533_v59 = vpack.c.bf16 %v3899_v55, %v3898_v39  ;;  %v3794_v19 = vadd.f32 %v5120_v9, %v6339_v13  ;;  %v5122_v20 = vadd.f32 %v5085_v40, %v4933_v22  ;;  %v3681_v46 = vpop.f32.mrb[27].mxu0 }
 0x227   : > { %4575 = vst [vmem:[%s6355_s18 + $0x58] sm:$0xff] %v4538_v45   ;;  %v3792_v47 = vadd.f32 %v5121_v4, %v6339_v13  ;;  %v5123_v42 = vadd.f32 %v3681_v46, %v2167_v18 }
 0x228   : > { %v4940_v23 = vpop.f32.mrb[32].mxu1  ;;  %4574 = vst [vmem:[%s6355_s18 + $0x50] sm:$0xff] %v4533_v59   ;;  %v3868_v33 = vmul.f32 %v6341_v5, %v3794_v19  ;;  %v3795_v56 = vadd.f32 %v5122_v20, %v6339_v13  ;;  %vm3831_vm1 = vcmp.ge.f32.partialorder %v3794_v19, 0.0 }
 0x229   : > { %v2196_v38 = vpop.f32.mrb[33].mxu1  ;;  %v3866_v48 = vmul.f32 %v6341_v5, %v3792_v47  ;;  %v3793_v63 = vadd.f32 %v5123_v42, %v6339_v13  ;;  %vm3829_vm2 = vcmp.ge.f32.partialorder %v3792_v47, 0.0 }
 0x22a   : > { %v4941_v8 = vpop.f32.mrb[34].mxu1  ;;  %vm3832_vm3 = vcmp.ge.f32.partialorder %v3795_v56, 0.0  ;;  %v3869_v58 = vmul.f32 %v6341_v5, %v3795_v56  ;;  %v3904_v11 = vsel %vm3831_vm1, %v3794_v19, %v3868_v33 }
 0x22b   : > { %v2199_v51 = vpop.f32.mrb[35].mxu1  ;;  %vm3830_vm4 = vcmp.ge.f32.partialorder %v3793_v63, 0.0  ;;  %v3867_v15 = vmul.f32 %v6341_v5, %v3793_v63  ;;  %v5088_v3 = vpop.f32.mrb[28].mxu0  ;;  %v3902_v12 = vsel %vm3829_vm2, %v3792_v47, %v3866_v48 }
 0x22c   : > { %v3905_v29 = vsel %vm3832_vm3, %v3795_v56, %v3869_v58  ;;  %v5124_v24 = vadd.f32 %v5088_v3, %v4936_v60  ;;  %v3694_v22 = vpop.f32.mrb[29].mxu0 }
 0x22d   : > { %v4548_v57 = vpack.c.bf16 %v3905_v29, %v3904_v11  ;;  %v3903_v18 = vsel %vm3830_vm4, %v3793_v63, %v3867_v15  ;;  %v5125_v36 = vadd.f32 %v3694_v22, %v2180_v43  ;;  %v5089_v21 = vpop.f32.mrb[30].mxu0 }
 0x22e   : > { %v4543_v41 = vpack.c.bf16 %v3903_v18, %v3902_v12  ;;  %v3798_v0 = vadd.f32 %v5124_v24, %v6339_v13  ;;  %v5126_v44 = vadd.f32 %v5089_v21, %v4937_v52  ;;  %v3697_v35 = vpop.f32.mrb[31].mxu0 }
 0x22f   : > { %4577 = vst [vmem:[%s6355_s18 + $0x68] sm:$0xff] %v4548_v57   ;;  %v3796_v2 = vadd.f32 %v5125_v36, %v6339_v13  ;;  %v5127_v16 = vadd.f32 %v3697_v35, %v2183_v28 }
 0x230   : > { %4576 = vst [vmem:[%s6355_s18 + $0x60] sm:$0xff] %v4543_v41   ;;  %v3872_v7 = vmul.f32 %v6341_v5, %v3798_v0  ;;  %v3799_v17 = vadd.f32 %v5126_v44, %v6339_v13  ;;  %vm3835_vm5 = vcmp.ge.f32.partialorder %v3798_v0, 0.0 }
 0x231   : > { %v3870_v53 = vmul.f32 %v6341_v5, %v3796_v2  ;;  %v3797_v54 = vadd.f32 %v5127_v16, %v6339_v13  ;;  %vm3833_vm6 = vcmp.ge.f32.partialorder %v3796_v2, 0.0 }
 0x232   : > { %vm3836_vm7 = vcmp.ge.f32.partialorder %v3799_v17, 0.0  ;;  %v3873_v10 = vmul.f32 %v6341_v5, %v3799_v17  ;;  %v3908_v27 = vsel %vm3835_vm5, %v3798_v0, %v3872_v7 }
 0x233   : > { %vm3834_vm8 = vcmp.ge.f32.partialorder %v3797_v54, 0.0  ;;  %v3871_v61 = vmul.f32 %v6341_v5, %v3797_v54  ;;  %v5092_v14 = vpop.f32.mrb[32].mxu0  ;;  %v3906_v43 = vsel %vm3833_vm6, %v3796_v2, %v3870_v53 }
 0x234   : > { %v3909_v60 = vsel %vm3836_vm7, %v3799_v17, %v3873_v10  ;;  %v5128_v49 = vadd.f32 %v5092_v14, %v4940_v23  ;;  %v3710_v62 = vpop.f32.mrb[33].mxu0 }
 0x235   : > { %v4558_v30 = vpack.c.bf16 %v3909_v60, %v3908_v27  ;;  %v3907_v50 = vsel %vm3834_vm8, %v3797_v54, %v3871_v61  ;;  %v5129_v52 = vadd.f32 %v3710_v62, %v2196_v38  ;;  %v5093_v37 = vpop.f32.mrb[34].mxu0 }
 0x236   : > { %v4553_v26 = vpack.c.bf16 %v3907_v50, %v3906_v43  ;;  %v3802_v28 = vadd.f32 %v5128_v49, %v6339_v13  ;;  %v5130_v6 = vadd.f32 %v5093_v37, %v4941_v8  ;;  %v3713_v31 = vpop.f32.mrb[35].mxu0 }
 0x237   : > { %4579 = vst [vmem:[%s6355_s18 + $0x78] sm:$0xff] %v4558_v30   ;;  %v3800_v25 = vadd.f32 %v5129_v52, %v6339_v13  ;;  %v5131_v1 = vadd.f32 %v3713_v31, %v2199_v51 }
 0x238   : > { %4578 = vst [vmem:[%s6355_s18 + $0x70] sm:$0xff] %v4553_v26   ;;  %vm3839_vm9 = vcmp.ge.f32.partialorder %v3802_v28, 0.0  ;;  %v3876_v32 = vmul.f32 %v6341_v5, %v3802_v28  ;;  %v3803_v9 = vadd.f32 %v5130_v6, %v6339_v13 }
 0x239   : > { %v3874_v34 = vmul.f32 %v6341_v5, %v3800_v25  ;;  %v3801_v39 = vadd.f32 %v5131_v1, %v6339_v13  ;;  %vm3837_vm10 = vcmp.ge.f32.partialorder %v3800_v25, 0.0 }
 0x23a   : > { %v3912_v45 = vsel %vm3839_vm9, %v3802_v28, %v3876_v32  ;;  %vm3840_vm11 = vcmp.ge.f32.partialorder %v3803_v9, 0.0  ;;  %v3877_v55 = vmul.f32 %v6341_v5, %v3803_v9 }
 0x23b   : > { %v4478_v4 = vpack.c.bf16 %v3912_v45, %v3912_v45  ;;  %vm3838_vm12 = vcmp.ge.f32.partialorder %v3801_v39, 0.0  ;;  %v3875_v40 = vmul.f32 %v6341_v5, %v3801_v39  ;;  %v3910_v19 = vsel %vm3837_vm10, %v3800_v25, %v3874_v34 }
 0x23c   : > { %v3913_v59 = vsel %vm3840_vm11, %v3803_v9, %v3877_v55 }
 0x23d   : > { %4092 = vst [vmem:[%s6355_s18 + $0x88] sm:$0xf] %v4478_v4  ;;  %v4479_v20 = vpack.c.bf16 %v3913_v59, %v3913_v59  ;;  %v3911_v46 = vsel %vm3838_vm12, %v3801_v39, %v3875_v40 }
 0x23e   : > { %v4563_v23 = vpack.c.bf16 %v3911_v46, %v3910_v19 }
 0x23f   : > { %4093 = vst [vmem:[%s6355_s18 + $0x8c] sm:$0x7] %v4479_v20 }
 0x240   : > { %4580 = vst [vmem:[%s6355_s18 + $0x80] sm:$0xff] %v4563_v23  }
 0x241 PF: > { %s15_s17 = sadd.s32 1, %s5480_s17  }
 0x242   : > { %p12_p4 = scmp.ge.s32.totalorder %s15_s17, 4  }
 0x244   :  { %14 = sbr.rel (!%p12_p4) target bundleno = 2 (0x2), region = 74 }

// kernel: feature_extractor_forward.8
= control target key start
LH: loop header
LB: loop body
LE: loop exit
PB: predicated region body
PF: predicated region fallthrough
CT: control target
= control target key end

     0   :  { %s2340_s17 = smov 0   ;;  %s2768_s0 = inlined_call_operand.vmem [shape: bf16[2,4,81,32], index: 0, kind: input, shape index: {}]   ;;  %s2769_s1 = inlined_call_operand.vmem [shape: bf16[9,32,128], index: 1, kind: input, shape index: {}]   ;;  %s2770_s2 = inlined_call_operand.vmem [shape: f32[1,128], index: 2, kind: input, shape index: {}]   ;;  %s2771_s3 = inlined_call_operand.<no memory space> [shape: f32[1,1], index: 3, kind: input, shape index: {}]   ;;  %s2772_s4 = inlined_call_operand.vmem [shape: bf16[2,71,128], index: 4, kind: output, shape index: {}]  }
   0x1   :  { %9 = sst [smem:[#allocation2]] %s2771_s3 }
   0x2 LB: > { %s1737_s18 = sadd.s32 4294967295, %s2308_s17   ;;  %p1741_p0 = scmp.ge.s32.totalorder %s2308_s17, 1  ;;  %s2308_s17 = sphi %s2340_s17, %s15_s17  }
   0x3   : > { %p163_p1 = scmp.lt.s32.totalorder %s2308_s17, 3 }
   0x5   : > { %p164_p2 = pnand %p1741_p0, %p163_p1 }
   0x6   : > { %v2249_v0 = vld [vmem:[%s2769_s1 + $0x10] sm:$0xff] (!%p164_p2)   ;;  %v2310_v1 = vmov (!%p164_p2), 0.0   ;;  %v2250_v2 = vld [vmem:[%s2769_s1 + $0x18] sm:$0xff] (!%p164_p2)   ;;  %p189_p3 = scmp.lt.s32.totalorder (!%p164_p2), %s1737_s18, 1  ;;  %vm2311_vm0 = vmmov (!%p164_p2), 0   ;;  %vm263_vm1 = vcmask (!%p164_p2), 261120  }
   0x7   : > { %167 = sbr.rel (%p164_p2) target bundleno = 418 (0x1a2), region = 36  ;;  %2017 = vmatprep.subr.bf16.mxu0 (!%p164_p2), %v2310_v1  ;;  %2233 = vmatprep.subr.bf16.mxu1 (!%p164_p2), %v2310_v1  ;;  %v2253_v3 = vld [vmem:[%s2769_s1 + $0x20] sm:$0xff] (!%p164_p2)   ;;  %v2258_v7 = vld [vmem:[%s2769_s1 + $0x28] sm:$0xff] (!%p164_p2)   ;;  %vm478_vm2 = vsmask.f32 (!%p164_p2), 7424  ;;  %v2261_v15 = vld [vmem:[%s2769_s1 + $0x30] sm:$0xff] (!%p164_p2)  }
   0x8   : > { %2018 = vmatpush3.bf16.msra.mxu0 (!%p164_p2), %v2249_v0  ;;  %2235 = vmatpush3.bf16.msra.mxu1 (!%p164_p2), %v2249_v0  ;;  %v2254_v4 = vld [vmem:[%s2769_s1] sm:$0xff] (!%p164_p2)   ;;  %v2257_v8 = vld [vmem:[%s2769_s1 + $0x8] sm:$0xff] (!%p164_p2)   ;;  %v2266_v24 = vld [vmem:[%s2769_s1 + $0x38] sm:$0xff] (!%p164_p2)   ;;  %vm1468_vm3 = vcmask (!%p164_p2), 1046528   ;;  %vm1676_vm12 = vcmask (!%p164_p2), 1043456  }
   0x9   : > { %2019 = vmatprep.subr.bf16.mxu0 (!%p164_p2), %v2310_v1  ;;  %2234 = vmatprep.subr.bf16.mxu1 (!%p164_p2), %v2310_v1  ;;  %v2263_v36 = vld [vmem:[%s2769_s1 + $0x40] sm:$0xff] (!%p164_p2)   ;;  %v2267_v42 = vld [vmem:[%s2769_s1 + $0x48] sm:$0xff] (!%p164_p2)   ;;  %vm1677_vm13 = vsmask.f32 (!%p164_p2), 3328 }
   0xa   : > { %2021 = vmatprep.mubr.msk.bf16.mxu0 (!%p164_p2), %vm2311_vm0, %v2310_v1  ;;  %2033 = vmatprep.mubr.msk.bf16.mxu1 (!%p164_p2), %vm2311_vm0, %v2310_v1  ;;  %vm1678_vm15 = vmand (!%p164_p2), %vm1676_vm12, %vm1677_vm13 }
   0xc   : > { %2020 = vmatpush3.bf16.msra.mxu0 (!%p164_p2), %v2250_v2  ;;  %2236 = vmatpush3.bf16.msra.mxu1 (!%p164_p2), %v2250_v2 }
   0xd   : > { %2065 = vmatprep.subr.bf16.mxu0 (!%p164_p2), %v2310_v1  ;;  %2041 = vmatprep.subr.bf16.mxu1 (!%p164_p2), %v2310_v1 }
   0xe   : > { %s2774_s18 = smov (!%p189_p3, %s1737_s18), 1 }
   0xf   : > { %s2237_s22 = smul.u32 176, %s2774_s18 }
  0x10   : > { %s2238_s10 = smul.u32 36, %s2774_s18 }
  0x11   : > { %s2373_s27 = scalar_lea.vmem %s2768_s0, %s2237_s22 }
  0x12   : > { %v2251_v5 = vld [vmem:[%s2373_s27 + $0x2c] sm:$0xff]   ;;  %v2252_v6 = vld [vmem:[%s2373_s27 + $0x44] sm:$0xff]   ;;  %v2255_v9 = vld [vmem:[%s2373_s27 + $0x34] sm:$0xff]   ;;  %s2739_s13 = scalar_lea.vmem %s2772_s4, %s2238_s10 }
  0x13   : > { %2022 = vmatmul.mubr.msk.bf16.vlgmr.msra.gmra.mrb[0].mxu0 %vm263_vm1, %v2251_v5  ;;  %2034 = vmatmul.mubr.msk.bf16.vlgmr.msra.gmra.mrb[0].mxu1 %vm263_vm1, %v2252_v6  ;;  %v2256_v10 = vld [vmem:[%s2373_s27 + $0x4c] ss:$0 sps:$4 sm:$0xff]   ;;  %v2260_v11 = vld [vmem:[%s2373_s27] sm:$0xff]   ;;  %v2414_v20 = vld [vmem:[%s2373_s27 + $0x10] sm:$0xff]  }
  0x14   : > { %2066 = vmatpush3.bf16.msra.mxu0 %v2253_v3  ;;  %2025 = vmatprep.mubr.msk.bf16.mxu0 %vm2311_vm0, %v2310_v1  ;;  %v2262_v12 = vld [vmem:[%s2373_s27 + $0x8] sm:$0xff]   ;;  %v481_v13 = vshll.u32 %v2260_v11, 16  ;;  %v2259_v14 = vld [vmem:[%s2373_s27 + $0x3c] sm:$0xff]   ;;  %v479_v18 = vshrl.u32 %v2260_v11, 16  ;;  %v492_v32 = vshll.u32 %v2414_v20, 16  ;;  %v496_v41 = vshrl.u32 %v2414_v20, 16 }
  0x15   : > { %2037 = vmatprep.mubr.msk.bf16.mxu1 %vm2311_vm0, %v2310_v1  ;;  %2042 = vmatpush3.bf16.msra.mxu1 %v2254_v4  ;;  %v485_v16 = vshll.u32 %v2262_v12, 16  ;;  %v2411_v17 = vld [vmem:[%s2373_s27 + $0x60] sm:$0xff]   ;;  %v2418_v22 = vld [vmem:[%s2373_s27 + $0x58] sm:$0xff]   ;;  %v2425_v25 = vld [vmem:[%s2373_s27 + $0x68] sm:$0xff]   ;;  %v489_v37 = vshrl.u32 %v2262_v12, 16 }
  0x16   : > { %2067 = vmatprep.subr.bf16.mxu0 %v2310_v1  ;;  %2043 = vmatprep.subr.bf16.mxu1 %v2310_v1  ;;  %v483_v19 = vrot.slane %v481_v13, 1  ;;  %v924_v21 = vshll.u32 %v2411_v17, 16  ;;  %v918_v27 = vshrl.u32 %v2418_v22, 16  ;;  %v920_v28 = vshll.u32 %v2418_v22, 16  ;;  %v2443_v39 = vld [vmem:[%s2373_s27 + $0x18] sm:$0xff]   ;;  %v2451_v43 = vld [vmem:[%s2373_s27 + $0x70] sm:$0xff]  }
  0x17   : > { %v487_v23 = vrot.slane %v485_v16, 1  ;;  %v928_v30 = vshrl.u32 %v2411_v17, 16  ;;  %v931_v34 = vshll.u32 %v2425_v25, 16  ;;  %v494_v45 = vrot.slane %v492_v32, 1  ;;  %v2458_v46 = vld [vmem:[%s2373_s27 + $0x78] ss:$0 sps:$4 sm:$0xff]  }
  0x18   : > { %2068 = vmatpush3.bf16.msra.mxu0 %v2258_v7  ;;  %v484_v26 = vor.u32 %v483_v19, %v479_v18  ;;  %v926_v29 = vrot.slane %v924_v21, 1  ;;  %v922_v31 = vrot.slane %v920_v28, 1  ;;  %v935_v48 = vshrl.u32 %v2425_v25, 16  ;;  %v2284_v50 = vld [vmem:[%s2373_s27 + $0x4] sm:$0xff]   ;;  %v2285_v52 = vld [vmem:[%s2373_s27 + $0xc] sm:$0xff]   ;;  %v2287_v60 = vld [vmem:[%s2373_s27 + $0x14] sm:$0xff]  }
  0x19   : > { %2113 = vmatprep.subr.bf16.mxu0 %v2310_v1  ;;  %2044 = vmatpush3.bf16.msra.mxu1 %v2257_v8  ;;  %v933_v40 = vrot.slane %v931_v34, 1  ;;  %v491_v49 = vor.u32 %v489_v37, %v487_v23  ;;  %v938_v51 = vshll.u32 %v2451_v43, 16  ;;  %v942_v54 = vshrl.u32 %v2451_v43, 16  ;;  %v2479_v0 = vld [vmem:[%s2373_s27 + $0x20] ss:$0 sps:$4 sm:$0xff]   ;;  %v2292_v18 = vld [vmem:[%s2373_s27 + $0x30] sm:$0xff]  }
  0x1a   : > { %2089 = vmatprep.subr.bf16.mxu1 %v2310_v1  ;;  %v930_v33 = vor.u32 %v928_v30, %v926_v29  ;;  %v488_v35 = vsel %vm478_vm2, %v484_v26, %v487_v23  ;;  %v923_v38 = vor.u32 %v922_v31, %v918_v27  ;;  %v499_v55 = vshll.u32 %v2443_v39, 16  ;;  %v2288_v5 = vld [vmem:[%s2373_s27 + $0x1c] sm:$0xff]  }
  0x1b   : > { %2026 = vmatmul.mubr.msk.bf16.gmra.mrb[4].mxu0 %vm263_vm1, %v2255_v9  ;;  %2038 = vmatmul.mubr.msk.bf16.gmra.mrb[4].mxu1 %vm263_vm1, %v2256_v10  ;;  %v937_v53 = vor.u32 %v935_v48, %v933_v40  ;;  %v1098_v56 = vshrl.u32 %v2284_v50, 16  ;;  %v1100_v57 = vshll.u32 %v2284_v50, 16  ;;  %v940_v58 = vrot.slane %v938_v51, 1  ;;  %v2293_v31 = vld [vmem:[%s2373_s27 + $0x38] sm:$0xff]  }
  0x1c   : > { %2029 = vmatprep.mubr.msk.bf16.mxu0 %vm2311_vm0, %v2310_v1  ;;  %2045 = vmatprep.mubr.msk.bf16.mxu1 %vm2311_vm0, %v2310_v1  ;;  %v2454_v44 = vsel %vm478_vm2, %v923_v38, %v926_v29  ;;  %v2461_v47 = vsel %vm478_vm2, %v930_v33, %v933_v40  ;;  %v1105_v59 = vshll.u32 %v2285_v52, 16  ;;  %v1109_v61 = vshrl.u32 %v2285_v52, 16 }
  0x1d   : > { %v945_v62 = vshll.u32 %v2458_v46, 16  ;;  %v495_v63 = vsel %vm478_vm2, %v491_v49, %v494_v45  ;;  %v1102_v2 = vrot.slane %v1100_v57, 1  ;;  %v2482_v3 = vsel %vm478_vm2, %v937_v53, %v940_v58  ;;  %v2536_v57 = vld [vmem:[%s2373_s27 + $0x50] ss:$0 sps:$4 sm:$0xff]  }
  0x1e   : > { %v944_v4 = vor.u32 %v942_v54, %v940_v58  ;;  %v1107_v6 = vrot.slane %v1105_v59, 1  ;;  %v1113_v7 = vshll.u32 %v2287_v60, 16  ;;  %v1117_v9 = vshrl.u32 %v2287_v60, 16  ;;  %v2297_v54 = vld [vmem:[%s2373_s27 + $0x48] sm:$0xff]  }
  0x1f   : > { %v2486_v8 = vrot.slane %v945_v62, 1  ;;  %v503_v10 = vshrl.u32 %v2443_v39, 16  ;;  %v501_v13 = vrot.slane %v499_v55, 1  ;;  %v498_v19 = vor.u32 %v496_v41, %v494_v45 }
  0x20   : > { %v1125_v26 = vshrl.u32 %v2288_v5, 16  ;;  %v1282_v32 = vshrl.u32 %v2292_v18, 16  ;;  %v1284_v34 = vshll.u32 %v2292_v18, 16  ;;  %v1289_v38 = vshll.u32 %v2293_v31, 16  ;;  %v2286_v18 = vld [vmem:[%s2769_s1 + $0x80] sm:$0xff]  }
  0x21   : > { %v2492_v16 = vsel %vm478_vm2, %v944_v4, %v2486_v8  ;;  %v1293_v40 = vshrl.u32 %v2293_v31, 16  ;;  %v505_v51 = vor.u32 %v503_v10, %v501_v13  ;;  %v1305_v59 = vshll.u32 %v2297_v54, 16  ;;  %v2270_v10 = vld [vmem:[%s2769_s1 + $0x50] sm:$0xff]   ;;  %v2301_v31 = vld [vmem:[%s2373_s27 + $0x24] sm:$0x1f]  }
  0x22   : > { %v1286_v41 = vrot.slane %v1284_v34, 1  ;;  %v1291_v48 = vrot.slane %v1289_v38, 1  ;;  %v1309_v60 = vshrl.u32 %v2297_v54, 16 }
  0x23   : > { %2030 = vmatmul.mubr.msk.bf16.gmra.mrb[8].mxu0 %vm263_vm1, %v2259_v14  ;;  %2046 = vmatmul.mubr.msk.bf16.vlgmr.msra.gmra.mrb[8].mxu1 %vm263_vm1, %v2260_v11  ;;  %v1103_v11 = vor.u32 %v1102_v2, %v1098_v56  ;;  %v1111_v14 = vor.u32 %v1109_v61, %v1107_v6  ;;  %v1313_v61 = vshll.u32 %v2536_v57, 16 }
  0x24   : > { %2069 = vmatprep.mubr.msk.bf16.mxu0 %vm2311_vm0, %v2310_v1  ;;  %2049 = vmatprep.mubr.msk.bf16.mxu1 %vm2311_vm0, %v2310_v1  ;;  %v1287_v49 = vor.u32 %v1286_v41, %v1282_v32  ;;  %v1295_v53 = vor.u32 %v1293_v40, %v1291_v48  ;;  %v1317_v32 = vshrl.u32 %v2536_v57, 16 }
  0x25   : > { %2090 = vmatpush3.bf16.msra.mxu1 %v2261_v15  ;;  %v1115_v15 = vrot.slane %v1113_v7, 1  ;;  %v2500_v21 = vsel %vm478_vm2, %v1103_v11, %v1107_v6  ;;  %v2543_v2 = vrot.slane %v1313_v61, 1  ;;  %v510_v6 = vshrl.u32 %v2479_v0, 16  ;;  %v2272_v11 = vld [vmem:[%s2373_s27 + $0x84] sm:$0xff]  }
  0x26   : > { %2091 = vmatprep.subr.bf16.mxu1 %v2310_v1  ;;  %v2533_v56 = vsel %vm478_vm2, %v1287_v49, %v1291_v48 }
  0x27   : > { %v2508_v27 = vsel %vm478_vm2, %v1111_v14, %v1115_v15  ;;  %v1119_v28 = vor.u32 %v1117_v9, %v1115_v15  ;;  %v2281_v14 = vld [vmem:[%s2373_s27 + $0x9c] sm:$0xff]   ;;  %v1319_v34 = vor.u32 %v1317_v32, %v2543_v2 }
  0x28   : > { %v2289_v15 = vld [vmem:[%s2769_s1 + $0x78] sm:$0xff]  }
  0x29   : > { %2092 = vmatpush3.bf16.msra.mxu1 %v2266_v24  ;;  %v2503_v24 = vld [vmem:[%s2373_s27 + $0x24] ss:$0 sps:$4 sm:$0xff]  }
  0x2a   : > { %2137 = vmatprep.subr.bf16.mxu1 %v2310_v1  ;;  %v1129_v30 = vshll.u32 %v2503_v24, 16 }
  0x2b   : > { %2070 = vmatmul.mubr.msk.bf16.vlgmr.msra.gmra.mrb[12].mxu0 %vm263_vm1, %v488_v35  ;;  %2050 = vmatmul.mubr.msk.bf16.gmra.mrb[12].mxu1 %vm263_vm1, %v2262_v12  ;;  %v1121_v12 = vshll.u32 %v2288_v5, 16  ;;  %v2294_v35 = vld [vmem:[%s2373_s27 + $0x40] sm:$0xff]  }
  0x2c   : > { %2114 = vmatpush3.bf16.msra.mxu0 %v2263_v36  ;;  %2053 = vmatprep.mubr.msk.bf16.mxu1 %vm2311_vm0, %v2310_v1  ;;  %v502_v36 = vsel %vm478_vm2, %v498_v19, %v501_v13  ;;  %v2518_v37 = vrot.slane %v1129_v30, 1  ;;  %v1301_v55 = vshrl.u32 %v2294_v35, 16  ;;  %v2275_v13 = vld [vmem:[%s2373_s27 + $0x8c] sm:$0xff]   ;;  %v1133_v19 = vshrl.u32 %v2503_v24, 16 }
  0x2d   : > { %2073 = vmatprep.mubr.msk.bf16.mxu0 %vm2311_vm0, %v2310_v1  ;;  %2115 = vmatprep.subr.bf16.mxu0 %v2310_v1  ;;  %v1123_v23 = vrot.slane %v1121_v12, 1  ;;  %v2273_v12 = vld [vmem:[%s2769_s1 + $0x60] sm:$0xff]  }
  0x2f   : > { %v1127_v29 = vor.u32 %v1125_v26, %v1123_v23  ;;  %v2514_v33 = vsel %vm478_vm2, %v1119_v28, %v1123_v23  ;;  %v2298_v26 = vld [vmem:[%s2373_s27 + $0x14] sm:$0xff]  }
  0x30   : > { %2116 = vmatpush3.bf16.msra.mxu0 %v2267_v42  ;;  %v1297_v42 = vshll.u32 %v2294_v35, 16 }
  0x31   : > { %2161 = vmatprep.subr.bf16.mxu0 %v2310_v1  ;;  %v2522_v45 = vsel %vm478_vm2, %v1127_v29, %v2518_v37 }
  0x32   : > { %v1299_v50 = vrot.slane %v1297_v42, 1 }
  0x33   : > { %2074 = vmatmul.mubr.msk.bf16.gmra.mrb[16].mxu0 %vm263_vm1, %v495_v63  ;;  %2054 = vmatmul.mubr.msk.bf16.gmra.mrb[16].mxu1 %vm263_vm1, %v2414_v20  ;;  %v506_v20 = vshll.u32 %v2479_v0, 16  ;;  %v1307_v63 = vrot.slane %v1305_v59, 1 }
  0x34   : > { %2077 = vmatprep.mubr.msk.bf16.mxu0 %vm2311_vm0, %v2310_v1  ;;  %2057 = vmatprep.mubr.msk.bf16.mxu1 %vm2311_vm0, %v2310_v1  ;;  %v2539_v58 = vsel %vm478_vm2, %v1295_v53, %v1299_v50 }
  0x35   : > { %v508_v52 = vrot.slane %v506_v20, 1  ;;  %v1311_v5 = vor.u32 %v1309_v60, %v1307_v63  ;;  %v2300_v20 = vld [vmem:[%s2373_s27 + $0x1c] sm:$0xff]  }
  0x36   : > { %v1474_v29 = vrot.slane %v2300_v20, 1 }
  0x37   : > { %v509_v62 = vsel %vm478_vm2, %v505_v51, %v508_v52  ;;  %v2556_v7 = vsel %vm478_vm2, %v1311_v5, %v2543_v2  ;;  %v512_v9 = vor.u32 %v510_v6, %v508_v52 }
  0x3b   : > { %2078 = vmatmul.mubr.msk.bf16.gmra.mrb[20].mxu0 %vm263_vm1, %v502_v36  ;;  %2058 = vmatmul.mubr.msk.bf16.gmra.mrb[20].mxu1 %vm263_vm1, %v2443_v39  ;;  %v1303_v39 = vor.u32 %v1301_v55, %v1299_v50 }
  0x3c   : > { %2081 = vmatprep.mubr.msk.bf16.mxu0 %vm2311_vm0, %v2310_v1  ;;  %2061 = vmatprep.mubr.msk.bf16.mxu1 %vm2311_vm0, %v2310_v1 }
  0x3d   : > { %v2546_v4 = vsel %vm478_vm2, %v1303_v39, %v1307_v63 }
  0x43   : > { %2082 = vmatmul.mubr.msk.bf16.gmra.mrb[24].mxu0 %vm263_vm1, %v509_v62  ;;  %2062 = vmatmul.mubr.msk.bf16.gmra.mrb[24].mxu1 %vm263_vm1, %v2479_v0  ;;  %v2278_v0 = vld [vmem:[%s2769_s1 + $0x58] sm:$0xff]  }
  0x44   : > { %2085 = vmatprep.mubr.msk.bf16.mxu0 %vm2311_vm0, %v2310_v1  ;;  %2093 = vmatprep.mubr.msk.bf16.mxu1 %vm2311_vm0, %v2310_v1 }
  0x4b   : > { %2086 = vmatmul.mubr.msk.bf16.gmra.mrb[28].mxu0 %vm263_vm1, %v512_v9  ;;  %2094 = vmatmul.mubr.msk.bf16.vlgmr.msra.gmra.mrb[28].mxu1 %vm263_vm1, %v2418_v22  ;;  %v2279_v22 = vld [vmem:[%s2769_s1 + $0x68] sm:$0xff]  }
  0x4c   : > { %2117 = vmatprep.mubr.msk.bf16.mxu0 %vm2311_vm0, %v2310_v1  ;;  %2097 = vmatprep.mubr.msk.bf16.mxu1 %vm2311_vm0, %v2310_v1 }
  0x4d   : > { %2138 = vmatpush3.bf16.msra.mxu1 %v2270_v10 }
  0x4e   : > { %2139 = vmatprep.subr.bf16.mxu1 %v2310_v1 }
  0x51   : > { %2140 = vmatpush3.bf16.msra.mxu1 %v2278_v0 }
  0x52   : > { %2185 = vmatprep.subr.bf16.mxu1 %v2310_v1 }
  0x53   : > { %2118 = vmatmul.mubr.msk.bf16.vlgmr.msra.gmra.mrb[32].mxu0 %vm263_vm1, %v2272_v11  ;;  %2098 = vmatmul.mubr.msk.bf16.gmra.mrb[32].mxu1 %vm263_vm1, %v2411_v17  ;;  %v2277_v17 = vld [vmem:[%s2373_s27 + $0x94] sm:$0xff]  }
  0x54   : > { %2162 = vmatpush3.bf16.msra.mxu0 %v2273_v12  ;;  %2101 = vmatprep.mubr.msk.bf16.mxu1 %vm2311_vm0, %v2310_v1 }
  0x55   : > { %2121 = vmatprep.mubr.msk.bf16.mxu0 %vm2311_vm0, %v2310_v1  ;;  %2163 = vmatprep.subr.bf16.mxu0 %v2310_v1 }
  0x58   : > { %2164 = vmatpush3.bf16.msra.mxu0 %v2279_v22 }
  0x59   : > { %2209 = vmatprep.subr.bf16.mxu0 %v2310_v1 }
  0x5b   : > { %2122 = vmatmul.mubr.msk.bf16.gmra.mrb[36].mxu0 %vm263_vm1, %v2275_v13  ;;  %2102 = vmatmul.mubr.msk.bf16.gmra.mrb[36].mxu1 %vm263_vm1, %v2425_v25  ;;  %v2282_v25 = vld [vmem:[%s2373_s27 + $0xa4] ss:$0 sps:$4 sm:$0xff]  }
  0x5c   : > { %2125 = vmatprep.mubr.msk.bf16.mxu0 %vm2311_vm0, %v2310_v1  ;;  %2105 = vmatprep.mubr.msk.bf16.mxu1 %vm2311_vm0, %v2310_v1 }
  0x63   : > { %2126 = vmatmul.mubr.msk.bf16.gmra.mrb[40].mxu0 %vm263_vm1, %v2277_v17  ;;  %2106 = vmatmul.mubr.msk.bf16.gmra.mrb[40].mxu1 %vm263_vm1, %v2451_v43  ;;  %v2283_v43 = vld [vmem:[%s2769_s1 + $0x70] sm:$0xff]  }
  0x64   : > { %2129 = vmatprep.mubr.msk.bf16.mxu0 %vm2311_vm0, %v2310_v1  ;;  %2109 = vmatprep.mubr.msk.bf16.mxu1 %vm2311_vm0, %v2310_v1 }
  0x6b   : > { %2130 = vmatmul.mubr.msk.bf16.gmra.mrb[44].mxu0 %vm263_vm1, %v2281_v14  ;;  %2110 = vmatmul.mubr.msk.bf16.gmra.mrb[44].mxu1 %vm263_vm1, %v2458_v46 }
  0x6c   : > { %2133 = vmatprep.mubr.msk.bf16.mxu0 %vm2311_vm0, %v2310_v1  ;;  %2141 = vmatprep.mubr.msk.bf16.mxu1 %vm2311_vm0, %v2310_v1 }
  0x73   : > { %2134 = vmatmul.mubr.msk.bf16.gmra.mrb[48].mxu0 %vm263_vm1, %v2282_v25  ;;  %2142 = vmatmul.mubr.msk.bf16.vlgmr.msra.gmra.mrb[48].mxu1 %vm263_vm1, %v2454_v44  ;;  %v2290_v44 = vld [vmem:[%s2769_s1 + $0x88] sm:$0xff]  }
  0x74   : > { %2165 = vmatprep.mubr.msk.bf16.mxu0 %vm2311_vm0, %v2310_v1  ;;  %2145 = vmatprep.mubr.msk.bf16.mxu1 %vm2311_vm0, %v2310_v1 }
  0x75   : > { %2186 = vmatpush3.bf16.msra.mxu1 %v2283_v43 }
  0x76   : > { %2187 = vmatprep.subr.bf16.mxu1 %v2310_v1 }
  0x79   : > { %2188 = vmatpush3.bf16.msra.mxu1 %v2289_v15 }
  0x7b   : > { %2166 = vmatmul.mubr.msk.bf16.vlgmr.msra.gmra.mrb[52].mxu0 %vm263_vm1, %v2500_v21  ;;  %2146 = vmatmul.mubr.msk.bf16.gmra.mrb[52].mxu1 %vm263_vm1, %v2461_v47  ;;  %v949_v47 = vshrl.u32 %v2458_v46, 16  ;;  %v1135_v46 = vor.u32 %v1133_v19, %v2518_v37  ;;  %v2296_v21 = vld [vmem:[%s2373_s27 + $0xc] sm:$0xff]  }
  0x7c   : > { %2210 = vmatpush3.bf16.msra.mxu0 %v2286_v18  ;;  %2149 = vmatprep.mubr.msk.bf16.mxu1 %vm2311_vm0, %v2310_v1  ;;  %v1470_v23 = vrot.slane %v2296_v21, 1 }
  0x7d   : > { %2169 = vmatprep.mubr.msk.bf16.mxu0 %vm2311_vm0, %v2310_v1  ;;  %2211 = vmatprep.subr.bf16.mxu0 %v2310_v1 }
  0x80   : > { %2212 = vmatpush3.bf16.msra.mxu0 %v2290_v44 }
  0x83   : > { %2170 = vmatmul.mubr.msk.bf16.gmra.mrb[56].mxu0 %vm263_vm1, %v2508_v27  ;;  %2150 = vmatmul.mubr.msk.bf16.gmra.mrb[56].mxu1 %vm263_vm1, %v2482_v3  ;;  %v951_v3 = vor.u32 %v949_v47, %v2486_v8  ;;  %v1472_v27 = vrot.slane %v2298_v26, 1 }
  0x84   : > { %2173 = vmatprep.mubr.msk.bf16.mxu0 %vm2311_vm0, %v2310_v1  ;;  %2153 = vmatprep.mubr.msk.bf16.mxu1 %vm2311_vm0, %v2310_v1 }
  0x85   : > { %v1473_v28 = vsel %vm1468_vm3, %v1470_v23, %v1472_v27  ;;  %v1475_v30 = vsel %vm1468_vm3, %v1472_v27, %v1474_v29 }
  0x8b   : > { %2174 = vmatmul.mubr.msk.bf16.gmra.mrb[60].mxu0 %vm263_vm1, %v2514_v33  ;;  %2154 = vmatmul.mubr.msk.bf16.gmra.mrb[60].mxu1 %vm263_vm1, %v2492_v16  ;;  %v2295_v16 = vld [vmem:[%s2373_s27 + $0x4] sm:$0xfe]   ;;  %v1476_v33 = vrot.slane %v2301_v31, 1  ;;  %s1602_s27 = sld [smem:[#allocation2]] }
  0x8c   : > { %2177 = vmatprep.mubr.msk.bf16.mxu0 %vm2311_vm0, %v2310_v1  ;;  %2157 = vmatprep.mubr.msk.bf16.mxu1 %vm2311_vm0, %v2310_v1  ;;  %v1469_v8 = vrot.slane %v2295_v16, 1 }
  0x8d   : > { %v1477_v35 = vsel %vm1468_vm3, %v1474_v29, %v1476_v33 }
  0x8e   : > { %v1471_v24 = vsel %vm1468_vm3, %v1469_v8, %v1470_v23 }
  0x93   : > { %2178 = vmatmul.mubr.msk.bf16.gmra.mrb[64].mxu0 %vm263_vm1, %v2522_v45  ;;  %2158 = vmatmul.mubr.msk.bf16.gmra.mrb[64].mxu1 %vm263_vm1, %v951_v3 }
  0x94   : > { %2181 = vmatprep.mubr.msk.bf16.mxu0 %vm2311_vm0, %v2310_v1  ;;  %2189 = vmatprep.mubr.msk.bf16.mxu1 %vm2311_vm0, %v2310_v1 }
  0x9b   : > { %2182 = vmatmul.mubr.msk.bf16.gmra.mrb[68].mxu0 %vm263_vm1, %v1135_v46  ;;  %2190 = vmatmul.mubr.msk.bf16.vlgmr.msra.gmra.mrb[68].mxu1 %vm263_vm1, %v2533_v56 }
  0x9c   : > { %2213 = vmatprep.mubr.msk.bf16.mxu0 %vm2311_vm0, %v2310_v1  ;;  %2193 = vmatprep.mubr.msk.bf16.mxu1 %vm2311_vm0, %v2310_v1 }
  0xa3   : > { %2214 = vmatmul.mubr.msk.bf16.vlgmr.msra.gmra.mrb[72].mxu0 %vm263_vm1, %v1471_v24  ;;  %2194 = vmatmul.mubr.msk.bf16.gmra.mrb[72].mxu1 %vm263_vm1, %v2539_v58 }
  0xa4   : > { %2217 = vmatprep.mubr.msk.bf16.mxu0 %vm2311_vm0, %v2310_v1  ;;  %2197 = vmatprep.mubr.msk.bf16.mxu1 %vm2311_vm0, %v2310_v1 }
  0xab   : > { %2218 = vmatmul.mubr.msk.bf16.gmra.mrb[76].mxu0 %vm263_vm1, %v1473_v28  ;;  %2198 = vmatmul.mubr.msk.bf16.gmra.mrb[76].mxu1 %vm263_vm1, %v2546_v4 }
  0xac   : > { %2221 = vmatprep.mubr.msk.bf16.mxu0 %vm2311_vm0, %v2310_v1  ;;  %2201 = vmatprep.mubr.msk.bf16.mxu1 %vm2311_vm0, %v2310_v1 }
  0xb3   : > { %2222 = vmatmul.mubr.msk.bf16.gmra.mrb[80].mxu0 %vm263_vm1, %v1475_v30  ;;  %2202 = vmatmul.mubr.msk.bf16.gmra.mrb[80].mxu1 %vm263_vm1, %v2556_v7 }
  0xb4   : > { %2225 = vmatprep.mubr.msk.bf16.mxu0 %vm2311_vm0, %v2310_v1  ;;  %2205 = vmatprep.mubr.msk.bf16.mxu1 %vm2311_vm0, %v2310_v1 }
  0xbb   : > { %2226 = vmatmul.mubr.msk.bf16.gmra.mrb[84].mxu0 %vm263_vm1, %v1477_v35  ;;  %2206 = vmatmul.mubr.msk.bf16.gmra.mrb[84].mxu1 %vm263_vm1, %v1319_v34 }
  0xbc   : > { %2229 = vmatprep.mubr.msk.bf16.mxu0 %vm2311_vm0, %v2310_v1 }
  0xc3   : > { %2230 = vmatmul.mubr.msk.bf16.gmra.mrb[88].mxu0 %vm263_vm1, %v1476_v33 }
  0xe6   : > { %v313_v36 = vpop.f32.mrb[0].mxu0  ;;  %v337_v38 = vpop.f32.mrb[0].mxu1 }
  0xe7   : > { %v2023_v37 = vpop.f32.mrb[1].mxu0  ;;  %v2035_v41 = vpop.f32.mrb[1].mxu1 }
  0xe8   : > { %v316_v40 = vpop.f32.mrb[2].mxu0  ;;  %v340_v45 = vpop.f32.mrb[2].mxu1 }
  0xe9   : > { %v2024_v42 = vpop.f32.mrb[3].mxu0  ;;  %v2036_v48 = vpop.f32.mrb[3].mxu1 }
  0xee   : > { %v321_v49 = vpop.f32.mrb[4].mxu0  ;;  %v345_v51 = vpop.f32.mrb[4].mxu1 }
  0xef   : > { %v2027_v50 = vpop.f32.mrb[5].mxu0  ;;  %v2039_v53 = vpop.f32.mrb[5].mxu1 }
  0xf0   : > { %v324_v52 = vpop.f32.mrb[6].mxu0  ;;  %v348_v55 = vpop.f32.mrb[6].mxu1 }
  0xf1   : > { %v2028_v54 = vpop.f32.mrb[7].mxu0  ;;  %v2040_v56 = vpop.f32.mrb[7].mxu1 }
  0xf6   : > { %v329_v57 = vpop.f32.mrb[8].mxu0  ;;  %v435_v1 = vpop.f32.mrb[8].mxu1 }
  0xf7   : > { %v2031_v58 = vpop.f32.mrb[9].mxu0  ;;  %v436_v39 = vadd.f32 %v435_v1, %v313_v36  ;;  %v2047_v59 = vpop.f32.mrb[9].mxu1 }
  0xf8   : > { %v332_v60 = vpop.f32.mrb[10].mxu0  ;;  %v438_v61 = vpop.f32.mrb[10].mxu1 }
  0xf9   : > { %v2032_v62 = vpop.f32.mrb[11].mxu0  ;;  %v439_v63 = vadd.f32 %v438_v61, %v316_v40  ;;  %v2048_v2 = vpop.f32.mrb[11].mxu1 }
  0xfe   : > { %v574_v4 = vpop.f32.mrb[12].mxu0  ;;  %v443_v5 = vpop.f32.mrb[12].mxu1 }
  0xff   : > { %v612_v6 = vadd.f32 %v574_v4, %v436_v39  ;;  %v2071_v7 = vpop.f32.mrb[13].mxu0  ;;  %v444_v9 = vadd.f32 %v443_v5, %v321_v49  ;;  %v2051_v10 = vpop.f32.mrb[13].mxu1 }
 0x100   : > { %v577_v0 = vpop.f32.mrb[14].mxu0  ;;  %v446_v11 = vpop.f32.mrb[14].mxu1 }
 0x101   : > { %v613_v12 = vadd.f32 %v577_v0, %v439_v63  ;;  %v2072_v22 = vpop.f32.mrb[15].mxu0  ;;  %v447_v13 = vadd.f32 %v446_v11, %v324_v52  ;;  %v2052_v17 = vpop.f32.mrb[15].mxu1 }
 0x106   : > { %v582_v14 = vpop.f32.mrb[16].mxu0  ;;  %v451_v25 = vpop.f32.mrb[16].mxu1 }
 0x107   : > { %v614_v43 = vadd.f32 %v582_v14, %v444_v9  ;;  %v2075_v15 = vpop.f32.mrb[17].mxu0  ;;  %v452_v18 = vadd.f32 %v451_v25, %v329_v57  ;;  %v2055_v44 = vpop.f32.mrb[17].mxu1 }
 0x108   : > { %v585_v47 = vpop.f32.mrb[18].mxu0  ;;  %v454_v3 = vpop.f32.mrb[18].mxu1 }
 0x109   : > { %v615_v19 = vadd.f32 %v585_v47, %v447_v13  ;;  %v2076_v46 = vpop.f32.mrb[19].mxu0  ;;  %v455_v16 = vadd.f32 %v454_v3, %v332_v60  ;;  %v2056_v21 = vpop.f32.mrb[19].mxu1 }
 0x10e   : > { %v590_v8 = vpop.f32.mrb[20].mxu0  ;;  %v459_v23 = vpop.f32.mrb[20].mxu1 }
 0x10f   : > { %v616_v24 = vadd.f32 %v590_v8, %v452_v18  ;;  %v2079_v26 = vpop.f32.mrb[21].mxu0  ;;  %v460_v27 = vadd.f32 %v459_v23, %v337_v38  ;;  %v2059_v28 = vpop.f32.mrb[21].mxu1 }
 0x110   : > { %v593_v20 = vpop.f32.mrb[22].mxu0  ;;  %v462_v29 = vpop.f32.mrb[22].mxu1 }
 0x111   : > { %v617_v30 = vadd.f32 %v593_v20, %v455_v16  ;;  %v2080_v31 = vpop.f32.mrb[23].mxu0  ;;  %v463_v32 = vadd.f32 %v462_v29, %v340_v45  ;;  %v2060_v33 = vpop.f32.mrb[23].mxu1 }
 0x116   : > { %v598_v34 = vpop.f32.mrb[24].mxu0  ;;  %v467_v35 = vpop.f32.mrb[24].mxu1 }
 0x117   : > { %v618_v36 = vadd.f32 %v598_v34, %v460_v27  ;;  %v2083_v37 = vpop.f32.mrb[25].mxu0  ;;  %v468_v40 = vadd.f32 %v467_v35, %v345_v51  ;;  %v2063_v42 = vpop.f32.mrb[25].mxu1 }
 0x118   : > { %v601_v41 = vpop.f32.mrb[26].mxu0  ;;  %v470_v50 = vpop.f32.mrb[26].mxu1 }
 0x119   : > { %v619_v48 = vadd.f32 %v601_v41, %v463_v32  ;;  %v2084_v49 = vpop.f32.mrb[27].mxu0  ;;  %v2064_v52 = vpop.f32.mrb[27].mxu1 }
 0x11e   : > { %v606_v53 = vpop.f32.mrb[28].mxu0  ;;  %v720_v54 = vpop.f32.mrb[28].mxu1 }
 0x11f   : > { %v620_v38 = vadd.f32 %v606_v53, %v468_v40  ;;  %v2087_v55 = vpop.f32.mrb[29].mxu0  ;;  %v758_v56 = vadd.f32 %v720_v54, %v612_v6  ;;  %v2095_v57 = vpop.f32.mrb[29].mxu1 }
 0x120   : > { %v609_v1 = vpop.f32.mrb[30].mxu0  ;;  %v723_v45 = vpop.f32.mrb[30].mxu1 }
 0x121   : > { %v2088_v58 = vpop.f32.mrb[31].mxu0  ;;  %v759_v39 = vadd.f32 %v723_v45, %v613_v12  ;;  %v2096_v59 = vpop.f32.mrb[31].mxu1 }
 0x126   : > { %v866_v60 = vpop.f32.mrb[32].mxu0  ;;  %v728_v61 = vpop.f32.mrb[32].mxu1 }
 0x127   : > { %v904_v51 = vadd.f32 %v866_v60, %v758_v56  ;;  %v2119_v62 = vpop.f32.mrb[33].mxu0  ;;  %v760_v63 = vadd.f32 %v728_v61, %v614_v43  ;;  %v2099_v2 = vpop.f32.mrb[33].mxu1 }
 0x128   : > { %v869_v4 = vpop.f32.mrb[34].mxu0  ;;  %v731_v5 = vpop.f32.mrb[34].mxu1 }
 0x129   : > { %v905_v7 = vadd.f32 %v869_v4, %v759_v39  ;;  %v2120_v9 = vpop.f32.mrb[35].mxu0  ;;  %v761_v10 = vadd.f32 %v731_v5, %v615_v19  ;;  %v2100_v0 = vpop.f32.mrb[35].mxu1 }
 0x12e   : > { %v874_v11 = vpop.f32.mrb[36].mxu0  ;;  %v736_v6 = vpop.f32.mrb[36].mxu1 }
 0x12f   : > { %v906_v22 = vadd.f32 %v874_v11, %v760_v63  ;;  %v2123_v13 = vpop.f32.mrb[37].mxu0  ;;  %v762_v17 = vadd.f32 %v736_v6, %v616_v24  ;;  %v2103_v14 = vpop.f32.mrb[37].mxu1 }
 0x130   : > { %v877_v12 = vpop.f32.mrb[38].mxu0  ;;  %v739_v25 = vpop.f32.mrb[38].mxu1 }
 0x131   : > { %v907_v15 = vadd.f32 %v877_v12, %v761_v10  ;;  %v2124_v18 = vpop.f32.mrb[39].mxu0  ;;  %v763_v44 = vadd.f32 %v739_v25, %v617_v30  ;;  %v2104_v47 = vpop.f32.mrb[39].mxu1 }
 0x136   : > { %v882_v43 = vpop.f32.mrb[40].mxu0  ;;  %v744_v3 = vpop.f32.mrb[40].mxu1 }
 0x137   : > { %v908_v46 = vadd.f32 %v882_v43, %v762_v17  ;;  %v2127_v16 = vpop.f32.mrb[41].mxu0  ;;  %v764_v21 = vadd.f32 %v744_v3, %v618_v36  ;;  %v2107_v8 = vpop.f32.mrb[41].mxu1 }
 0x138   : > { %v885_v19 = vpop.f32.mrb[42].mxu0  ;;  %v747_v23 = vpop.f32.mrb[42].mxu1 }
 0x139   : > { %v909_v26 = vadd.f32 %v885_v19, %v763_v44  ;;  %v2128_v27 = vpop.f32.mrb[43].mxu0  ;;  %v765_v28 = vadd.f32 %v747_v23, %v619_v48  ;;  %v2108_v20 = vpop.f32.mrb[43].mxu1 }
 0x13e   : > { %v890_v24 = vpop.f32.mrb[44].mxu0  ;;  %v752_v29 = vpop.f32.mrb[44].mxu1 }
 0x13f   : > { %v910_v31 = vadd.f32 %v890_v24, %v764_v21  ;;  %v2131_v32 = vpop.f32.mrb[45].mxu0  ;;  %v766_v33 = vadd.f32 %v752_v29, %v620_v38  ;;  %v2111_v30 = vpop.f32.mrb[45].mxu1 }
 0x140   : > { %v893_v34 = vpop.f32.mrb[46].mxu0  ;;  %v755_v40 = vpop.f32.mrb[46].mxu1 }
 0x141   : > { %v911_v35 = vadd.f32 %v893_v34, %v765_v28  ;;  %v2132_v37 = vpop.f32.mrb[47].mxu0  ;;  %v2112_v41 = vpop.f32.mrb[47].mxu1 }
 0x146   : > { %v898_v42 = vpop.f32.mrb[48].mxu0  ;;  %v1013_v49 = vpop.f32.mrb[48].mxu1 }
 0x147   : > { %v912_v36 = vadd.f32 %v898_v42, %v766_v33  ;;  %v2135_v50 = vpop.f32.mrb[49].mxu0  ;;  %v1051_v52 = vadd.f32 %v1013_v49, %v904_v51  ;;  %v2143_v53 = vpop.f32.mrb[49].mxu1 }
 0x148   : > { %v901_v54 = vpop.f32.mrb[50].mxu0  ;;  %v1016_v48 = vpop.f32.mrb[50].mxu1 }
 0x149   : > { %v2136_v55 = vpop.f32.mrb[51].mxu0  ;;  %v1052_v56 = vadd.f32 %v1016_v48, %v905_v7  ;;  %v2144_v57 = vpop.f32.mrb[51].mxu1  ;;  %v2727_v54 = vld [vmem:[%s2770_s2] ss:$0 sm:$0xff] }
 0x14e   : > { %v1197_v1 = vpop.f32.mrb[52].mxu0  ;;  %v1021_v45 = vpop.f32.mrb[52].mxu1 }
 0x14f   : > { %v1235_v38 = vadd.f32 %v1197_v1, %v1051_v52  ;;  %v2167_v58 = vpop.f32.mrb[53].mxu0  ;;  %v1053_v39 = vadd.f32 %v1021_v45, %v906_v22  ;;  %v2147_v59 = vpop.f32.mrb[53].mxu1  ;;  %v2729_v1 = vstv %s1602_s27 }
 0x150   : > { %v1200_v60 = vpop.f32.mrb[54].mxu0  ;;  %v1024_v61 = vpop.f32.mrb[54].mxu1 }
 0x151   : > { %v1236_v62 = vadd.f32 %v1200_v60, %v1052_v56  ;;  %v2168_v63 = vpop.f32.mrb[55].mxu0  ;;  %v1054_v2 = vadd.f32 %v1024_v61, %v907_v15  ;;  %v2148_v4 = vpop.f32.mrb[55].mxu1 }
 0x156   : > { %v1205_v5 = vpop.f32.mrb[56].mxu0  ;;  %v1029_v51 = vpop.f32.mrb[56].mxu1 }
 0x157   : > { %v1237_v9 = vadd.f32 %v1205_v5, %v1053_v39  ;;  %v2171_v10 = vpop.f32.mrb[57].mxu0  ;;  %v1055_v0 = vadd.f32 %v1029_v51, %v908_v46  ;;  %v2151_v11 = vpop.f32.mrb[57].mxu1 }
 0x158   : > { %v1208_v7 = vpop.f32.mrb[58].mxu0  ;;  %v1032_v6 = vpop.f32.mrb[58].mxu1 }
 0x159   : > { %v1238_v13 = vadd.f32 %v1208_v7, %v1054_v2  ;;  %v2172_v17 = vpop.f32.mrb[59].mxu0  ;;  %v1056_v14 = vadd.f32 %v1032_v6, %v909_v26  ;;  %v2152_v12 = vpop.f32.mrb[59].mxu1 }
 0x15e   : > { %v1213_v22 = vpop.f32.mrb[60].mxu0  ;;  %v1037_v25 = vpop.f32.mrb[60].mxu1 }
 0x15f   : > { %v1239_v18 = vadd.f32 %v1213_v22, %v1055_v0  ;;  %v2175_v44 = vpop.f32.mrb[61].mxu0  ;;  %v1057_v47 = vadd.f32 %v1037_v25, %v910_v31  ;;  %v2155_v43 = vpop.f32.mrb[61].mxu1 }
 0x160   : > { %v1216_v15 = vpop.f32.mrb[62].mxu0  ;;  %v1040_v3 = vpop.f32.mrb[62].mxu1 }
 0x161   : > { %v2716_v16 = vadd.f32 %v1216_v15, %v1056_v14  ;;  %v2176_v21 = vpop.f32.mrb[63].mxu0  ;;  %v1058_v8 = vadd.f32 %v1040_v3, %v911_v35  ;;  %v2156_v46 = vpop.f32.mrb[63].mxu1 }
 0x166   : > { %v1221_v19 = vpop.f32.mrb[64].mxu0  ;;  %v1045_v23 = vpop.f32.mrb[64].mxu1 }
 0x167   : > { %v2718_v27 = vadd.f32 %v1221_v19, %v1057_v47  ;;  %v2179_v28 = vpop.f32.mrb[65].mxu0  ;;  %v1059_v26 = vadd.f32 %v1045_v23, %v912_v36  ;;  %v2159_v24 = vpop.f32.mrb[65].mxu1 }
 0x168   : > { %v1224_v20 = vpop.f32.mrb[66].mxu0  ;;  %v1048_v31 = vpop.f32.mrb[66].mxu1 }
 0x169   : > { %v2720_v29 = vadd.f32 %v1224_v20, %v1058_v8  ;;  %v2180_v32 = vpop.f32.mrb[67].mxu0  ;;  %v2160_v33 = vpop.f32.mrb[67].mxu1 }
 0x16e   : > { %v1229_v34 = vpop.f32.mrb[68].mxu0  ;;  %v1381_v37 = vpop.f32.mrb[68].mxu1 }
 0x16f   : > { %v2722_v30 = vadd.f32 %v1229_v34, %v1059_v26  ;;  %v2183_v40 = vpop.f32.mrb[69].mxu0  ;;  %v1419_v35 = vadd.f32 %v1381_v37, %v1235_v38  ;;  %v2191_v41 = vpop.f32.mrb[69].mxu1 }
 0x170   : > { %v1232_v42 = vpop.f32.mrb[70].mxu0  ;;  %v1384_v49 = vpop.f32.mrb[70].mxu1 }
 0x171   : > { %v2184_v50 = vpop.f32.mrb[71].mxu0  ;;  %v1420_v52 = vadd.f32 %v1384_v49, %v1236_v62  ;;  %v2192_v36 = vpop.f32.mrb[71].mxu1 }
 0x176   : > { %v1539_v53 = vpop.f32.mrb[72].mxu0  ;;  %v1389_v48 = vpop.f32.mrb[72].mxu1 }
 0x177   : > { %v1577_v55 = vadd.f32 %v1539_v53, %v1419_v35  ;;  %v2215_v56 = vpop.f32.mrb[73].mxu0  ;;  %v1421_v57 = vadd.f32 %v1389_v48, %v1237_v9  ;;  %v2195_v45 = vpop.f32.mrb[73].mxu1 }
 0x178   : > { %v1542_v38 = vpop.f32.mrb[74].mxu0  ;;  %v1392_v39 = vpop.f32.mrb[74].mxu1 }
 0x179   : > { %v1593_v58 = vadd.f32 %v2727_v54, %v1577_v55  ;;  %v1578_v59 = vadd.f32 %v1542_v38, %v1420_v52  ;;  %v2216_v60 = vpop.f32.mrb[75].mxu0  ;;  %v1422_v61 = vadd.f32 %v1392_v39, %v1238_v13  ;;  %v2196_v62 = vpop.f32.mrb[75].mxu1 }
 0x17b   : > { %v1613_v63 = vmul.f32 %v2729_v1, %v1593_v58  ;;  %v1594_v2 = vadd.f32 %v2727_v54, %v1578_v59  ;;  %vm1603_vm4 = vcmp.ge.f32.partialorder %v1593_v58, 0.0 }
 0x17d   : > { %vm1604_vm5 = vcmp.ge.f32.partialorder %v1594_v2, 0.0  ;;  %v1614_v4 = vmul.f32 %v2729_v1, %v1594_v2  ;;  %v1622_v51 = vsel %vm1603_vm4, %v1593_v58, %v1613_v63 }
 0x17e   : > { %v1547_v5 = vpop.f32.mrb[76].mxu0  ;;  %v1397_v10 = vpop.f32.mrb[76].mxu1 }
 0x17f   : > { %v1623_v9 = vsel %vm1604_vm5, %v1594_v2, %v1614_v4  ;;  %v1579_v0 = vadd.f32 %v1547_v5, %v1421_v57  ;;  %v2219_v11 = vpop.f32.mrb[77].mxu0  ;;  %v1423_v6 = vadd.f32 %v1397_v10, %v1239_v18  ;;  %v2199_v13 = vpop.f32.mrb[77].mxu1 }
 0x180   : > { %v1934_v7 = vpack.c.bf16 %v1623_v9, %v1622_v51  ;;  %v1550_v17 = vpop.f32.mrb[78].mxu0  ;;  %v1400_v12 = vpop.f32.mrb[78].mxu1  ;;  %v1679_v11 = vld [vmem:[%s2739_s13 + $0x20] sm:$0xf] }
 0x181   : > { %v1595_v14 = vadd.f32 %v2727_v54, %v1579_v0  ;;  %v1580_v22 = vadd.f32 %v1550_v17, %v1422_v61  ;;  %v2220_v25 = vpop.f32.mrb[79].mxu0  ;;  %v1424_v44 = vadd.f32 %v1400_v12, %v2716_v16  ;;  %v2200_v47 = vpop.f32.mrb[79].mxu1 }
 0x182   : > { %1935 = vst [vmem:[%s2739_s13] sm:$0xff] %v1934_v7  }
 0x183   : > { %v1615_v43 = vmul.f32 %v2729_v1, %v1595_v14  ;;  %v1596_v15 = vadd.f32 %v2727_v54, %v1580_v22  ;;  %vm1605_vm6 = vcmp.ge.f32.partialorder %v1595_v14, 0.0 }
 0x185   : > { %vm1606_vm7 = vcmp.ge.f32.partialorder %v1596_v15, 0.0  ;;  %v1616_v18 = vmul.f32 %v2729_v1, %v1596_v15  ;;  %v1624_v21 = vsel %vm1605_vm6, %v1595_v14, %v1615_v43 }
 0x186   : > { %v1555_v3 = vpop.f32.mrb[80].mxu0  ;;  %v1405_v46 = vpop.f32.mrb[80].mxu1 }
 0x187   : > { %v1625_v8 = vsel %vm1606_vm7, %v1596_v15, %v1616_v18  ;;  %v1581_v19 = vadd.f32 %v1555_v3, %v1423_v6  ;;  %v2223_v23 = vpop.f32.mrb[81].mxu0  ;;  %v1425_v26 = vadd.f32 %v1405_v46, %v2718_v27  ;;  %v2203_v16 = vpop.f32.mrb[81].mxu1 }
 0x188   : > { %v1939_v28 = vpack.c.bf16 %v1625_v8, %v1624_v21  ;;  %v1558_v20 = vpop.f32.mrb[82].mxu0  ;;  %v1408_v32 = vpop.f32.mrb[82].mxu1 }
 0x189   : > { %v1597_v24 = vadd.f32 %v2727_v54, %v1581_v19  ;;  %v1582_v31 = vadd.f32 %v1558_v20, %v1424_v44  ;;  %v2224_v33 = vpop.f32.mrb[83].mxu0  ;;  %v1426_v34 = vadd.f32 %v1408_v32, %v2720_v29  ;;  %v2204_v37 = vpop.f32.mrb[83].mxu1 }
 0x18a   : > { %1951 = vst [vmem:[%s2739_s13 + $0x8] sm:$0xff] %v1939_v28  }
 0x18b   : > { %v1617_v40 = vmul.f32 %v2729_v1, %v1597_v24  ;;  %v1598_v35 = vadd.f32 %v2727_v54, %v1582_v31  ;;  %vm1607_vm8 = vcmp.ge.f32.partialorder %v1597_v24, 0.0 }
 0x18d   : > { %vm1608_vm9 = vcmp.ge.f32.partialorder %v1598_v35, 0.0  ;;  %v1618_v27 = vmul.f32 %v2729_v1, %v1598_v35  ;;  %v1626_v42 = vsel %vm1607_vm8, %v1597_v24, %v1617_v40 }
 0x18e   : > { %v1563_v41 = vpop.f32.mrb[84].mxu0  ;;  %v1413_v50 = vpop.f32.mrb[84].mxu1 }
 0x18f   : > { %v1627_v49 = vsel %vm1608_vm9, %v1598_v35, %v1618_v27  ;;  %v1583_v52 = vadd.f32 %v1563_v41, %v1425_v26  ;;  %v2227_v36 = vpop.f32.mrb[85].mxu0  ;;  %v1427_v48 = vadd.f32 %v1413_v50, %v2722_v30  ;;  %v2207_v55 = vpop.f32.mrb[85].mxu1 }
 0x190   : > { %v1944_v53 = vpack.c.bf16 %v1627_v49, %v1626_v42  ;;  %v1566_v29 = vpop.f32.mrb[86].mxu0  ;;  %v1416_v38 = vpop.f32.mrb[86].mxu1 }
 0x191   : > { %v1599_v56 = vadd.f32 %v2727_v54, %v1583_v52  ;;  %v1584_v57 = vadd.f32 %v1566_v29, %v1426_v34  ;;  %v2228_v45 = vpop.f32.mrb[87].mxu0  ;;  %v2208_v58 = vpop.f32.mrb[87].mxu1 }
 0x192   : > { %1952 = vst [vmem:[%s2739_s13 + $0x10] sm:$0xff] %v1944_v53  }
 0x193   : > { %v1619_v39 = vmul.f32 %v2729_v1, %v1599_v56  ;;  %v1600_v59 = vadd.f32 %v2727_v54, %v1584_v57  ;;  %vm1609_vm10 = vcmp.ge.f32.partialorder %v1599_v56, 0.0 }
 0x195   : > { %vm1610_vm11 = vcmp.ge.f32.partialorder %v1600_v59, 0.0  ;;  %v1620_v60 = vmul.f32 %v2729_v1, %v1600_v59  ;;  %v1628_v30 = vsel %vm1609_vm10, %v1599_v56, %v1619_v39 }
 0x196   : > { %v1571_v61 = vpop.f32.mrb[88].mxu0 }
 0x197   : > { %v1629_v62 = vsel %vm1610_vm11, %v1600_v59, %v1620_v60  ;;  %v1585_v63 = vadd.f32 %v1571_v61, %v1427_v48  ;;  %v2231_v2 = vpop.f32.mrb[89].mxu0 }
 0x198   : > { %v1949_v4 = vpack.c.bf16 %v1629_v62, %v1628_v30  ;;  %v1574_v5 = vpop.f32.mrb[90].mxu0 }
 0x199   : > { %v1601_v51 = vadd.f32 %v2727_v54, %v1585_v63  ;;  %v2232_v9 = vpop.f32.mrb[91].mxu0 }
 0x19a   : > { %1953 = vst [vmem:[%s2739_s13 + $0x18] sm:$0xff] %v1949_v4  }
 0x19b   : > { %vm1611_vm14 = vcmp.ge.f32.partialorder %v1601_v51, 0.0  ;;  %v1621_v10 = vmul.f32 %v2729_v1, %v1601_v51 }
 0x19d   : > { %v1630_v0 = vsel %vm1611_vm14, %v1601_v51, %v1621_v10 }
 0x19e   : > { %v1930_v7 = vpack.c.bf16 %v1630_v0, %v1630_v0 }
 0x1a0   : > { %v1680_v6 = vsel %vm1678_vm15, %v1930_v7, %v1679_v11 }
 0x1a1   : > { %1681 = vst [vmem:[%s2739_s13 + $0x20] sm:$0xf] %v1680_v6 }
 0x1a2 PF: > { %s15_s17 = sadd.s32 1, %s2308_s17  }
 0x1a3   : > { %p12_p4 = scmp.ge.s32.totalorder %s15_s17, 4  }
 0x1a5   :  { %14 = sbr.rel (!%p12_p4) target bundleno = 2 (0x2), region = 77 }

// kernel: feature_extractor_forward.7
= control target key start
LH: loop header
LB: loop body
LE: loop exit
PB: predicated region body
PF: predicated region fallthrough
CT: control target
= control target key end

     0   :  { %s5707_s17 = smov 0   ;;  %s6664_s0 = inlined_call_operand.vmem [shape: bf16[2,1,324,32], index: 0, kind: input, shape index: {}]   ;;  %s6665_s1 = inlined_call_operand.vmem [shape: bf16[9,32,128], index: 1, kind: input, shape index: {}]   ;;  %s6666_s2 = inlined_call_operand.vmem [shape: f32[1,128], index: 2, kind: input, shape index: {}]   ;;  %s6667_s3 = inlined_call_operand.<no memory space> [shape: f32[1,1], index: 3, kind: input, shape index: {}]   ;;  %s6668_s4 = inlined_call_operand.vmem [shape: bf16[2,286,128], index: 4, kind: output, shape index: {}]  }
   0x1   :  { %9 = sst [smem:[#allocation2]] %s6667_s3 }
   0x2 LB: > { %s4253_s18 = sadd.s32 4294967295, %s5677_s17   ;;  %p4257_p0 = scmp.ge.s32.totalorder %s5677_s17, 1  ;;  %s5677_s17 = sphi %s5707_s17, %s15_s17  }
   0x3   : > { %p163_p1 = scmp.lt.s32.totalorder %s5677_s17, 3 }
   0x5   : > { %p164_p2 = pnand %p4257_p0, %p163_p1 }
   0x6   : > { %v5569_v0 = vld [vmem:[%s6665_s1 + $0x40] sm:$0xff] (!%p164_p2)   ;;  %p189_p3 = scmp.lt.s32.totalorder (!%p164_p2), %s4253_s18, 1  ;;  %v5570_v1 = vld [vmem:[%s6665_s1 + $0x10] sm:$0xff] (!%p164_p2)   ;;  %v5571_v2 = vld [vmem:[%s6665_s1 + $0x48] sm:$0xff] (!%p164_p2)   ;;  %vm336_vm0 = vsmask.f32 (!%p164_p2), 7424 }
   0x7   : > { %167 = sbr.rel (%p164_p2) target bundleno = 577 (0x241), region = 36  ;;  %5067 = vmatprep.subr.bf16.mxu0 (!%p164_p2), %v5569_v0  ;;  %4907 = vmatprep.subr.bf16.mxu1 (!%p164_p2), %v5570_v1  ;;  %v5572_v3 = vld [vmem:[%s6665_s1 + $0x18] sm:$0xff] (!%p164_p2)   ;;  %v5733_v4 = vld [vmem:[%s6665_s1 + $0x50] sm:$0xff] (!%p164_p2)   ;;  %v5581_v5 = vld [vmem:[%s6665_s1] sm:$0xff] (!%p164_p2)   ;;  %vm492_vm1 = vcmask (!%p164_p2), 261120   ;;  %vm2312_vm3 = vcmask (!%p164_p2), 1045504  }
   0x8   : > { %5068 = vmatpush3.bf16.msra.mxu0 (!%p164_p2), %v5569_v0  ;;  %4908 = vmatpush3.bf16.msra.mxu1 (!%p164_p2), %v5570_v1  ;;  %vm1857_vm2 = vsmask.f32 (!%p164_p2), 6400  ;;  %vm962_vm4 = vcmask (!%p164_p2), 1046528   ;;  %vm3089_vm5 = vsmask.f32 (!%p164_p2), 5376  ;;  %vm3548_vm6 = vcmask (!%p164_p2), 1044480  }
   0x9   : > { %5069 = vmatprep.subr.bf16.mxu0 (!%p164_p2), %v5571_v2  ;;  %4909 = vmatprep.subr.bf16.mxu1 (!%p164_p2), %v5572_v3 }
   0xc   : > { %5070 = vmatpush3.bf16.msra.mxu0 (!%p164_p2), %v5571_v2  ;;  %4910 = vmatpush3.bf16.msra.mxu1 (!%p164_p2), %v5572_v3 }
   0xd   : > { %5107 = vmatprep.subr.bf16.mxu0 (!%p164_p2), %v5733_v4  ;;  %4947 = vmatprep.subr.bf16.mxu1 (!%p164_p2), %v5581_v5 }
   0xe   : > { %s6670_s18 = smov (!%p189_p3, %s4253_s18), 1 }
   0xf   : > { %s5559_s26 = smul.u32 164, %s6670_s18 }
  0x10   : > { %s5560_s14 = smul.u32 144, %s6670_s18 }
  0x11   : > { %s5738_s5 = scalar_lea.vmem %s6664_s0, %s5559_s26 }
  0x12   : > { %v200_v6 = vld [vmem:[%s5738_s5] sm:$0xf]  ;;  %v201_v7 = vld [vmem:[%s5738_s5 + $0x4] sm:$0xf]  ;;  %v5748_v9 = vld [vmem:[%s5738_s5 + $0x8] sm:$0xff]   ;;  %s6564_s18 = scalar_lea.vmem %s6668_s4, %s5560_s14 }
  0x13   : > { %v5745_v8 = vcombine.low %v200_v6, %v201_v7  ;;  %v1722_v10 = vld [vmem:[%s5738_s5 + $0x8] sm:$0xe]  ;;  %v5753_v11 = vld [vmem:[%s5738_s5 + $0xc] sm:$0xf]  ;;  %v345_v14 = vshll.u32 %v5748_v9, 16  ;;  %v349_v15 = vshrl.u32 %v5748_v9, 16 }
  0x14   : > { %v5760_v16 = vld [vmem:[%s5738_s5 + $0x10] sm:$0xff]   ;;  %v4394_v18 = vcombine.low %v1722_v10, %v5753_v11  ;;  %v5770_v26 = vld [vmem:[%s5738_s5 + $0x18] sm:$0xff]   ;;  %v5776_v32 = vld [vmem:[%s5738_s5 + $0x20] sm:$0xff]  }
  0x15   : > { %v338_v12 = vshrl.u32 %v5745_v8, 16  ;;  %v340_v13 = vshll.u32 %v5745_v8, 16  ;;  %v5763_v17 = vld [vmem:[%s5738_s5 + $0x10] sm:$0xff]   ;;  %v347_v20 = vrot.slane %v345_v14, 1  ;;  %v1867_v21 = vshrl.u32 %v5760_v16, 16  ;;  %v5773_v31 = vld [vmem:[%s5738_s5 + $0x18] sm:$0xff]  }
  0x16   : > { %v1870_v22 = vshll.u32 %v5760_v16, 16  ;;  %v1859_v23 = vshrl.u32 %v4394_v18, 16  ;;  %v1862_v24 = vshll.u32 %v4394_v18, 16  ;;  %v353_v25 = vshll.u32 %v5763_v17, 16  ;;  %v5786_v45 = vld [vmem:[%s5738_s5 + $0x20] sm:$0xff]   ;;  %v5789_v46 = vld [vmem:[%s5738_s5 + $0x28] sm:$0xff]  }
  0x17   : > { %v342_v19 = vrot.slane %v340_v13, 1  ;;  %v351_v28 = vor.u32 %v349_v15, %v347_v20  ;;  %v1869_v29 = vrot.slane %v1867_v21, 1  ;;  %v1876_v36 = vshrl.u32 %v5770_v26, 16  ;;  %v5795_v51 = vld [vmem:[%s5738_s5 + $0x28] sm:$0xff]   ;;  %v5801_v56 = vld [vmem:[%s5738_s5 + $0x30] sm:$0xff]   ;;  %v5818_v14 = vld [vmem:[%s5738_s5 + $0x38] sm:$0xff]  }
  0x18   : > { %v1872_v30 = vrot.slane %v1870_v22, 2  ;;  %v1861_v33 = vrot.slane %v1859_v23, 1  ;;  %v1864_v34 = vrot.slane %v1862_v24, 2  ;;  %v355_v35 = vrot.slane %v353_v25, 1  ;;  %v5806_v61 = vld [vmem:[%s5738_s5 + $0x30] sm:$0xff]   ;;  %v5589_v25 = vld [vmem:[%s6665_s1 + $0x58] sm:$0xff]  }
  0x19   : > { %v343_v27 = vor.u32 %v342_v19, %v338_v12  ;;  %v1879_v39 = vshll.u32 %v5770_v26, 16  ;;  %v357_v40 = vshrl.u32 %v5763_v17, 16  ;;  %v1878_v43 = vrot.slane %v1876_v36, 1  ;;  %v5838_v36 = vld [vmem:[%s5738_s5 + $0x40] sm:$0xff]  }
  0x1a   : > { %v1873_v38 = vor.u32 %v1872_v30, %v1869_v29  ;;  %v1865_v41 = vor.u32 %v1864_v34, %v1861_v33  ;;  %v356_v42 = vsel %vm336_vm0, %v351_v28, %v355_v35  ;;  %v361_v44 = vshll.u32 %v5773_v31, 16  ;;  %v5833_v29 = vld [vmem:[%s5738_s5 + $0x38] sm:$0xff]  }
  0x1b   : > { %v348_v37 = vsel %vm336_vm0, %v343_v27, %v347_v20  ;;  %v1881_v47 = vrot.slane %v1879_v39, 2  ;;  %v359_v48 = vor.u32 %v357_v40, %v355_v35  ;;  %v1885_v49 = vshrl.u32 %v5776_v32, 16 }
  0x1c   : > { %4911 = vmatprep.mubr.msk.bf16.mxu1 %vm492_vm1, %v348_v37  ;;  %v1888_v50 = vshll.u32 %v5776_v32, 16  ;;  %v1874_v52 = vsel %vm1857_vm2, %v1865_v41, %v1873_v38  ;;  %v363_v53 = vrot.slane %v361_v44, 1  ;;  %v365_v54 = vshrl.u32 %v5773_v31, 16  ;;  %v5843_v41 = vld [vmem:[%s5738_s5 + $0x40] sm:$0xff]  }
  0x1d   : > { %4912 = vmatmul.mubr.msk.bf16.vlgmr.msra.gmra.mrb[0].mxu1 %vm492_vm1, %v356_v42  ;;  %v369_v55 = vshll.u32 %v5786_v45, 16  ;;  %5071 = vmatprep.mubr.msk.bf16.mxu0 %vm492_vm1, %v1874_v52  ;;  %v1882_v57 = vor.u32 %v1881_v47, %v1878_v43  ;;  %v1887_v58 = vrot.slane %v1885_v49, 1  ;;  %v1894_v60 = vshrl.u32 %v5789_v46, 16  ;;  %v5849_v47 = vld [vmem:[%s5738_s5 + $0x48] sm:$0xff]  }
  0x1e   : > { %4948 = vmatpush3.bf16.msra.mxu1 %v5581_v5  ;;  %v1890_v59 = vrot.slane %v1888_v50, 2  ;;  %v364_v62 = vsel %vm336_vm0, %v359_v48, %v363_v53  ;;  %v367_v63 = vor.u32 %v365_v54, %v363_v53  ;;  %v1897_v1 = vshll.u32 %v5789_v46, 16  ;;  %v5855_v53 = vld [vmem:[%s5738_s5 + $0x48] sm:$0xff]  }
  0x1f   : > { %v371_v0 = vrot.slane %v369_v55, 1  ;;  %v1883_v2 = vsel %vm1857_vm2, %v1873_v38, %v1882_v57  ;;  %4915 = vmatprep.mubr.msk.bf16.mxu1 %vm492_vm1, %v364_v62  ;;  %v1896_v5 = vrot.slane %v1894_v60, 1  ;;  %v373_v6 = vshrl.u32 %v5786_v45, 16 }
  0x20   : > { %v1891_v3 = vor.u32 %v1890_v59, %v1887_v58  ;;  %5072 = vmatmul.mubr.msk.bf16.vlgmr.msra.gmra.mrb[0].mxu0 %vm492_vm1, %v1883_v2  ;;  %v1899_v10 = vrot.slane %v1897_v1, 2  ;;  %v377_v12 = vshll.u32 %v5795_v51, 16  ;;  %v1903_v13 = vshrl.u32 %v5801_v56, 16  ;;  %v5864_v1 = vld [vmem:[%s5738_s5 + $0x50] sm:$0xff]  }
  0x21   : > { %v372_v7 = vsel %vm336_vm0, %v367_v63, %v371_v0  ;;  %5108 = vmatpush3.bf16.msra.mxu0 %v5733_v4  ;;  %v375_v18 = vor.u32 %v373_v6, %v371_v0  ;;  %v1906_v19 = vshll.u32 %v5801_v56, 16  ;;  %v381_v20 = vshrl.u32 %v5795_v51, 16 }
  0x22   : > { %v1892_v15 = vsel %vm1857_vm2, %v1882_v57, %v1891_v3  ;;  %v1900_v21 = vor.u32 %v1899_v10, %v1896_v5  ;;  %v379_v22 = vrot.slane %v377_v12, 1  ;;  %v1905_v23 = vrot.slane %v1903_v13, 1  ;;  %5109 = vmatprep.subr.bf16.mxu0 %v5589_v25  ;;  %v5873_v13 = vld [vmem:[%s5738_s5 + $0x50] sm:$0xff]  }
  0x23   : > { %5075 = vmatprep.mubr.msk.bf16.mxu0 %vm492_vm1, %v1892_v15  ;;  %v385_v24 = vshll.u32 %v5806_v61, 16  ;;  %v1908_v4 = vrot.slane %v1906_v19, 2  ;;  %v1912_v27 = vshrl.u32 %v5818_v14, 16  ;;  %v1915_v28 = vshll.u32 %v5818_v14, 16  ;;  %v5876_v15 = vld [vmem:[%s5738_s5 + $0x58] sm:$0xff]  }
  0x24   : > { %v1901_v30 = vsel %vm1857_vm2, %v1891_v3, %v1900_v21  ;;  %v380_v33 = vsel %vm336_vm0, %v375_v18, %v379_v22  ;;  %v383_v34 = vor.u32 %v381_v20, %v379_v22  ;;  %v389_v40 = vshrl.u32 %v5806_v61, 16 }
  0x25   : > { %4916 = vmatmul.mubr.msk.bf16.gmra.mrb[4].mxu1 %vm492_vm1, %v372_v7  ;;  %v387_v35 = vrot.slane %v385_v24, 1  ;;  %v1909_v37 = vor.u32 %v1908_v4, %v1905_v23  ;;  %v1914_v38 = vrot.slane %v1912_v27, 1  ;;  %v1917_v39 = vrot.slane %v1915_v28, 2  ;;  %5110 = vmatpush3.bf16.msra.mxu0 %v5589_v25  ;;  %v5884_v28 = vld [vmem:[%s5738_s5 + $0x58] sm:$0xff]  }
  0x26   : > { %4919 = vmatprep.mubr.msk.bf16.mxu1 %vm492_vm1, %v380_v33  ;;  %v393_v42 = vshll.u32 %v5833_v29, 16  ;;  %v1921_v43 = vshrl.u32 %v5838_v36, 16  ;;  %v1924_v44 = vshll.u32 %v5838_v36, 16  ;;  %v397_v52 = vshrl.u32 %v5833_v29, 16 }
  0x27   : > { %v1910_v48 = vsel %vm1857_vm2, %v1900_v21, %v1909_v37  ;;  %v388_v49 = vsel %vm336_vm0, %v383_v34, %v387_v35  ;;  %v391_v50 = vor.u32 %v389_v40, %v387_v35  ;;  %v401_v58 = vshll.u32 %v5843_v41, 16  ;;  %v5892_v34 = vld [vmem:[%s6665_s1 + $0x60] sm:$0xff]   ;;  %v2303_v40 = vld [vmem:[%s5738_s5 + $0x8] sm:$0xc] }
  0x28   : > { %5076 = vmatmul.mubr.msk.bf16.gmra.mrb[4].mxu0 %vm492_vm1, %v1901_v30  ;;  %v395_v54 = vrot.slane %v393_v42, 1  ;;  %v1923_v55 = vrot.slane %v1921_v43, 1  ;;  %v1926_v57 = vrot.slane %v1924_v44, 2  ;;  %v1918_v59 = vor.u32 %v1917_v39, %v1914_v38  ;;  %5147 = vmatprep.subr.bf16.mxu0 %v5892_v34  ;;  %v5602_v43 = vld [vmem:[%s6665_s1 + $0x8] sm:$0xff]  }
  0x29   : > { %5079 = vmatprep.mubr.msk.bf16.mxu0 %vm492_vm1, %v1910_v48  ;;  %v1930_v60 = vshrl.u32 %v5849_v47, 16  ;;  %v1933_v62 = vshll.u32 %v5849_v47, 16  ;;  %v403_v2 = vrot.slane %v401_v58, 1  ;;  %v405_v5 = vshrl.u32 %v5843_v41, 16  ;;  %4949 = vmatprep.subr.bf16.mxu1 %v5602_v43 }
  0x2a   : > { %v396_v63 = vsel %vm336_vm0, %v391_v50, %v395_v54  ;;  %v1927_v0 = vor.u32 %v1926_v57, %v1923_v55  ;;  %v409_v6 = vshll.u32 %v5855_v53, 16  ;;  %v399_v7 = vor.u32 %v397_v52, %v395_v54  ;;  %v5905_v50 = vld [vmem:[%s5738_s5 + $0x60] sm:$0xff]   ;;  %v5909_v55 = vld [vmem:[%s5738_s5 + $0x68] sm:$0xff]   ;;  %4950 = vmatpush3.bf16.msra.mxu1 %v5602_v43 }
  0x2b   : > { %v1932_v3 = vrot.slane %v1930_v60, 1  ;;  %v1939_v10 = vshrl.u32 %v5864_v1, 16  ;;  %v1942_v12 = vshll.u32 %v5864_v1, 16  ;;  %v1919_v18 = vsel %vm1857_vm2, %v1909_v37, %v1918_v59 }
  0x2c   : > { %v1935_v19 = vrot.slane %v1933_v62, 2  ;;  %v407_v20 = vor.u32 %v405_v5, %v403_v2  ;;  %v411_v21 = vrot.slane %v409_v6, 1  ;;  %v1928_v22 = vsel %vm1857_vm2, %v1918_v59, %v1927_v0 }
  0x2d   : > { %4920 = vmatmul.mubr.msk.bf16.gmra.mrb[8].mxu1 %vm492_vm1, %v388_v49  ;;  %v1941_v23 = vrot.slane %v1939_v10, 1  ;;  %v1944_v24 = vrot.slane %v1942_v12, 2  ;;  %v417_v25 = vshll.u32 %v5873_v13, 16  ;;  %v1948_v4 = vshrl.u32 %v5876_v15, 16  ;;  %v5926_v10 = vld [vmem:[%s5738_s5 + $0x70] sm:$0xff]   ;;  %v5931_v12 = vld [vmem:[%s6665_s1 + $0x20] sm:$0xff]  }
  0x2e   : > { %4923 = vmatprep.mubr.msk.bf16.mxu1 %vm492_vm1, %v396_v63  ;;  %v1951_v27 = vshll.u32 %v5876_v15, 16  ;;  %v404_v30 = vsel %vm336_vm0, %v399_v7, %v403_v2  ;;  %v413_v33 = vshrl.u32 %v5855_v53, 16  ;;  %v1936_v35 = vor.u32 %v1935_v19, %v1932_v3  ;;  %4987 = vmatprep.subr.bf16.mxu1 %v5931_v12 }
  0x2f   : > { %v412_v37 = vsel %vm336_vm0, %v407_v20, %v411_v21  ;;  %v421_v38 = vshrl.u32 %v5873_v13, 16  ;;  %v425_v39 = vshll.u32 %v5884_v28, 16  ;;  %v1945_v42 = vor.u32 %v1944_v24, %v1941_v23  ;;  %v5936_v20 = vld [vmem:[%s5738_s5 + $0x78] sm:$0xff]  }
  0x30   : > { %5080 = vmatmul.mubr.msk.bf16.gmra.mrb[8].mxu0 %vm492_vm1, %v1919_v18  ;;  %v419_v44 = vrot.slane %v417_v25, 1  ;;  %v1950_v48 = vrot.slane %v1948_v4, 1  ;;  %v1953_v49 = vrot.slane %v1951_v27, 2  ;;  %v415_v52 = vor.u32 %v413_v33, %v411_v21 }
  0x31   : > { %5083 = vmatprep.mubr.msk.bf16.mxu0 %vm492_vm1, %v1928_v22  ;;  %v427_v54 = vrot.slane %v425_v39, 1  ;;  %v1937_v57 = vsel %vm1857_vm2, %v1927_v0, %v1936_v35  ;;  %v1946_v59 = vsel %vm1857_vm2, %v1936_v35, %v1945_v42  ;;  %v4437_v60 = vcombine.low %v2303_v40, %v5753_v11 }
  0x32   : > { %v423_v58 = vor.u32 %v421_v38, %v419_v44  ;;  %v433_v62 = vshll.u32 %v5905_v50, 16  ;;  %v420_v63 = vsel %vm336_vm0, %v415_v52, %v419_v44  ;;  %v429_v2 = vshrl.u32 %v5884_v28, 16  ;;  %v240_v38 = vld [vmem:[%s5738_s5 + $0x8c] sm:$0xf] }
  0x33   : > { %v5919_v3 = vor.u32 %v1953_v49, %v1950_v48  ;;  %v437_v5 = vshrl.u32 %v5905_v50, 16  ;;  %v441_v6 = vshll.u32 %v5909_v55, 16  ;;  %v2313_v11 = vrot.slane %v4437_v60, 2 }
  0x34   : > { %v428_v0 = vsel %vm336_vm0, %v423_v58, %v427_v54  ;;  %v2314_v7 = vrot.slane %v5760_v16, 2  ;;  %v435_v18 = vrot.slane %v433_v62, 1  ;;  %v431_v19 = vor.u32 %v429_v2, %v427_v54  ;;  %v5608_v54 = vld [vmem:[%s6665_s1 + $0x68] sm:$0xff]  }
  0x35   : > { %4924 = vmatmul.mubr.msk.bf16.gmra.mrb[12].mxu1 %vm492_vm1, %v404_v30  ;;  %v1955_v16 = vsel %vm1857_vm2, %v1945_v42, %v5919_v3  ;;  %v2316_v21 = vrot.slane %v5770_v26, 2  ;;  %v443_v23 = vrot.slane %v441_v6, 1  ;;  %v2318_v25 = vrot.slane %v5776_v32, 2  ;;  %v5954_v26 = vld [vmem:[%s5738_s5 + $0x88] sm:$0xf] }
  0x36   : > { %4927 = vmatprep.mubr.msk.bf16.mxu1 %vm492_vm1, %v412_v37  ;;  %v439_v22 = vor.u32 %v437_v5, %v435_v18  ;;  %v2315_v24 = vsel %vm2312_vm3, %v2313_v11, %v2314_v7  ;;  %v449_v4 = vshll.u32 %v5926_v10, 16  ;;  %v436_v27 = vsel %vm336_vm0, %v431_v19, %v435_v18  ;;  %v5951_v37 = vld [vmem:[%s5738_s5 + $0x80] sm:$0xff]  }
  0x37   : > { %v445_v30 = vshrl.u32 %v5909_v55, 16  ;;  %v453_v33 = vshrl.u32 %v5926_v10, 16  ;;  %v457_v35 = vshll.u32 %v5936_v20, 16  ;;  %v2317_v42 = vsel %vm2312_vm3, %v2314_v7, %v2316_v21 }
  0x38   : > { %5084 = vmatmul.mubr.msk.bf16.gmra.mrb[12].mxu0 %vm492_vm1, %v1937_v57  ;;  %v444_v32 = vsel %vm336_vm0, %v439_v22, %v443_v23  ;;  %v451_v39 = vrot.slane %v449_v4, 1  ;;  %v5963_v48 = vcombine.low %v5954_v26, %v240_v38  ;;  %v2319_v49 = vsel %vm2312_vm3, %v2316_v21, %v2318_v25  ;;  %v6049_v38 = vld [vmem:[%s5738_s5 + $0x78] sm:$0xff]  }
  0x39   : > { %5087 = vmatprep.mubr.msk.bf16.mxu0 %vm492_vm1, %v1946_v59  ;;  %v447_v40 = vor.u32 %v445_v30, %v443_v23  ;;  %v459_v44 = vrot.slane %v457_v35, 1  ;;  %v465_v52 = vshll.u32 %v5951_v37, 16  ;;  %v2320_v58 = vrot.slane %v5789_v46, 2 }
  0x3a   : > { %v455_v43 = vor.u32 %v453_v33, %v451_v39  ;;  %v461_v59 = vshrl.u32 %v5936_v20, 16  ;;  %v469_v62 = vshrl.u32 %v5951_v37, 16  ;;  %v2322_v2 = vrot.slane %v5801_v56, 2 }
  0x3b   : > { %v452_v57 = vsel %vm336_vm0, %v447_v40, %v451_v39  ;;  %v467_v46 = vrot.slane %v465_v52, 1  ;;  %v2321_v5 = vsel %vm2312_vm3, %v2318_v25, %v2320_v58  ;;  %v2324_v18 = vrot.slane %v5818_v14, 2  ;;  %v6053_v40 = vld [vmem:[%s5738_s5 + $0x80] sm:$0xff]  }
  0x3c   : > { %v460_v60 = vsel %vm336_vm0, %v455_v43, %v459_v44  ;;  %v2323_v7 = vsel %vm2312_vm3, %v2320_v58, %v2322_v2  ;;  %v477_v21 = vshrl.u32 %v5963_v48, 16  ;;  %v2328_v14 = vrot.slane %v5849_v47, 2 }
  0x3d   : > { %4928 = vmatmul.mubr.msk.bf16.gmra.mrb[16].mxu1 %vm492_vm1, %v420_v63  ;;  %v473_v63 = vshll.u32 %v5963_v48, 16  ;;  %v471_v6 = vor.u32 %v469_v62, %v467_v46  ;;  %v2325_v22 = vsel %vm2312_vm3, %v2322_v2, %v2324_v18  ;;  %v2332_v47 = vrot.slane %v5876_v15, 2  ;;  %v6032_v15 = vld [vmem:[%s6665_s1 + $0x30] sm:$0xff]  }
  0x3e   : > { %4931 = vmatprep.mubr.msk.bf16.mxu1 %vm492_vm1, %v428_v0  ;;  %v5983_v0 = vld [vmem:[%s6665_s1 + $0x70] sm:$0xff]   ;;  %v2342_v43 = vrot.slane %v6053_v40, 2 }
  0x3f   : > { %v475_v11 = vrot.slane %v473_v63, 1  ;;  %v6085_v63 = vld [vmem:[%s5738_s5 + $0x98] ss:$0 sps:$4 sm:$0x11]  }
  0x40   : > { %5088 = vmatmul.mubr.msk.bf16.gmra.mrb[16].mxu0 %vm492_vm1, %v1955_v16  ;;  %v2326_v16 = vrot.slane %v5838_v36, 2  ;;  %v2330_v36 = vrot.slane %v5864_v1, 2  ;;  %v5622_v1 = vld [vmem:[%s6665_s1 + $0x28] sm:$0xff]  }
  0x41   : > { %5111 = vmatprep.mubr.msk.bf16.mxu0 %vm492_vm1, %v2315_v24  ;;  %v476_v19 = vsel %vm336_vm0, %v471_v6, %v475_v11  ;;  %v479_v24 = vor.u32 %v477_v21, %v475_v11 }
  0x42   : > { %v2327_v23 = vsel %vm2312_vm3, %v2324_v18, %v2326_v16  ;;  %v2329_v25 = vsel %vm2312_vm3, %v2326_v16, %v2328_v14  ;;  %v2331_v4 = vsel %vm2312_vm3, %v2328_v14, %v2330_v36  ;;  %v2333_v33 = vsel %vm2312_vm3, %v2330_v36, %v2332_v47  ;;  %v6125_v14 = vld [vmem:[%s5738_s5 + $0x38] sm:$0xff]  }
  0x43   : > { %v5633_v36 = vld [vmem:[%s6665_s1 + $0x78] sm:$0xff]  }
  0x45   : > { %4932 = vmatmul.mubr.msk.bf16.gmra.mrb[20].mxu1 %vm492_vm1, %v436_v27  ;;  %v6011_v27 = vld [vmem:[%s5738_s5 + $0x60] sm:$0xff]  }
  0x46   : > { %4935 = vmatprep.mubr.msk.bf16.mxu1 %vm492_vm1, %v444_v32  ;;  %v2334_v30 = vrot.slane %v6011_v27, 2 }
  0x48   : > { %5112 = vmatmul.mubr.msk.bf16.vlgmr.msra.gmra.mrb[0].mxu0 %vm492_vm1, %v2317_v42  ;;  %v2335_v35 = vsel %vm2312_vm3, %v2332_v47, %v2334_v30  ;;  %v2340_v42 = vrot.slane %v6049_v38, 2  ;;  %v6138_v47 = vld [vmem:[%s6665_s1 + $0x80] sm:$0xff]  }
  0x49   : > { %5148 = vmatpush3.bf16.msra.mxu0 %v5892_v34  ;;  %5115 = vmatprep.mubr.msk.bf16.mxu0 %vm492_vm1, %v2319_v49  ;;  %v463_v34 = vor.u32 %v461_v59, %v459_v44  ;;  %v6062_v44 = vld [vmem:[%s5738_s5 + $0x88] sm:$0xff]   ;;  %v6067_v49 = vld [vmem:[%s5738_s5 + $0x90] sm:$0xff]  }
  0x4a   : > { %5149 = vmatprep.subr.bf16.mxu0 %v5608_v54  ;;  %v2346_v58 = vrot.slane %v6067_v49, 2  ;;  %v2629_v59 = vld [vmem:[%s5738_s5 + $0x10] sm:$0xc] }
  0x4b   : > { %v468_v56 = vsel %vm336_vm0, %v463_v34, %v467_v46  ;;  %v6092_v34 = vld [vmem:[%s5738_s5 + $0x18] sm:$0xff]  }
  0x4c   : > { %v2765_v11 = vrot.slane %v6092_v34, 2 }
  0x4d   : > { %4936 = vmatmul.mubr.msk.bf16.gmra.mrb[24].mxu1 %vm492_vm1, %v452_v57  ;;  %5150 = vmatpush3.bf16.msra.mxu0 %v5608_v54  ;;  %v2343_v54 = vsel %vm2312_vm3, %v2340_v42, %v2342_v43  ;;  %v2344_v57 = vrot.slane %v6062_v44, 2 }
  0x4e   : > { %4939 = vmatprep.mubr.msk.bf16.mxu1 %vm492_vm1, %v460_v60  ;;  %5187 = vmatprep.subr.bf16.mxu0 %v5983_v0  ;;  %v6079_v60 = vld [vmem:[%s5738_s5 + $0x14] sm:$0xf] }
  0x4f   : > { %v2345_v62 = vsel %vm2312_vm3, %v2342_v43, %v2344_v57  ;;  %v2347_v2 = vsel %vm2312_vm3, %v2344_v57, %v2346_v58  ;;  %v6089_v46 = vcombine.low %v2629_v59, %v6079_v60  ;;  %v5667_v57 = vld [vmem:[%s5738_s5 + $0x8] sm:$0xff]  }
  0x50   : > { %5116 = vmatmul.mubr.msk.bf16.gmra.mrb[4].mxu0 %vm492_vm1, %v2321_v5  ;;  %v2348_v5 = vrot.slane %v6085_v63, 2 }
  0x51   : > { %5119 = vmatprep.mubr.msk.bf16.mxu0 %vm492_vm1, %v2323_v7  ;;  %v2764_v6 = vrot.slane %v6089_v46, 2 }
  0x52   : > { %v2349_v7 = vsel %vm2312_vm3, %v2346_v58, %v2348_v5  ;;  %v964_v58 = vrot.slane %v5667_v57, 1 }
  0x53   : > { %v2766_v18 = vsel %vm2312_vm3, %v2764_v6, %v2765_v11 }
  0x55   : > { %4940 = vmatmul.mubr.msk.bf16.gmra.mrb[28].mxu1 %vm492_vm1, %v468_v56  ;;  %v6105_v56 = vld [vmem:[%s5738_s5 + $0x20] sm:$0xff]  }
  0x56   : > { %4943 = vmatprep.mubr.msk.bf16.mxu1 %vm492_vm1, %v476_v19  ;;  %v6109_v19 = vld [vmem:[%s5738_s5 + $0x28] sm:$0xff]   ;;  %v2767_v16 = vrot.slane %v6105_v56, 2 }
  0x57   : > { %v2769_v21 = vrot.slane %v6109_v19, 2 }
  0x58   : > { %5120 = vmatmul.mubr.msk.bf16.gmra.mrb[8].mxu0 %vm492_vm1, %v2325_v22  ;;  %v2768_v22 = vsel %vm2312_vm3, %v2765_v11, %v2767_v16 }
  0x59   : > { %5123 = vmatprep.mubr.msk.bf16.mxu0 %vm492_vm1, %v2327_v23  ;;  %v6121_v23 = vld [vmem:[%s5738_s5 + $0x30] sm:$0xff]  }
  0x5d   : > { %4944 = vmatmul.mubr.msk.bf16.gmra.mrb[32].mxu1 %vm492_vm1, %v479_v24  ;;  %v2770_v24 = vsel %vm2312_vm3, %v2767_v16, %v2769_v21 }
  0x5e   : > { %4951 = vmatprep.mubr.msk.bf16.mxu1 %vm492_vm1, %v5745_v8  ;;  %v6026_v8 = vld [vmem:[%s5738_s5 + $0x68] sm:$0xff]  }
  0x60   : > { %5124 = vmatmul.mubr.msk.bf16.gmra.mrb[12].mxu0 %vm492_vm1, %v2329_v25  ;;  %v2771_v25 = vrot.slane %v6121_v23, 2 }
  0x61   : > { %5127 = vmatprep.mubr.msk.bf16.mxu0 %vm492_vm1, %v2331_v4  ;;  %v2773_v4 = vrot.slane %v6125_v14, 2 }
  0x65   : > { %4952 = vmatmul.mubr.msk.bf16.vlgmr.msra.gmra.mrb[0].mxu1 %vm492_vm1, %v5748_v9  ;;  %v6036_v9 = vld [vmem:[%s5738_s5 + $0x70] sm:$0xff]  }
  0x66   : > { %4955 = vmatprep.mubr.msk.bf16.mxu1 %vm492_vm1, %v5763_v17  ;;  %4988 = vmatpush3.bf16.msra.mxu1 %v5931_v12  ;;  %v2336_v17 = vrot.slane %v6026_v8, 2  ;;  %v2338_v12 = vrot.slane %v6036_v9, 2 }
  0x67   : > { %4989 = vmatprep.subr.bf16.mxu1 %v5622_v1 }
  0x68   : > { %5128 = vmatmul.mubr.msk.bf16.gmra.mrb[16].mxu0 %vm492_vm1, %v2333_v33  ;;  %v2337_v32 = vsel %vm2312_vm3, %v2334_v30, %v2336_v17  ;;  %v2339_v39 = vsel %vm2312_vm3, %v2336_v17, %v2338_v12  ;;  %v2341_v52 = vsel %vm2312_vm3, %v2338_v12, %v2340_v42  ;;  %v2774_v30 = vsel %vm2312_vm3, %v2771_v25, %v2773_v4  ;;  %v6150_v33 = vld [vmem:[%s5738_s5 + $0x48] sm:$0xff]   ;;  %v5666_v12 = vld [vmem:[%s5738_s5 + $0x4] sm:$0xf] }
  0x69   : > { %5131 = vmatprep.mubr.msk.bf16.mxu0 %vm492_vm1, %v2335_v35  ;;  %v953_v35 = vld [vmem:[%s5738_s5] sm:$0xe]  ;;  %v235_v42 = vld [vmem:[%s5738_s5 + $0x8c] sm:$0x7] }
  0x6a   : > { %4990 = vmatpush3.bf16.msra.mxu1 %v5622_v1  ;;  %v6146_v1 = vld [vmem:[%s5738_s5 + $0x40] sm:$0xff]  }
  0x6b   : > { %5027 = vmatprep.subr.bf16.mxu1 %v6032_v15  ;;  %v2775_v17 = vrot.slane %v6146_v1, 2 }
  0x6d   : > { %4956 = vmatmul.mubr.msk.bf16.gmra.mrb[4].mxu1 %vm492_vm1, %v5773_v31  ;;  %v2776_v43 = vsel %vm2312_vm3, %v2773_v4, %v2775_v17 }
  0x6e   : > { %4959 = vmatprep.mubr.msk.bf16.mxu1 %vm492_vm1, %v5786_v45 }
  0x70   : > { %5132 = vmatmul.mubr.msk.bf16.gmra.mrb[20].mxu0 %vm492_vm1, %v2337_v32  ;;  %v4327_v32 = vcombine.low %v953_v35, %v5666_v12  ;;  %v972_v12 = vrot.slane %v5795_v51, 1 }
  0x71   : > { %5135 = vmatprep.mubr.msk.bf16.mxu0 %vm492_vm1, %v2339_v39  ;;  %v2777_v39 = vrot.slane %v6150_v33, 2 }
  0x73   : > { %v2778_v59 = vsel %vm2312_vm3, %v2775_v17, %v2777_v39  ;;  %v6206_v17 = vld [vmem:[%s5738_s5 + $0x70] sm:$0xff]  }
  0x75   : > { %4960 = vmatmul.mubr.msk.bf16.gmra.mrb[8].mxu1 %vm492_vm1, %v5795_v51  ;;  %v6221_v51 = vld [vmem:[%s6665_s1 + $0x40] sm:$0xff]  }
  0x76   : > { %4963 = vmatprep.mubr.msk.bf16.mxu1 %vm492_vm1, %v5806_v61 }
  0x78   : > { %5136 = vmatmul.mubr.msk.bf16.gmra.mrb[24].mxu0 %vm492_vm1, %v2341_v52  ;;  %v6166_v52 = vld [vmem:[%s5738_s5 + $0x50] sm:$0xff]  }
  0x79   : > { %5139 = vmatprep.mubr.msk.bf16.mxu0 %vm492_vm1, %v2343_v54  ;;  %v963_v54 = vrot.slane %v4327_v32, 1  ;;  %v2779_v5 = vrot.slane %v6166_v52, 2 }
  0x7b   : > { %v965_v6 = vsel %vm962_vm4, %v963_v54, %v964_v58  ;;  %v2780_v16 = vsel %vm2312_vm3, %v2777_v39, %v2779_v5  ;;  %v6211_v39 = vld [vmem:[%s5738_s5 + $0x78] sm:$0xff]   ;;  %v974_v54 = vrot.slane %v5806_v61, 1 }
  0x7d   : > { %4964 = vmatmul.mubr.msk.bf16.gmra.mrb[12].mxu1 %vm492_vm1, %v5833_v29 }
  0x7e   : > { %4967 = vmatprep.mubr.msk.bf16.mxu1 %vm492_vm1, %v5843_v41 }
  0x80   : > { %5140 = vmatmul.mubr.msk.bf16.gmra.mrb[28].mxu0 %vm492_vm1, %v2345_v62  ;;  %v6171_v62 = vld [vmem:[%s5738_s5 + $0x58] sm:$0xff]  }
  0x81   : > { %5143 = vmatprep.mubr.msk.bf16.mxu0 %vm492_vm1, %v2347_v2  ;;  %v4302_v2 = vcombine.low %v5954_v26, %v235_v42  ;;  %v2781_v11 = vrot.slane %v6171_v62, 2  ;;  %v968_v26 = vrot.slane %v5773_v31, 1 }
  0x85   : > { %4968 = vmatmul.mubr.msk.bf16.gmra.mrb[16].mxu1 %vm492_vm1, %v5855_v53 }
  0x86   : > { %4971 = vmatprep.mubr.msk.bf16.mxu1 %vm492_vm1, %v5873_v13 }
  0x88   : > { %5144 = vmatmul.mubr.msk.bf16.gmra.mrb[32].mxu0 %vm492_vm1, %v2349_v7  ;;  %v5668_v7 = vld [vmem:[%s5738_s5 + $0x10] sm:$0xff]  }
  0x89   : > { %5151 = vmatprep.mubr.msk.bf16.mxu0 %vm492_vm1, %v2766_v18  ;;  %v966_v18 = vrot.slane %v5668_v7, 1 }
  0x8b   : > { %v969_v4 = vsel %vm962_vm4, %v966_v18, %v968_v26 }
  0x8d   : > { %4972 = vmatmul.mubr.msk.bf16.gmra.mrb[20].mxu1 %vm492_vm1, %v5884_v28 }
  0x8e   : > { %4975 = vmatprep.mubr.msk.bf16.mxu1 %vm492_vm1, %v5905_v50 }
  0x90   : > { %5152 = vmatmul.mubr.msk.bf16.vlgmr.msra.gmra.mrb[0].mxu0 %vm492_vm1, %v2768_v22  ;;  %v2782_v22 = vsel %vm2312_vm3, %v2779_v5, %v2781_v11  ;;  %v6235_v5 = vld [vmem:[%s5738_s5 + $0x88] sm:$0xff]  }
  0x91   : > { %5188 = vmatpush3.bf16.msra.mxu0 %v5983_v0  ;;  %5155 = vmatprep.mubr.msk.bf16.mxu0 %vm492_vm1, %v2770_v24  ;;  %v2772_v0 = vsel %vm2312_vm3, %v2769_v21, %v2771_v25  ;;  %v6184_v21 = vld [vmem:[%s5738_s5 + $0x60] sm:$0xff]   ;;  %v6189_v24 = vld [vmem:[%s5738_s5 + $0x68] sm:$0xff]   ;;  %v2793_v7 = vrot.slane %v6235_v5, 2 }
  0x92   : > { %5189 = vmatprep.subr.bf16.mxu0 %v5633_v36  ;;  %v2783_v25 = vrot.slane %v6184_v21, 2  ;;  %v2785_v31 = vrot.slane %v6189_v24, 2 }
  0x94   : > { %v2784_v35 = vsel %vm2312_vm3, %v2781_v11, %v2783_v25  ;;  %v2786_v32 = vsel %vm2312_vm3, %v2783_v25, %v2785_v31 }
  0x95   : > { %4976 = vmatmul.mubr.msk.bf16.gmra.mrb[24].mxu1 %vm492_vm1, %v5909_v55  ;;  %5190 = vmatpush3.bf16.msra.mxu0 %v5633_v36  ;;  %v967_v36 = vsel %vm962_vm4, %v964_v58, %v966_v18  ;;  %v6230_v58 = vld [vmem:[%s5738_s5 + $0x80] sm:$0xff]  }
  0x96   : > { %4979 = vmatprep.mubr.msk.bf16.mxu1 %vm492_vm1, %v5926_v10  ;;  %5227 = vmatprep.subr.bf16.mxu0 %v6138_v47  ;;  %v2791_v61 = vrot.slane %v6230_v58, 2 }
  0x98   : > { %5156 = vmatmul.mubr.msk.bf16.gmra.mrb[4].mxu0 %vm492_vm1, %v2772_v0  ;;  %v5644_v0 = vld [vmem:[%s6665_s1 + $0x38] sm:$0xff]  }
  0x99   : > { %5159 = vmatprep.mubr.msk.bf16.mxu0 %vm492_vm1, %v2774_v30  ;;  %v970_v30 = vrot.slane %v5786_v45, 1  ;;  %v2787_v45 = vrot.slane %v6206_v17, 2 }
  0x9b   : > { %v971_v42 = vsel %vm962_vm4, %v968_v26, %v970_v30  ;;  %v2788_v57 = vsel %vm2312_vm3, %v2785_v31, %v2787_v45  ;;  %v980_v26 = vrot.slane %v5855_v53, 1  ;;  %v3091_v31 = vshrl.u32 %v6089_v46, 16 }
  0x9c   : > { %v3094_v53 = vshll.u32 %v6089_v46, 16 }
  0x9d   : > { %4980 = vmatmul.mubr.msk.bf16.gmra.mrb[28].mxu1 %vm492_vm1, %v5936_v20 }
  0x9e   : > { %4983 = vmatprep.mubr.msk.bf16.mxu1 %vm492_vm1, %v5951_v37 }
  0xa0   : > { %5160 = vmatmul.mubr.msk.bf16.gmra.mrb[8].mxu0 %vm492_vm1, %v2776_v43  ;;  %v2789_v43 = vrot.slane %v6211_v39, 2 }
  0xa1   : > { %5163 = vmatprep.mubr.msk.bf16.mxu0 %vm492_vm1, %v2778_v59  ;;  %v976_v59 = vrot.slane %v5833_v29, 1  ;;  %v978_v29 = vrot.slane %v5843_v41, 1 }
  0xa2   : > { %v2792_v18 = vsel %vm2312_vm3, %v2789_v43, %v2791_v61 }
  0xa3   : > { %v977_v11 = vsel %vm962_vm4, %v974_v54, %v976_v59  ;;  %v979_v25 = vsel %vm962_vm4, %v976_v59, %v978_v29  ;;  %v981_v41 = vsel %vm962_vm4, %v978_v29, %v980_v26  ;;  %v3120_v29 = vshll.u32 %v6109_v19, 16 }
  0xa5   : > { %4984 = vmatmul.mubr.msk.bf16.gmra.mrb[32].mxu1 %vm492_vm1, %v4302_v2  ;;  %v2790_v2 = vsel %vm2312_vm3, %v2787_v45, %v2789_v43  ;;  %v5642_v45 = vld [vmem:[%s5738_s5 + $0xa0] ss:$0 sps:$4 sm:$0x11]   ;;  %v3093_v43 = vrot.slane %v3091_v31, 2 }
  0xa6   : > { %4991 = vmatprep.mubr.msk.bf16.mxu1 %vm492_vm1, %v965_v6  ;;  %v975_v6 = vsel %vm962_vm4, %v972_v12, %v974_v54  ;;  %v3096_v54 = vrot.slane %v3094_v53, 3  ;;  %v3122_v53 = vrot.slane %v3120_v29, 3  ;;  %v3156_v29 = vshll.u32 %v6150_v33, 16 }
  0xa8   : > { %5164 = vmatmul.mubr.msk.bf16.gmra.mrb[12].mxu0 %vm492_vm1, %v2780_v16  ;;  %v6248_v16 = vld [vmem:[%s5738_s5 + $0x90] sm:$0xff]  }
  0xa9   : > { %5167 = vmatprep.mubr.msk.bf16.mxu0 %vm492_vm1, %v2782_v22  ;;  %v6252_v22 = vld [vmem:[%s5738_s5 + $0x98] sm:$0xff]  }
  0xad   : > { %4992 = vmatmul.mubr.msk.bf16.vlgmr.msra.gmra.mrb[0].mxu1 %vm492_vm1, %v967_v36  ;;  %v2794_v36 = vsel %vm2312_vm3, %v2791_v61, %v2793_v7  ;;  %v3111_v61 = vshll.u32 %v6105_v56, 16 }
  0xae   : > { %4995 = vmatprep.mubr.msk.bf16.mxu1 %vm492_vm1, %v969_v4  ;;  %5028 = vmatpush3.bf16.msra.mxu1 %v6032_v15  ;;  %v973_v15 = vsel %vm962_vm4, %v970_v30, %v972_v12  ;;  %v2795_v4 = vrot.slane %v6248_v16, 2  ;;  %v3099_v30 = vshrl.u32 %v6092_v34, 16  ;;  %v982_v12 = vrot.slane %v5873_v13, 1 }
  0xaf   : > { %5029 = vmatprep.subr.bf16.mxu1 %v5644_v0 }
  0xb0   : > { %5168 = vmatmul.mubr.msk.bf16.gmra.mrb[16].mxu0 %vm492_vm1, %v2784_v35  ;;  %v3102_v35 = vshll.u32 %v6092_v34, 16  ;;  %v3101_v46 = vrot.slane %v3099_v30, 2  ;;  %v983_v59 = vsel %vm962_vm4, %v980_v26, %v982_v12 }
  0xb1   : > { %5171 = vmatprep.mubr.msk.bf16.mxu0 %vm492_vm1, %v2786_v32  ;;  %v2796_v32 = vsel %vm2312_vm3, %v2793_v7, %v2795_v4 }
  0xb2   : > { %5030 = vmatpush3.bf16.msra.mxu1 %v5644_v0  ;;  %v2797_v0 = vrot.slane %v6252_v22, 2 }
  0xb3   : > { %5267 = vmatprep.subr.bf16.mxu1 %v6221_v51 }
  0xb5   : > { %4996 = vmatmul.mubr.msk.bf16.gmra.mrb[4].mxu1 %vm492_vm1, %v971_v42  ;;  %v2798_v42 = vsel %vm2312_vm3, %v2795_v4, %v2797_v0  ;;  %v988_v4 = vrot.slane %v5909_v55, 1  ;;  %v3135_v55 = vshrl.u32 %v6125_v14, 16 }
  0xb6   : > { %4999 = vmatprep.mubr.msk.bf16.mxu1 %vm492_vm1, %v973_v15  ;;  %v984_v15 = vrot.slane %v5884_v28, 1  ;;  %v3117_v28 = vshrl.u32 %v6109_v19, 16 }
  0xb8   : > { %5172 = vmatmul.mubr.msk.bf16.gmra.mrb[20].mxu0 %vm492_vm1, %v2788_v57  ;;  %v3104_v57 = vrot.slane %v3102_v35, 3  ;;  %v985_v13 = vsel %vm962_vm4, %v982_v12, %v984_v15  ;;  %v3119_v31 = vrot.slane %v3117_v28, 2  ;;  %v3153_v28 = vshrl.u32 %v6150_v33, 16 }
  0xb9   : > { %5175 = vmatprep.mubr.msk.bf16.mxu0 %vm492_vm1, %v2790_v2  ;;  %v2799_v2 = vrot.slane %v5642_v45, 2  ;;  %v990_v45 = vrot.slane %v5926_v10, 1  ;;  %v3144_v10 = vshrl.u32 %v6146_v1, 16 }
  0xba   : > { %v3105_v7 = vor.u32 %v3104_v57, %v3101_v46  ;;  %v992_v46 = vrot.slane %v5936_v20, 1 }
  0xbb   : > { %v2800_v26 = vsel %vm2312_vm3, %v2797_v0, %v2799_v2  ;;  %v3129_v0 = vshll.u32 %v6121_v23, 16 }
  0xbd   : > { %5000 = vmatmul.mubr.msk.bf16.gmra.mrb[8].mxu1 %vm492_vm1, %v975_v6  ;;  %v3108_v6 = vshrl.u32 %v6105_v56, 16 }
  0xbe   : > { %5003 = vmatprep.mubr.msk.bf16.mxu1 %vm492_vm1, %v977_v11  ;;  %v3097_v11 = vor.u32 %v3096_v54, %v3093_v43  ;;  %v3131_v54 = vrot.slane %v3129_v0, 3 }
  0xc0   : > { %5176 = vmatmul.mubr.msk.bf16.gmra.mrb[24].mxu0 %vm492_vm1, %v2792_v18  ;;  %v986_v18 = vrot.slane %v5905_v50, 1  ;;  %v3126_v50 = vshrl.u32 %v6121_v23, 16 }
  0xc1   : > { %5179 = vmatprep.mubr.msk.bf16.mxu0 %vm492_vm1, %v2794_v36  ;;  %v3110_v36 = vrot.slane %v3108_v6, 2  ;;  %v991_v6 = vsel %vm962_vm4, %v988_v4, %v990_v45 }
  0xc2   : > { %v987_v30 = vsel %vm962_vm4, %v984_v15, %v986_v18  ;;  %v989_v12 = vsel %vm962_vm4, %v986_v18, %v988_v4  ;;  %v3128_v43 = vrot.slane %v3126_v50, 2  ;;  %v994_v18 = vrot.slane %v5951_v37, 1  ;;  %v5645_v50 = vld [vmem:[%s5738_s5 + $0x8] sm:$0xfe]  }
  0xc4   : > { %v3132_v20 = vor.u32 %v3131_v54, %v3128_v43  ;;  %v1408_v43 = vrot.slane %v5645_v50, 1  ;;  %v5651_v50 = vld [vmem:[%s5738_s5 + $0x30] sm:$0xff]  }
  0xc5   : > { %5004 = vmatmul.mubr.msk.bf16.gmra.mrb[12].mxu1 %vm492_vm1, %v979_v25  ;;  %v3113_v25 = vrot.slane %v3111_v61, 3  ;;  %v3147_v61 = vshll.u32 %v6146_v1, 16 }
  0xc6   : > { %5007 = vmatprep.mubr.msk.bf16.mxu1 %vm492_vm1, %v981_v41  ;;  %v3106_v41 = vsel %vm3089_vm5, %v3097_v11, %v3105_v7  ;;  %v993_v11 = vsel %vm962_vm4, %v990_v45, %v992_v46 }
  0xc7   : > { %v3114_v35 = vor.u32 %v3113_v25, %v3110_v36  ;;  %v996_v25 = vrot.slane %v5963_v48, 1  ;;  %v5646_v48 = vld [vmem:[%s5738_s5 + $0x10] sm:$0xff]  }
  0xc8   : > { %5180 = vmatmul.mubr.msk.bf16.gmra.mrb[28].mxu0 %vm492_vm1, %v2796_v32  ;;  %v3123_v32 = vor.u32 %v3122_v53, %v3119_v31  ;;  %v3158_v31 = vrot.slane %v3156_v29, 3  ;;  %v995_v53 = vsel %vm962_vm4, %v992_v46, %v994_v18  ;;  %v1409_v54 = vrot.slane %v5646_v48, 1 }
  0xc9   : > { %5183 = vmatprep.mubr.msk.bf16.mxu0 %vm492_vm1, %v2798_v42  ;;  %v3138_v42 = vshll.u32 %v6125_v14, 16  ;;  %v3115_v15 = vsel %vm3089_vm5, %v3105_v7, %v3114_v35  ;;  %v997_v37 = vsel %vm962_vm4, %v994_v18, %v996_v25 }
  0xca   : > { %v3124_v57 = vsel %vm3089_vm5, %v3114_v35, %v3123_v32  ;;  %v3133_v36 = vsel %vm3089_vm5, %v3123_v32, %v3132_v20  ;;  %v3162_v35 = vshrl.u32 %v6166_v52, 16  ;;  %v3171_v32 = vshrl.u32 %v6171_v62, 16 }
  0xcb   : > { %v3140_v2 = vrot.slane %v3138_v42, 3 }
  0xcc   : > { %v3164_v45 = vrot.slane %v3162_v35, 2  ;;  %v3198_v35 = vshrl.u32 %v6206_v17, 16 }
  0xcd   : > { %5008 = vmatmul.mubr.msk.bf16.gmra.mrb[16].mxu1 %vm492_vm1, %v983_v59  ;;  %v3137_v59 = vrot.slane %v3135_v55, 2  ;;  %v3174_v55 = vshll.u32 %v6171_v62, 16 }
  0xce   : > { %5011 = vmatprep.mubr.msk.bf16.mxu1 %vm492_vm1, %v985_v13  ;;  %v5648_v13 = vld [vmem:[%s6665_s1 + $0x88] sm:$0xff]  }
  0xcf   : > { %v3141_v7 = vor.u32 %v3140_v2, %v3137_v59  ;;  %v3176_v59 = vrot.slane %v3174_v55, 3  ;;  %v5647_v2 = vld [vmem:[%s5738_s5 + $0x18] sm:$0xff]  }
  0xd0   : > { %5184 = vmatmul.mubr.msk.bf16.gmra.mrb[32].mxu0 %vm492_vm1, %v2800_v26  ;;  %v3146_v26 = vrot.slane %v3144_v10, 2  ;;  %v3180_v10 = vshrl.u32 %v6184_v21, 16  ;;  %v1411_v29 = vrot.slane %v5647_v2, 1 }
  0xd1   : > { %5191 = vmatprep.mubr.msk.bf16.mxu0 %vm492_vm1, %v3106_v41  ;;  %v3142_v4 = vsel %vm3089_vm5, %v3132_v20, %v3141_v7  ;;  %v3155_v41 = vrot.slane %v3153_v28, 2  ;;  %v5649_v20 = vld [vmem:[%s5738_s5 + $0x20] sm:$0xff]   ;;  %v3192_v28 = vshll.u32 %v6189_v24, 16 }
  0xd3   : > { %v3159_v0 = vor.u32 %v3158_v31, %v3155_v41  ;;  %v3194_v31 = vrot.slane %v3192_v28, 3  ;;  %v3228_v28 = vshll.u32 %v6235_v5, 16 }
  0xd5   : > { %5012 = vmatmul.mubr.msk.bf16.gmra.mrb[20].mxu1 %vm492_vm1, %v987_v30 }
  0xd6   : > { %5015 = vmatprep.mubr.msk.bf16.mxu1 %vm492_vm1, %v989_v12  ;;  %v3165_v12 = vshll.u32 %v6166_v52, 16 }
  0xd8   : > { %5192 = vmatmul.mubr.msk.bf16.vlgmr.msra.gmra.mrb[0].mxu0 %vm492_vm1, %v3115_v15  ;;  %v3167_v15 = vrot.slane %v3165_v12, 3  ;;  %v3201_v12 = vshll.u32 %v6206_v17, 16 }
  0xd9   : > { %5228 = vmatpush3.bf16.msra.mxu0 %v6138_v47  ;;  %5195 = vmatprep.mubr.msk.bf16.mxu0 %vm492_vm1, %v3124_v57  ;;  %v3149_v47 = vrot.slane %v3147_v61, 3  ;;  %v3173_v57 = vrot.slane %v3171_v32, 2  ;;  %v3183_v61 = vshll.u32 %v6184_v21, 16  ;;  %v3210_v32 = vshll.u32 %v6211_v39, 16 }
  0xda   : > { %5229 = vmatprep.subr.bf16.mxu0 %v5648_v13 }
  0xdb   : > { %v3150_v30 = vor.u32 %v3149_v47, %v3146_v26  ;;  %v3182_v26 = vrot.slane %v3180_v10, 2  ;;  %v3185_v47 = vrot.slane %v3183_v61, 3  ;;  %v3216_v10 = vshrl.u32 %v6230_v58, 16 }
  0xdc   : > { %v3219_v61 = vshll.u32 %v6230_v58, 16 }
  0xdd   : > { %5016 = vmatmul.mubr.msk.bf16.gmra.mrb[24].mxu1 %vm492_vm1, %v991_v6  ;;  %5230 = vmatpush3.bf16.msra.mxu0 %v5648_v13  ;;  %v3151_v42 = vsel %vm3089_vm5, %v3141_v7, %v3150_v30  ;;  %v3160_v46 = vsel %vm3089_vm5, %v3150_v30, %v3159_v0  ;;  %v3168_v13 = vor.u32 %v3167_v15, %v3164_v45  ;;  %v3189_v7 = vshrl.u32 %v6189_v24, 16  ;;  %v5650_v30 = vld [vmem:[%s5738_s5 + $0x28] sm:$0xff]  }
  0xde   : > { %5019 = vmatprep.mubr.msk.bf16.mxu1 %vm492_vm1, %v993_v11  ;;  %v1410_v6 = vsel %vm962_vm4, %v1408_v43, %v1409_v54  ;;  %v3177_v11 = vor.u32 %v3176_v59, %v3173_v57  ;;  %v1415_v55 = vrot.slane %v5650_v30, 1  ;;  %v3200_v45 = vrot.slane %v3198_v35, 2  ;;  %v5654_v30 = vld [vmem:[%s5738_s5 + $0x48] sm:$0xff]  }
  0xdf   : > { %v3169_v18 = vsel %vm3089_vm5, %v3159_v0, %v3168_v13  ;;  %v3191_v41 = vrot.slane %v3189_v7, 2  ;;  %v3207_v0 = vshrl.u32 %v6211_v39, 16  ;;  %v3203_v15 = vrot.slane %v3201_v12, 3 }
  0xe0   : > { %5196 = vmatmul.mubr.msk.bf16.gmra.mrb[4].mxu0 %vm492_vm1, %v3133_v36  ;;  %v1413_v36 = vrot.slane %v5649_v20, 1  ;;  %v1417_v43 = vrot.slane %v5651_v50, 1  ;;  %v3212_v59 = vrot.slane %v3210_v32, 3  ;;  %v5653_v20 = vld [vmem:[%s5738_s5 + $0x40] sm:$0xff]   ;;  %v3225_v7 = vshrl.u32 %v6235_v5, 16  ;;  %v5655_v50 = vld [vmem:[%s5738_s5 + $0x50] sm:$0xff]  }
  0xe1   : > { %5199 = vmatprep.mubr.msk.bf16.mxu0 %vm492_vm1, %v3142_v4  ;;  %v3178_v4 = vsel %vm3089_vm5, %v3168_v13, %v3177_v11  ;;  %v3195_v48 = vor.u32 %v3194_v31, %v3191_v41  ;;  %v3209_v57 = vrot.slane %v3207_v0, 2  ;;  %v3204_v13 = vor.u32 %v3203_v15, %v3200_v45 }
  0xe2   : > { %v1416_v2 = vsel %vm962_vm4, %v1413_v36, %v1415_v55  ;;  %v3227_v41 = vrot.slane %v3225_v7, 2  ;;  %v3230_v31 = vrot.slane %v3228_v28, 3  ;;  %v3234_v35 = vshrl.u32 %v6248_v16, 16  ;;  %v3539_v7 = vld [vmem:[%s5738_s5 + $0x10] sm:$0x8] }
  0xe3   : > { %v3237_v12 = vshll.u32 %v6248_v16, 16  ;;  %v3243_v0 = vshrl.u32 %v6252_v22, 16  ;;  %v3246_v32 = vshll.u32 %v6252_v22, 16 }
  0xe4   : > { %v3236_v45 = vrot.slane %v3234_v35, 2  ;;  %v3550_v35 = vrot.slane %v6092_v34, 3  ;;  %v3552_v34 = vrot.slane %v6105_v56, 3 }
  0xe5   : > { %5020 = vmatmul.mubr.msk.bf16.gmra.mrb[28].mxu1 %vm492_vm1, %v995_v53  ;;  %v1412_v53 = vsel %vm962_vm4, %v1409_v54, %v1411_v29  ;;  %v5670_v54 = vld [vmem:[%s6665_s1 + $0x48] sm:$0xff]   ;;  %v3239_v15 = vrot.slane %v3237_v12, 3 }
  0xe6   : > { %5023 = vmatprep.mubr.msk.bf16.mxu1 %vm492_vm1, %v997_v37  ;;  %v1414_v37 = vsel %vm962_vm4, %v1411_v29, %v1413_v36  ;;  %v1421_v36 = vrot.slane %v5653_v20, 1  ;;  %v5658_v20 = vld [vmem:[%s5738_s5 + $0x60] sm:$0xff]  }
  0xe8   : > { %5200 = vmatmul.mubr.msk.bf16.gmra.mrb[8].mxu0 %vm492_vm1, %v3151_v42 }
  0xe9   : > { %5203 = vmatprep.mubr.msk.bf16.mxu0 %vm492_vm1, %v3160_v46 }
  0xed   : > { %5024 = vmatmul.mubr.msk.bf16.gmra.mrb[32].mxu1 %vm492_vm1, %v996_v25  ;;  %v3186_v25 = vor.u32 %v3185_v47, %v3182_v26  ;;  %v3218_v26 = vrot.slane %v3216_v10, 2  ;;  %v3221_v47 = vrot.slane %v3219_v61, 3 }
  0xee   : > { %5031 = vmatprep.mubr.msk.bf16.mxu1 %vm492_vm1, %v1410_v6  ;;  %v1418_v6 = vsel %vm962_vm4, %v1415_v55, %v1417_v43  ;;  %v1423_v55 = vrot.slane %v5654_v30, 1 }
  0xef   : > { %v3187_v42 = vsel %vm3089_vm5, %v3177_v11, %v3186_v25  ;;  %v3196_v46 = vsel %vm3089_vm5, %v3186_v25, %v3195_v48  ;;  %v3213_v11 = vor.u32 %v3212_v59, %v3209_v57  ;;  %v3222_v25 = vor.u32 %v3221_v47, %v3218_v26 }
  0xf0   : > { %5204 = vmatmul.mubr.msk.bf16.gmra.mrb[12].mxu0 %vm492_vm1, %v3169_v18  ;;  %v3205_v18 = vsel %vm3089_vm5, %v3195_v48, %v3204_v13  ;;  %v3231_v48 = vor.u32 %v3230_v31, %v3227_v41  ;;  %v3245_v57 = vrot.slane %v3243_v0, 2  ;;  %v3248_v59 = vrot.slane %v3246_v32, 3  ;;  %v5660_v31 = vld [vmem:[%s5738_s5 + $0x68] sm:$0xff]   ;;  %v5662_v32 = vld [vmem:[%s5738_s5 + $0x78] sm:$0xff]  }
  0xf1   : > { %5207 = vmatprep.mubr.msk.bf16.mxu0 %vm492_vm1, %v3178_v4  ;;  %v3214_v4 = vsel %vm3089_vm5, %v3204_v13, %v3213_v11  ;;  %v3240_v13 = vor.u32 %v3239_v15, %v3236_v45  ;;  %v1429_v47 = vrot.slane %v5658_v20, 1  ;;  %v3554_v45 = vrot.slane %v6109_v19, 3 }
  0xf2   : > { %v1435_v15 = vrot.slane %v5662_v32, 1  ;;  %v1957_v20 = vshrl.u32 %v6011_v27, 16 }
  0xf5   : > { %5032 = vmatmul.mubr.msk.bf16.vlgmr.msra.gmra.mrb[0].mxu1 %vm492_vm1, %v1412_v53 }
  0xf6   : > { %5035 = vmatprep.mubr.msk.bf16.mxu1 %vm492_vm1, %v1414_v37  ;;  %5269 = vmatpush3.bf16.msra.mxu1 %v6221_v51  ;;  %v5652_v51 = vld [vmem:[%s5738_s5 + $0x38] sm:$0xff]  }
  0xf7   : > { %5268 = vmatprep.subr.bf16.mxu1 %v5670_v54  ;;  %v1419_v29 = vrot.slane %v5652_v51, 1  ;;  %v5656_v51 = vld [vmem:[%s5738_s5 + $0x58] sm:$0xff]  }
  0xf8   : > { %5208 = vmatmul.mubr.msk.bf16.gmra.mrb[16].mxu0 %vm492_vm1, %v3187_v42  ;;  %v3223_v42 = vsel %vm3089_vm5, %v3213_v11, %v3222_v25  ;;  %v3249_v11 = vor.u32 %v3248_v59, %v3245_v57  ;;  %v1427_v28 = vrot.slane %v5656_v51, 1  ;;  %v3555_v57 = vsel %vm3548_vm6, %v3552_v34, %v3554_v45  ;;  %v5664_v59 = vld [vmem:[%s5738_s5 + $0x88] sm:$0xff]   ;;  %v5665_v51 = vld [vmem:[%s5738_s5 + $0x90] sm:$0xff]  }
  0xf9   : > { %5211 = vmatprep.mubr.msk.bf16.mxu0 %vm492_vm1, %v3196_v46  ;;  %v1420_v53 = vsel %vm962_vm4, %v1417_v43, %v1419_v29  ;;  %v1422_v37 = vsel %vm962_vm4, %v1419_v29, %v1421_v36  ;;  %v1425_v43 = vrot.slane %v5655_v50, 1  ;;  %v3232_v46 = vsel %vm3089_vm5, %v3222_v25, %v3231_v48  ;;  %v5661_v25 = vld [vmem:[%s5738_s5 + $0x70] sm:$0xff]  }
  0xfa   : > { %5270 = vmatpush3.bf16.msra.mxu1 %v5670_v54  ;;  %v6391_v54 = vld [vmem:[%s5738_s5 + $0xa0] ss:$0 sps:$4 sm:$0x33]   ;;  %v3241_v29 = vsel %vm3089_vm5, %v3231_v48, %v3240_v13  ;;  %v1430_v30 = vsel %vm962_vm4, %v1427_v28, %v1429_v47  ;;  %v1433_v50 = vrot.slane %v5661_v25, 1 }
  0xfb   : > { %v3252_v10 = vshrl.u32 %v6391_v54, 16  ;;  %v3255_v61 = vshll.u32 %v6391_v54, 16  ;;  %v1428_v41 = vsel %vm962_vm4, %v1425_v43, %v1427_v28 }
  0xfc   : > { %v1436_v56 = vsel %vm962_vm4, %v1433_v50, %v1435_v15 }
  0xfd   : > { %5036 = vmatmul.mubr.msk.bf16.gmra.mrb[4].mxu1 %vm492_vm1, %v1416_v2  ;;  %v1424_v2 = vsel %vm962_vm4, %v1421_v36, %v1423_v55  ;;  %v3257_v26 = vrot.slane %v3255_v61, 3  ;;  %v3250_v36 = vsel %vm3089_vm5, %v3240_v13, %v3249_v11  ;;  %v3558_v13 = vrot.slane %v6125_v14, 3 }
  0xfe   : > { %5039 = vmatprep.mubr.msk.bf16.mxu1 %vm492_vm1, %v1418_v6  ;;  %v1426_v6 = vsel %vm962_vm4, %v1423_v55, %v1425_v43  ;;  %v3553_v43 = vsel %vm3548_vm6, %v3550_v35, %v3552_v34  ;;  %v1441_v61 = vrot.slane %v5665_v51, 1  ;;  %v3560_v14 = vrot.slane %v6146_v1, 3 }
  0xff   : > { %v1978_v1 = vshll.u32 %v6036_v9, 16 }
 0x100   : > { %5212 = vmatmul.mubr.msk.bf16.gmra.mrb[20].mxu0 %vm492_vm1, %v3205_v18  ;;  %v3254_v18 = vrot.slane %v3252_v10, 2 }
 0x101   : > { %5215 = vmatprep.mubr.msk.bf16.mxu0 %vm492_vm1, %v3214_v4  ;;  %v4530_v4 = vcombine.low %v3539_v7, %v6079_v60  ;;  %v1431_v60 = vrot.slane %v5660_v31, 1 }
 0x103   : > { %v1432_v0 = vsel %vm962_vm4, %v1429_v47, %v1431_v60  ;;  %v1434_v55 = vsel %vm962_vm4, %v1431_v60, %v1433_v50  ;;  %v1969_v47 = vshll.u32 %v6026_v8, 16  ;;  %v1984_v60 = vshrl.u32 %v6049_v38, 16 }
 0x105   : > { %5040 = vmatmul.mubr.msk.bf16.gmra.mrb[8].mxu1 %vm492_vm1, %v1420_v53  ;;  %v3258_v53 = vor.u32 %v3257_v26, %v3254_v18  ;;  %v3562_v26 = vrot.slane %v6150_v33, 3  ;;  %v1986_v32 = vrot.slane %v1984_v60, 1 }
 0x106   : > { %5043 = vmatprep.mubr.msk.bf16.mxu1 %vm492_vm1, %v1422_v37  ;;  %v3549_v37 = vrot.slane %v4530_v4, 3 }
 0x107   : > { %v3259_v12 = vsel %vm3089_vm5, %v3249_v11, %v3258_v53  ;;  %v1960_v11 = vshll.u32 %v6011_v27, 16  ;;  %v1966_v27 = vshrl.u32 %v6026_v8, 16  ;;  %v3563_v31 = vsel %vm3548_vm6, %v3560_v14, %v3562_v26 }
 0x108   : > { %5216 = vmatmul.mubr.msk.bf16.gmra.mrb[24].mxu0 %vm492_vm1, %v3223_v42  ;;  %v3551_v48 = vsel %vm3548_vm6, %v3549_v37, %v3550_v35  ;;  %v5663_v42 = vld [vmem:[%s5738_s5 + $0x80] sm:$0xff]   ;;  %v1971_v53 = vrot.slane %v1969_v47, 2  ;;  %v1980_v37 = vrot.slane %v1978_v1, 2  ;;  %v3566_v35 = vrot.slane %v6171_v62, 3  ;;  %s3908_s5 = sld [smem:[#allocation2]] }
 0x109   : > { %5219 = vmatprep.mubr.msk.bf16.mxu0 %vm492_vm1, %v3232_v46  ;;  %v1437_v46 = vrot.slane %v5663_v42, 1  ;;  %v1962_v18 = vrot.slane %v1960_v11, 2  ;;  %v1968_v33 = vrot.slane %v1966_v27, 1  ;;  %v3582_v27 = vrot.slane %v6252_v22, 3 }
 0x10b   : > { %v1438_v19 = vsel %vm962_vm4, %v1435_v15, %v1437_v46  ;;  %v3570_v15 = vrot.slane %v6189_v24, 3 }
 0x10d   : > { %5044 = vmatmul.mubr.msk.bf16.gmra.mrb[12].mxu1 %vm492_vm1, %v1424_v2  ;;  %v3556_v2 = vrot.slane %v6121_v23, 3 }
 0x10e   : > { %5047 = vmatprep.mubr.msk.bf16.mxu1 %vm492_vm1, %v1426_v6  ;;  %v1439_v6 = vrot.slane %v5664_v59, 1  ;;  %v2014_v59 = vshll.u32 %v6067_v49, 16 }
 0x10f   : > { %v3557_v10 = vsel %vm3548_vm6, %v3554_v45, %v3556_v2  ;;  %v3559_v7 = vsel %vm3548_vm6, %v3556_v2, %v3558_v13 }
 0x110   : > { %5220 = vmatmul.mubr.msk.bf16.gmra.mrb[28].mxu0 %vm492_vm1, %v3241_v29  ;;  %v1440_v23 = vsel %vm962_vm4, %v1437_v46, %v1439_v6  ;;  %v1442_v28 = vsel %vm962_vm4, %v1439_v6, %v1441_v61  ;;  %v1959_v29 = vrot.slane %v1957_v20, 1  ;;  %v2005_v46 = vshll.u32 %v6062_v44, 16 }
 0x111   : > { %5223 = vmatprep.mubr.msk.bf16.mxu0 %vm492_vm1, %v3250_v36  ;;  %v3561_v36 = vsel %vm3548_vm6, %v3558_v13, %v3560_v14  ;;  %v3572_v13 = vrot.slane %v6206_v17, 3 }
 0x112   : > { %v1963_v4 = vor.u32 %v1962_v18, %v1959_v29  ;;  %v2007_v51 = vrot.slane %v2005_v46, 2 }
 0x113   : > { %v3573_v20 = vsel %vm3548_vm6, %v3570_v15, %v3572_v13 }
 0x114   : > { %v1964_v8 = vsel %vm1857_vm2, %v5919_v3, %v1963_v4  ;;  %v1996_v3 = vshll.u32 %v6053_v40, 16 }
 0x115   : > { %5048 = vmatmul.mubr.msk.bf16.gmra.mrb[16].mxu1 %vm492_vm1, %v1428_v41  ;;  %v1975_v41 = vshrl.u32 %v6036_v9, 16  ;;  %v1972_v9 = vor.u32 %v1971_v53, %v1968_v33 }
 0x116   : > { %5051 = vmatprep.mubr.msk.bf16.mxu1 %vm492_vm1, %v1430_v30  ;;  %v3564_v30 = vrot.slane %v6166_v52, 3  ;;  %v1993_v52 = vshrl.u32 %v6053_v40, 16  ;;  %v1998_v45 = vrot.slane %v1996_v3, 2 }
 0x117   : > { %v1977_v25 = vrot.slane %v1975_v41, 1  ;;  %v1973_v62 = vsel %vm1857_vm2, %v1963_v4, %v1972_v9 }
 0x118   : > { %5224 = vmatmul.mubr.msk.bf16.gmra.mrb[32].mxu0 %vm492_vm1, %v3259_v12  ;;  %v1987_v12 = vshll.u32 %v6049_v38, 16  ;;  %v3565_v50 = vsel %vm3548_vm6, %v3562_v26, %v3564_v30  ;;  %v1995_v42 = vrot.slane %v1993_v52, 1 }
 0x119   : > { %5231 = vmatprep.mubr.msk.bf16.mxu0 %vm492_vm1, %v3551_v48  ;;  %v1981_v48 = vor.u32 %v1980_v37, %v1977_v25 }
 0x11a   : > { %v1989_v34 = vrot.slane %v1987_v12, 2 }
 0x11b   : > { %v1982_v38 = vsel %vm1857_vm2, %v1972_v9, %v1981_v48 }
 0x11c   : > { %v1990_v40 = vor.u32 %v1989_v34, %v1986_v32 }
 0x11d   : > { %5052 = vmatmul.mubr.msk.bf16.gmra.mrb[20].mxu1 %vm492_vm1, %v1432_v0  ;;  %v3567_v0 = vsel %vm3548_vm6, %v3564_v30, %v3566_v35 }
 0x11e   : > { %5055 = vmatprep.mubr.msk.bf16.mxu1 %vm492_vm1, %v1434_v55  ;;  %v3568_v55 = vrot.slane %v6184_v21, 3  ;;  %v2011_v21 = vshrl.u32 %v6067_v49, 16  ;;  %v1991_v24 = vsel %vm1857_vm2, %v1981_v48, %v1990_v40 }
 0x120   : > { %5232 = vmatmul.mubr.msk.bf16.vlgmr.msra.gmra.mrb[0].mxu0 %vm492_vm1, %v3553_v43  ;;  %v2002_v43 = vshrl.u32 %v6062_v44, 16  ;;  %v3571_v2 = vsel %vm3548_vm6, %v3568_v55, %v3570_v15  ;;  %v2013_v6 = vrot.slane %v2011_v21, 1 }
 0x121   : > { %5235 = vmatprep.mubr.msk.bf16.mxu0 %vm492_vm1, %v3555_v57  ;;  %v3569_v57 = vsel %vm3548_vm6, %v3566_v35, %v3568_v55  ;;  %v6550_v55 = vstv %s3908_s5 }
 0x125   : > { %5056 = vmatmul.mubr.msk.bf16.gmra.mrb[24].mxu1 %vm492_vm1, %v1436_v56  ;;  %v1999_v56 = vor.u32 %v1998_v45, %v1995_v42 }
 0x126   : > { %5059 = vmatprep.mubr.msk.bf16.mxu1 %vm492_vm1, %v1438_v19  ;;  %v2004_v19 = vrot.slane %v2002_v43, 1 }
 0x127   : > { %v2000_v44 = vsel %vm1857_vm2, %v1990_v40, %v1999_v56 }
 0x128   : > { %5236 = vmatmul.mubr.msk.bf16.gmra.mrb[4].mxu0 %vm492_vm1, %v3557_v10  ;;  %v2016_v10 = vrot.slane %v2014_v59, 2  ;;  %v2008_v49 = vor.u32 %v2007_v51, %v2004_v19 }
 0x129   : > { %5239 = vmatprep.mubr.msk.bf16.mxu0 %vm492_vm1, %v3559_v7 }
 0x12a   : > { %v2017_v11 = vor.u32 %v2016_v10, %v2013_v6  ;;  %v2009_v17 = vsel %vm1857_vm2, %v1999_v56, %v2008_v49 }
 0x12c   : > { %v2018_v14 = vsel %vm1857_vm2, %v2008_v49, %v2017_v11 }
 0x12d   : > { %5060 = vmatmul.mubr.msk.bf16.gmra.mrb[28].mxu1 %vm492_vm1, %v1440_v23  ;;  %v2020_v23 = vshll.u32 %v6085_v63, 16 }
 0x12e   : > { %5063 = vmatprep.mubr.msk.bf16.mxu1 %vm492_vm1, %v1442_v28  ;;  %v3578_v28 = vrot.slane %v6235_v5, 3 }
 0x12f   : > { %v2022_v29 = vrot.slane %v2020_v23, 2 }
 0x130   : > { %5240 = vmatmul.mubr.msk.bf16.gmra.mrb[8].mxu0 %vm492_vm1, %v3561_v36  ;;  %v3584_v36 = vrot.slane %v6391_v54, 3 }
 0x131   : > { %5243 = vmatprep.mubr.msk.bf16.mxu0 %vm492_vm1, %v3563_v31  ;;  %v2023_v63 = vsel %vm1857_vm2, %v2017_v11, %v2022_v29 }
 0x132   : > { %v3585_v4 = vsel %vm3548_vm6, %v3582_v27, %v3584_v36 }
 0x135   : > { %5064 = vmatmul.mubr.msk.bf16.gmra.mrb[32].mxu1 %vm492_vm1, %v1441_v61  ;;  %v3574_v61 = vrot.slane %v6211_v39, 3  ;;  %v3576_v39 = vrot.slane %v6230_v58, 3  ;;  %v3580_v58 = vrot.slane %v6248_v16, 3 }
 0x136   : > { %5091 = vmatprep.mubr.msk.bf16.mxu1 %vm492_vm1, %v1964_v8 }
 0x137   : > { %v3575_v7 = vsel %vm3548_vm6, %v3572_v13, %v3574_v61  ;;  %v3577_v18 = vsel %vm3548_vm6, %v3574_v61, %v3576_v39  ;;  %v3579_v26 = vsel %vm3548_vm6, %v3576_v39, %v3578_v28  ;;  %v3581_v5 = vsel %vm3548_vm6, %v3578_v28, %v3580_v58 }
 0x138   : > { %5244 = vmatmul.mubr.msk.bf16.gmra.mrb[12].mxu0 %vm492_vm1, %v3565_v50  ;;  %v3583_v47 = vsel %vm3548_vm6, %v3580_v58, %v3582_v27 }
 0x139   : > { %5247 = vmatprep.mubr.msk.bf16.mxu0 %vm492_vm1, %v3567_v0 }
 0x13d   : > { %5092 = vmatmul.mubr.msk.bf16.vlgmr.msra.gmra.mrb[20].mxu1 %vm492_vm1, %v1973_v62  ;;  %v6548_v62 = vld [vmem:[%s6666_s2] ss:$0 sm:$0xff] }
 0x13e   : > { %5095 = vmatprep.mubr.msk.bf16.mxu1 %vm492_vm1, %v1982_v38 }
 0x140   : > { %5248 = vmatmul.mubr.msk.bf16.gmra.mrb[16].mxu0 %vm492_vm1, %v3569_v57 }
 0x141   : > { %5251 = vmatprep.mubr.msk.bf16.mxu0 %vm492_vm1, %v3571_v2 }
 0x145   : > { %5096 = vmatmul.mubr.msk.bf16.gmra.mrb[24].mxu1 %vm492_vm1, %v1991_v24 }
 0x146   : > { %5099 = vmatprep.mubr.msk.bf16.mxu1 %vm492_vm1, %v2000_v44 }
 0x148   : > { %5252 = vmatmul.mubr.msk.bf16.gmra.mrb[20].mxu0 %vm492_vm1, %v3573_v20 }
 0x149   : > { %5255 = vmatprep.mubr.msk.bf16.mxu0 %vm492_vm1, %v3575_v7 }
 0x14d   : > { %5100 = vmatmul.mubr.msk.bf16.gmra.mrb[28].mxu1 %vm492_vm1, %v2009_v17 }
 0x14e   : > { %5103 = vmatprep.mubr.msk.bf16.mxu1 %vm492_vm1, %v2018_v14 }
 0x150   : > { %5256 = vmatmul.mubr.msk.bf16.gmra.mrb[24].mxu0 %vm492_vm1, %v3577_v18 }
 0x151   : > { %5259 = vmatprep.mubr.msk.bf16.mxu0 %vm492_vm1, %v3579_v26 }
 0x155   : > { %5104 = vmatmul.mubr.msk.bf16.gmra.mrb[32].mxu1 %vm492_vm1, %v2023_v63 }
 0x158   : > { %5260 = vmatmul.mubr.msk.bf16.gmra.mrb[28].mxu0 %vm492_vm1, %v3581_v5 }
 0x159   : > { %5263 = vmatprep.mubr.msk.bf16.mxu0 %vm492_vm1, %v3583_v47 }
 0x160   : > { %5264 = vmatmul.mubr.msk.bf16.gmra.mrb[32].mxu0 %vm492_vm1, %v3585_v4 }
 0x1c8   : > { %v5033_v41 = vpop.f32.mrb[0].mxu1 }
 0x1c9   : > { %v1543_v16 = vpop.f32.mrb[1].mxu1 }
 0x1ca   : > { %v5034_v1 = vpop.f32.mrb[2].mxu1 }
 0x1cb   : > { %v1546_v22 = vpop.f32.mrb[3].mxu1 }
 0x1d0   : > { %v5037_v31 = vpop.f32.mrb[4].mxu1 }
 0x1d1   : > { %v1559_v33 = vpop.f32.mrb[5].mxu1 }
 0x1d2   : > { %v5038_v53 = vpop.f32.mrb[6].mxu1 }
 0x1d3   : > { %v1562_v30 = vpop.f32.mrb[7].mxu1 }
 0x1d8   : > { %v6521_v8 = vpop.f32.mrb[8].mxu1 }
 0x1d9   : > { %v6523_v25 = vpop.f32.mrb[9].mxu1 }
 0x1da   : > { %v6525_v37 = vpop.f32.mrb[10].mxu1 }
 0x1db   : > { %v6527_v35 = vpop.f32.mrb[11].mxu1 }
 0x1e0   : > { %v6529_v54 = vpop.f32.mrb[12].mxu1 }
 0x1e1   : > { %v6531_v9 = vpop.f32.mrb[13].mxu1 }
 0x1e2   : > { %v6533_v60 = vpop.f32.mrb[14].mxu1 }
 0x1e3   : > { %v6535_v12 = vpop.f32.mrb[15].mxu1 }
 0x1e8   : > { %v6537_v50 = vpop.f32.mrb[16].mxu1 }
 0x1e9   : > { %v6539_v48 = vpop.f32.mrb[17].mxu1 }
 0x1ea   : > { %v6541_v52 = vpop.f32.mrb[18].mxu1 }
 0x1eb   : > { %v6543_v3 = vpop.f32.mrb[19].mxu1 }
 0x1f3   : > { %v5233_v0 = vpop.f32.mrb[0].mxu0 }
 0x1f4   : > { %v5271_v32 = vadd.f32 %v5233_v0, %v5033_v41  ;;  %v3686_v34 = vpop.f32.mrb[1].mxu0 }
 0x1f5   : > { %v5272_v38 = vadd.f32 %v3686_v34, %v1543_v16  ;;  %v5234_v42 = vpop.f32.mrb[2].mxu0 }
 0x1f6   : > { %v3874_v45 = vadd.f32 %v5271_v32, %v6548_v62  ;;  %v5273_v15 = vadd.f32 %v5234_v42, %v5034_v1  ;;  %v3689_v40 = vpop.f32.mrb[3].mxu0 }
 0x1f7   : > { %v3872_v43 = vadd.f32 %v5272_v38, %v6548_v62  ;;  %v5274_v46 = vadd.f32 %v3689_v40, %v1546_v22 }
 0x1f8   : > { %v3948_v57 = vmul.f32 %v6550_v55, %v3874_v45  ;;  %v3875_v56 = vadd.f32 %v5273_v15, %v6548_v62  ;;  %vm3911_vm7 = vcmp.ge.f32.partialorder %v3874_v45, 0.0 }
 0x1f9   : > { %v3946_v21 = vmul.f32 %v6550_v55, %v3872_v43  ;;  %v3873_v59 = vadd.f32 %v5274_v46, %v6548_v62  ;;  %vm3909_vm8 = vcmp.ge.f32.partialorder %v3872_v43, 0.0 }
 0x1fa   : > { %vm3912_vm9 = vcmp.ge.f32.partialorder %v3875_v56, 0.0  ;;  %v3949_v2 = vmul.f32 %v6550_v55, %v3875_v56  ;;  %v3984_v51 = vsel %vm3911_vm7, %v3874_v45, %v3948_v57 }
 0x1fb   : > { %vm3910_vm10 = vcmp.ge.f32.partialorder %v3873_v59, 0.0  ;;  %v3947_v24 = vmul.f32 %v6550_v55, %v3873_v59  ;;  %v5237_v19 = vpop.f32.mrb[4].mxu0  ;;  %v3982_v10 = vsel %vm3909_vm8, %v3872_v43, %v3946_v21 }
 0x1fc   : > { %v3985_v13 = vsel %vm3912_vm9, %v3875_v56, %v3949_v2  ;;  %v5275_v44 = vadd.f32 %v5237_v19, %v5037_v31  ;;  %v3702_v6 = vpop.f32.mrb[5].mxu0 }
 0x1fd   : > { %v4634_v61 = vpack.c.bf16 %v3985_v13, %v3984_v51  ;;  %v3983_v49 = vsel %vm3910_vm10, %v3873_v59, %v3947_v24  ;;  %v5276_v20 = vadd.f32 %v3702_v6, %v1559_v33  ;;  %v5238_v11 = vpop.f32.mrb[6].mxu0 }
 0x1fe   : > { %v4629_v7 = vpack.c.bf16 %v3983_v49, %v3982_v10  ;;  %v3878_v17 = vadd.f32 %v5275_v44, %v6548_v62  ;;  %v5277_v23 = vadd.f32 %v5238_v11, %v5038_v53  ;;  %v3705_v39 = vpop.f32.mrb[7].mxu0 }
 0x1ff   : > { %4711 = vst [vmem:[%s6564_s18 + $0x8] sm:$0xff] %v4634_v61   ;;  %v3876_v14 = vadd.f32 %v5276_v20, %v6548_v62  ;;  %v5278_v28 = vadd.f32 %v3705_v39, %v1562_v30 }
 0x200   : > { %4630 = vst [vmem:[%s6564_s18] sm:$0xff] %v4629_v7   ;;  %v3952_v29 = vmul.f32 %v6550_v55, %v3878_v17  ;;  %v3879_v18 = vadd.f32 %v5277_v23, %v6548_v62  ;;  %vm3915_vm11 = vcmp.ge.f32.partialorder %v3878_v17, 0.0 }
 0x201   : > { %v3950_v26 = vmul.f32 %v6550_v55, %v3876_v14  ;;  %v3877_v63 = vadd.f32 %v5278_v28, %v6548_v62  ;;  %vm3913_vm12 = vcmp.ge.f32.partialorder %v3876_v14, 0.0 }
 0x202   : > { %vm3916_vm13 = vcmp.ge.f32.partialorder %v3879_v18, 0.0  ;;  %v3953_v58 = vmul.f32 %v6550_v55, %v3879_v18  ;;  %v3988_v47 = vsel %vm3915_vm11, %v3878_v17, %v3952_v29 }
 0x203   : > { %vm3914_vm14 = vcmp.ge.f32.partialorder %v3877_v63, 0.0  ;;  %v3951_v27 = vmul.f32 %v6550_v55, %v3877_v63  ;;  %v5241_v5 = vpop.f32.mrb[8].mxu0  ;;  %v3986_v16 = vsel %vm3913_vm12, %v3876_v14, %v3950_v26 }
 0x204   : > { %v3989_v36 = vsel %vm3916_vm13, %v3879_v18, %v3953_v58  ;;  %v5279_v4 = vadd.f32 %v5241_v5, %v6521_v8  ;;  %v3718_v41 = vpop.f32.mrb[9].mxu0 }
 0x205   : > { %v4644_v1 = vpack.c.bf16 %v3989_v36, %v3988_v47  ;;  %v3987_v22 = vsel %vm3914_vm14, %v3877_v63, %v3951_v27  ;;  %v5280_v31 = vadd.f32 %v3718_v41, %v6523_v25  ;;  %v5242_v33 = vpop.f32.mrb[10].mxu0 }
 0x206   : > { %v4639_v53 = vpack.c.bf16 %v3987_v22, %v3986_v16  ;;  %v3882_v30 = vadd.f32 %v5279_v4, %v6548_v62  ;;  %v5281_v0 = vadd.f32 %v5242_v33, %v6525_v37  ;;  %v3721_v32 = vpop.f32.mrb[11].mxu0 }
 0x207   : > { %4713 = vst [vmem:[%s6564_s18 + $0x18] sm:$0xff] %v4644_v1   ;;  %v3880_v34 = vadd.f32 %v5280_v31, %v6548_v62  ;;  %v5282_v38 = vadd.f32 %v3721_v32, %v6527_v35 }
 0x208   : > { %4712 = vst [vmem:[%s6564_s18 + $0x10] sm:$0xff] %v4639_v53   ;;  %v3956_v8 = vmul.f32 %v6550_v55, %v3882_v30  ;;  %v3883_v42 = vadd.f32 %v5281_v0, %v6548_v62  ;;  %vm3919_vm15 = vcmp.ge.f32.partialorder %v3882_v30, 0.0 }
 0x209   : > { %v3954_v25 = vmul.f32 %v6550_v55, %v3880_v34  ;;  %v3881_v45 = vadd.f32 %v5282_v38, %v6548_v62  ;;  %vm3917_vm0 = vcmp.ge.f32.partialorder %v3880_v34, 0.0 }
 0x20a   : > { %vm3920_vm1 = vcmp.ge.f32.partialorder %v3883_v42, 0.0  ;;  %v3957_v37 = vmul.f32 %v6550_v55, %v3883_v42  ;;  %v3992_v35 = vsel %vm3919_vm15, %v3882_v30, %v3956_v8 }
 0x20b   : > { %vm3918_vm2 = vcmp.ge.f32.partialorder %v3881_v45, 0.0  ;;  %v3955_v15 = vmul.f32 %v6550_v55, %v3881_v45  ;;  %v5245_v40 = vpop.f32.mrb[12].mxu0  ;;  %v3990_v56 = vsel %vm3917_vm0, %v3880_v34, %v3954_v25 }
 0x20c   : > { %v3993_v43 = vsel %vm3920_vm1, %v3883_v42, %v3957_v37  ;;  %v5283_v46 = vadd.f32 %v5245_v40, %v6529_v54  ;;  %v3734_v57 = vpop.f32.mrb[13].mxu0 }
 0x20d   : > { %v4654_v21 = vpack.c.bf16 %v3993_v43, %v3992_v35  ;;  %v3991_v59 = vsel %vm3918_vm2, %v3881_v45, %v3955_v15  ;;  %v5284_v2 = vadd.f32 %v3734_v57, %v6531_v9  ;;  %v5246_v24 = vpop.f32.mrb[14].mxu0 }
 0x20e   : > { %v4649_v19 = vpack.c.bf16 %v3991_v59, %v3990_v56  ;;  %v3886_v51 = vadd.f32 %v5283_v46, %v6548_v62  ;;  %v5285_v13 = vadd.f32 %v5246_v24, %v6533_v60  ;;  %v3737_v44 = vpop.f32.mrb[15].mxu0 }
 0x20f   : > { %4715 = vst [vmem:[%s6564_s18 + $0x28] sm:$0xff] %v4654_v21   ;;  %v3884_v10 = vadd.f32 %v5284_v2, %v6548_v62  ;;  %v5286_v54 = vadd.f32 %v3737_v44, %v6535_v12 }
 0x210   : > { %v5093_v6 = vpop.f32.mrb[20].mxu1  ;;  %4714 = vst [vmem:[%s6564_s18 + $0x20] sm:$0xff] %v4649_v19   ;;  %v3960_v49 = vmul.f32 %v6550_v55, %v3886_v51  ;;  %v3887_v20 = vadd.f32 %v5285_v13, %v6548_v62  ;;  %vm3923_vm3 = vcmp.ge.f32.partialorder %v3886_v51, 0.0 }
 0x211   : > { %v2204_v61 = vpop.f32.mrb[21].mxu1  ;;  %v3958_v11 = vmul.f32 %v6550_v55, %v3884_v10  ;;  %v3885_v7 = vadd.f32 %v5286_v54, %v6548_v62  ;;  %vm3921_vm4 = vcmp.ge.f32.partialorder %v3884_v10, 0.0 }
 0x212   : > { %v5094_v9 = vpop.f32.mrb[22].mxu1  ;;  %vm3924_vm5 = vcmp.ge.f32.partialorder %v3887_v20, 0.0  ;;  %v3961_v17 = vmul.f32 %v6550_v55, %v3887_v20  ;;  %v3996_v39 = vsel %vm3923_vm3, %v3886_v51, %v3960_v49 }
 0x213   : > { %v2207_v60 = vpop.f32.mrb[23].mxu1  ;;  %vm3922_vm6 = vcmp.ge.f32.partialorder %v3885_v7, 0.0  ;;  %v3959_v12 = vmul.f32 %v6550_v55, %v3885_v7  ;;  %v5249_v23 = vpop.f32.mrb[16].mxu0  ;;  %v3994_v18 = vsel %vm3921_vm4, %v3884_v10, %v3958_v11 }
 0x214   : > { %v3997_v14 = vsel %vm3924_vm5, %v3887_v20, %v3961_v17  ;;  %v5287_v28 = vadd.f32 %v5249_v23, %v6537_v50  ;;  %v3750_v29 = vpop.f32.mrb[17].mxu0 }
 0x215   : > { %v4664_v26 = vpack.c.bf16 %v3997_v14, %v3996_v39  ;;  %v3995_v63 = vsel %vm3922_vm6, %v3885_v7, %v3959_v12  ;;  %v5288_v58 = vadd.f32 %v3750_v29, %v6539_v48  ;;  %v5250_v27 = vpop.f32.mrb[18].mxu0 }
 0x216   : > { %v4659_v5 = vpack.c.bf16 %v3995_v63, %v3994_v18  ;;  %v3890_v47 = vadd.f32 %v5287_v28, %v6548_v62  ;;  %v5289_v36 = vadd.f32 %v5250_v27, %v6541_v52  ;;  %v3753_v4 = vpop.f32.mrb[19].mxu0 }
 0x217   : > { %4717 = vst [vmem:[%s6564_s18 + $0x38] sm:$0xff] %v4664_v26   ;;  %v3888_v16 = vadd.f32 %v5288_v58, %v6548_v62  ;;  %v5290_v50 = vadd.f32 %v3753_v4, %v6543_v3 }
 0x218   : > { %v5097_v41 = vpop.f32.mrb[24].mxu1  ;;  %4716 = vst [vmem:[%s6564_s18 + $0x30] sm:$0xff] %v4659_v5   ;;  %v3964_v22 = vmul.f32 %v6550_v55, %v3890_v47  ;;  %v3891_v31 = vadd.f32 %v5289_v36, %v6548_v62  ;;  %vm3927_vm7 = vcmp.ge.f32.partialorder %v3890_v47, 0.0 }
 0x219   : > { %v2220_v1 = vpop.f32.mrb[25].mxu1  ;;  %v3962_v33 = vmul.f32 %v6550_v55, %v3888_v16  ;;  %v3889_v53 = vadd.f32 %v5290_v50, %v6548_v62  ;;  %vm3925_vm8 = vcmp.ge.f32.partialorder %v3888_v16, 0.0 }
 0x21a   : > { %v5098_v48 = vpop.f32.mrb[26].mxu1  ;;  %vm3928_vm9 = vcmp.ge.f32.partialorder %v3891_v31, 0.0  ;;  %v3965_v30 = vmul.f32 %v6550_v55, %v3891_v31  ;;  %v4000_v32 = vsel %vm3927_vm7, %v3890_v47, %v3964_v22 }
 0x21b   : > { %v2223_v52 = vpop.f32.mrb[27].mxu1  ;;  %vm3926_vm10 = vcmp.ge.f32.partialorder %v3889_v53, 0.0  ;;  %v3963_v3 = vmul.f32 %v6550_v55, %v3889_v53  ;;  %v5253_v0 = vpop.f32.mrb[20].mxu0  ;;  %v3998_v42 = vsel %vm3925_vm8, %v3888_v16, %v3962_v33 }
 0x21c   : > { %v4001_v34 = vsel %vm3928_vm9, %v3891_v31, %v3965_v30  ;;  %v5291_v38 = vadd.f32 %v5253_v0, %v5093_v6  ;;  %v3766_v8 = vpop.f32.mrb[21].mxu0 }
 0x21d   : > { %v4674_v25 = vpack.c.bf16 %v4001_v34, %v4000_v32  ;;  %v3999_v45 = vsel %vm3926_vm10, %v3889_v53, %v3963_v3  ;;  %v5292_v37 = vadd.f32 %v3766_v8, %v2204_v61  ;;  %v5254_v15 = vpop.f32.mrb[22].mxu0 }
 0x21e   : > { %v4669_v40 = vpack.c.bf16 %v3999_v45, %v3998_v42  ;;  %v3894_v35 = vadd.f32 %v5291_v38, %v6548_v62  ;;  %v5293_v43 = vadd.f32 %v5254_v15, %v5094_v9  ;;  %v3769_v46 = vpop.f32.mrb[23].mxu0 }
 0x21f   : > { %4719 = vst [vmem:[%s6564_s18 + $0x48] sm:$0xff] %v4674_v25   ;;  %v3892_v56 = vadd.f32 %v5292_v37, %v6548_v62  ;;  %v5294_v21 = vadd.f32 %v3769_v46, %v2207_v60 }
 0x220   : > { %v5101_v57 = vpop.f32.mrb[28].mxu1  ;;  %4718 = vst [vmem:[%s6564_s18 + $0x40] sm:$0xff] %v4669_v40   ;;  %v3968_v2 = vmul.f32 %v6550_v55, %v3894_v35  ;;  %v3895_v24 = vadd.f32 %v5293_v43, %v6548_v62  ;;  %vm3931_vm11 = vcmp.ge.f32.partialorder %v3894_v35, 0.0 }
 0x221   : > { %v2236_v59 = vpop.f32.mrb[29].mxu1  ;;  %v3966_v51 = vmul.f32 %v6550_v55, %v3892_v56  ;;  %v3893_v13 = vadd.f32 %v5294_v21, %v6548_v62  ;;  %vm3929_vm12 = vcmp.ge.f32.partialorder %v3892_v56, 0.0 }
 0x222   : > { %v5102_v19 = vpop.f32.mrb[30].mxu1  ;;  %vm3932_vm13 = vcmp.ge.f32.partialorder %v3895_v24, 0.0  ;;  %v3969_v6 = vmul.f32 %v6550_v55, %v3895_v24  ;;  %v4004_v61 = vsel %vm3931_vm11, %v3894_v35, %v3968_v2 }
 0x223   : > { %v2239_v44 = vpop.f32.mrb[31].mxu1  ;;  %vm3930_vm14 = vcmp.ge.f32.partialorder %v3893_v13, 0.0  ;;  %v3967_v10 = vmul.f32 %v6550_v55, %v3893_v13  ;;  %v5257_v54 = vpop.f32.mrb[24].mxu0  ;;  %v4002_v11 = vsel %vm3929_vm12, %v3892_v56, %v3966_v51 }
 0x224   : > { %v4005_v49 = vsel %vm3932_vm13, %v3895_v24, %v3969_v6  ;;  %v5295_v20 = vadd.f32 %v5257_v54, %v5097_v41  ;;  %v3782_v9 = vpop.f32.mrb[25].mxu0 }
 0x225   : > { %v4684_v7 = vpack.c.bf16 %v4005_v49, %v4004_v61  ;;  %v4003_v60 = vsel %vm3930_vm14, %v3893_v13, %v3967_v10  ;;  %v5296_v17 = vadd.f32 %v3782_v9, %v2220_v1  ;;  %v5258_v12 = vpop.f32.mrb[26].mxu0 }
 0x226   : > { %v4679_v23 = vpack.c.bf16 %v4003_v60, %v4002_v11  ;;  %v3898_v39 = vadd.f32 %v5295_v20, %v6548_v62  ;;  %v5297_v14 = vadd.f32 %v5258_v12, %v5098_v48  ;;  %v3785_v28 = vpop.f32.mrb[27].mxu0 }
 0x227   : > { %4721 = vst [vmem:[%s6564_s18 + $0x58] sm:$0xff] %v4684_v7   ;;  %v3896_v18 = vadd.f32 %v5296_v17, %v6548_v62  ;;  %v5298_v26 = vadd.f32 %v3785_v28, %v2223_v52 }
 0x228   : > { %v5105_v29 = vpop.f32.mrb[32].mxu1  ;;  %4720 = vst [vmem:[%s6564_s18 + $0x50] sm:$0xff] %v4679_v23   ;;  %v3972_v58 = vmul.f32 %v6550_v55, %v3898_v39  ;;  %v3899_v27 = vadd.f32 %v5297_v14, %v6548_v62  ;;  %vm3935_vm15 = vcmp.ge.f32.partialorder %v3898_v39, 0.0 }
 0x229   : > { %v2252_v63 = vpop.f32.mrb[33].mxu1  ;;  %v3970_v47 = vmul.f32 %v6550_v55, %v3896_v18  ;;  %v3897_v36 = vadd.f32 %v5298_v26, %v6548_v62  ;;  %vm3933_vm0 = vcmp.ge.f32.partialorder %v3896_v18, 0.0 }
 0x22a   : > { %v5106_v5 = vpop.f32.mrb[34].mxu1  ;;  %vm3936_vm1 = vcmp.ge.f32.partialorder %v3899_v27, 0.0  ;;  %v3973_v41 = vmul.f32 %v6550_v55, %v3899_v27  ;;  %v4008_v1 = vsel %vm3935_vm15, %v3898_v39, %v3972_v58 }
 0x22b   : > { %v2255_v4 = vpop.f32.mrb[35].mxu1  ;;  %vm3934_vm2 = vcmp.ge.f32.partialorder %v3897_v36, 0.0  ;;  %v3971_v16 = vmul.f32 %v6550_v55, %v3897_v36  ;;  %v5261_v50 = vpop.f32.mrb[28].mxu0  ;;  %v4006_v33 = vsel %vm3933_vm0, %v3896_v18, %v3970_v47 }
 0x22c   : > { %v4009_v22 = vsel %vm3936_vm1, %v3899_v27, %v3973_v41  ;;  %v5299_v31 = vadd.f32 %v5261_v50, %v5101_v57  ;;  %v3798_v48 = vpop.f32.mrb[29].mxu0 }
 0x22d   : > { %v4694_v53 = vpack.c.bf16 %v4009_v22, %v4008_v1  ;;  %v4007_v52 = vsel %vm3934_vm2, %v3897_v36, %v3971_v16  ;;  %v5300_v30 = vadd.f32 %v3798_v48, %v2236_v59  ;;  %v5262_v3 = vpop.f32.mrb[30].mxu0 }
 0x22e   : > { %v4689_v0 = vpack.c.bf16 %v4007_v52, %v4006_v33  ;;  %v3902_v32 = vadd.f32 %v5299_v31, %v6548_v62  ;;  %v5301_v34 = vadd.f32 %v5262_v3, %v5102_v19  ;;  %v3801_v38 = vpop.f32.mrb[31].mxu0 }
 0x22f   : > { %4723 = vst [vmem:[%s6564_s18 + $0x68] sm:$0xff] %v4694_v53   ;;  %v3900_v8 = vadd.f32 %v5300_v30, %v6548_v62  ;;  %v5302_v42 = vadd.f32 %v3801_v38, %v2239_v44 }
 0x230   : > { %4722 = vst [vmem:[%s6564_s18 + $0x60] sm:$0xff] %v4689_v0   ;;  %v3976_v25 = vmul.f32 %v6550_v55, %v3902_v32  ;;  %v3903_v45 = vadd.f32 %v5301_v34, %v6548_v62  ;;  %vm3939_vm3 = vcmp.ge.f32.partialorder %v3902_v32, 0.0 }
 0x231   : > { %v3974_v37 = vmul.f32 %v6550_v55, %v3900_v8  ;;  %v3901_v15 = vadd.f32 %v5302_v42, %v6548_v62  ;;  %vm3937_vm4 = vcmp.ge.f32.partialorder %v3900_v8, 0.0 }
 0x232   : > { %vm3940_vm5 = vcmp.ge.f32.partialorder %v3903_v45, 0.0  ;;  %v3977_v40 = vmul.f32 %v6550_v55, %v3903_v45  ;;  %v4012_v46 = vsel %vm3939_vm3, %v3902_v32, %v3976_v25 }
 0x233   : > { %vm3938_vm6 = vcmp.ge.f32.partialorder %v3901_v15, 0.0  ;;  %v3975_v35 = vmul.f32 %v6550_v55, %v3901_v15  ;;  %v5265_v43 = vpop.f32.mrb[32].mxu0  ;;  %v4010_v59 = vsel %vm3937_vm4, %v3900_v8, %v3974_v37 }
 0x234   : > { %v4013_v57 = vsel %vm3940_vm5, %v3903_v45, %v3977_v40  ;;  %v5303_v56 = vadd.f32 %v5265_v43, %v5105_v29  ;;  %v3814_v21 = vpop.f32.mrb[33].mxu0 }
 0x235   : > { %v4704_v2 = vpack.c.bf16 %v4013_v57, %v4012_v46  ;;  %v4011_v24 = vsel %vm3938_vm6, %v3901_v15, %v3975_v35  ;;  %v5304_v19 = vadd.f32 %v3814_v21, %v2252_v63  ;;  %v5266_v51 = vpop.f32.mrb[34].mxu0 }
 0x236   : > { %v4699_v13 = vpack.c.bf16 %v4011_v24, %v4010_v59  ;;  %v3906_v44 = vadd.f32 %v5303_v56, %v6548_v62  ;;  %v5305_v6 = vadd.f32 %v5266_v51, %v5106_v5  ;;  %v3817_v10 = vpop.f32.mrb[35].mxu0 }
 0x237   : > { %4725 = vst [vmem:[%s6564_s18 + $0x78] sm:$0xff] %v4704_v2   ;;  %v3904_v54 = vadd.f32 %v5304_v19, %v6548_v62  ;;  %v5306_v61 = vadd.f32 %v3817_v10, %v2255_v4 }
 0x238   : > { %4724 = vst [vmem:[%s6564_s18 + $0x70] sm:$0xff] %v4699_v13   ;;  %vm3943_vm7 = vcmp.ge.f32.partialorder %v3906_v44, 0.0  ;;  %v3980_v49 = vmul.f32 %v6550_v55, %v3906_v44  ;;  %v3907_v20 = vadd.f32 %v5305_v6, %v6548_v62 }
 0x239   : > { %v3978_v9 = vmul.f32 %v6550_v55, %v3904_v54  ;;  %v3905_v11 = vadd.f32 %v5306_v61, %v6548_v62  ;;  %vm3941_vm8 = vcmp.ge.f32.partialorder %v3904_v54, 0.0 }
 0x23a   : > { %v4016_v7 = vsel %vm3943_vm7, %v3906_v44, %v3980_v49  ;;  %vm3944_vm9 = vcmp.ge.f32.partialorder %v3907_v20, 0.0  ;;  %v3981_v60 = vmul.f32 %v6550_v55, %v3907_v20 }
 0x23b   : > { %v4624_v17 = vpack.c.bf16 %v4016_v7, %v4016_v7  ;;  %vm3942_vm10 = vcmp.ge.f32.partialorder %v3905_v11, 0.0  ;;  %v3979_v12 = vmul.f32 %v6550_v55, %v3905_v11  ;;  %v4014_v39 = vsel %vm3941_vm8, %v3904_v54, %v3978_v9 }
 0x23c   : > { %v4017_v23 = vsel %vm3944_vm9, %v3907_v20, %v3981_v60 }
 0x23d   : > { %4196 = vst [vmem:[%s6564_s18 + $0x88] sm:$0xf] %v4624_v17  ;;  %v4625_v14 = vpack.c.bf16 %v4017_v23, %v4017_v23  ;;  %v4015_v28 = vsel %vm3942_vm10, %v3905_v11, %v3979_v12 }
 0x23e   : > { %v4709_v29 = vpack.c.bf16 %v4015_v28, %v4014_v39 }
 0x23f   : > { %4197 = vst [vmem:[%s6564_s18 + $0x8c] sm:$0x7] %v4625_v14 }
 0x240   : > { %4726 = vst [vmem:[%s6564_s18 + $0x80] sm:$0xff] %v4709_v29  }
 0x241 PF: > { %s15_s17 = sadd.s32 1, %s5677_s17  }
 0x242   : > { %p12_p4 = scmp.ge.s32.totalorder %s15_s17, 4  }
 0x244   :  { %14 = sbr.rel (!%p12_p4) target bundleno = 2 (0x2), region = 74 }

// kernel: feature_extractor_forward.10
= control target key start
LH: loop header
LB: loop body
LE: loop exit
PB: predicated region body
PF: predicated region fallthrough
CT: control target
= control target key end

     0   :  { %s1667_s17 = smov 0   ;;  %s1850_s0 = inlined_call_operand.vmem [shape: bf16[2,4,25,64], index: 0, kind: input, shape index: {}]   ;;  %s1851_s1 = inlined_call_operand.vmem [shape: bf16[9,64,128], index: 1, kind: input, shape index: {}]   ;;  %s1852_s2 = inlined_call_operand.vmem [shape: f32[1,128], index: 2, kind: input, shape index: {}]   ;;  %s1853_s3 = inlined_call_operand.<no memory space> [shape: f32[1,1], index: 3, kind: input, shape index: {}]   ;;  %s1854_s4 = inlined_call_operand.vmem [shape: bf16[2,19,128], index: 4, kind: output, shape index: {}]  }
   0x1   :  { %9 = sst [smem:[#allocation2]] %s1853_s3 }
   0x2 LB: > { %s1244_s18 = sadd.s32 4294967295, %s1637_s17   ;;  %p1248_p0 = scmp.ge.s32.totalorder %s1637_s17, 1  ;;  %s1637_s17 = sphi %s1667_s17, %s15_s17  }
   0x3   : > { %p163_p1 = scmp.lt.s32.totalorder %s1637_s17, 3 }
   0x5   : > { %p164_p2 = pnand %p1248_p0, %p163_p1 }
   0x6   : > { %v1581_v0 = vld [vmem:[%s1851_s1 + $0x20] sm:$0xff] (!%p164_p2)   ;;  %p189_p3 = scmp.lt.s32.totalorder (!%p164_p2), %s1244_s18, 1  ;;  %v1583_v2 = vld [vmem:[%s1851_s1 + $0x28] sm:$0xff] (!%p164_p2)   ;;  %v1585_v4 = vld [vmem:[%s1851_s1 + $0x30] sm:$0xff] (!%p164_p2)   ;;  %vm256_vm0 = vcmask (!%p164_p2), 523264   ;;  %vm1062_vm3 = vcmask (!%p164_p2), 1044480  }
   0x7   : > { %167 = sbr.rel (%p164_p2) target bundleno = 312 (0x138), region = 36  ;;  %v1582_v1 = vld [vmem:[%s1851_s1] sm:$0xff] (!%p164_p2)   ;;  %1464 = vmatprep.subr.bf16.mxu0 (!%p164_p2), %v1581_v0  ;;  %v1584_v3 = vld [vmem:[%s1851_s1 + $0x8] sm:$0xff] (!%p164_p2)   ;;  %v1586_v5 = vld [vmem:[%s1851_s1 + $0x10] sm:$0xff] (!%p164_p2)   ;;  %vm406_vm1 = vsmask.f32 (!%p164_p2), 7424 }
   0x8   : > { %1476 = vmatprep.subr.bf16.mxu1 (!%p164_p2), %v1582_v1  ;;  %1465 = vmatpush3.bf16.msra.mxu0 (!%p164_p2), %v1581_v0  ;;  %v1587_v6 = vld [vmem:[%s1851_s1 + $0x38] sm:$0xff] (!%p164_p2)   ;;  %v1595_v15 = vld [vmem:[%s1851_s1 + $0x40] sm:$0xff] (!%p164_p2)   ;;  %v1597_v21 = vld [vmem:[%s1851_s1 + $0x48] sm:$0xff] (!%p164_p2)   ;;  %vm825_vm2 = vsmask.f32 (!%p164_p2), 5376  ;;  %s1157_s3 = sld [smem:[#allocation2]] (!%p164_p2) }
   0x9   : > { %1477 = vmatpush3.bf16.msra.mxu1 (!%p164_p2), %v1582_v1  ;;  %1466 = vmatprep.subr.bf16.mxu0 (!%p164_p2), %v1583_v2  ;;  %v1588_v9 = vld [vmem:[%s1851_s1 + $0x18] sm:$0xff] (!%p164_p2)   ;;  %v1596_v18 = vld [vmem:[%s1851_s1 + $0x60] sm:$0xff] (!%p164_p2)   ;;  %v1598_v23 = vld [vmem:[%s1851_s1 + $0x68] sm:$0xff] (!%p164_p2)   ;;  %vm1183_vm4 = vcmask (!%p164_p2), 1041408   ;;  %vm1184_vm5 = vsmask.f32 (!%p164_p2), 1280 }
   0xa   : > { %1478 = vmatprep.subr.bf16.mxu1 (!%p164_p2), %v1584_v3  ;;  %v1599_v26 = vld [vmem:[%s1851_s1 + $0x50] sm:$0xff] (!%p164_p2)   ;;  %v1601_v31 = vld [vmem:[%s1851_s1 + $0x58] sm:$0xff] (!%p164_p2)   ;;  %v1603_v39 = vld [vmem:[%s1851_s1 + $0x80] sm:$0xff] (!%p164_p2)  }
   0xb   : > { %v1600_v27 = vld [vmem:[%s1851_s1 + $0x70] sm:$0xff] (!%p164_p2)   ;;  %v1602_v32 = vld [vmem:[%s1851_s1 + $0x78] sm:$0xff] (!%p164_p2)   ;;  %v1606_v41 = vld [vmem:[%s1851_s1 + $0xa0] sm:$0xff] (!%p164_p2)  }
   0xc   : > { %1467 = vmatpush3.bf16.msra.mxu0 (!%p164_p2), %v1583_v2  ;;  %v1607_v44 = vld [vmem:[%s1851_s1 + $0x88] sm:$0xff] (!%p164_p2)   ;;  %v1609_v54 = vld [vmem:[%s1851_s1 + $0x90] sm:$0xff] (!%p164_p2)   ;;  %v1611_v60 = vld [vmem:[%s1851_s1 + $0x98] sm:$0xff] (!%p164_p2)  }
   0xd   : > { %1479 = vmatpush3.bf16.msra.mxu1 (!%p164_p2), %v1584_v3  ;;  %1468 = vmatprep.subr.bf16.mxu0 (!%p164_p2), %v1585_v4  ;;  %v1608_v48 = vld [vmem:[%s1851_s1 + $0xa8] sm:$0xff] (!%p164_p2)   ;;  %v1610_v56 = vld [vmem:[%s1851_s1 + $0xb0] sm:$0xff] (!%p164_p2)   ;;  %v1612_v62 = vld [vmem:[%s1851_s1 + $0xb8] sm:$0xff] (!%p164_p2)  }
   0xe   : > { %s1856_s18 = smov (!%p189_p3, %s1244_s18), 1  ;;  %1480 = vmatprep.subr.bf16.mxu1 %v1586_v5  ;;  %v1615_v0 = vld [vmem:[%s1851_s1 + $0xc0] sm:$0xff]   ;;  %vm1185_vm7 = vmand %vm1183_vm4, %vm1184_vm5 }
   0xf   : > { %s1401_s28 = sshll.u32 %s1856_s18, 6  ;;  %s1572_s21 = smul.u32 12, %s1856_s18 }
  0x10   : > { %s1699_s7 = scalar_lea.vmem %s1850_s0, %s1401_s28  ;;  %1469 = vmatpush3.bf16.msra.mxu0 %v1585_v4 }
  0x11   : > { %v1252_v7 = vld [vmem:[%s1699_s7 + $0x10] sm:$0xf]  ;;  %v1706_v8 = vld [vmem:[%s1699_s7 + $0x14] sm:$0xf]  ;;  %v200_v11 = vld [vmem:[%s1699_s7] sm:$0xf]  ;;  %1481 = vmatpush3.bf16.msra.mxu1 %v1586_v5  ;;  %1470 = vmatprep.subr.bf16.mxu0 %v1587_v6  ;;  %s198_s26 = scalar_lea.vmem %s1854_s4, %s1572_s21 }
  0x12   : > { %v1263_v10 = vcombine.low %v1252_v7, %v1706_v8  ;;  %v1714_v12 = vld [vmem:[%s1699_s7 + $0x4] sm:$0xf]  ;;  %1482 = vmatprep.subr.bf16.mxu1 %v1588_v9  ;;  %v1593_v17 = vld [vmem:[%s1699_s7 + $0x18] ss:$0 sps:$4 sm:$0x33]   ;;  %v1613_v49 = vld [vmem:[%s1699_s7 + $0x30] sm:$0xff]  }
  0x13   : > { %v1271_v13 = vcombine.low %v200_v11, %v1714_v12  ;;  %v1594_v20 = vld [vmem:[%s1699_s7 + $0x8] ss:$0 sps:$4 sm:$0x33]   ;;  %v1604_v29 = vld [vmem:[%s1699_s7 + $0x20] sm:$0xff]   ;;  %v1361_v33 = vld [vmem:[%s1699_s7 + $0x10] sm:$0xc] }
  0x14   : > { %1472 = vmatprep.mubr.msk.bf16.mxu0 %vm256_vm0, %v1263_v10  ;;  %1471 = vmatpush3.bf16.msra.mxu0 %v1587_v6  ;;  %v413_v22 = vshll.u32 %v1594_v20, 16  ;;  %v1745_v30 = vld [vmem:[%s1699_s7 + $0x28] ss:$0 sps:$4 sm:$0x33]   ;;  %v417_v34 = vshrl.u32 %v1594_v20, 16  ;;  %v716_v35 = vshll.u32 %v1604_v29, 16  ;;  %v1371_v43 = vcombine.low %v1361_v33, %v1706_v8 }
  0x15   : > { %v409_v14 = vshll.u32 %v1271_v13, 16  ;;  %1484 = vmatprep.mubr.msk.bf16.mxu1 %vm256_vm0, %v1271_v13  ;;  %v407_v16 = vshrl.u32 %v1271_v13, 16  ;;  %1483 = vmatpush3.bf16.msra.mxu1 %v1588_v9  ;;  %v808_v36 = vld [vmem:[%s1699_s7] sm:$0xc]  ;;  %v714_v37 = vshrl.u32 %v1604_v29, 16  ;;  %v720_v38 = vshll.u32 %v1745_v30, 16 }
  0x16   : > { %1488 = vmatprep.subr.bf16.mxu0 %v1595_v15  ;;  %1500 = vmatprep.subr.bf16.mxu1 %v1596_v18  ;;  %v415_v25 = vrot.slane %v413_v22, 1  ;;  %v718_v40 = vrot.slane %v716_v35, 1  ;;  %v1353_v47 = vcombine.low %v808_v36, %v1714_v12  ;;  %v942_v50 = vshrl.u32 %v1371_v43, 16  ;;  %v1623_v63 = vld [vmem:[%s1699_s7 + $0x8] ss:$0 sps:$4 sm:$0xff]   ;;  %v1616_v6 = vld [vmem:[%s1851_s1 + $0xe0] sm:$0xff]  }
  0x17   : > { %v411_v19 = vrot.slane %v409_v14, 1  ;;  %1473 = vmatmul.mubr.msk.bf16.vlgmr.msra.gmra.mrb[0].mxu0 %vm256_vm0, %v1593_v17  ;;  %v722_v46 = vrot.slane %v720_v38, 1  ;;  %v945_v51 = vshll.u32 %v1371_v43, 16  ;;  %v724_v1 = vshrl.u32 %v1745_v30, 16  ;;  %v1625_v4 = vld [vmem:[%s1699_s7 + $0x18] ss:$0 sps:$4 sm:$0xff]  }
  0x18   : > { %1485 = vmatmul.mubr.msk.bf16.vlgmr.msra.gmra.mrb[0].mxu1 %vm256_vm0, %v1594_v20  ;;  %1489 = vmatpush3.bf16.msra.mxu0 %v1595_v15  ;;  %v419_v42 = vor.u32 %v417_v34, %v415_v25  ;;  %v719_v45 = vor.u32 %v718_v40, %v714_v37  ;;  %v827_v53 = vshrl.u32 %v1353_v47, 16  ;;  %v830_v55 = vshll.u32 %v1353_v47, 16  ;;  %v1614_v5 = vld [vmem:[%s1699_s7 + $0x38] ss:$0 sps:$4 sm:$0x33]   ;;  %v1617_v12 = vld [vmem:[%s1851_s1 + $0xc8] sm:$0xff]  }
  0x19   : > { %v412_v24 = vor.u32 %v411_v19, %v407_v16  ;;  %1501 = vmatpush3.bf16.msra.mxu1 %v1596_v18  ;;  %1490 = vmatprep.subr.bf16.mxu0 %v1597_v21  ;;  %v944_v57 = vrot.slane %v942_v50, 2  ;;  %v947_v58 = vrot.slane %v945_v51, 3  ;;  %v835_v2 = vshrl.u32 %v1623_v63, 16  ;;  %v1618_v18 = vld [vmem:[%s1851_s1 + $0xe8] sm:$0xff]   ;;  %v1619_v22 = vld [vmem:[%s1851_s1 + $0xd0] sm:$0xff]   ;;  %v1628_v34 = vld [vmem:[%s1851_s1 + $0x118] sm:$0xff]  }
  0x1a   : > { %1502 = vmatprep.subr.bf16.mxu1 %v1598_v23  ;;  %1508 = vmatprep.mubr.msk.bf16.mxu1 %vm256_vm0, %v1604_v29  ;;  %v723_v52 = vsel %vm406_vm1, %v719_v45, %v722_v46  ;;  %v829_v59 = vrot.slane %v827_v53, 2  ;;  %v832_v61 = vrot.slane %v830_v55, 3  ;;  %v838_v3 = vshll.u32 %v1623_v63, 16  ;;  %v1627_v33 = vld [vmem:[%s1851_s1 + $0x110] sm:$0xff]  }
  0x1b   : > { %v416_v28 = vsel %vm406_vm1, %v412_v24, %v415_v25  ;;  %v837_v7 = vrot.slane %v835_v2, 2  ;;  %v950_v9 = vshrl.u32 %v1625_v4, 16  ;;  %v953_v10 = vshll.u32 %v1625_v4, 16  ;;  %v1621_v24 = vld [vmem:[%s1851_s1 + $0xd8] sm:$0xff]  }
  0x1c   : > { %1491 = vmatpush3.bf16.msra.mxu0 %v1597_v21  ;;  %1496 = vmatprep.mubr.msk.bf16.mxu0 %vm256_vm0, %v416_v28  ;;  %v840_v8 = vrot.slane %v838_v3, 3  ;;  %v726_v11 = vor.u32 %v724_v1, %v722_v46  ;;  %v833_v13 = vor.u32 %v832_v61, %v829_v59  ;;  %v948_v14 = vor.u32 %v947_v58, %v944_v57  ;;  %v1622_v25 = vld [vmem:[%s1851_s1 + $0xf8] sm:$0xff]   ;;  %v1624_v28 = vld [vmem:[%s1851_s1 + $0x100] sm:$0xff]  }
  0x1d   : > { %1503 = vmatpush3.bf16.msra.mxu1 %v1598_v23  ;;  %1492 = vmatprep.subr.bf16.mxu0 %v1599_v26  ;;  %v952_v16 = vrot.slane %v950_v9, 2  ;;  %v955_v17 = vrot.slane %v953_v10, 3  ;;  %v1620_v23 = vld [vmem:[%s1851_s1 + $0xf0] sm:$0xff]  }
  0x1e   : > { %1504 = vmatprep.subr.bf16.mxu1 %v1600_v27  ;;  %v841_v15 = vor.u32 %v840_v8, %v837_v7 }
  0x1f   : > { %v956_v19 = vor.u32 %v955_v17, %v952_v16 }
  0x20   : > { %1493 = vmatpush3.bf16.msra.mxu0 %v1599_v26  ;;  %v842_v20 = vsel %vm825_vm2, %v833_v13, %v841_v15  ;;  %v1629_v26 = vld [vmem:[%s1699_s7] sm:$0xf8]  }
  0x21   : > { %1505 = vmatpush3.bf16.msra.mxu1 %v1600_v27  ;;  %1494 = vmatprep.subr.bf16.mxu0 %v1601_v31  ;;  %v957_v21 = vsel %vm825_vm2, %v948_v14, %v956_v19  ;;  %v1630_v27 = vld [vmem:[%s1699_s7 + $0x8] sm:$0x1f]   ;;  %v1063_v29 = vrot.slane %v1629_v26, 3 }
  0x22   : > { %1506 = vmatprep.subr.bf16.mxu1 %v1602_v32 }
  0x24   : > { %1495 = vmatpush3.bf16.msra.mxu0 %v1601_v31  ;;  %v1626_v31 = vld [vmem:[%s1851_s1 + $0x108] sm:$0xff]  }
  0x25   : > { %1507 = vmatpush3.bf16.msra.mxu1 %v1602_v32  ;;  %1512 = vmatprep.subr.bf16.mxu0 %v1603_v39 }
  0x26   : > { %1524 = vmatprep.subr.bf16.mxu1 %v1606_v41 }
  0x27   : > { %1497 = vmatmul.mubr.msk.bf16.vlgmr.msra.gmra.mrb[4].mxu0 %vm256_vm0, %v419_v42 }
  0x28   : > { %1513 = vmatpush3.bf16.msra.mxu0 %v1603_v39  ;;  %1509 = vmatmul.mubr.msk.bf16.vlgmr.msra.gmra.mrb[4].mxu1 %vm256_vm0, %v1745_v30  ;;  %v1064_v30 = vrot.slane %v1630_v27, 3 }
  0x29   : > { %1525 = vmatpush3.bf16.msra.mxu1 %v1606_v41  ;;  %1514 = vmatprep.subr.bf16.mxu0 %v1607_v44 }
  0x2a   : > { %1526 = vmatprep.subr.bf16.mxu1 %v1608_v48  ;;  %1520 = vmatprep.mubr.msk.bf16.mxu0 %vm256_vm0, %v1613_v49  ;;  %v1065_v32 = vsel %vm1062_vm3, %v1063_v29, %v1064_v30 }
  0x2b   : > { %1532 = vmatprep.mubr.msk.bf16.mxu1 %vm256_vm0, %v723_v52 }
  0x2c   : > { %1515 = vmatpush3.bf16.msra.mxu0 %v1607_v44 }
  0x2d   : > { %1527 = vmatpush3.bf16.msra.mxu1 %v1608_v48  ;;  %1516 = vmatprep.subr.bf16.mxu0 %v1609_v54 }
  0x2e   : > { %1528 = vmatprep.subr.bf16.mxu1 %v1610_v56 }
  0x30   : > { %1517 = vmatpush3.bf16.msra.mxu0 %v1609_v54 }
  0x31   : > { %1529 = vmatpush3.bf16.msra.mxu1 %v1610_v56  ;;  %1518 = vmatprep.subr.bf16.mxu0 %v1611_v60 }
  0x32   : > { %1530 = vmatprep.subr.bf16.mxu1 %v1612_v62 }
  0x34   : > { %1519 = vmatpush3.bf16.msra.mxu0 %v1611_v60 }
  0x35   : > { %1531 = vmatpush3.bf16.msra.mxu1 %v1612_v62  ;;  %1536 = vmatprep.subr.bf16.mxu0 %v1615_v0 }
  0x36   : > { %1548 = vmatprep.subr.bf16.mxu1 %v1616_v6 }
  0x37   : > { %1521 = vmatmul.mubr.msk.bf16.vlgmr.msra.gmra.mrb[8].mxu0 %vm256_vm0, %v1614_v5 }
  0x38   : > { %1537 = vmatpush3.bf16.msra.mxu0 %v1615_v0  ;;  %1533 = vmatmul.mubr.msk.bf16.vlgmr.msra.gmra.mrb[8].mxu1 %vm256_vm0, %v726_v11 }
  0x39   : > { %1549 = vmatpush3.bf16.msra.mxu1 %v1616_v6  ;;  %1538 = vmatprep.subr.bf16.mxu0 %v1617_v12 }
  0x3a   : > { %1550 = vmatprep.subr.bf16.mxu1 %v1618_v18  ;;  %1544 = vmatprep.mubr.msk.bf16.mxu0 %vm256_vm0, %v842_v20 }
  0x3b   : > { %1556 = vmatprep.mubr.msk.bf16.mxu1 %vm256_vm0, %v957_v21 }
  0x3c   : > { %1539 = vmatpush3.bf16.msra.mxu0 %v1617_v12 }
  0x3d   : > { %1551 = vmatpush3.bf16.msra.mxu1 %v1618_v18  ;;  %1540 = vmatprep.subr.bf16.mxu0 %v1619_v22 }
  0x3e   : > { %1552 = vmatprep.subr.bf16.mxu1 %v1620_v23 }
  0x40   : > { %1541 = vmatpush3.bf16.msra.mxu0 %v1619_v22 }
  0x41   : > { %1553 = vmatpush3.bf16.msra.mxu1 %v1620_v23  ;;  %1542 = vmatprep.subr.bf16.mxu0 %v1621_v24 }
  0x42   : > { %1554 = vmatprep.subr.bf16.mxu1 %v1622_v25 }
  0x44   : > { %1543 = vmatpush3.bf16.msra.mxu0 %v1621_v24 }
  0x45   : > { %1555 = vmatpush3.bf16.msra.mxu1 %v1622_v25  ;;  %1560 = vmatprep.subr.bf16.mxu0 %v1624_v28  ;;  %v1395_v25 = vld [vmem:[%s1852_s2] ss:$0 sm:$0xff] }
  0x47   : > { %1545 = vmatmul.mubr.msk.bf16.vlgmr.msra.gmra.mrb[12].mxu0 %vm256_vm0, %v841_v15 }
  0x48   : > { %1561 = vmatpush3.bf16.msra.mxu0 %v1624_v28  ;;  %1557 = vmatmul.mubr.msk.bf16.vlgmr.msra.gmra.mrb[12].mxu1 %vm256_vm0, %v956_v19  ;;  %v1161_v28 = vstv %s1157_s3 }
  0x49   : > { %1562 = vmatprep.subr.bf16.mxu0 %v1626_v31  ;;  %1568 = vmatprep.mubr.msk.bf16.mxu0 %vm256_vm0, %v1065_v32 }
  0x4c   : > { %1563 = vmatpush3.bf16.msra.mxu0 %v1626_v31 }
  0x4d   : > { %1564 = vmatprep.subr.bf16.mxu0 %v1627_v33 }
  0x50   : > { %1565 = vmatpush3.bf16.msra.mxu0 %v1627_v33 }
  0x51   : > { %1566 = vmatprep.subr.bf16.mxu0 %v1628_v34 }
  0x54   : > { %1567 = vmatpush3.bf16.msra.mxu0 %v1628_v34 }
  0x57   : > { %1569 = vmatmul.mubr.msk.bf16.vlgmr.msra.gmra.mrb[16].mxu0 %vm256_vm0, %v1064_v30 }
  0xea   : > { %v1474_v35 = vpop.f32.mrb[0].mxu0 }
  0xeb   : > { %v1486_v36 = vpop.f32.mrb[0].mxu1  ;;  %v297_v37 = vpop.f32.mrb[1].mxu0 }
  0xec   : > { %v392_v38 = vadd.f32 %v1486_v36, %v1474_v35  ;;  %v383_v39 = vpop.f32.mrb[1].mxu1  ;;  %v1475_v40 = vpop.f32.mrb[2].mxu0 }
  0xed   : > { %v384_v41 = vadd.f32 %v383_v39, %v297_v37  ;;  %v1487_v42 = vpop.f32.mrb[2].mxu1  ;;  %v300_v43 = vpop.f32.mrb[3].mxu0  ;;  %v1186_v39 = vld [vmem:[%s198_s26 + $0x8] sm:$0x3] }
  0xee   : > { %v386_v44 = vpop.f32.mrb[3].mxu1 }
  0xef   : > { %v387_v45 = vadd.f32 %v386_v44, %v300_v43 }
  0xfa   : > { %v1498_v46 = vpop.f32.mrb[4].mxu0 }
  0xfb   : > { %v500_v47 = vadd.f32 %v1498_v46, %v392_v38  ;;  %v484_v48 = vpop.f32.mrb[5].mxu0  ;;  %v1510_v49 = vpop.f32.mrb[4].mxu1 }
  0xfc   : > { %v498_v50 = vadd.f32 %v484_v48, %v384_v41  ;;  %v1499_v51 = vpop.f32.mrb[6].mxu0  ;;  %v586_v52 = vpop.f32.mrb[5].mxu1 }
  0xfd   : > { %v602_v53 = vadd.f32 %v1510_v49, %v500_v47  ;;  %v487_v54 = vpop.f32.mrb[7].mxu0  ;;  %v1511_v55 = vpop.f32.mrb[6].mxu1 }
  0xfe   : > { %v499_v56 = vadd.f32 %v487_v54, %v387_v45  ;;  %v600_v57 = vadd.f32 %v586_v52, %v498_v50  ;;  %v589_v58 = vpop.f32.mrb[7].mxu1 }
 0x100   : > { %v601_v59 = vadd.f32 %v589_v58, %v499_v56 }
 0x10a   : > { %v1522_v60 = vpop.f32.mrb[8].mxu0 }
 0x10b   : > { %v704_v61 = vadd.f32 %v1522_v60, %v602_v53  ;;  %v688_v62 = vpop.f32.mrb[9].mxu0  ;;  %v1534_v63 = vpop.f32.mrb[8].mxu1 }
 0x10c   : > { %v702_v0 = vadd.f32 %v688_v62, %v600_v57  ;;  %v1523_v1 = vpop.f32.mrb[10].mxu0  ;;  %v791_v2 = vpop.f32.mrb[9].mxu1 }
 0x10d   : > { %v807_v3 = vadd.f32 %v1534_v63, %v704_v61  ;;  %v691_v4 = vpop.f32.mrb[11].mxu0  ;;  %v1535_v5 = vpop.f32.mrb[10].mxu1 }
 0x10e   : > { %v703_v6 = vadd.f32 %v691_v4, %v601_v59  ;;  %v805_v7 = vadd.f32 %v791_v2, %v702_v0  ;;  %v794_v8 = vpop.f32.mrb[11].mxu1 }
 0x110   : > { %v806_v9 = vadd.f32 %v794_v8, %v703_v6 }
 0x11a   : > { %v1546_v10 = vpop.f32.mrb[12].mxu0 }
 0x11b   : > { %v923_v11 = vadd.f32 %v1546_v10, %v807_v3  ;;  %v907_v12 = vpop.f32.mrb[13].mxu0  ;;  %v1558_v13 = vpop.f32.mrb[12].mxu1 }
 0x11c   : > { %v921_v14 = vadd.f32 %v907_v12, %v805_v7  ;;  %v1547_v15 = vpop.f32.mrb[14].mxu0  ;;  %v1022_v16 = vpop.f32.mrb[13].mxu1 }
 0x11d   : > { %v1038_v17 = vadd.f32 %v1558_v13, %v923_v11  ;;  %v910_v18 = vpop.f32.mrb[15].mxu0  ;;  %v1559_v19 = vpop.f32.mrb[14].mxu1 }
 0x11e   : > { %v922_v20 = vadd.f32 %v910_v18, %v806_v9  ;;  %v1036_v21 = vadd.f32 %v1022_v16, %v921_v14  ;;  %v1025_v22 = vpop.f32.mrb[15].mxu1 }
 0x120   : > { %v1037_v23 = vadd.f32 %v1025_v22, %v922_v20 }
 0x12a   : > { %v1570_v24 = vpop.f32.mrb[16].mxu0 }
 0x12b   : > { %v1146_v26 = vadd.f32 %v1570_v24, %v1038_v17  ;;  %v1130_v27 = vpop.f32.mrb[17].mxu0 }
 0x12c   : > { %v1144_v29 = vadd.f32 %v1130_v27, %v1036_v21  ;;  %v1571_v30 = vpop.f32.mrb[18].mxu0 }
 0x12d   : > { %v1156_v31 = vadd.f32 %v1395_v25, %v1146_v26  ;;  %v1133_v32 = vpop.f32.mrb[19].mxu0 }
 0x12e   : > { %v1154_v33 = vadd.f32 %v1395_v25, %v1144_v29  ;;  %v1145_v34 = vadd.f32 %v1133_v32, %v1037_v23 }
 0x12f   : > { %vm1160_vm6 = vcmp.ge.f32.partialorder %v1156_v31, 0.0  ;;  %v1164_v35 = vmul.f32 %v1161_v28, %v1156_v31 }
 0x130   : > { %v1162_v36 = vmul.f32 %v1161_v28, %v1154_v33  ;;  %v1155_v37 = vadd.f32 %v1395_v25, %v1145_v34  ;;  %vm1158_vm8 = vcmp.ge.f32.partialorder %v1154_v33, 0.0 }
 0x131   : > { %v1167_v38 = vsel %vm1160_vm6, %v1156_v31, %v1164_v35 }
 0x132   : > { %v1404_v40 = vpack.c.bf16 %v1167_v38, %v1167_v38  ;;  %vm1159_vm9 = vcmp.ge.f32.partialorder %v1155_v37, 0.0  ;;  %v1163_v41 = vmul.f32 %v1161_v28, %v1155_v37  ;;  %v1165_v43 = vsel %vm1158_vm8, %v1154_v33, %v1162_v36 }
 0x134   : > { %v1187_v42 = vsel %vm1185_vm7, %v1404_v40, %v1186_v39  ;;  %v1166_v44 = vsel %vm1159_vm9, %v1155_v37, %v1163_v41 }
 0x135   : > { %1188 = vst [vmem:[%s198_s26 + $0x8] sm:$0x3] %v1187_v42  ;;  %v1408_v45 = vpack.c.bf16 %v1166_v44, %v1165_v43 }
 0x137   : > { %1409 = vst [vmem:[%s198_s26] sm:$0xff] %v1408_v45  }
 0x138 PF: > { %s15_s17 = sadd.s32 1, %s1637_s17  }
 0x139   : > { %p12_p4 = scmp.ge.s32.totalorder %s15_s17, 4  }
 0x13b   :  { %14 = sbr.rel (!%p12_p4) target bundleno = 2 (0x2), region = 77 }

// kernel: feature_extractor_forward.9
= control target key start
LH: loop header
LB: loop body
LE: loop exit
PB: predicated region body
PF: predicated region fallthrough
CT: control target
= control target key end

     0   :  { %s2554_s17 = smov 0   ;;  %s3101_s0 = inlined_call_operand.vmem [shape: bf16[2,1,100,64], index: 0, kind: input, shape index: {}]   ;;  %s3102_s1 = inlined_call_operand.vmem [shape: bf16[9,64,128], index: 1, kind: input, shape index: {}]   ;;  %s3103_s2 = inlined_call_operand.vmem [shape: f32[1,128], index: 2, kind: input, shape index: {}]   ;;  %s3104_s3 = inlined_call_operand.<no memory space> [shape: f32[1,1], index: 3, kind: input, shape index: {}]   ;;  %s3105_s4 = inlined_call_operand.vmem [shape: bf16[2,78,128], index: 4, kind: output, shape index: {}]  }
   0x1   :  { %9 = sst [smem:[#allocation2]] %s3104_s3 }
   0x2 LB: > { %s1875_s18 = sadd.s32 4294967295, %s2522_s17   ;;  %p1879_p0 = scmp.ge.s32.totalorder %s2522_s17, 1  ;;  %s2522_s17 = sphi %s2554_s17, %s15_s17  }
   0x3   : > { %p163_p1 = scmp.lt.s32.totalorder %s2522_s17, 3 }
   0x5   : > { %p164_p2 = pnand %p1879_p0, %p163_p1 }
   0x6   : > { %v2453_v0 = vld [vmem:[%s3102_s1 + $0x20] sm:$0xff] (!%p164_p2)   ;;  %v2524_v1 = vmov (!%p164_p2), 0.0   ;;  %v2454_v2 = vld [vmem:[%s3102_s1 + $0x28] sm:$0xff] (!%p164_p2)   ;;  %p189_p3 = scmp.lt.s32.totalorder (!%p164_p2), %s1875_s18, 1  ;;  %vm2525_vm0 = vmmov (!%p164_p2), 0   ;;  %v2455_v3 = vld [vmem:[%s3102_s1 + $0x30] sm:$0xff] (!%p164_p2)  }
   0x7   : > { %167 = sbr.rel (%p164_p2) target bundleno = 428 (0x1ac), region = 36  ;;  %2433 = vmatprep.subr.bf16.mxu1 (!%p164_p2), %v2524_v1  ;;  %2181 = vmatprep.subr.bf16.mxu0 (!%p164_p2), %v2524_v1  ;;  %v2456_v4 = vld [vmem:[%s3102_s1 + $0x38] sm:$0xff] (!%p164_p2)   ;;  %vm317_vm1 = vcmask (!%p164_p2), 523264   ;;  %vm253_vm2 = vsmask.f32 (!%p164_p2), 7424  ;;  %v2459_v20 = vld [vmem:[%s3102_s1] sm:$0xff] (!%p164_p2)  }
   0x8   : > { %2437 = vmatpush3.bf16.msra.mxu1 (!%p164_p2), %v2453_v0  ;;  %2182 = vmatpush3.bf16.msra.mxu0 (!%p164_p2), %v2453_v0  ;;  %v2464_v30 = vld [vmem:[%s3102_s1 + $0x40] sm:$0xff] (!%p164_p2)   ;;  %v2460_v32 = vld [vmem:[%s3102_s1 + $0x8] sm:$0xff] (!%p164_p2)   ;;  %v2465_v40 = vld [vmem:[%s3102_s1 + $0x10] sm:$0xff] (!%p164_p2)   ;;  %vm530_vm3 = vcmask (!%p164_p2), 1046528   ;;  %vm885_vm4 = vsmask.f32 (!%p164_p2), 6400 }
   0x9   : > { %2434 = vmatprep.subr.bf16.mxu1 (!%p164_p2), %v2524_v1  ;;  %2183 = vmatprep.subr.bf16.mxu0 (!%p164_p2), %v2524_v1  ;;  %v2466_v36 = vld [vmem:[%s3102_s1 + $0x48] sm:$0xff] (!%p164_p2)   ;;  %v2467_v43 = vld [vmem:[%s3102_s1 + $0x50] sm:$0xff] (!%p164_p2)   ;;  %v2468_v45 = vld [vmem:[%s3102_s1 + $0x18] sm:$0xff] (!%p164_p2)   ;;  %vm1070_vm5 = vcmask (!%p164_p2), 1045504   ;;  %vm1587_vm6 = vcmask (!%p164_p2), 1044480  }
   0xa   : > { %2197 = vmatprep.mubr.msk.bf16.mxu1 (!%p164_p2), %vm2525_vm0, %v2524_v1  ;;  %2189 = vmatprep.mubr.msk.bf16.mxu0 (!%p164_p2), %vm2525_vm0, %v2524_v1  ;;  %v2469_v46 = vld [vmem:[%s3102_s1 + $0x58] sm:$0xff] (!%p164_p2)   ;;  %v2472_v51 = vld [vmem:[%s3102_s1 + $0x80] sm:$0xff] (!%p164_p2)   ;;  %v2474_v53 = vld [vmem:[%s3102_s1 + $0x88] sm:$0xff] (!%p164_p2)   ;;  %vm1398_vm7 = vsmask.f32 (!%p164_p2), 5376 }
   0xb   : > { %v2471_v54 = vld [vmem:[%s3102_s1 + $0x60] sm:$0xff] (!%p164_p2)   ;;  %v2476_v57 = vld [vmem:[%s3102_s1 + $0x90] sm:$0xff] (!%p164_p2)   ;;  %v2473_v59 = vld [vmem:[%s3102_s1 + $0x68] sm:$0xff] (!%p164_p2)  }
   0xc   : > { %2438 = vmatpush3.bf16.msra.mxu1 (!%p164_p2), %v2454_v2  ;;  %2184 = vmatpush3.bf16.msra.mxu0 (!%p164_p2), %v2454_v2  ;;  %v2479_v63 = vld [vmem:[%s3102_s1 + $0x98] sm:$0xff] (!%p164_p2)   ;;  %v2475_v2 = vld [vmem:[%s3102_s1 + $0x70] sm:$0xff] (!%p164_p2)  }
   0xd   : > { %2435 = vmatprep.subr.bf16.mxu1 (!%p164_p2), %v2524_v1  ;;  %2185 = vmatprep.subr.bf16.mxu0 (!%p164_p2), %v2524_v1 }
   0xe   : > { %s3107_s18 = smov (!%p189_p3, %s1875_s18), 1 }
   0xf   : > { %s2441_s24 = smul.u32 52, %s3107_s18 }
  0x10   : > { %2439 = vmatpush3.bf16.msra.mxu1 %v2455_v3  ;;  %2186 = vmatpush3.bf16.msra.mxu0 %v2455_v3  ;;  %s2442_s23 = smul.u32 40, %s3107_s18 }
  0x11   : > { %s2590_s29 = scalar_lea.vmem %s3101_s0, %s2441_s24  ;;  %2436 = vmatprep.subr.bf16.mxu1 %v2524_v1  ;;  %2187 = vmatprep.subr.bf16.mxu0 %v2524_v1 }
  0x12   : > { %v2593_v5 = vld [vmem:[%s2590_s29 + $0x10] sm:$0xff]   ;;  %v2596_v6 = vld [vmem:[%s2590_s29 + $0x18] sm:$0xff]   ;;  %v200_v7 = vld [vmem:[%s2590_s29] sm:$0xf]  ;;  %s3067_s26 = scalar_lea.vmem %s3105_s4, %s2442_s23 }
  0x13   : > { %v2602_v8 = vld [vmem:[%s2590_s29 + $0x4] sm:$0xf]  ;;  %v270_v9 = vshll.u32 %v2593_v5, 16  ;;  %v274_v10 = vshrl.u32 %v2593_v5, 16  ;;  %v278_v11 = vshll.u32 %v2596_v6, 16  ;;  %v2611_v13 = vld [vmem:[%s2590_s29 + $0x8] sm:$0xff]  }
  0x14   : > { %v2608_v12 = vcombine.low %v200_v7, %v2602_v8  ;;  %v2614_v14 = vld [vmem:[%s2590_s29 + $0x20] sm:$0xf]  ;;  %v218_v15 = vld [vmem:[%s2590_s29 + $0x24] sm:$0xf]  ;;  %2440 = vmatpush3.bf16.msra.mxu1 %v2456_v4  ;;  %2188 = vmatpush3.bf16.msra.mxu0 %v2456_v4  ;;  %v262_v21 = vshll.u32 %v2611_v13, 16  ;;  %v282_v25 = vshrl.u32 %v2596_v6, 16 }
  0x15   : > { %v272_v16 = vrot.slane %v270_v9, 1  ;;  %v280_v17 = vrot.slane %v278_v11, 1  ;;  %2209 = vmatprep.subr.bf16.mxu1 %v2524_v1  ;;  %v2625_v22 = vcombine.low %v2614_v14, %v218_v15  ;;  %2237 = vmatprep.subr.bf16.mxu0 %v2524_v1  ;;  %v266_v31 = vshrl.u32 %v2611_v13, 16  ;;  %v517_v38 = vld [vmem:[%s2590_s29] sm:$0xe]  ;;  %v2709_v58 = vld [vmem:[%s2590_s29 + $0x24] sm:$0xff]  }
  0x16   : > { %v255_v18 = vshrl.u32 %v2608_v12, 16  ;;  %v257_v19 = vshll.u32 %v2608_v12, 16  ;;  %v264_v26 = vrot.slane %v262_v21, 1  ;;  %v1922_v44 = vcombine.low %v517_v38, %v2602_v8  ;;  %v2699_v55 = vld [vmem:[%s2590_s29 + $0x1c] sm:$0xff]   ;;  %v837_v8 = vld [vmem:[%s2590_s29 + $0x4] sm:$0xe] }
  0x17   : > { %v276_v23 = vor.u32 %v274_v10, %v272_v16  ;;  %v286_v27 = vshll.u32 %v2625_v22, 16  ;;  %v284_v34 = vor.u32 %v282_v25, %v280_v17  ;;  %v290_v42 = vshrl.u32 %v2625_v22, 16  ;;  %v2477_v4 = vld [vmem:[%s3102_s1 + $0x78] sm:$0xff]   ;;  %v2754_v9 = vld [vmem:[%s2590_s29 + $0x8] sm:$0xf] }
  0x18   : > { %v259_v24 = vrot.slane %v257_v19, 1  ;;  %v268_v37 = vor.u32 %v266_v31, %v264_v26  ;;  %v531_v47 = vrot.slane %v1922_v44, 1  ;;  %v532_v48 = vrot.slane %v2611_v13, 1  ;;  %v2772_v21 = vld [vmem:[%s2590_s29 + $0x14] sm:$0xff]  }
  0x19   : > { %v281_v28 = vsel %vm253_vm2, %v276_v23, %v280_v17  ;;  %v288_v35 = vrot.slane %v286_v27, 1  ;;  %v534_v52 = vrot.slane %v2593_v5, 1  ;;  %v711_v60 = vrot.slane %v2699_v55, 1 }
  0x1a   : > { %v260_v29 = vor.u32 %v259_v24, %v255_v18  ;;  %2198 = vmatmul.mubr.msk.bf16.vlgmr.msra.gmra.mrb[0].mxu1 %vm317_vm1, %v281_v28  ;;  %v273_v41 = vsel %vm253_vm2, %v268_v37, %v272_v16  ;;  %v533_v50 = vsel %vm530_vm3, %v531_v47, %v532_v48  ;;  %v713_v61 = vrot.slane %v2709_v58, 1  ;;  %v2481_v28 = vld [vmem:[%s2590_s29 + $0xc] sm:$0xff]  }
  0x1b   : > { %2210 = vmatpush3.bf16.msra.mxu1 %v2459_v20  ;;  %2201 = vmatprep.mubr.msk.bf16.mxu1 %vm2525_vm0, %v2524_v1  ;;  %v289_v39 = vsel %vm253_vm2, %v284_v34, %v288_v35  ;;  %v292_v49 = vor.u32 %v290_v42, %v288_v35  ;;  %v535_v56 = vsel %vm530_vm3, %v532_v48, %v534_v52  ;;  %v536_v62 = vrot.slane %v2596_v6, 1  ;;  %v2488_v48 = vld [vmem:[%s3102_s1 + $0xa8] sm:$0xff]  }
  0x1c   : > { %v265_v33 = vsel %vm253_vm2, %v260_v29, %v264_v26  ;;  %2211 = vmatprep.subr.bf16.mxu1 %v2524_v1  ;;  %v2732_v0 = vsel %vm530_vm3, %v711_v60, %v713_v61  ;;  %v538_v7 = vrot.slane %v2625_v22, 1  ;;  %v1962_v11 = vcombine.low %v837_v8, %v2754_v9  ;;  %v209_v22 = vld [vmem:[%s2590_s29 + $0x24] sm:$0x7]  ;;  %v2869_v8 = vld [vmem:[%s2590_s29 + $0xc] sm:$0xf] }
  0x1d   : > { %2190 = vmatmul.mubr.msk.bf16.vlgmr.msra.gmra.mrb[0].mxu0 %vm317_vm1, %v265_v33  ;;  %v537_v3 = vsel %vm530_vm3, %v534_v52, %v536_v62  ;;  %v904_v25 = vshrl.u32 %v2772_v21, 16  ;;  %v907_v26 = vshll.u32 %v2772_v21, 16  ;;  %v1904_v27 = vcombine.low %v2614_v14, %v209_v22  ;;  %v2792_v33 = vld [vmem:[%s2590_s29 + $0x1c] sm:$0xff]   ;;  %v2506_v58 = vld [vmem:[%s3102_s1 + $0x108] sm:$0xff]  }
  0x1e   : > { %2238 = vmatpush3.bf16.msra.mxu0 %v2464_v30  ;;  %2193 = vmatprep.mubr.msk.bf16.mxu0 %vm2525_vm0, %v2524_v1  ;;  %v539_v10 = vsel %vm530_vm3, %v536_v62, %v538_v7  ;;  %v890_v15 = vshll.u32 %v1962_v11, 16  ;;  %v2485_v30 = vld [vmem:[%s3102_s1 + $0xc0] sm:$0xff]   ;;  %v707_v34 = vrot.slane %v2481_v28, 1  ;;  %v913_v37 = vshrl.u32 %v2792_v33, 16  ;;  %v2498_v52 = vld [vmem:[%s3102_s1 + $0xd8] sm:$0xff]  }
  0x1f   : > { %2239 = vmatprep.subr.bf16.mxu0 %v2524_v1  ;;  %2212 = vmatpush3.bf16.msra.mxu1 %v2460_v32  ;;  %v906_v31 = vrot.slane %v904_v25, 1  ;;  %v909_v32 = vrot.slane %v907_v26, 2  ;;  %v916_v38 = vshll.u32 %v2792_v33, 16  ;;  %v2496_v62 = vld [vmem:[%s3102_s1 + $0xb8] sm:$0xff]   ;;  %v2509_v25 = vld [vmem:[%s3102_s1 + $0x110] sm:$0xff]   ;;  %v1074_v26 = vrot.slane %v2772_v21, 2 }
  0x20   : > { %2213 = vmatprep.subr.bf16.mxu1 %v2524_v1  ;;  %v892_v19 = vrot.slane %v890_v15, 2  ;;  %v1057_v15 = vld [vmem:[%s2590_s29 + $0x4] sm:$0xc]  ;;  %v2513_v28 = vld [vmem:[%s3102_s1 + $0x118] sm:$0xff]  }
  0x21   : > { %v910_v35 = vor.u32 %v909_v32, %v906_v31  ;;  %v918_v44 = vrot.slane %v916_v38, 2  ;;  %v2945_v31 = vld [vmem:[%s2590_s29 + $0x28] sm:$0xff]   ;;  %v1076_v32 = vrot.slane %v2792_v33, 2 }
  0x22   : > { %2240 = vmatpush3.bf16.msra.mxu0 %v2466_v36  ;;  %2202 = vmatmul.mubr.msk.bf16.gmra.mrb[4].mxu1 %vm317_vm1, %v289_v39  ;;  %v2489_v36 = vld [vmem:[%s3102_s1 + $0xc8] sm:$0xff]  }
  0x23   : > { %2241 = vmatprep.subr.bf16.mxu0 %v2524_v1  ;;  %2214 = vmatpush3.bf16.msra.mxu1 %v2465_v40  ;;  %v2484_v40 = vld [vmem:[%s3102_s1 + $0xa0] sm:$0xff]  }
  0x24   : > { %2205 = vmatprep.mubr.msk.bf16.mxu1 %vm2525_vm0, %v2524_v1  ;;  %2215 = vmatprep.subr.bf16.mxu1 %v2524_v1 }
  0x25   : > { %2194 = vmatmul.mubr.msk.bf16.gmra.mrb[4].mxu0 %vm317_vm1, %v273_v41  ;;  %v2486_v41 = vld [vmem:[%s2590_s29 + $0x14] sm:$0xff]  }
  0x26   : > { %2242 = vmatpush3.bf16.msra.mxu0 %v2467_v43  ;;  %2245 = vmatprep.mubr.msk.bf16.mxu0 %vm2525_vm0, %v2524_v1  ;;  %v915_v43 = vrot.slane %v913_v37, 1  ;;  %v709_v47 = vrot.slane %v2486_v41, 1 }
  0x27   : > { %2243 = vmatprep.subr.bf16.mxu0 %v2524_v1  ;;  %2216 = vmatpush3.bf16.msra.mxu1 %v2468_v45  ;;  %v2493_v45 = vld [vmem:[%s3102_s1 + $0xd0] sm:$0xff]  }
  0x28   : > { %2265 = vmatprep.subr.bf16.mxu1 %v2524_v1 }
  0x2a   : > { %2244 = vmatpush3.bf16.msra.mxu0 %v2469_v46  ;;  %2206 = vmatmul.mubr.msk.bf16.gmra.mrb[8].mxu1 %vm317_vm1, %v292_v49  ;;  %v2816_v46 = vld [vmem:[%s2590_s29 + $0x24] sm:$0xff]   ;;  %v919_v49 = vor.u32 %v918_v44, %v915_v43 }
  0x2b   : > { %2293 = vmatprep.subr.bf16.mxu0 %v2524_v1  ;;  %2217 = vmatprep.mubr.msk.bf16.mxu1 %vm2525_vm0, %v2524_v1  ;;  %v1078_v37 = vrot.slane %v2816_v46, 2 }
  0x2d   : > { %2246 = vmatmul.mubr.msk.bf16.vlgmr.msra.gmra.mrb[8].mxu0 %vm317_vm1, %v533_v50  ;;  %v922_v50 = vshrl.u32 %v2816_v46, 16 }
  0x2e   : > { %2294 = vmatpush3.bf16.msra.mxu0 %v2472_v51  ;;  %2249 = vmatprep.mubr.msk.bf16.mxu0 %vm2525_vm0, %v2524_v1  ;;  %v925_v51 = vshll.u32 %v2816_v46, 16 }
  0x2f   : > { %2295 = vmatprep.subr.bf16.mxu0 %v2524_v1 }
  0x32   : > { %2296 = vmatpush3.bf16.msra.mxu0 %v2474_v53  ;;  %2218 = vmatmul.mubr.msk.bf16.vlgmr.msra.gmra.mrb[12].mxu1 %vm317_vm1, %v2608_v12  ;;  %v2760_v12 = vld [vmem:[%s2590_s29 + $0xc] sm:$0xff]   ;;  %v710_v53 = vsel %vm530_vm3, %v707_v34, %v709_v47 }
  0x33   : > { %2297 = vmatprep.subr.bf16.mxu0 %v2524_v1  ;;  %2266 = vmatpush3.bf16.msra.mxu1 %v2471_v54  ;;  %v895_v16 = vshrl.u32 %v2760_v12, 16  ;;  %v898_v17 = vshll.u32 %v2760_v12, 16  ;;  %v2492_v54 = vld [vmem:[%s3102_s1 + $0xb0] sm:$0xff]   ;;  %v1072_v22 = vrot.slane %v2760_v12, 2  ;;  %v2502_v12 = vld [vmem:[%s3102_s1 + $0xe0] sm:$0xff]  }
  0x34   : > { %2221 = vmatprep.mubr.msk.bf16.mxu1 %vm2525_vm0, %v2524_v1  ;;  %2267 = vmatprep.subr.bf16.mxu1 %v2524_v1 }
  0x35   : > { %2250 = vmatmul.mubr.msk.bf16.gmra.mrb[12].mxu0 %vm317_vm1, %v535_v56  ;;  %v897_v20 = vrot.slane %v895_v16, 1  ;;  %v920_v56 = vsel %vm885_vm4, %v910_v35, %v919_v49  ;;  %v1075_v21 = vsel %vm1070_vm5, %v1072_v22, %v1074_v26 }
  0x36   : > { %2253 = vmatprep.mubr.msk.bf16.mxu0 %vm2525_vm0, %v2524_v1  ;;  %2298 = vmatpush3.bf16.msra.mxu0 %v2476_v57  ;;  %v924_v57 = vrot.slane %v922_v50, 1 }
  0x37   : > { %2299 = vmatprep.subr.bf16.mxu0 %v2524_v1  ;;  %2268 = vmatpush3.bf16.msra.mxu1 %v2473_v59  ;;  %v927_v59 = vrot.slane %v925_v51, 2 }
  0x38   : > { %2269 = vmatprep.subr.bf16.mxu1 %v2524_v1 }
  0x3a   : > { %2300 = vmatpush3.bf16.msra.mxu0 %v2479_v63  ;;  %2222 = vmatmul.mubr.msk.bf16.gmra.mrb[16].mxu1 %vm317_vm1, %v2611_v13  ;;  %v887_v13 = vshrl.u32 %v1962_v11, 16  ;;  %v928_v63 = vor.u32 %v927_v59, %v924_v57 }
  0x3b   : > { %2349 = vmatprep.subr.bf16.mxu0 %v2524_v1  ;;  %2225 = vmatprep.mubr.msk.bf16.mxu1 %vm2525_vm0, %v2524_v1 }
  0x3c   : > { %2270 = vmatpush3.bf16.msra.mxu1 %v2475_v2  ;;  %v889_v18 = vrot.slane %v887_v13, 1  ;;  %v2853_v2 = vld [vmem:[%s2590_s29 + $0x2c] ss:$0 sps:$4 sm:$0x11]   ;;  %v2876_v13 = vld [vmem:[%s2590_s29 + $0x10] sm:$0xff]  }
  0x3d   : > { %2254 = vmatmul.mubr.msk.bf16.gmra.mrb[16].mxu0 %vm317_vm1, %v537_v3  ;;  %2271 = vmatprep.subr.bf16.mxu1 %v2524_v1  ;;  %v712_v3 = vsel %vm530_vm3, %v709_v47, %v711_v60  ;;  %v1204_v60 = vld [vmem:[%s2590_s29 + $0x8] sm:$0xc]  ;;  %v1080_v43 = vrot.slane %v2853_v2, 2  ;;  %v1408_v46 = vshrl.u32 %v2876_v13, 16  ;;  %v1411_v47 = vshll.u32 %v2876_v13, 16 }
  0x3e   : > { %2257 = vmatprep.mubr.msk.bf16.mxu0 %vm2525_vm0, %v2524_v1  ;;  %v893_v23 = vor.u32 %v892_v19, %v889_v18  ;;  %v2873_v11 = vcombine.low %v1204_v60, %v2869_v8  ;;  %v1985_v18 = vcombine.low %v1057_v15, %v2754_v9 }
  0x3f   : > { %v1081_v50 = vsel %vm1070_vm5, %v1078_v37, %v1080_v43 }
  0x40   : > { %2272 = vmatpush3.bf16.msra.mxu1 %v2477_v4  ;;  %v929_v4 = vsel %vm885_vm4, %v919_v49, %v928_v63  ;;  %v1252_v16 = vrot.slane %v2873_v11, 2  ;;  %v1400_v44 = vshrl.u32 %v2873_v11, 16  ;;  %v1589_v49 = vrot.slane %v2876_v13, 3 }
  0x41   : > { %2321 = vmatprep.subr.bf16.mxu1 %v2524_v1 }
  0x42   : > { %2226 = vmatmul.mubr.msk.bf16.gmra.mrb[20].mxu1 %vm317_vm1, %v2593_v5  ;;  %v900_v5 = vrot.slane %v898_v17, 2  ;;  %v1253_v17 = vrot.slane %v2876_v13, 2  ;;  %v1402_v51 = vrot.slane %v1400_v44, 2 }
  0x43   : > { %2229 = vmatprep.mubr.msk.bf16.mxu1 %vm2525_vm0, %v2524_v1 }
  0x44   : > { %v901_v24 = vor.u32 %v900_v5, %v897_v20  ;;  %v1254_v19 = vsel %vm1070_vm5, %v1252_v16, %v1253_v17  ;;  %v2894_v20 = vld [vmem:[%s2590_s29 + $0x18] sm:$0xff]   ;;  %v1071_v5 = vrot.slane %v1985_v18, 2 }
  0x45   : > { %2258 = vmatmul.mubr.msk.bf16.gmra.mrb[20].mxu0 %vm317_vm1, %v539_v10  ;;  %v1255_v9 = vrot.slane %v2894_v20, 2 }
  0x46   : > { %2261 = vmatprep.mubr.msk.bf16.mxu0 %vm2525_vm0, %v2524_v1  ;;  %v902_v29 = vsel %vm885_vm4, %v893_v23, %v901_v24  ;;  %v911_v42 = vsel %vm885_vm4, %v901_v24, %v910_v35  ;;  %v2916_v24 = vld [vmem:[%s2590_s29 + $0x20] sm:$0xff]   ;;  %v1077_v35 = vsel %vm1070_vm5, %v1074_v26, %v1076_v32 }
  0x47   : > { %v1256_v23 = vsel %vm1070_vm5, %v1253_v17, %v1255_v9 }
  0x4a   : > { %2230 = vmatmul.mubr.msk.bf16.gmra.mrb[24].mxu1 %vm317_vm1, %v2596_v6  ;;  %v2480_v6 = vld [vmem:[%s2590_s29 + $0x4] sm:$0xfe]  }
  0x4b   : > { %2233 = vmatprep.mubr.msk.bf16.mxu1 %vm2525_vm0, %v2524_v1  ;;  %v706_v14 = vrot.slane %v2480_v6, 1  ;;  %v1257_v6 = vrot.slane %v2916_v24, 2 }
  0x4d   : > { %2262 = vmatmul.mubr.msk.bf16.gmra.mrb[24].mxu0 %vm317_vm1, %v538_v7  ;;  %v708_v39 = vsel %vm530_vm3, %v706_v14, %v707_v34  ;;  %v931_v7 = vshll.u32 %v2853_v2, 16  ;;  %v2511_v14 = vld [vmem:[%s3102_s1 + $0xf8] sm:$0xff]   ;;  %v1259_v34 = vrot.slane %v2945_v31, 2  ;;  %v1591_v2 = vrot.slane %v2894_v20, 3 }
  0x4e   : > { %2301 = vmatprep.mubr.msk.bf16.mxu0 %vm2525_vm0, %v2524_v1 }
  0x4f   : > { %v933_v55 = vrot.slane %v931_v7, 2  ;;  %v1260_v33 = vsel %vm1070_vm5, %v1257_v6, %v1259_v34 }
  0x51   : > { %v934_v10 = vsel %vm885_vm4, %v928_v63, %v933_v55  ;;  %v1420_v63 = vshll.u32 %v2894_v20, 16  ;;  %v1592_v55 = vsel %vm1587_vm6, %v1589_v49, %v1591_v2 }
  0x52   : > { %2234 = vmatmul.mubr.msk.bf16.gmra.mrb[28].mxu1 %vm317_vm1, %v1904_v27  ;;  %v2505_v27 = vld [vmem:[%s3102_s1 + $0xe8] sm:$0xff]  }
  0x53   : > { %2273 = vmatprep.mubr.msk.bf16.mxu1 %vm2525_vm0, %v2524_v1  ;;  %v1422_v7 = vrot.slane %v1420_v63, 3 }
  0x55   : > { %2302 = vmatmul.mubr.msk.bf16.vlgmr.msra.gmra.mrb[28].mxu0 %vm317_vm1, %v902_v29  ;;  %v2508_v29 = vld [vmem:[%s3102_s1 + $0xf0] sm:$0xff]  }
  0x56   : > { %2350 = vmatpush3.bf16.msra.mxu0 %v2485_v30  ;;  %2305 = vmatprep.mubr.msk.bf16.mxu0 %vm2525_vm0, %v2524_v1  ;;  %v1258_v30 = vsel %vm1070_vm5, %v1255_v9, %v1257_v6 }
  0x57   : > { %2351 = vmatprep.subr.bf16.mxu0 %v2524_v1 }
  0x5a   : > { %2352 = vmatpush3.bf16.msra.mxu0 %v2489_v36  ;;  %2274 = vmatmul.mubr.msk.bf16.vlgmr.msra.gmra.mrb[32].mxu1 %vm317_vm1, %v708_v39  ;;  %v2512_v36 = vld [vmem:[%s2590_s29 + $0x30] ss:$0 sps:$4 sm:$0x11]   ;;  %v1574_v39 = vld [vmem:[%s2590_s29 + $0x8] sm:$0x8] }
  0x5b   : > { %2353 = vmatprep.subr.bf16.mxu0 %v2524_v1  ;;  %2322 = vmatpush3.bf16.msra.mxu1 %v2484_v40  ;;  %v1261_v38 = vrot.slane %v2512_v36, 2  ;;  %v1079_v40 = vsel %vm1070_vm5, %v1076_v32, %v1078_v37 }
  0x5c   : > { %2277 = vmatprep.mubr.msk.bf16.mxu1 %vm2525_vm0, %v2524_v1  ;;  %2323 = vmatprep.subr.bf16.mxu1 %v2524_v1 }
  0x5d   : > { %2306 = vmatmul.mubr.msk.bf16.gmra.mrb[32].mxu0 %vm317_vm1, %v911_v42  ;;  %v1262_v41 = vsel %vm1070_vm5, %v1259_v34, %v1261_v38  ;;  %v2044_v42 = vcombine.low %v1574_v39, %v2869_v8  ;;  %v1426_v8 = vshrl.u32 %v2916_v24, 16 }
  0x5e   : > { %2309 = vmatprep.mubr.msk.bf16.mxu0 %vm2525_vm0, %v2524_v1  ;;  %2354 = vmatpush3.bf16.msra.mxu0 %v2493_v45  ;;  %v1403_v45 = vshll.u32 %v2873_v11, 16  ;;  %v1593_v11 = vrot.slane %v2916_v24, 3 }
  0x5f   : > { %2355 = vmatprep.subr.bf16.mxu0 %v2524_v1  ;;  %2324 = vmatpush3.bf16.msra.mxu1 %v2488_v48  ;;  %v1588_v48 = vrot.slane %v2044_v42, 3  ;;  %v1428_v15 = vrot.slane %v1426_v8, 2 }
  0x60   : > { %2325 = vmatprep.subr.bf16.mxu1 %v2524_v1  ;;  %v1594_v17 = vsel %vm1587_vm6, %v1591_v2, %v1593_v11 }
  0x62   : > { %2356 = vmatpush3.bf16.msra.mxu0 %v2498_v52  ;;  %2278 = vmatmul.mubr.msk.bf16.gmra.mrb[36].mxu1 %vm317_vm1, %v710_v53  ;;  %v1405_v52 = vrot.slane %v1403_v45, 3  ;;  %v1410_v53 = vrot.slane %v1408_v46, 2 }
  0x63   : > { %2405 = vmatprep.subr.bf16.mxu0 %v2524_v1  ;;  %2281 = vmatprep.mubr.msk.bf16.mxu1 %vm2525_vm0, %v2524_v1 }
  0x64   : > { %2326 = vmatpush3.bf16.msra.mxu1 %v2492_v54  ;;  %v1413_v54 = vrot.slane %v1411_v47, 3  ;;  %v1406_v57 = vor.u32 %v1405_v52, %v1402_v51 }
  0x65   : > { %2310 = vmatmul.mubr.msk.bf16.gmra.mrb[36].mxu0 %vm317_vm1, %v920_v56  ;;  %2327 = vmatprep.subr.bf16.mxu1 %v2524_v1  ;;  %v1590_v56 = vsel %vm1587_vm6, %v1588_v48, %v1589_v49 }
  0x66   : > { %2313 = vmatprep.mubr.msk.bf16.mxu0 %vm2525_vm0, %v2524_v1  ;;  %v1414_v59 = vor.u32 %v1413_v54, %v1410_v53 }
  0x68   : > { %2328 = vmatpush3.bf16.msra.mxu1 %v2496_v62  ;;  %v1417_v62 = vshrl.u32 %v2894_v20, 16  ;;  %v1595_v20 = vrot.slane %v2945_v31, 3 }
  0x69   : > { %2377 = vmatprep.subr.bf16.mxu1 %v2524_v1 }
  0x6a   : > { %2282 = vmatmul.mubr.msk.bf16.gmra.mrb[40].mxu1 %vm317_vm1, %v712_v3  ;;  %v1415_v3 = vsel %vm1398_vm7, %v1406_v57, %v1414_v59 }
  0x6b   : > { %2285 = vmatprep.mubr.msk.bf16.mxu1 %vm2525_vm0, %v2524_v1 }
  0x6d   : > { %2314 = vmatmul.mubr.msk.bf16.gmra.mrb[40].mxu0 %vm317_vm1, %v929_v4  ;;  %v1419_v4 = vrot.slane %v1417_v62, 2 }
  0x6e   : > { %2317 = vmatprep.mubr.msk.bf16.mxu0 %vm2525_vm0, %v2524_v1 }
  0x6f   : > { %v1423_v60 = vor.u32 %v1422_v7, %v1419_v4 }
  0x71   : > { %v1424_v13 = vsel %vm1398_vm7, %v1414_v59, %v1423_v60 }
  0x72   : > { %2286 = vmatmul.mubr.msk.bf16.gmra.mrb[44].mxu1 %vm317_vm1, %v2732_v0  ;;  %v2503_v0 = vld [vmem:[%s3102_s1 + $0x100] sm:$0xff]  }
  0x73   : > { %2289 = vmatprep.mubr.msk.bf16.mxu1 %vm2525_vm0, %v2524_v1 }
  0x75   : > { %2318 = vmatmul.mubr.msk.bf16.gmra.mrb[44].mxu0 %vm317_vm1, %v934_v10  ;;  %v1429_v10 = vshll.u32 %v2916_v24, 16 }
  0x76   : > { %2357 = vmatprep.mubr.msk.bf16.mxu0 %vm2525_vm0, %v2524_v1 }
  0x77   : > { %v1431_v16 = vrot.slane %v1429_v10, 3 }
  0x79   : > { %v1432_v18 = vor.u32 %v1431_v16, %v1428_v15 }
  0x7a   : > { %2290 = vmatmul.mubr.msk.bf16.gmra.mrb[48].mxu1 %vm317_vm1, %v713_v61  ;;  %v1073_v61 = vsel %vm1070_vm5, %v1071_v5, %v1072_v22 }
  0x7b   : > { %2329 = vmatprep.mubr.msk.bf16.mxu1 %vm2525_vm0, %v2524_v1  ;;  %v1433_v5 = vsel %vm1398_vm7, %v1423_v60, %v1432_v18 }
  0x7d   : > { %2358 = vmatmul.mubr.msk.bf16.vlgmr.msra.gmra.mrb[48].mxu0 %vm317_vm1, %v1254_v19  ;;  %v1435_v19 = vshrl.u32 %v2945_v31, 16 }
  0x7e   : > { %2406 = vmatpush3.bf16.msra.mxu0 %v2503_v0  ;;  %2361 = vmatprep.mubr.msk.bf16.mxu0 %vm2525_vm0, %v2524_v1  ;;  %v1438_v0 = vshll.u32 %v2945_v31, 16 }
  0x7f   : > { %2407 = vmatprep.subr.bf16.mxu0 %v2524_v1  ;;  %v1437_v22 = vrot.slane %v1435_v19, 2 }
  0x80   : > { %v1440_v9 = vrot.slane %v1438_v0, 3 }
  0x82   : > { %2408 = vmatpush3.bf16.msra.mxu0 %v2506_v58  ;;  %2330 = vmatmul.mubr.msk.bf16.vlgmr.msra.gmra.mrb[52].mxu1 %vm317_vm1, %v1073_v61  ;;  %v2515_v58 = vld [vmem:[%s2590_s29 + $0x30] ss:$0 sps:$4 sm:$0x33]   ;;  %v1596_v61 = vsel %vm1587_vm6, %v1593_v11, %v1595_v20  ;;  %s1738_s29 = sld [smem:[#allocation2]] }
  0x83   : > { %2409 = vmatprep.subr.bf16.mxu0 %v2524_v1  ;;  %2378 = vmatpush3.bf16.msra.mxu1 %v2502_v12  ;;  %v1441_v12 = vor.u32 %v1440_v9, %v1437_v22  ;;  %v1447_v24 = vshll.u32 %v2515_v58, 16 }
  0x84   : > { %2333 = vmatprep.mubr.msk.bf16.mxu1 %vm2525_vm0, %v2524_v1  ;;  %2379 = vmatprep.subr.bf16.mxu1 %v2524_v1 }
  0x85   : > { %2362 = vmatmul.mubr.msk.bf16.gmra.mrb[52].mxu0 %vm317_vm1, %v1256_v23  ;;  %v1444_v23 = vshrl.u32 %v2515_v58, 16  ;;  %v1442_v26 = vsel %vm1398_vm7, %v1432_v18, %v1441_v12  ;;  %v1449_v6 = vrot.slane %v1447_v24, 3 }
  0x86   : > { %2365 = vmatprep.mubr.msk.bf16.mxu0 %vm2525_vm0, %v2524_v1  ;;  %2410 = vmatpush3.bf16.msra.mxu0 %v2509_v25  ;;  %v1597_v25 = vrot.slane %v2515_v58, 3 }
  0x87   : > { %2411 = vmatprep.subr.bf16.mxu0 %v2524_v1  ;;  %2380 = vmatpush3.bf16.msra.mxu1 %v2505_v27  ;;  %v1446_v27 = vrot.slane %v1444_v23, 2 }
  0x88   : > { %2381 = vmatprep.subr.bf16.mxu1 %v2524_v1 }
  0x8a   : > { %2412 = vmatpush3.bf16.msra.mxu0 %v2513_v28  ;;  %2334 = vmatmul.mubr.msk.bf16.gmra.mrb[56].mxu1 %vm317_vm1, %v1075_v21  ;;  %v1598_v28 = vsel %vm1587_vm6, %v1595_v20, %v1597_v25  ;;  %v1450_v21 = vor.u32 %v1449_v6, %v1446_v27 }
  0x8b   : > { %2337 = vmatprep.mubr.msk.bf16.mxu1 %vm2525_vm0, %v2524_v1  ;;  %2382 = vmatpush3.bf16.msra.mxu1 %v2508_v29 }
  0x8c   : > { %2383 = vmatprep.subr.bf16.mxu1 %v2524_v1  ;;  %v1451_v29 = vsel %vm1398_vm7, %v1441_v12, %v1450_v21 }
  0x8d   : > { %2366 = vmatmul.mubr.msk.bf16.gmra.mrb[56].mxu0 %vm317_vm1, %v1258_v30 }
  0x8e   : > { %2369 = vmatprep.mubr.msk.bf16.mxu0 %vm2525_vm0, %v2524_v1 }
  0x8f   : > { %2384 = vmatpush3.bf16.msra.mxu1 %v2511_v14 }
  0x92   : > { %2338 = vmatmul.mubr.msk.bf16.gmra.mrb[60].mxu1 %vm317_vm1, %v1077_v35 }
  0x93   : > { %2341 = vmatprep.mubr.msk.bf16.mxu1 %vm2525_vm0, %v2524_v1 }
  0x95   : > { %2370 = vmatmul.mubr.msk.bf16.gmra.mrb[60].mxu0 %vm317_vm1, %v1260_v33 }
  0x96   : > { %2373 = vmatprep.mubr.msk.bf16.mxu0 %vm2525_vm0, %v2524_v1 }
  0x9a   : > { %2342 = vmatmul.mubr.msk.bf16.gmra.mrb[64].mxu1 %vm317_vm1, %v1079_v40 }
  0x9b   : > { %2345 = vmatprep.mubr.msk.bf16.mxu1 %vm2525_vm0, %v2524_v1 }
  0x9d   : > { %2374 = vmatmul.mubr.msk.bf16.gmra.mrb[64].mxu0 %vm317_vm1, %v1262_v41 }
  0x9e   : > { %2413 = vmatprep.mubr.msk.bf16.mxu0 %vm2525_vm0, %v2524_v1 }
  0xa2   : > { %2346 = vmatmul.mubr.msk.bf16.gmra.mrb[68].mxu1 %vm317_vm1, %v1081_v50 }
  0xa3   : > { %2385 = vmatprep.mubr.msk.bf16.mxu1 %vm2525_vm0, %v2524_v1 }
  0xa5   : > { %2414 = vmatmul.mubr.msk.bf16.vlgmr.msra.gmra.mrb[68].mxu0 %vm317_vm1, %v1590_v56 }
  0xa6   : > { %2417 = vmatprep.mubr.msk.bf16.mxu0 %vm2525_vm0, %v2524_v1 }
  0xaa   : > { %2386 = vmatmul.mubr.msk.bf16.vlgmr.msra.gmra.mrb[72].mxu1 %vm317_vm1, %v1415_v3 }
  0xab   : > { %2389 = vmatprep.mubr.msk.bf16.mxu1 %vm2525_vm0, %v2524_v1 }
  0xad   : > { %2418 = vmatmul.mubr.msk.bf16.gmra.mrb[72].mxu0 %vm317_vm1, %v1592_v55 }
  0xae   : > { %2421 = vmatprep.mubr.msk.bf16.mxu0 %vm2525_vm0, %v2524_v1 }
  0xb2   : > { %2390 = vmatmul.mubr.msk.bf16.gmra.mrb[76].mxu1 %vm317_vm1, %v1424_v13 }
  0xb3   : > { %2393 = vmatprep.mubr.msk.bf16.mxu1 %vm2525_vm0, %v2524_v1 }
  0xb5   : > { %2422 = vmatmul.mubr.msk.bf16.gmra.mrb[76].mxu0 %vm317_vm1, %v1594_v17 }
  0xb6   : > { %2425 = vmatprep.mubr.msk.bf16.mxu0 %vm2525_vm0, %v2524_v1 }
  0xba   : > { %2394 = vmatmul.mubr.msk.bf16.gmra.mrb[80].mxu1 %vm317_vm1, %v1433_v5 }
  0xbb   : > { %2397 = vmatprep.mubr.msk.bf16.mxu1 %vm2525_vm0, %v2524_v1 }
  0xbd   : > { %2426 = vmatmul.mubr.msk.bf16.gmra.mrb[80].mxu0 %vm317_vm1, %v1596_v61 }
  0xbe   : > { %2429 = vmatprep.mubr.msk.bf16.mxu0 %vm2525_vm0, %v2524_v1 }
  0xc2   : > { %2398 = vmatmul.mubr.msk.bf16.gmra.mrb[84].mxu1 %vm317_vm1, %v1442_v26 }
  0xc3   : > { %2401 = vmatprep.mubr.msk.bf16.mxu1 %vm2525_vm0, %v2524_v1 }
  0xc5   : > { %2430 = vmatmul.mubr.msk.bf16.gmra.mrb[84].mxu0 %vm317_vm1, %v1598_v28 }
  0xca   : > { %2402 = vmatmul.mubr.msk.bf16.gmra.mrb[88].mxu1 %vm317_vm1, %v1451_v29 }
  0xed   : > { %v383_v30 = vpop.f32.mrb[0].mxu1 }
  0xee   : > { %v2199_v31 = vpop.f32.mrb[1].mxu1 }
  0xef   : > { %v386_v32 = vpop.f32.mrb[2].mxu1 }
  0xf0   : > { %v367_v14 = vpop.f32.mrb[0].mxu0  ;;  %v2200_v34 = vpop.f32.mrb[3].mxu1 }
  0xf1   : > { %v2191_v35 = vpop.f32.mrb[1].mxu0 }
  0xf2   : > { %v370_v33 = vpop.f32.mrb[2].mxu0 }
  0xf3   : > { %v2192_v36 = vpop.f32.mrb[3].mxu0 }
  0xf5   : > { %v391_v37 = vpop.f32.mrb[4].mxu1 }
  0xf6   : > { %v2203_v38 = vpop.f32.mrb[5].mxu1 }
  0xf7   : > { %v394_v39 = vpop.f32.mrb[6].mxu1 }
  0xf8   : > { %v375_v40 = vpop.f32.mrb[4].mxu0  ;;  %v2204_v1 = vpop.f32.mrb[7].mxu1 }
  0xf9   : > { %v2195_v41 = vpop.f32.mrb[5].mxu0 }
  0xfa   : > { %v378_v42 = vpop.f32.mrb[6].mxu0 }
  0xfb   : > { %v2196_v43 = vpop.f32.mrb[7].mxu0 }
  0xfd   : > { %v399_v44 = vpop.f32.mrb[8].mxu1 }
  0xfe   : > { %v2207_v45 = vpop.f32.mrb[9].mxu1 }
  0xff   : > { %v402_v46 = vpop.f32.mrb[10].mxu1 }
 0x100   : > { %v613_v47 = vpop.f32.mrb[8].mxu0  ;;  %v2208_v48 = vpop.f32.mrb[11].mxu1 }
 0x101   : > { %v2247_v49 = vpop.f32.mrb[9].mxu0 }
 0x102   : > { %v616_v50 = vpop.f32.mrb[10].mxu0 }
 0x103   : > { %v2248_v51 = vpop.f32.mrb[11].mxu0 }
 0x105   : > { %v478_v52 = vpop.f32.mrb[12].mxu1 }
 0x106   : > { %v479_v53 = vadd.f32 %v478_v52, %v367_v14  ;;  %v2219_v54 = vpop.f32.mrb[13].mxu1 }
 0x107   : > { %v481_v56 = vpop.f32.mrb[14].mxu1 }
 0x108   : > { %v621_v57 = vpop.f32.mrb[12].mxu0  ;;  %v652_v59 = vadd.f32 %v613_v47, %v479_v53  ;;  %v482_v62 = vadd.f32 %v481_v56, %v370_v33  ;;  %v2220_v63 = vpop.f32.mrb[15].mxu1 }
 0x109   : > { %v2251_v2 = vpop.f32.mrb[13].mxu0 }
 0x10a   : > { %v624_v3 = vpop.f32.mrb[14].mxu0  ;;  %v653_v4 = vadd.f32 %v616_v50, %v482_v62 }
 0x10b   : > { %v2252_v7 = vpop.f32.mrb[15].mxu0 }
 0x10d   : > { %v486_v55 = vpop.f32.mrb[16].mxu1 }
 0x10e   : > { %v487_v60 = vadd.f32 %v486_v55, %v375_v40  ;;  %v2223_v8 = vpop.f32.mrb[17].mxu1 }
 0x10f   : > { %v489_v10 = vpop.f32.mrb[18].mxu1 }
 0x110   : > { %v629_v11 = vpop.f32.mrb[16].mxu0  ;;  %v654_v13 = vadd.f32 %v621_v57, %v487_v60  ;;  %v490_v15 = vadd.f32 %v489_v10, %v378_v42  ;;  %v2224_v16 = vpop.f32.mrb[19].mxu1 }
 0x111   : > { %v2255_v17 = vpop.f32.mrb[17].mxu0 }
 0x112   : > { %v632_v18 = vpop.f32.mrb[18].mxu0  ;;  %v655_v19 = vadd.f32 %v624_v3, %v490_v15 }
 0x113   : > { %v2256_v0 = vpop.f32.mrb[19].mxu0 }
 0x115   : > { %v494_v20 = vpop.f32.mrb[20].mxu1 }
 0x116   : > { %v495_v5 = vadd.f32 %v494_v20, %v383_v30  ;;  %v2227_v22 = vpop.f32.mrb[21].mxu1 }
 0x117   : > { %v497_v9 = vpop.f32.mrb[22].mxu1 }
 0x118   : > { %v637_v58 = vpop.f32.mrb[20].mxu0  ;;  %v656_v61 = vadd.f32 %v629_v11, %v495_v5  ;;  %v498_v12 = vadd.f32 %v497_v9, %v386_v32  ;;  %v2228_v23 = vpop.f32.mrb[23].mxu1 }
 0x119   : > { %v2259_v24 = vpop.f32.mrb[21].mxu0 }
 0x11a   : > { %v640_v25 = vpop.f32.mrb[22].mxu0  ;;  %v657_v26 = vadd.f32 %v632_v18, %v498_v12 }
 0x11b   : > { %v2260_v27 = vpop.f32.mrb[23].mxu0 }
 0x11d   : > { %v502_v6 = vpop.f32.mrb[24].mxu1 }
 0x11e   : > { %v503_v28 = vadd.f32 %v502_v6, %v391_v37  ;;  %v2231_v21 = vpop.f32.mrb[25].mxu1 }
 0x11f   : > { %v505_v29 = vpop.f32.mrb[26].mxu1 }
 0x120   : > { %v645_v31 = vpop.f32.mrb[24].mxu0  ;;  %v658_v14 = vadd.f32 %v637_v58, %v503_v28  ;;  %v506_v34 = vadd.f32 %v505_v29, %v394_v39  ;;  %v2232_v35 = vpop.f32.mrb[27].mxu1 }
 0x121   : > { %v2263_v33 = vpop.f32.mrb[25].mxu0 }
 0x122   : > { %v648_v30 = vpop.f32.mrb[26].mxu0  ;;  %v659_v36 = vadd.f32 %v640_v25, %v506_v34 }
 0x123   : > { %v2264_v38 = vpop.f32.mrb[27].mxu0 }
 0x125   : > { %v510_v40 = vpop.f32.mrb[28].mxu1 }
 0x126   : > { %v511_v1 = vadd.f32 %v510_v40, %v399_v44  ;;  %v2235_v32 = vpop.f32.mrb[29].mxu1 }
 0x127   : > { %v513_v41 = vpop.f32.mrb[30].mxu1 }
 0x128   : > { %v1008_v42 = vpop.f32.mrb[28].mxu0  ;;  %v660_v43 = vadd.f32 %v645_v31, %v511_v1  ;;  %v514_v45 = vadd.f32 %v513_v41, %v402_v46  ;;  %v2236_v47 = vpop.f32.mrb[31].mxu1 }
 0x129   : > { %v2303_v48 = vpop.f32.mrb[29].mxu0 }
 0x12a   : > { %v1011_v37 = vpop.f32.mrb[30].mxu0  ;;  %v661_v49 = vadd.f32 %v648_v30, %v514_v45 }
 0x12b   : > { %v2304_v50 = vpop.f32.mrb[31].mxu0 }
 0x12d   : > { %v788_v51 = vpop.f32.mrb[32].mxu1 }
 0x12e   : > { %v827_v52 = vadd.f32 %v788_v51, %v652_v59  ;;  %v2275_v39 = vpop.f32.mrb[33].mxu1 }
 0x12f   : > { %v791_v53 = vpop.f32.mrb[34].mxu1 }
 0x130   : > { %v1016_v54 = vpop.f32.mrb[32].mxu0  ;;  %v1047_v56 = vadd.f32 %v1008_v42, %v827_v52  ;;  %v828_v57 = vadd.f32 %v791_v53, %v653_v4  ;;  %v2276_v62 = vpop.f32.mrb[35].mxu1 }
 0x131   : > { %v2307_v63 = vpop.f32.mrb[33].mxu0 }
 0x132   : > { %v1019_v44 = vpop.f32.mrb[34].mxu0  ;;  %v1048_v2 = vadd.f32 %v1011_v37, %v828_v57 }
 0x133   : > { %v2308_v3 = vpop.f32.mrb[35].mxu0 }
 0x135   : > { %v796_v7 = vpop.f32.mrb[36].mxu1 }
 0x136   : > { %v829_v55 = vadd.f32 %v796_v7, %v654_v13  ;;  %v2279_v46 = vpop.f32.mrb[37].mxu1 }
 0x137   : > { %v799_v60 = vpop.f32.mrb[38].mxu1 }
 0x138   : > { %v1024_v8 = vpop.f32.mrb[36].mxu0  ;;  %v1049_v10 = vadd.f32 %v1016_v54, %v829_v55  ;;  %v830_v11 = vadd.f32 %v799_v60, %v655_v19  ;;  %v2280_v15 = vpop.f32.mrb[39].mxu1 }
 0x139   : > { %v2311_v16 = vpop.f32.mrb[37].mxu0 }
 0x13a   : > { %v1027_v59 = vpop.f32.mrb[38].mxu0  ;;  %v1050_v17 = vadd.f32 %v1019_v44, %v830_v11 }
 0x13b   : > { %v2312_v18 = vpop.f32.mrb[39].mxu0 }
 0x13d   : > { %v804_v0 = vpop.f32.mrb[40].mxu1 }
 0x13e   : > { %v831_v20 = vadd.f32 %v804_v0, %v656_v61  ;;  %v2283_v4 = vpop.f32.mrb[41].mxu1 }
 0x13f   : > { %v807_v5 = vpop.f32.mrb[42].mxu1 }
 0x140   : > { %v1032_v22 = vpop.f32.mrb[40].mxu0  ;;  %v1051_v9 = vadd.f32 %v1024_v8, %v831_v20  ;;  %v832_v58 = vadd.f32 %v807_v5, %v657_v26  ;;  %v2284_v12 = vpop.f32.mrb[43].mxu1 }
 0x141   : > { %v2315_v23 = vpop.f32.mrb[41].mxu0 }
 0x142   : > { %v1035_v13 = vpop.f32.mrb[42].mxu0  ;;  %v1052_v24 = vadd.f32 %v1027_v59, %v832_v58 }
 0x143   : > { %v2316_v25 = vpop.f32.mrb[43].mxu0 }
 0x145   : > { %v812_v27 = vpop.f32.mrb[44].mxu1 }
 0x146   : > { %v833_v6 = vadd.f32 %v812_v27, %v658_v14  ;;  %v2287_v19 = vpop.f32.mrb[45].mxu1 }
 0x147   : > { %v815_v28 = vpop.f32.mrb[46].mxu1 }
 0x148   : > { %v1040_v21 = vpop.f32.mrb[44].mxu0  ;;  %v1053_v29 = vadd.f32 %v1032_v22, %v833_v6  ;;  %v834_v31 = vadd.f32 %v815_v28, %v659_v36  ;;  %v2288_v34 = vpop.f32.mrb[47].mxu1 }
 0x149   : > { %v2319_v35 = vpop.f32.mrb[45].mxu0 }
 0x14a   : > { %v1043_v61 = vpop.f32.mrb[46].mxu0  ;;  %v1054_v33 = vadd.f32 %v1035_v13, %v834_v31 }
 0x14b   : > { %v2320_v30 = vpop.f32.mrb[47].mxu0 }
 0x14d   : > { %v820_v38 = vpop.f32.mrb[48].mxu1 }
 0x14e   : > { %v835_v40 = vadd.f32 %v820_v38, %v660_v43  ;;  %v2291_v26 = vpop.f32.mrb[49].mxu1 }
 0x14f   : > { %v823_v1 = vpop.f32.mrb[50].mxu1 }
 0x150   : > { %v1336_v32 = vpop.f32.mrb[48].mxu0  ;;  %v1055_v41 = vadd.f32 %v1040_v21, %v835_v40  ;;  %v836_v42 = vadd.f32 %v823_v1, %v661_v49  ;;  %v2292_v45 = vpop.f32.mrb[51].mxu1 }
 0x151   : > { %v2359_v47 = vpop.f32.mrb[49].mxu0 }
 0x152   : > { %v1339_v14 = vpop.f32.mrb[50].mxu0  ;;  %v1056_v48 = vadd.f32 %v1043_v61, %v836_v42 }
 0x153   : > { %v2360_v37 = vpop.f32.mrb[51].mxu0 }
 0x155   : > { %v1155_v50 = vpop.f32.mrb[52].mxu1 }
 0x156   : > { %v1194_v51 = vadd.f32 %v1155_v50, %v1047_v56  ;;  %v2331_v36 = vpop.f32.mrb[53].mxu1 }
 0x157   : > { %v1158_v52 = vpop.f32.mrb[54].mxu1 }
 0x158   : > { %v1344_v39 = vpop.f32.mrb[52].mxu0  ;;  %v1375_v53 = vadd.f32 %v1336_v32, %v1194_v51  ;;  %v1195_v54 = vadd.f32 %v1158_v52, %v1048_v2  ;;  %v2332_v57 = vpop.f32.mrb[55].mxu1 }
 0x159   : > { %v2363_v62 = vpop.f32.mrb[53].mxu0  ;;  %v3056_v57 = vstv %s1738_s29 }
 0x15a   : > { %v1347_v43 = vpop.f32.mrb[54].mxu0  ;;  %v1376_v63 = vadd.f32 %v1339_v14, %v1195_v54 }
 0x15b   : > { %v2364_v44 = vpop.f32.mrb[55].mxu0 }
 0x15d   : > { %v1163_v3 = vpop.f32.mrb[56].mxu1 }
 0x15e   : > { %v1196_v7 = vadd.f32 %v1163_v3, %v1049_v10  ;;  %v2335_v49 = vpop.f32.mrb[57].mxu1 }
 0x15f   : > { %v1166_v55 = vpop.f32.mrb[58].mxu1 }
 0x160   : > { %v1352_v46 = vpop.f32.mrb[56].mxu0  ;;  %v3035_v60 = vadd.f32 %v1344_v39, %v1196_v7  ;;  %v1197_v8 = vadd.f32 %v1166_v55, %v1050_v17  ;;  %v2336_v11 = vpop.f32.mrb[59].mxu1 }
 0x161   : > { %v2367_v56 = vpop.f32.mrb[57].mxu0 }
 0x162   : > { %v1355_v15 = vpop.f32.mrb[58].mxu0  ;;  %v3037_v16 = vadd.f32 %v1347_v43, %v1197_v8 }
 0x163   : > { %v2368_v59 = vpop.f32.mrb[59].mxu0 }
 0x165   : > { %v1171_v2 = vpop.f32.mrb[60].mxu1 }
 0x166   : > { %v1198_v18 = vadd.f32 %v1171_v2, %v1051_v9  ;;  %v2339_v0 = vpop.f32.mrb[61].mxu1 }
 0x167   : > { %v1174_v20 = vpop.f32.mrb[62].mxu1 }
 0x168   : > { %v1360_v4 = vpop.f32.mrb[60].mxu0  ;;  %v3039_v5 = vadd.f32 %v1352_v46, %v1198_v18  ;;  %v1199_v10 = vadd.f32 %v1174_v20, %v1052_v24  ;;  %v2340_v22 = vpop.f32.mrb[63].mxu1 }
 0x169   : > { %v2371_v58 = vpop.f32.mrb[61].mxu0 }
 0x16a   : > { %v1363_v12 = vpop.f32.mrb[62].mxu0  ;;  %v3041_v23 = vadd.f32 %v1355_v15, %v1199_v10 }
 0x16b   : > { %v2372_v17 = vpop.f32.mrb[63].mxu0 }
 0x16d   : > { %v1179_v13 = vpop.f32.mrb[64].mxu1 }
 0x16e   : > { %v1200_v25 = vadd.f32 %v1179_v13, %v1053_v29  ;;  %v2343_v27 = vpop.f32.mrb[65].mxu1 }
 0x16f   : > { %v1182_v6 = vpop.f32.mrb[66].mxu1 }
 0x170   : > { %v1368_v19 = vpop.f32.mrb[64].mxu0  ;;  %v3043_v28 = vadd.f32 %v1360_v4, %v1200_v25  ;;  %v1201_v9 = vadd.f32 %v1182_v6, %v1054_v33  ;;  %v2344_v21 = vpop.f32.mrb[67].mxu1 }
 0x171   : > { %v2375_v31 = vpop.f32.mrb[65].mxu0 }
 0x172   : > { %v1371_v34 = vpop.f32.mrb[66].mxu0  ;;  %v3045_v35 = vadd.f32 %v1363_v12, %v1201_v9 }
 0x173   : > { %v2376_v24 = vpop.f32.mrb[67].mxu0 }
 0x175   : > { %v1187_v61 = vpop.f32.mrb[68].mxu1 }
 0x176   : > { %v1202_v30 = vadd.f32 %v1187_v61, %v1055_v41  ;;  %v2347_v38 = vpop.f32.mrb[69].mxu1  ;;  %v3054_v41 = vld [vmem:[%s3103_s2] ss:$0 sm:$0xff] }
 0x177   : > { %v1190_v40 = vpop.f32.mrb[70].mxu1 }
 0x178   : > { %v1672_v26 = vpop.f32.mrb[68].mxu0  ;;  %v3047_v1 = vadd.f32 %v1368_v19, %v1202_v30  ;;  %v1203_v29 = vadd.f32 %v1190_v40, %v1056_v48  ;;  %v2348_v32 = vpop.f32.mrb[71].mxu1 }
 0x179   : > { %v2415_v42 = vpop.f32.mrb[69].mxu0 }
 0x17a   : > { %v1675_v45 = vpop.f32.mrb[70].mxu0  ;;  %v3049_v47 = vadd.f32 %v1371_v34, %v1203_v29 }
 0x17b   : > { %v2416_v33 = vpop.f32.mrb[71].mxu0 }
 0x17d   : > { %v1525_v14 = vpop.f32.mrb[72].mxu1 }
 0x17e   : > { %v1564_v37 = vadd.f32 %v1525_v14, %v1375_v53  ;;  %v2387_v50 = vpop.f32.mrb[73].mxu1 }
 0x17f   : > { %v1528_v51 = vpop.f32.mrb[74].mxu1 }
 0x180   : > { %v1680_v36 = vpop.f32.mrb[72].mxu0  ;;  %v1711_v52 = vadd.f32 %v1672_v26, %v1564_v37  ;;  %v1565_v48 = vadd.f32 %v1528_v51, %v1376_v63  ;;  %v2388_v39 = vpop.f32.mrb[75].mxu1 }
 0x181   : > { %v2419_v54 = vpop.f32.mrb[73].mxu0 }
 0x182   : > { %v1683_v62 = vpop.f32.mrb[74].mxu0  ;;  %v1728_v43 = vadd.f32 %v3054_v41, %v1711_v52  ;;  %v1712_v44 = vadd.f32 %v1675_v45, %v1565_v48 }
 0x183   : > { %v2420_v3 = vpop.f32.mrb[75].mxu0 }
 0x184   : > { %v1750_v53 = vmul.f32 %v3056_v57, %v1728_v43  ;;  %v1729_v7 = vadd.f32 %v3054_v41, %v1712_v44  ;;  %vm1739_vm8 = vcmp.ge.f32.partialorder %v1728_v43, 0.0 }
 0x185   : > { %v1533_v49 = vpop.f32.mrb[76].mxu1 }
 0x186   : > { %vm1740_vm9 = vcmp.ge.f32.partialorder %v1729_v7, 0.0  ;;  %v1751_v55 = vmul.f32 %v3056_v57, %v1729_v7  ;;  %v1566_v63 = vadd.f32 %v1533_v49, %v3035_v60  ;;  %v2391_v46 = vpop.f32.mrb[77].mxu1  ;;  %v1760_v56 = vsel %vm1739_vm8, %v1728_v43, %v1750_v53 }
 0x187   : > { %v1536_v8 = vpop.f32.mrb[78].mxu1 }
 0x188   : > { %v1688_v11 = vpop.f32.mrb[76].mxu0  ;;  %v1761_v15 = vsel %vm1740_vm9, %v1729_v7, %v1751_v55  ;;  %v1713_v59 = vadd.f32 %v1680_v36, %v1566_v63  ;;  %v1567_v2 = vadd.f32 %v1536_v8, %v3037_v16  ;;  %v2392_v18 = vpop.f32.mrb[79].mxu1 }
 0x189   : > { %v2423_v0 = vpop.f32.mrb[77].mxu0  ;;  %v2080_v20 = vpack.c.bf16 %v1761_v15, %v1760_v56 }
 0x18a   : > { %v1691_v4 = vpop.f32.mrb[78].mxu0  ;;  %v1730_v60 = vadd.f32 %v3054_v41, %v1713_v59  ;;  %v1714_v10 = vadd.f32 %v1683_v62, %v1567_v2 }
 0x18b   : > { %v2424_v22 = vpop.f32.mrb[79].mxu0  ;;  %2081 = vst [vmem:[%s3067_s26] sm:$0xff] %v2080_v20  }
 0x18c   : > { %v1752_v58 = vmul.f32 %v3056_v57, %v1730_v60  ;;  %v1731_v12 = vadd.f32 %v3054_v41, %v1714_v10  ;;  %vm1741_vm10 = vcmp.ge.f32.partialorder %v1730_v60, 0.0 }
 0x18d   : > { %v1541_v17 = vpop.f32.mrb[80].mxu1 }
 0x18e   : > { %vm1742_vm11 = vcmp.ge.f32.partialorder %v1731_v12, 0.0  ;;  %v1753_v13 = vmul.f32 %v3056_v57, %v1731_v12  ;;  %v1568_v16 = vadd.f32 %v1541_v17, %v3039_v5  ;;  %v2395_v25 = vpop.f32.mrb[81].mxu1  ;;  %v1762_v19 = vsel %vm1741_vm10, %v1730_v60, %v1752_v58 }
 0x18f   : > { %v1544_v27 = vpop.f32.mrb[82].mxu1 }
 0x190   : > { %v1696_v6 = vpop.f32.mrb[80].mxu0  ;;  %v1763_v9 = vsel %vm1742_vm11, %v1731_v12, %v1753_v13  ;;  %v1715_v21 = vadd.f32 %v1688_v11, %v1568_v16  ;;  %v1569_v31 = vadd.f32 %v1544_v27, %v3041_v23  ;;  %v2396_v34 = vpop.f32.mrb[83].mxu1 }
 0x191   : > { %v2427_v24 = vpop.f32.mrb[81].mxu0  ;;  %v2085_v61 = vpack.c.bf16 %v1763_v9, %v1762_v19 }
 0x192   : > { %v1699_v30 = vpop.f32.mrb[82].mxu0  ;;  %v1732_v38 = vadd.f32 %v3054_v41, %v1715_v21  ;;  %v1716_v40 = vadd.f32 %v1691_v4, %v1569_v31 }
 0x193   : > { %v2428_v26 = vpop.f32.mrb[83].mxu0  ;;  %2097 = vst [vmem:[%s3067_s26 + $0x8] sm:$0xff] %v2085_v61  }
 0x194   : > { %v1754_v29 = vmul.f32 %v3056_v57, %v1732_v38  ;;  %v1733_v5 = vadd.f32 %v3054_v41, %v1716_v40  ;;  %vm1743_vm12 = vcmp.ge.f32.partialorder %v1732_v38, 0.0 }
 0x195   : > { %v1549_v32 = vpop.f32.mrb[84].mxu1 }
 0x196   : > { %vm1744_vm13 = vcmp.ge.f32.partialorder %v1733_v5, 0.0  ;;  %v1755_v42 = vmul.f32 %v3056_v57, %v1733_v5  ;;  %v1570_v23 = vadd.f32 %v1549_v32, %v3043_v28  ;;  %v2399_v45 = vpop.f32.mrb[85].mxu1  ;;  %v1764_v37 = vsel %vm1743_vm12, %v1732_v38, %v1754_v29 }
 0x197   : > { %v1552_v33 = vpop.f32.mrb[86].mxu1 }
 0x198   : > { %v1704_v14 = vpop.f32.mrb[84].mxu0  ;;  %v1765_v50 = vsel %vm1744_vm13, %v1733_v5, %v1755_v42  ;;  %v1717_v51 = vadd.f32 %v1696_v6, %v1570_v23  ;;  %v1571_v36 = vadd.f32 %v1552_v33, %v3045_v35  ;;  %v2400_v52 = vpop.f32.mrb[87].mxu1 }
 0x199   : > { %v2431_v48 = vpop.f32.mrb[85].mxu0  ;;  %v2090_v39 = vpack.c.bf16 %v1765_v50, %v1764_v37 }
 0x19a   : > { %v1707_v54 = vpop.f32.mrb[86].mxu0  ;;  %v1734_v62 = vadd.f32 %v3054_v41, %v1717_v51  ;;  %v1718_v43 = vadd.f32 %v1699_v30, %v1571_v36 }
 0x19b   : > { %v2432_v44 = vpop.f32.mrb[87].mxu0  ;;  %2098 = vst [vmem:[%s3067_s26 + $0x10] sm:$0xff] %v2090_v39  }
 0x19c   : > { %v1756_v3 = vmul.f32 %v3056_v57, %v1734_v62  ;;  %v1735_v28 = vadd.f32 %v3054_v41, %v1718_v43  ;;  %vm1745_vm14 = vcmp.ge.f32.partialorder %v1734_v62, 0.0 }
 0x19d   : > { %v1557_v53 = vpop.f32.mrb[88].mxu1 }
 0x19e   : > { %vm1746_vm15 = vcmp.ge.f32.partialorder %v1735_v28, 0.0  ;;  %v1757_v7 = vmul.f32 %v3056_v57, %v1735_v28  ;;  %v1572_v35 = vadd.f32 %v1557_v53, %v3047_v1  ;;  %v2403_v49 = vpop.f32.mrb[89].mxu1  ;;  %v1766_v63 = vsel %vm1745_vm14, %v1734_v62, %v1756_v3 }
 0x19f   : > { %v1560_v55 = vpop.f32.mrb[90].mxu1 }
 0x1a0   : > { %v1767_v46 = vsel %vm1746_vm15, %v1735_v28, %v1757_v7  ;;  %v1719_v8 = vadd.f32 %v1704_v14, %v1572_v35  ;;  %v1573_v11 = vadd.f32 %v1560_v55, %v3049_v47  ;;  %v2404_v56 = vpop.f32.mrb[91].mxu1 }
 0x1a1   : > { %v2095_v15 = vpack.c.bf16 %v1767_v46, %v1766_v63 }
 0x1a2   : > { %v1736_v59 = vadd.f32 %v3054_v41, %v1719_v8  ;;  %v1720_v2 = vadd.f32 %v1707_v54, %v1573_v11 }
 0x1a3   : > { %2099 = vst [vmem:[%s3067_s26 + $0x18] sm:$0xff] %v2095_v15  }
 0x1a4   : > { %vm1747_vm0 = vcmp.ge.f32.partialorder %v1736_v59, 0.0  ;;  %v1758_v18 = vmul.f32 %v3056_v57, %v1736_v59  ;;  %v1737_v1 = vadd.f32 %v3054_v41, %v1720_v2 }
 0x1a6   : > { %v1768_v0 = vsel %vm1747_vm0, %v1736_v59, %v1758_v18  ;;  %vm1748_vm1 = vcmp.ge.f32.partialorder %v1737_v1, 0.0  ;;  %v1759_v20 = vmul.f32 %v3056_v57, %v1737_v1 }
 0x1a7   : > { %v2075_v4 = vpack.c.bf16 %v1768_v0, %v1768_v0 }
 0x1a8   : > { %v1769_v60 = vsel %vm1748_vm1, %v1737_v1, %v1759_v20 }
 0x1a9   : > { %1818 = vst [vmem:[%s3067_s26 + $0x20] sm:$0xf] %v2075_v4  ;;  %v2076_v47 = vpack.c.bf16 %v1769_v60, %v1769_v60 }
 0x1ab   : > { %1819 = vst [vmem:[%s3067_s26 + $0x24] sm:$0x7] %v2076_v47 }
 0x1ac PF: > { %s15_s17 = sadd.s32 1, %s2522_s17  }
 0x1ad   : > { %p12_p4 = scmp.ge.s32.totalorder %s15_s17, 4  }
 0x1af   :  { %14 = sbr.rel (!%p12_p4) target bundleno = 2 (0x2), region = 74 }

// kernel: feature_extractor_forward.11
= control target key start
LH: loop header
LB: loop body
LE: loop exit
PB: predicated region body
PF: predicated region fallthrough
CT: control target
= control target key end

     0   :  { %s1898_s17 = smov 0   ;;  %s2158_s0 = inlined_call_operand.vmem [shape: bf16[2,1,36,96], index: 0, kind: input, shape index: {}]   ;;  %s2159_s1 = inlined_call_operand.vmem [shape: bf16[9,96,128], index: 1, kind: input, shape index: {}]   ;;  %s2160_s2 = inlined_call_operand.vmem [shape: f32[1,128], index: 2, kind: input, shape index: {}]   ;;  %s2161_s3 = inlined_call_operand.<no memory space> [shape: f32[1,1], index: 3, kind: input, shape index: {}]   ;;  %s2162_s4 = inlined_call_operand.vmem [shape: bf16[2,22,128], index: 4, kind: output, shape index: {}]  }
   0x1   :  { %9 = sst [smem:[#allocation2]] %s2161_s3 }
   0x2 LB: > { %s1367_s18 = sadd.s32 4294967295, %s1868_s17   ;;  %p1371_p0 = scmp.ge.s32.totalorder %s1868_s17, 1  ;;  %s1868_s17 = sphi %s1898_s17, %s15_s17  }
   0x3   : > { %p163_p1 = scmp.lt.s32.totalorder %s1868_s17, 3 }
   0x5   : > { %p164_p2 = pnand %p1371_p0, %p163_p1 }
   0x6   : > { %v1795_v0 = vld [vmem:[%s2159_s1 + $0x30] sm:$0xff] (!%p164_p2)   ;;  %p189_p3 = scmp.lt.s32.totalorder (!%p164_p2), %s1367_s18, 1  ;;  %v1796_v1 = vld [vmem:[%s2159_s1] sm:$0xff] (!%p164_p2)   ;;  %v1797_v2 = vld [vmem:[%s2159_s1 + $0x38] sm:$0xff] (!%p164_p2)   ;;  %vm289_vm0 = vcmask (!%p164_p2), 785408   ;;  %vm453_vm2 = vcmask (!%p164_p2), 1046528  }
   0x7   : > { %167 = sbr.rel (%p164_p2) target bundleno = 352 (0x160), region = 36  ;;  %1641 = vmatprep.subr.bf16.mxu0 (!%p164_p2), %v1795_v0  ;;  %1657 = vmatprep.subr.bf16.mxu1 (!%p164_p2), %v1796_v1  ;;  %v1798_v3 = vld [vmem:[%s2159_s1 + $0x8] sm:$0xff] (!%p164_p2)   ;;  %v1799_v4 = vld [vmem:[%s2159_s1 + $0x40] sm:$0xff] (!%p164_p2)   ;;  %v1800_v5 = vld [vmem:[%s2159_s1 + $0x10] sm:$0xff] (!%p164_p2)   ;;  %vm237_vm1 = vsmask.f32 (!%p164_p2), 7424 }
   0x8   : > { %1642 = vmatpush3.bf16.msra.mxu0 (!%p164_p2), %v1795_v0  ;;  %1658 = vmatpush3.bf16.msra.mxu1 (!%p164_p2), %v1796_v1  ;;  %v1801_v6 = vld [vmem:[%s2159_s1 + $0x48] sm:$0xff] (!%p164_p2)   ;;  %v1802_v7 = vld [vmem:[%s2159_s1 + $0x18] sm:$0xff] (!%p164_p2)   ;;  %v1803_v8 = vld [vmem:[%s2159_s1 + $0x50] sm:$0xff] (!%p164_p2)   ;;  %vm577_vm3 = vcmask (!%p164_p2), 1044480   ;;  %vm691_vm4 = vsmask.f32 (!%p164_p2), 4352 }
   0x9   : > { %1643 = vmatprep.subr.bf16.mxu0 (!%p164_p2), %v1797_v2  ;;  %1659 = vmatprep.subr.bf16.mxu1 (!%p164_p2), %v1798_v3  ;;  %v1804_v11 = vld [vmem:[%s2159_s1 + $0x20] sm:$0xff] (!%p164_p2)   ;;  %v1805_v14 = vld [vmem:[%s2159_s1 + $0x58] sm:$0xff] (!%p164_p2)   ;;  %v1806_v15 = vld [vmem:[%s2159_s1 + $0x28] sm:$0xff] (!%p164_p2)   ;;  %vm937_vm5 = vcmask (!%p164_p2), 1045504   ;;  %vm1051_vm6 = vsmask.f32 (!%p164_p2), 5376 }
   0xa   : > { %v1810_v23 = vld [vmem:[%s2159_s1 + $0x60] sm:$0xff] (!%p164_p2)   ;;  %v1811_v26 = vld [vmem:[%s2159_s1 + $0x90] sm:$0xff] (!%p164_p2)   ;;  %v1812_v28 = vld [vmem:[%s2159_s1 + $0x68] sm:$0xff] (!%p164_p2)   ;;  %s1285_s5 = sld [smem:[#allocation2]] (!%p164_p2) }
   0xb   : > { %v1813_v29 = vld [vmem:[%s2159_s1 + $0x98] sm:$0xff] (!%p164_p2)   ;;  %v1814_v30 = vld [vmem:[%s2159_s1 + $0x70] sm:$0xff] (!%p164_p2)   ;;  %v1815_v32 = vld [vmem:[%s2159_s1 + $0xa0] sm:$0xff] (!%p164_p2)  }
   0xc   : > { %1644 = vmatpush3.bf16.msra.mxu0 (!%p164_p2), %v1797_v2  ;;  %1660 = vmatpush3.bf16.msra.mxu1 (!%p164_p2), %v1798_v3  ;;  %v1816_v42 = vld [vmem:[%s2159_s1 + $0x78] sm:$0xff] (!%p164_p2)   ;;  %v1817_v46 = vld [vmem:[%s2159_s1 + $0xa8] sm:$0xff] (!%p164_p2)   ;;  %v1818_v48 = vld [vmem:[%s2159_s1 + $0x80] sm:$0xff] (!%p164_p2)  }
   0xd   : > { %1645 = vmatprep.subr.bf16.mxu0 (!%p164_p2), %v1799_v4  ;;  %1661 = vmatprep.subr.bf16.mxu1 (!%p164_p2), %v1800_v5  ;;  %v1819_v49 = vld [vmem:[%s2159_s1 + $0xb0] sm:$0xff] (!%p164_p2)   ;;  %v1820_v52 = vld [vmem:[%s2159_s1 + $0x88] sm:$0xff] (!%p164_p2)   ;;  %v1821_v53 = vld [vmem:[%s2159_s1 + $0xb8] sm:$0xff] (!%p164_p2)  }
   0xe   : > { %s2164_s18 = smov (!%p189_p3, %s1367_s18), 1  ;;  %v1823_v58 = vld [vmem:[%s2159_s1 + $0xc0] sm:$0xff]   ;;  %v1826_v59 = vld [vmem:[%s2159_s1 + $0xf0] sm:$0xff]   ;;  %v1827_v1 = vld [vmem:[%s2159_s1 + $0xc8] sm:$0xff]  }
   0xf   : > { %s1785_s30 = smul.u32 20, %s2164_s18  ;;  %v1828_v3 = vld [vmem:[%s2159_s1 + $0xf8] sm:$0xff]  }
  0x10   : > { %1646 = vmatpush3.bf16.msra.mxu0 %v1799_v4  ;;  %1662 = vmatpush3.bf16.msra.mxu1 %v1800_v5  ;;  %s1786_s8 = smul.u32 12, %s2164_s18 }
  0x11   : > { %s1936_s11 = scalar_lea.vmem %s2158_s0, %s1785_s30  ;;  %1647 = vmatprep.subr.bf16.mxu0 %v1801_v6  ;;  %1663 = vmatprep.subr.bf16.mxu1 %v1802_v7 }
  0x12   : > { %v200_v9 = vld [vmem:[%s1936_s11] sm:$0xf]  ;;  %v201_v10 = vld [vmem:[%s1936_s11 + $0x4] sm:$0xf]  ;;  %v1947_v13 = vld [vmem:[%s1936_s11 + $0x8] ss:$0 sps:$4 sm:$0xff]   ;;  %s198_s12 = scalar_lea.vmem %s2162_s4, %s1786_s8 }
  0x13   : > { %v1386_v12 = vcombine.low %v200_v9, %v201_v10  ;;  %v246_v18 = vshll.u32 %v1947_v13, 16  ;;  %v250_v21 = vshrl.u32 %v1947_v13, 16  ;;  %v1809_v25 = vld [vmem:[%s1936_s11 + $0x8] ss:$0 sps:$4 sm:$0x77]   ;;  %v455_v34 = vrot.slane %v1947_v13, 1 }
  0x14   : > { %1648 = vmatpush3.bf16.msra.mxu0 %v1801_v6  ;;  %1664 = vmatpush3.bf16.msra.mxu1 %v1802_v7  ;;  %v436_v31 = vld [vmem:[%s1936_s11] sm:$0xe]  ;;  %v1984_v36 = vld [vmem:[%s1936_s11 + $0x4] sm:$0xf]  ;;  %v1987_v37 = vld [vmem:[%s1936_s11 + $0x8] sm:$0xf] }
  0x15   : > { %v239_v16 = vshrl.u32 %v1386_v12, 16  ;;  %v241_v17 = vshll.u32 %v1386_v12, 16  ;;  %1669 = vmatprep.mubr.msk.bf16.mxu1 %vm289_vm0, %v1386_v12  ;;  %1649 = vmatprep.subr.bf16.mxu0 %v1803_v8  ;;  %v248_v20 = vrot.slane %v246_v18, 1  ;;  %v1417_v33 = vcombine.low %v436_v31, %v201_v10  ;;  %v550_v35 = vld [vmem:[%s1936_s11] sm:$0x8]  ;;  %v1829_v6 = vld [vmem:[%s2159_s1 + $0xd0] sm:$0xff]  }
  0x16   : > { %1665 = vmatprep.subr.bf16.mxu1 %v1804_v11  ;;  %v553_v38 = vld [vmem:[%s1936_s11 + $0xc] sm:$0x3]  ;;  %v1438_v40 = vcombine.low %v550_v35, %v1984_v36  ;;  %v1481_v5 = vcombine.low %v1984_v36, %v1987_v37  ;;  %v1830_v7 = vld [vmem:[%s2159_s1 + $0x100] sm:$0xff]   ;;  %v911_v10 = vld [vmem:[%s1936_s11 + $0x8] sm:$0xf] }
  0x17   : > { %v243_v19 = vrot.slane %v241_v17, 1  ;;  %v252_v27 = vor.u32 %v250_v21, %v248_v20  ;;  %v454_v39 = vrot.slane %v1417_v33, 1  ;;  %v1439_v41 = vcombine.low %v1987_v37, %v553_v38  ;;  %v2015_v54 = vld [vmem:[%s1936_s11 + $0xc] sm:$0x7]  ;;  %v910_v9 = vld [vmem:[%s1936_s11 + $0x4] sm:$0xc] }
  0x18   : > { %1650 = vmatpush3.bf16.msra.mxu0 %v1803_v8  ;;  %1666 = vmatpush3.bf16.msra.mxu1 %v1804_v11  ;;  %v578_v44 = vrot.slane %v1438_v40, 3  ;;  %v693_v50 = vshrl.u32 %v1438_v40, 16  ;;  %v696_v51 = vshll.u32 %v1438_v40, 16  ;;  %v1460_v57 = vcombine.low %v1987_v37, %v2015_v54  ;;  %v1831_v8 = vld [vmem:[%s2159_s1 + $0xd8] sm:$0xff]   ;;  %v912_v11 = vld [vmem:[%s1936_s11 + $0xc] sm:$0xf] }
  0x19   : > { %v244_v22 = vor.u32 %v243_v19, %v239_v16  ;;  %1651 = vmatprep.subr.bf16.mxu0 %v1805_v14  ;;  %1667 = vmatprep.subr.bf16.mxu1 %v1806_v15  ;;  %v456_v43 = vsel %vm453_vm2, %v454_v39, %v455_v34  ;;  %v579_v45 = vrot.slane %v1439_v41, 3  ;;  %v1034_v12 = vld [vmem:[%s1936_s11 + $0x10] sm:$0x3]  ;;  %v1832_v13 = vld [vmem:[%s2159_s1 + $0x108] sm:$0xff]   ;;  %v1833_v16 = vld [vmem:[%s2159_s1 + $0xe0] sm:$0xff]   ;;  %v1482_v39 = vcombine.low %v2015_v54, %v2015_v54 }
  0x1a   : > { %v695_v55 = vrot.slane %v693_v50, 3  ;;  %v698_v56 = vrot.slane %v696_v51, 4  ;;  %v701_v60 = vshrl.u32 %v1460_v57, 16  ;;  %v704_v61 = vshll.u32 %v1460_v57, 16  ;;  %v1834_v17 = vld [vmem:[%s2159_s1 + $0x110] sm:$0xff]   ;;  %v1838_v35 = vld [vmem:[%s2159_s1 + $0x120] sm:$0xff]  }
  0x1b   : > { %v249_v24 = vsel %vm237_vm1, %v244_v22, %v248_v20  ;;  %v580_v47 = vsel %vm577_vm3, %v578_v44, %v579_v45  ;;  %v1162_v20 = vld [vmem:[%s1936_s11 + $0x4] sm:$0x8]  ;;  %v913_v21 = vld [vmem:[%s1936_s11 + $0x10] sm:$0x1]  ;;  %v1858_v57 = vld [vmem:[%s2159_s1 + $0x198] sm:$0xff]  }
  0x1c   : > { %1653 = vmatprep.mubr.msk.bf16.mxu0 %vm289_vm0, %v249_v24  ;;  %1652 = vmatpush3.bf16.msra.mxu0 %v1805_v14  ;;  %v699_v62 = vor.u32 %v698_v56, %v695_v55  ;;  %v703_v63 = vrot.slane %v701_v60, 3  ;;  %v706_v0 = vrot.slane %v704_v61, 4  ;;  %v1503_v14 = vcombine.low %v910_v9, %v911_v10  ;;  %v1841_v36 = vld [vmem:[%s2159_s1 + $0x150] sm:$0xff]   ;;  %v1848_v50 = vld [vmem:[%s2159_s1 + $0x140] sm:$0xff]   ;;  %v1856_v55 = vld [vmem:[%s2159_s1 + $0x188] sm:$0xff]  }
  0x1d   : > { %1668 = vmatpush3.bf16.msra.mxu1 %v1806_v15  ;;  %1673 = vmatprep.subr.bf16.mxu0 %v1810_v23  ;;  %v2056_v15 = vcombine.low %v912_v11, %v1034_v12  ;;  %v1546_v24 = vcombine.low %v1162_v20, %v911_v10  ;;  %v1849_v51 = vld [vmem:[%s2159_s1 + $0x170] sm:$0xff]   ;;  %v1855_v54 = vld [vmem:[%s2159_s1 + $0x180] sm:$0xff]  }
  0x1e   : > { %1689 = vmatprep.subr.bf16.mxu1 %v1811_v26  ;;  %v2028_v2 = vor.u32 %v706_v0, %v703_v63  ;;  %v1053_v18 = vshrl.u32 %v1503_v14, 16  ;;  %v1056_v19 = vshll.u32 %v1503_v14, 16  ;;  %v938_v37 = vrot.slane %v1503_v14, 2  ;;  %v1857_v56 = vld [vmem:[%s2159_s1 + $0x190] sm:$0xff]  }
  0x1f   : > { %1654 = vmatmul.mubr.msk.bf16.vlgmr.msra.gmra.mrb[0].mxu0 %vm289_vm0, %v252_v27  ;;  %v1061_v22 = vshrl.u32 %v2056_v15, 16  ;;  %v1836_v27 = vld [vmem:[%s2159_s1 + $0x118] sm:$0xff]  }
  0x20   : > { %1670 = vmatmul.mubr.msk.bf16.vlgmr.msra.gmra.mrb[0].mxu1 %vm289_vm0, %v1809_v25  ;;  %1674 = vmatpush3.bf16.msra.mxu0 %v1810_v23  ;;  %v708_v4 = vsel %vm691_vm4, %v699_v62, %v2028_v2  ;;  %v1064_v23 = vshll.u32 %v2056_v15, 16  ;;  %v1180_v25 = vrot.slane %v2056_v15, 3  ;;  %v1058_v31 = vrot.slane %v1056_v19, 3 }
  0x21   : > { %1690 = vmatpush3.bf16.msra.mxu1 %v1811_v26  ;;  %1675 = vmatprep.subr.bf16.mxu0 %v1812_v28  ;;  %v1835_v26 = vld [vmem:[%s2159_s1 + $0xe8] sm:$0xff]  }
  0x22   : > { %1691 = vmatprep.subr.bf16.mxu1 %v1813_v29  ;;  %1685 = vmatprep.mubr.msk.bf16.mxu0 %vm289_vm0, %v456_v43  ;;  %v1066_v33 = vrot.slane %v1064_v23, 3  ;;  %v1843_v43 = vld [vmem:[%s2159_s1 + $0x158] sm:$0xff]  }
  0x23   : > { %1701 = vmatprep.mubr.msk.bf16.mxu1 %vm289_vm0, %v580_v47  ;;  %v1845_v47 = vld [vmem:[%s2159_s1 + $0x160] sm:$0xff]  }
  0x24   : > { %1676 = vmatpush3.bf16.msra.mxu0 %v1812_v28  ;;  %v1179_v28 = vrot.slane %v1546_v24, 3 }
  0x25   : > { %1692 = vmatpush3.bf16.msra.mxu1 %v1813_v29  ;;  %1677 = vmatprep.subr.bf16.mxu0 %v1814_v30  ;;  %v1504_v29 = vcombine.low %v912_v11, %v913_v21 }
  0x26   : > { %1693 = vmatprep.subr.bf16.mxu1 %v1815_v32 }
  0x27   : > { %v939_v38 = vrot.slane %v1504_v29, 2 }
  0x28   : > { %1678 = vmatpush3.bf16.msra.mxu0 %v1814_v30  ;;  %v1055_v30 = vrot.slane %v1053_v18, 2 }
  0x29   : > { %1694 = vmatpush3.bf16.msra.mxu1 %v1815_v32  ;;  %1679 = vmatprep.subr.bf16.mxu0 %v1816_v42  ;;  %v1063_v32 = vrot.slane %v1061_v22, 2  ;;  %v940_v44 = vsel %vm937_vm5, %v938_v37, %v939_v38 }
  0x2a   : > { %1695 = vmatprep.subr.bf16.mxu1 %v1817_v46  ;;  %v1059_v40 = vor.u32 %v1058_v31, %v1055_v30 }
  0x2b   : > { %v1067_v41 = vor.u32 %v1066_v33, %v1063_v32 }
  0x2c   : > { %1680 = vmatpush3.bf16.msra.mxu0 %v1816_v42  ;;  %v1842_v42 = vld [vmem:[%s2159_s1 + $0x128] sm:$0xff]  }
  0x2d   : > { %1696 = vmatpush3.bf16.msra.mxu1 %v1817_v46  ;;  %1681 = vmatprep.subr.bf16.mxu0 %v1818_v48  ;;  %v1844_v46 = vld [vmem:[%s2159_s1 + $0x130] sm:$0xff]  }
  0x2e   : > { %1697 = vmatprep.subr.bf16.mxu1 %v1819_v49 }
  0x30   : > { %1682 = vmatpush3.bf16.msra.mxu0 %v1818_v48  ;;  %v1846_v48 = vld [vmem:[%s2159_s1 + $0x138] sm:$0xff]  }
  0x31   : > { %1698 = vmatpush3.bf16.msra.mxu1 %v1819_v49  ;;  %1683 = vmatprep.subr.bf16.mxu0 %v1820_v52  ;;  %v1847_v49 = vld [vmem:[%s2159_s1 + $0x168] sm:$0xff]  }
  0x32   : > { %1699 = vmatprep.subr.bf16.mxu1 %v1821_v53 }
  0x34   : > { %1684 = vmatpush3.bf16.msra.mxu0 %v1820_v52  ;;  %v1850_v52 = vld [vmem:[%s2159_s1 + $0x148] sm:$0xff]  }
  0x35   : > { %1700 = vmatpush3.bf16.msra.mxu1 %v1821_v53  ;;  %1705 = vmatprep.subr.bf16.mxu0 %v1823_v58  ;;  %v1851_v53 = vld [vmem:[%s2159_s1 + $0x178] sm:$0xff]  }
  0x36   : > { %1721 = vmatprep.subr.bf16.mxu1 %v1826_v59 }
  0x37   : > { %1686 = vmatmul.mubr.msk.bf16.vlgmr.msra.gmra.mrb[4].mxu0 %vm289_vm0, %v455_v34  ;;  %v2078_v34 = vsel %vm577_vm3, %v1179_v28, %v1180_v25 }
  0x38   : > { %1706 = vmatpush3.bf16.msra.mxu0 %v1823_v58  ;;  %1702 = vmatmul.mubr.msk.bf16.vlgmr.msra.gmra.mrb[4].mxu1 %vm289_vm0, %v579_v45  ;;  %v1068_v45 = vsel %vm1051_vm6, %v1059_v40, %v1067_v41  ;;  %v1859_v58 = vld [vmem:[%s2159_s1 + $0x1a0] sm:$0xff]  }
  0x39   : > { %1722 = vmatpush3.bf16.msra.mxu1 %v1826_v59  ;;  %1707 = vmatprep.subr.bf16.mxu0 %v1827_v1  ;;  %v1860_v59 = vld [vmem:[%s2159_s1 + $0x1a8] sm:$0xff]  }
  0x3a   : > { %1723 = vmatprep.subr.bf16.mxu1 %v1828_v3  ;;  %1717 = vmatprep.mubr.msk.bf16.mxu0 %vm289_vm0, %v708_v4 }
  0x3b   : > { %1733 = vmatprep.mubr.msk.bf16.mxu1 %vm289_vm0, %v1481_v5 }
  0x3c   : > { %1708 = vmatpush3.bf16.msra.mxu0 %v1827_v1 }
  0x3d   : > { %1724 = vmatpush3.bf16.msra.mxu1 %v1828_v3  ;;  %1709 = vmatprep.subr.bf16.mxu0 %v1829_v6 }
  0x3e   : > { %1725 = vmatprep.subr.bf16.mxu1 %v1830_v7 }
  0x40   : > { %1710 = vmatpush3.bf16.msra.mxu0 %v1829_v6 }
  0x41   : > { %1726 = vmatpush3.bf16.msra.mxu1 %v1830_v7  ;;  %1711 = vmatprep.subr.bf16.mxu0 %v1831_v8 }
  0x42   : > { %1727 = vmatprep.subr.bf16.mxu1 %v1832_v13 }
  0x44   : > { %1712 = vmatpush3.bf16.msra.mxu0 %v1831_v8 }
  0x45   : > { %1728 = vmatpush3.bf16.msra.mxu1 %v1832_v13  ;;  %1713 = vmatprep.subr.bf16.mxu0 %v1833_v16 }
  0x46   : > { %1729 = vmatprep.subr.bf16.mxu1 %v1834_v17 }
  0x48   : > { %1714 = vmatpush3.bf16.msra.mxu0 %v1833_v16 }
  0x49   : > { %1730 = vmatpush3.bf16.msra.mxu1 %v1834_v17  ;;  %1715 = vmatprep.subr.bf16.mxu0 %v1835_v26 }
  0x4a   : > { %1731 = vmatprep.subr.bf16.mxu1 %v1836_v27 }
  0x4c   : > { %1716 = vmatpush3.bf16.msra.mxu0 %v1835_v26 }
  0x4d   : > { %1732 = vmatpush3.bf16.msra.mxu1 %v1836_v27  ;;  %1737 = vmatprep.subr.bf16.mxu0 %v1838_v35 }
  0x4e   : > { %1753 = vmatprep.subr.bf16.mxu1 %v1841_v36 }
  0x4f   : > { %1718 = vmatmul.mubr.msk.bf16.vlgmr.msra.gmra.mrb[8].mxu0 %vm289_vm0, %v2028_v2 }
  0x50   : > { %1738 = vmatpush3.bf16.msra.mxu0 %v1838_v35  ;;  %1734 = vmatmul.mubr.msk.bf16.vlgmr.msra.gmra.mrb[8].mxu1 %vm289_vm0, %v1482_v39 }
  0x51   : > { %1754 = vmatpush3.bf16.msra.mxu1 %v1841_v36  ;;  %1739 = vmatprep.subr.bf16.mxu0 %v1842_v42 }
  0x52   : > { %1755 = vmatprep.subr.bf16.mxu1 %v1843_v43  ;;  %1749 = vmatprep.mubr.msk.bf16.mxu0 %vm289_vm0, %v940_v44 }
  0x53   : > { %1765 = vmatprep.mubr.msk.bf16.mxu1 %vm289_vm0, %v1068_v45 }
  0x54   : > { %1740 = vmatpush3.bf16.msra.mxu0 %v1842_v42 }
  0x55   : > { %1756 = vmatpush3.bf16.msra.mxu1 %v1843_v43  ;;  %1741 = vmatprep.subr.bf16.mxu0 %v1844_v46 }
  0x56   : > { %1757 = vmatprep.subr.bf16.mxu1 %v1845_v47 }
  0x58   : > { %1742 = vmatpush3.bf16.msra.mxu0 %v1844_v46 }
  0x59   : > { %1758 = vmatpush3.bf16.msra.mxu1 %v1845_v47  ;;  %1743 = vmatprep.subr.bf16.mxu0 %v1846_v48 }
  0x5a   : > { %1759 = vmatprep.subr.bf16.mxu1 %v1847_v49 }
  0x5c   : > { %1744 = vmatpush3.bf16.msra.mxu0 %v1846_v48 }
  0x5d   : > { %1760 = vmatpush3.bf16.msra.mxu1 %v1847_v49  ;;  %1745 = vmatprep.subr.bf16.mxu0 %v1848_v50 }
  0x5e   : > { %1761 = vmatprep.subr.bf16.mxu1 %v1849_v51 }
  0x60   : > { %1746 = vmatpush3.bf16.msra.mxu0 %v1848_v50  ;;  %v1555_v50 = vld [vmem:[%s2160_s2] ss:$0 sm:$0xff] }
  0x61   : > { %1762 = vmatpush3.bf16.msra.mxu1 %v1849_v51  ;;  %1747 = vmatprep.subr.bf16.mxu0 %v1850_v52 }
  0x62   : > { %1763 = vmatprep.subr.bf16.mxu1 %v1851_v53 }
  0x64   : > { %1748 = vmatpush3.bf16.msra.mxu0 %v1850_v52 }
  0x65   : > { %1764 = vmatpush3.bf16.msra.mxu1 %v1851_v53  ;;  %1769 = vmatprep.subr.bf16.mxu0 %v1855_v54  ;;  %v1289_v53 = vstv %s1285_s5 }
  0x67   : > { %1750 = vmatmul.mubr.msk.bf16.vlgmr.msra.gmra.mrb[12].mxu0 %vm289_vm0, %v939_v38 }
  0x68   : > { %1770 = vmatpush3.bf16.msra.mxu0 %v1855_v54  ;;  %1766 = vmatmul.mubr.msk.bf16.vlgmr.msra.gmra.mrb[12].mxu1 %vm289_vm0, %v1067_v41 }
  0x69   : > { %1771 = vmatprep.subr.bf16.mxu0 %v1856_v55  ;;  %1781 = vmatprep.mubr.msk.bf16.mxu0 %vm289_vm0, %v2078_v34 }
  0x6c   : > { %1772 = vmatpush3.bf16.msra.mxu0 %v1856_v55 }
  0x6d   : > { %1773 = vmatprep.subr.bf16.mxu0 %v1857_v56 }
  0x70   : > { %1774 = vmatpush3.bf16.msra.mxu0 %v1857_v56 }
  0x71   : > { %1775 = vmatprep.subr.bf16.mxu0 %v1858_v57 }
  0x74   : > { %1776 = vmatpush3.bf16.msra.mxu0 %v1858_v57 }
  0x75   : > { %1777 = vmatprep.subr.bf16.mxu0 %v1859_v58 }
  0x78   : > { %1778 = vmatpush3.bf16.msra.mxu0 %v1859_v58 }
  0x79   : > { %1779 = vmatprep.subr.bf16.mxu0 %v1860_v59 }
  0x7c   : > { %1780 = vmatpush3.bf16.msra.mxu0 %v1860_v59 }
  0x7f   : > { %1782 = vmatmul.mubr.msk.bf16.vlgmr.msra.gmra.mrb[16].mxu0 %vm289_vm0, %v1180_v25 }
  0xf2   : > { %v1655_v60 = vpop.f32.mrb[0].mxu0 }
  0xf3   : > { %v1671_v61 = vpop.f32.mrb[0].mxu1  ;;  %v330_v62 = vpop.f32.mrb[1].mxu0 }
  0xf4   : > { %v431_v63 = vadd.f32 %v1671_v61, %v1655_v60  ;;  %v422_v0 = vpop.f32.mrb[1].mxu1  ;;  %v1656_v1 = vpop.f32.mrb[2].mxu0 }
  0xf5   : > { %v423_v2 = vadd.f32 %v422_v0, %v330_v62  ;;  %v1672_v3 = vpop.f32.mrb[2].mxu1  ;;  %v333_v4 = vpop.f32.mrb[3].mxu0 }
  0xf6   : > { %v425_v5 = vpop.f32.mrb[3].mxu1 }
  0xf7   : > { %v426_v6 = vadd.f32 %v425_v5, %v333_v4 }
 0x10a   : > { %v1687_v7 = vpop.f32.mrb[4].mxu0 }
 0x10b   : > { %v549_v8 = vadd.f32 %v1687_v7, %v431_v63  ;;  %v533_v9 = vpop.f32.mrb[5].mxu0  ;;  %v1703_v10 = vpop.f32.mrb[4].mxu1 }
 0x10c   : > { %v547_v11 = vadd.f32 %v533_v9, %v423_v2  ;;  %v1688_v12 = vpop.f32.mrb[6].mxu0  ;;  %v657_v13 = vpop.f32.mrb[5].mxu1 }
 0x10d   : > { %v673_v14 = vadd.f32 %v1703_v10, %v549_v8  ;;  %v536_v15 = vpop.f32.mrb[7].mxu0  ;;  %v1704_v16 = vpop.f32.mrb[6].mxu1 }
 0x10e   : > { %v548_v17 = vadd.f32 %v536_v15, %v426_v6  ;;  %v671_v18 = vadd.f32 %v657_v13, %v547_v11  ;;  %v660_v19 = vpop.f32.mrb[7].mxu1 }
 0x110   : > { %v672_v20 = vadd.f32 %v660_v19, %v548_v17 }
 0x122   : > { %v1719_v21 = vpop.f32.mrb[8].mxu0 }
 0x123   : > { %v801_v22 = vadd.f32 %v1719_v21, %v673_v14  ;;  %v785_v23 = vpop.f32.mrb[9].mxu0  ;;  %v1735_v24 = vpop.f32.mrb[8].mxu1 }
 0x124   : > { %v799_v25 = vadd.f32 %v785_v23, %v671_v18  ;;  %v1720_v26 = vpop.f32.mrb[10].mxu0  ;;  %v893_v27 = vpop.f32.mrb[9].mxu1 }
 0x125   : > { %v909_v28 = vadd.f32 %v1735_v24, %v801_v22  ;;  %v788_v29 = vpop.f32.mrb[11].mxu0  ;;  %v1736_v30 = vpop.f32.mrb[10].mxu1 }
 0x126   : > { %v800_v31 = vadd.f32 %v788_v29, %v672_v20  ;;  %v907_v32 = vadd.f32 %v893_v27, %v799_v25  ;;  %v896_v33 = vpop.f32.mrb[11].mxu1 }
 0x128   : > { %v908_v34 = vadd.f32 %v896_v33, %v800_v31 }
 0x13a   : > { %v1751_v35 = vpop.f32.mrb[12].mxu0 }
 0x13b   : > { %v1033_v36 = vadd.f32 %v1751_v35, %v909_v28  ;;  %v1017_v37 = vpop.f32.mrb[13].mxu0  ;;  %v1767_v38 = vpop.f32.mrb[12].mxu1 }
 0x13c   : > { %v1031_v39 = vadd.f32 %v1017_v37, %v907_v32  ;;  %v1752_v40 = vpop.f32.mrb[14].mxu0  ;;  %v1145_v41 = vpop.f32.mrb[13].mxu1 }
 0x13d   : > { %v1161_v42 = vadd.f32 %v1767_v38, %v1033_v36  ;;  %v1020_v43 = vpop.f32.mrb[15].mxu0  ;;  %v1768_v44 = vpop.f32.mrb[14].mxu1 }
 0x13e   : > { %v1032_v45 = vadd.f32 %v1020_v43, %v908_v34  ;;  %v1159_v46 = vadd.f32 %v1145_v41, %v1031_v39  ;;  %v1148_v47 = vpop.f32.mrb[15].mxu1 }
 0x140   : > { %v1160_v48 = vadd.f32 %v1148_v47, %v1032_v45 }
 0x152   : > { %v1783_v49 = vpop.f32.mrb[16].mxu0 }
 0x153   : > { %v1274_v51 = vadd.f32 %v1783_v49, %v1161_v42  ;;  %v1258_v52 = vpop.f32.mrb[17].mxu0 }
 0x154   : > { %v1272_v54 = vadd.f32 %v1258_v52, %v1159_v46  ;;  %v1784_v55 = vpop.f32.mrb[18].mxu0 }
 0x155   : > { %v1284_v56 = vadd.f32 %v1555_v50, %v1274_v51  ;;  %v1261_v57 = vpop.f32.mrb[19].mxu0 }
 0x156   : > { %v1282_v58 = vadd.f32 %v1555_v50, %v1272_v54  ;;  %v1273_v59 = vadd.f32 %v1261_v57, %v1160_v48 }
 0x157   : > { %vm1288_vm7 = vcmp.ge.f32.partialorder %v1284_v56, 0.0  ;;  %v1292_v60 = vmul.f32 %v1289_v53, %v1284_v56 }
 0x158   : > { %v1290_v61 = vmul.f32 %v1289_v53, %v1282_v58  ;;  %v1283_v62 = vadd.f32 %v1555_v50, %v1273_v59  ;;  %vm1286_vm8 = vcmp.ge.f32.partialorder %v1282_v58, 0.0 }
 0x159   : > { %v1295_v63 = vsel %vm1288_vm7, %v1284_v56, %v1292_v60 }
 0x15a   : > { %v1563_v0 = vpack.c.bf16 %v1295_v63, %v1295_v63  ;;  %vm1287_vm9 = vcmp.ge.f32.partialorder %v1283_v62, 0.0  ;;  %v1291_v1 = vmul.f32 %v1289_v53, %v1283_v62  ;;  %v1293_v2 = vsel %vm1286_vm8, %v1282_v58, %v1290_v61 }
 0x15c   : > { %1311 = vst [vmem:[%s198_s12 + $0x8] sm:$0x7] %v1563_v0  ;;  %v1294_v3 = vsel %vm1287_vm9, %v1283_v62, %v1291_v1 }
 0x15d   : > { %v1567_v4 = vpack.c.bf16 %v1294_v3, %v1293_v2 }
 0x15f   : > { %1568 = vst [vmem:[%s198_s12] sm:$0xff] %v1567_v4  }
 0x160 PF: > { %s15_s17 = sadd.s32 1, %s1868_s17  }
 0x161   : > { %p12_p4 = scmp.ge.s32.totalorder %s15_s17, 4  }
 0x163   :  { %14 = sbr.rel (!%p12_p4) target bundleno = 2 (0x2), region = 74 }

</bundles_post_ra>
